<compile_context>
chip_gen: v5e
topology: v5e:2x2
jax: 0.10.0
libtpu: 0.0.40
codegen_flags: <defaults>
</compile_context>

<pallas_src>
import functools

import jax
import jax.numpy as jnp
from jax.experimental import pallas as pl
from jax.experimental.pallas import tpu as pltpu

EPS = 1e-5
_VMEM_LIMIT = 40 * 1024 * 1024  # < 64 MiB v7x physical; raises v5e's 16 MiB default


# ---------------------------------------------------------------------------
# Padding / tiling helpers
# ---------------------------------------------------------------------------
def _round_up(x, m):
    return ((x + m - 1) // m) * m


def _plan_dim(dim, *, max_tile=2048, lane=128, base=512):
    """Return (padded_dim, tile): padded_dim % tile == 0, tile multiple of 128."""
    if dim <= max_tile:
        p = _round_up(dim, lane)
        return p, p
    p = _round_up(dim, base)
    tile = base
    for t in range(base, max_tile + 1, base):
        if p % t == 0:
            tile = t
    return p, tile


# ---------------------------------------------------------------------------
# Pallas kernels
# ---------------------------------------------------------------------------
def _encoder_kernel(x_ref, w1_ref, b1_ref, w2_ref, b2_ref, w3_ref, b3_ref,
                    w4_ref, b4_ref, z_ref, acc_ref):
    """Fused encoder: tiled (B,K)@(K,1024) accumulation over the padded K axis,
    then the small chain 1024->512->256->latent entirely in VMEM on the last
    K tile.  Weights arrive as bf16 (halved HBM traffic) and are upcast to f32
    in VMEM so accumulation is exact f32."""
    k = pl.program_id(0)

    @pl.when(k == 0)
    def _():
        acc_ref[...] = jnp.zeros_like(acc_ref)

    acc_ref[...] += jnp.dot(x_ref[...], w1_ref[...].astype(jnp.float32),
                            preferred_element_type=jnp.float32)

    @pl.when(k == pl.num_programs(0) - 1)
    def _():
        h = jnp.maximum(acc_ref[...] + b1_ref[...], 0.0)
        h = jnp.maximum(
            jnp.dot(h, w2_ref[...].astype(jnp.float32),
                    preferred_element_type=jnp.float32) + b2_ref[...], 0.0)
        h = jnp.maximum(
            jnp.dot(h, w3_ref[...].astype(jnp.float32),
                    preferred_element_type=jnp.float32) + b3_ref[...], 0.0)
        z_ref[...] = (jnp.dot(h, w4_ref[...].astype(jnp.float32),
                              preferred_element_type=jnp.float32) + b4_ref[...])


def _decoder_kernel(z_ref, w1_ref, b1_ref, w2_ref, b2_ref, w3_ref, b3_ref,
                    w4_ref, b4_ref, o_ref):
    """Fused decoder: latent->256->512->1024 chain (tiny, B_pad<=8 rows) is
    recomputed per fc4 N-tile so the N grid axis can stay "parallel" (megacore
    safe, no cross-step scratch).  The recompute hides under the streamed fc4
    weight-tile DMA.  Final layer streams (1024, TN) bf16 tiles of fc4."""
    h = jnp.maximum(
        jnp.dot(z_ref[...], w1_ref[...].astype(jnp.float32),
                preferred_element_type=jnp.float32) + b1_ref[...], 0.0)
    h = jnp.maximum(
        jnp.dot(h, w2_ref[...].astype(jnp.float32),
                preferred_element_type=jnp.float32) + b2_ref[...], 0.0)
    h = jnp.maximum(
        jnp.dot(h, w3_ref[...].astype(jnp.float32),
                preferred_element_type=jnp.float32) + b3_ref[...], 0.0)
    o_ref[...] = (jnp.dot(h, w4_ref[...].astype(jnp.float32),
                          preferred_element_type=jnp.float32) + b4_ref[...])


# ---------------------------------------------------------------------------
# Kernel wrappers
# ---------------------------------------------------------------------------
def encoder_forward(x_flat, enc, *, max_tile=2048):
    """x_flat: (B_pad, K) f32, batch already padded to a multiple of 8."""
    B_pad, K = x_flat.shape
    w1, b1 = enc["fc1"]["w"], enc["fc1"]["b"]
    w2, b2 = enc["fc2"]["w"], enc["fc2"]["b"]
    w3, b3 = enc["fc3"]["w"], enc["fc3"]["b"]
    w4, b4 = enc["fc4"]["w"], enc["fc4"]["b"]
    H1, H2, H3, L = w1.shape[1], w2.shape[1], w3.shape[1], w4.shape[1]

    K_pad, TK = _plan_dim(K, max_tile=max_tile)
    if K_pad != K:
        # Zero columns/rows contribute nothing to the K-reduction.
        x_flat = jnp.pad(x_flat, ((0, 0), (0, K_pad - K)))
        w1 = jnp.pad(w1, ((0, K_pad - K), (0, 0)))

    grid = (K_pad // TK,)
    return pl.pallas_call(
        _encoder_kernel,
        out_shape=jax.ShapeDtypeStruct((B_pad, L), jnp.float32),
        grid=grid,
        in_specs=[
            pl.BlockSpec((B_pad, TK), lambda k: (0, k)),
            pl.BlockSpec((TK, H1), lambda k: (k, 0)),      # streamed bf16 fc1 tiles
            pl.BlockSpec((1, H1), lambda k: (0, 0)),
            pl.BlockSpec((H1, H2), lambda k: (0, 0)),       # resident chain weights
            pl.BlockSpec((1, H2), lambda k: (0, 0)),
            pl.BlockSpec((H2, H3), lambda k: (0, 0)),
            pl.BlockSpec((1, H3), lambda k: (0, 0)),
            pl.BlockSpec((H3, L), lambda k: (0, 0)),
            pl.BlockSpec((1, L), lambda k: (0, 0)),
        ],
        out_specs=pl.BlockSpec((B_pad, L), lambda k: (0, 0)),
        scratch_shapes=[pltpu.VMEM((B_pad, H1), jnp.float32)],
        compiler_params=pltpu.CompilerParams(
            dimension_semantics=("arbitrary",),
            vmem_limit_bytes=_VMEM_LIMIT),
    )(x_flat, w1, b1.reshape(1, H1), w2, b2.reshape(1, H2),
      w3, b3.reshape(1, H3), w4, b4.reshape(1, L))


def decoder_forward(z, dec, *, max_tile=2048):
    """z: (B_pad, latent) f32.  Returns (B_pad, 3*num_points) f32."""
    B_pad, L = z.shape
    w1, b1 = dec["fc1"]["w"], dec["fc1"]["b"]
    w2, b2 = dec["fc2"]["w"], dec["fc2"]["b"]
    w3, b3 = dec["fc3"]["w"], dec["fc3"]["b"]
    w4, b4 = dec["fc4"]["w"], dec["fc4"]["b"]
    H1, H2, H3 = w1.shape[1], w2.shape[1], w3.shape[1]
    N = w4.shape[1]

    N_pad, TN = _plan_dim(N, max_tile=max_tile)
    if N_pad != N:
        w4 = jnp.pad(w4, ((0, 0), (0, N_pad - N)))
        b4 = jnp.pad(b4, ((0, N_pad - N),))

    grid = (N_pad // TN,)
    out = pl.pallas_call(
        _decoder_kernel,
        out_shape=jax.ShapeDtypeStruct((B_pad, N_pad), jnp.float32),
        grid=grid,
        in_specs=[
            pl.BlockSpec((B_pad, L), lambda j: (0, 0)),
            pl.BlockSpec((L, H1), lambda j: (0, 0)),        # resident chain weights
            pl.BlockSpec((1, H1), lambda j: (0, 0)),
            pl.BlockSpec((H1, H2), lambda j: (0, 0)),
            pl.BlockSpec((1, H2), lambda j: (0, 0)),
            pl.BlockSpec((H2, H3), lambda j: (0, 0)),
            pl.BlockSpec((1, H3), lambda j: (0, 0)),
            pl.BlockSpec((H3, TN), lambda j: (0, j)),        # streamed bf16 fc4 tiles
            pl.BlockSpec((1, TN), lambda j: (0, j)),
        ],
        out_specs=pl.BlockSpec((B_pad, TN), lambda j: (0, j)),
        compiler_params=pltpu.CompilerParams(
            dimension_semantics=("parallel",),
            vmem_limit_bytes=_VMEM_LIMIT),
    )(z, w1, b1.reshape(1, H1), w2, b2.reshape(1, H2),
      w3, b3.reshape(1, H3), w4, b4.reshape(1, N_pad))
    return out[:, :N] if N_pad != N else out


# ---------------------------------------------------------------------------
# Deterministic parameter construction (PyTorch-like uniform fan-in init)
# ---------------------------------------------------------------------------
def _init_linear(key, fan_in, fan_out):
    k1, k2 = jax.random.split(key)
    bound = 1.0 / jnp.sqrt(jnp.float32(fan_in))
    w = jax.random.uniform(k1, (fan_in, fan_out), jnp.float32, -bound, bound)
    b = jax.random.uniform(k2, (fan_out,), jnp.float32, -bound, bound)
    return w, b


def _make_layer(key, cin, cout, bn=True):
    w, b = _init_linear(key, cin, cout)
    if bn:
        # TODO(synk): eval-mode BN with fresh stats (mean=0, var=1, gamma=1, beta=0)
        # folded in; trained BN needs per-channel gamma/sqrt(var+eps) and
        # beta - mean*scale instead of this scalar.
        s = 1.0 / jnp.sqrt(1.0 + EPS)
        w = w * s
        b = b * s
    # Weights stored bf16 (halves HBM streaming bytes); biases stay f32.
    return dict(w=w.astype(jnp.bfloat16), b=b)


def init_params(key, num_points, latent_size):
    keys = jax.random.split(key, 8)
    in_dim = 3 * num_points
    enc = dict(
        fc1=_make_layer(keys[0], in_dim, 1024),
        fc2=_make_layer(keys[1], 1024, 512),
        fc3=_make_layer(keys[2], 512, 256),
        fc4=_make_layer(keys[3], 256, latent_size, bn=False),
    )
    dec = dict(
        fc1=_make_layer(keys[4], latent_size, 256),
        fc2=_make_layer(keys[5], 256, 512),
        fc3=_make_layer(keys[6], 512, 1024),
        fc4=_make_layer(keys[7], 1024, in_dim, bn=False),
    )
    return dict(enc=enc, dec=dec)


# ---------------------------------------------------------------------------
# Model forward:  MLP_AE.forward(x) -> (recon, [])
# ---------------------------------------------------------------------------
def mlp_ae_forward(params, x, *, num_points):
    B = x.shape[0]
    x_flat = x.reshape(B, -1).astype(jnp.float32)     # (B, 3*num_points)
    B_pad = _round_up(B, 8)                           # sublane-aligned batch
    if B_pad != B:
        x_flat = jnp.pad(x_flat, ((0, B_pad - B), (0, 0)))
    z = encoder_forward(x_flat, params["enc"])        # (B_pad, latent)
    d = decoder_forward(z, params["dec"])             # (B_pad, 3*num_points)
    # TODO(synk): output column ordering assumed channel-major (B, 3, num_points),
    # mirroring the input layout; verify against the reference MLPDecoder.
    recon = d[:B].reshape(B, 3, num_points)
    return recon, []


# Pure-JAX reference (uses the same bf16-quantized weights, f32 compute).
def _ref_forward(params, x, num_points):
    hp = jax.lax.Precision.HIGHEST
    relu = lambda v: jnp.maximum(v, 0.0)
    f32 = lambda a: a.astype(jnp.float32)
    B = x.shape[0]
    enc, dec = params["enc"], params["dec"]
    h = x.reshape(B, -1).astype(jnp.float32)
    h = relu(jnp.dot(h, f32(enc["fc1"]["w"]), precision=hp) + enc["fc1"]["b"])
    h = relu(jnp.dot(h, f32(enc["fc2"]["w"]), precision=hp) + enc["fc2"]["b"])
    h = relu(jnp.dot(h, f32(enc["fc3"]["w"]), precision=hp) + enc["fc3"]["b"])
    z = jnp.dot(h, f32(enc["fc4"]["w"]), precision=hp) + enc["fc4"]["b"]
    d = relu(jnp.dot(z, f32(dec["fc1"]["w"]), precision=hp) + dec["fc1"]["b"])
    d = relu(jnp.dot(d, f32(dec["fc2"]["w"]), precision=hp) + dec["fc2"]["b"])
    d = relu(jnp.dot(d, f32(dec["fc3"]["w"]), precision=hp) + dec["fc3"]["b"])
    d = jnp.dot(d, f32(dec["fc4"]["w"]), precision=hp) + dec["fc4"]["b"]
    return d.reshape(B, 3, num_points)


# ---------------------------------------------------------------------------
if __name__ == "__main__":
    B, NUM_POINTS, LATENT = 2, 64, 16
    key = jax.random.PRNGKey(0)
    kx, kp = jax.random.split(key)
    x = jax.random.normal(kx, (B, 3, NUM_POINTS), dtype=jnp.float32)
    params = init_params(kp, NUM_POINTS, LATENT)

    fwd = jax.jit(functools.partial(mlp_ae_forward, num_points=NUM_POINTS))
    recon, extras = fwd(params, x)
    recon = jax.block_until_ready(recon)

    assert recon.shape == (B, 3, NUM_POINTS)
    assert recon.dtype == jnp.float32
    assert extras == []

    ref = jax.block_until_ready(_ref_forward(params, x, NUM_POINTS))
    assert jnp.allclose(recon, ref, rtol=1e-2, atol=1e-2), "mismatch vs reference"

    print("KERNEL_OK")
</pallas_src>

<mosaic_0001>
module attributes {stable_mosaic.version = 11 : i64} {
  func.func @_encoder_kernel(%arg0: i32, %arg1: memref<8x256xf32, #tpu.memory_space<vmem>>, %arg2: memref<256x1024xbf16, #tpu.memory_space<vmem>>, %arg3: memref<1x1024xf32, #tpu.memory_space<vmem>>, %arg4: memref<1024x512xbf16, #tpu.memory_space<vmem>>, %arg5: memref<1x512xf32, #tpu.memory_space<vmem>>, %arg6: memref<512x256xbf16, #tpu.memory_space<vmem>>, %arg7: memref<1x256xf32, #tpu.memory_space<vmem>>, %arg8: memref<256x16xbf16, #tpu.memory_space<vmem>>, %arg9: memref<1x16xf32, #tpu.memory_space<vmem>>, %arg10: memref<8x16xf32, #tpu.memory_space<vmem>>, %arg11: memref<8x1024xf32, #tpu.memory_space<vmem>>) attributes {dimension_semantics = [#tpu.dimension_semantics<arbitrary>], iteration_bounds = array<i64: 1>, scalar_prefetch = 0 : i64, scratch_operands = 1 : i64, tpu.core_type = #tpu.core_type<tc>, window_params = [{transform_indices = @transform_0, window_bounds = array<i64: 8, 256>}, {transform_indices = @transform_1, window_bounds = array<i64: 256, 1024>}, {pipeline_mode = #tpu.pipeline_mode<synchronous>, transform_indices = @transform_2, window_bounds = array<i64: 1, 1024>}, {pipeline_mode = #tpu.pipeline_mode<synchronous>, transform_indices = @transform_3, window_bounds = array<i64: 1024, 512>}, {pipeline_mode = #tpu.pipeline_mode<synchronous>, transform_indices = @transform_4, window_bounds = array<i64: 1, 512>}, {pipeline_mode = #tpu.pipeline_mode<synchronous>, transform_indices = @transform_5, window_bounds = array<i64: 512, 256>}, {pipeline_mode = #tpu.pipeline_mode<synchronous>, transform_indices = @transform_6, window_bounds = array<i64: 1, 256>}, {pipeline_mode = #tpu.pipeline_mode<synchronous>, transform_indices = @transform_7, window_bounds = array<i64: 256, 16>}, {pipeline_mode = #tpu.pipeline_mode<synchronous>, transform_indices = @transform_8, window_bounds = array<i64: 1, 16>}, {pipeline_mode = #tpu.pipeline_mode<synchronous>, transform_indices = @transform_9, window_bounds = array<i64: 8, 16>}]} {
    %c0_i32 = arith.constant 0 : i32
    %0 = arith.cmpi eq, %arg0, %c0_i32 : i32
    %1 = arith.extui %0 : i1 to i32
    %c0_i32_0 = arith.constant 0 : i32
    %2 = arith.cmpi ne, %1, %c0_i32_0 : i32
    scf.if %2 {
      %cst_10 = arith.constant 0.000000e+00 : f32
      %13 = vector.broadcast %cst_10 : f32 to vector<8x1024xf32>
      %c0_11 = arith.constant 0 : index
      %c0_12 = arith.constant 0 : index
      %14 = vector.load %arg11[%c0_11, %c0_12] : memref<8x1024xf32, #tpu.memory_space<vmem>>, vector<8x1024xf32>
      tpu.vector_store %arg11[%c0_11, %c0_12], %13 {strides = array<i32>} : memref<8x1024xf32, #tpu.memory_space<vmem>>, vector<8x1024xf32>,
    } else {
    }
    %c0 = arith.constant 0 : index
    %c0_1 = arith.constant 0 : index
    %3 = vector.load %arg11[%c0, %c0_1] : memref<8x1024xf32, #tpu.memory_space<vmem>>, vector<8x1024xf32>
    %c0_2 = arith.constant 0 : index
    %c0_3 = arith.constant 0 : index
    %4 = vector.load %arg1[%c0_2, %c0_3] : memref<8x256xf32, #tpu.memory_space<vmem>>, vector<8x256xf32>
    %c0_4 = arith.constant 0 : index
    %c0_5 = arith.constant 0 : index
    %5 = vector.load %arg2[%c0_4, %c0_5] : memref<256x1024xbf16, #tpu.memory_space<vmem>>, vector<256x1024xbf16>
    %6 = arith.extf %5 : vector<256x1024xbf16> to vector<256x1024xf32>
    %cst = arith.constant dense<0.000000e+00> : vector<8x1024xf32>
    %7 = tpu.matmul %4, %6, %cst {dimension_numbers = #tpu.dot_dimension_numbers<[1], [0], [0], [1], [0, 0, 1, 1], [], []>} : vector<8x256xf32>, vector<256x1024xf32>, vector<8x1024xf32> -> vector<8x1024xf32>
    %8 = arith.addf %3, %7 : vector<8x1024xf32>
    %c0_6 = arith.constant 0 : index
    %c0_7 = arith.constant 0 : index
    %9 = vector.load %arg11[%c0_6, %c0_7] : memref<8x1024xf32, #tpu.memory_space<vmem>>, vector<8x1024xf32>
    tpu.vector_store %arg11[%c0_6, %c0_7], %8 {strides = array<i32>} : memref<8x1024xf32, #tpu.memory_space<vmem>>, vector<8x1024xf32>,
    %c0_i32_8 = arith.constant 0 : i32
    %10 = arith.cmpi eq, %arg0, %c0_i32_8 : i32
    %11 = arith.extui %10 : i1 to i32
    %c0_i32_9 = arith.constant 0 : i32
    %12 = arith.cmpi ne, %11, %c0_i32_9 : i32
    scf.if %12 {
      %c0_10 = arith.constant 0 : index
      %c0_11 = arith.constant 0 : index
      %13 = vector.load %arg11[%c0_10, %c0_11] : memref<8x1024xf32, #tpu.memory_space<vmem>>, vector<8x1024xf32>
      %c0_12 = arith.constant 0 : index
      %c0_13 = arith.constant 0 : index
      %14 = vector.load %arg3[%c0_12, %c0_13] : memref<1x1024xf32, #tpu.memory_space<vmem>>, vector<1x1024xf32>
      %15 = vector.broadcast %14 : vector<1x1024xf32> to vector<8x1024xf32>
      %16 = arith.addf %13, %15 : vector<8x1024xf32>
      %cst_14 = arith.constant 0.000000e+00 : f32
      %17 = vector.broadcast %cst_14 : f32 to vector<8x1024xf32>
      %18 = arith.maximumf %16, %17 : vector<8x1024xf32>
      %c0_15 = arith.constant 0 : index
      %c0_16 = arith.constant 0 : index
      %19 = vector.load %arg4[%c0_15, %c0_16] : memref<1024x512xbf16, #tpu.memory_space<vmem>>, vector<1024x512xbf16>
      %20 = arith.extf %19 : vector<1024x512xbf16> to vector<1024x512xf32>
      %cst_17 = arith.constant dense<0.000000e+00> : vector<8x512xf32>
      %21 = tpu.matmul %18, %20, %cst_17 {dimension_numbers = #tpu.dot_dimension_numbers<[1], [0], [0], [1], [0, 0, 1, 1], [], []>} : vector<8x1024xf32>, vector<1024x512xf32>, vector<8x512xf32> -> vector<8x512xf32>
      %c0_18 = arith.constant 0 : index
      %c0_19 = arith.constant 0 : index
      %22 = vector.load %arg5[%c0_18, %c0_19] : memref<1x512xf32, #tpu.memory_space<vmem>>, vector<1x512xf32>
      %23 = vector.broadcast %22 : vector<1x512xf32> to vector<8x512xf32>
      %24 = arith.addf %21, %23 : vector<8x512xf32>
      %cst_20 = arith.constant 0.000000e+00 : f32
      %25 = vector.broadcast %cst_20 : f32 to vector<8x512xf32>
      %26 = arith.maximumf %24, %25 : vector<8x512xf32>
      %c0_21 = arith.constant 0 : index
      %c0_22 = arith.constant 0 : index
      %27 = vector.load %arg6[%c0_21, %c0_22] : memref<512x256xbf16, #tpu.memory_space<vmem>>, vector<512x256xbf16>
      %28 = arith.extf %27 : vector<512x256xbf16> to vector<512x256xf32>
      %cst_23 = arith.constant dense<0.000000e+00> : vector<8x256xf32>
      %29 = tpu.matmul %26, %28, %cst_23 {dimension_numbers = #tpu.dot_dimension_numbers<[1], [0], [0], [1], [0, 0, 1, 1], [], []>} : vector<8x512xf32>, vector<512x256xf32>, vector<8x256xf32> -> vector<8x256xf32>
      %c0_24 = arith.constant 0 : index
      %c0_25 = arith.constant 0 : index
      %30 = vector.load %arg7[%c0_24, %c0_25] : memref<1x256xf32, #tpu.memory_space<vmem>>, vector<1x256xf32>
      %31 = vector.broadcast %30 : vector<1x256xf32> to vector<8x256xf32>
      %32 = arith.addf %29, %31 : vector<8x256xf32>
      %cst_26 = arith.constant 0.000000e+00 : f32
      %33 = vector.broadcast %cst_26 : f32 to vector<8x256xf32>
      %34 = arith.maximumf %32, %33 : vector<8x256xf32>
      %c0_27 = arith.constant 0 : index
      %c0_28 = arith.constant 0 : index
      %35 = vector.load %arg8[%c0_27, %c0_28] : memref<256x16xbf16, #tpu.memory_space<vmem>>, vector<256x16xbf16>
      %36 = arith.extf %35 : vector<256x16xbf16> to vector<256x16xf32>
      %cst_29 = arith.constant dense<0.000000e+00> : vector<8x16xf32>
      %37 = tpu.matmul %34, %36, %cst_29 {dimension_numbers = #tpu.dot_dimension_numbers<[1], [0], [0], [1], [0, 0, 1, 1], [], []>} : vector<8x256xf32>, vector<256x16xf32>, vector<8x16xf32> -> vector<8x16xf32>
      %c0_30 = arith.constant 0 : index
      %c0_31 = arith.constant 0 : index
      %38 = vector.load %arg9[%c0_30, %c0_31] : memref<1x16xf32, #tpu.memory_space<vmem>>, vector<1x16xf32>
      %39 = vector.broadcast %38 : vector<1x16xf32> to vector<8x16xf32>
      %40 = arith.addf %37, %39 : vector<8x16xf32>
      %c0_32 = arith.constant 0 : index
      %c0_33 = arith.constant 0 : index
      %41 = vector.load %arg10[%c0_32, %c0_33] : memref<8x16xf32, #tpu.memory_space<vmem>>, vector<8x16xf32>
      tpu.vector_store %arg10[%c0_32, %c0_33], %40 {strides = array<i32>} : memref<8x16xf32, #tpu.memory_space<vmem>>, vector<8x16xf32>,
    } else {
    }
    return
  }
  func.func @transform_0(%arg0: i32) -> (i32, i32) {
    %c0_i32 = arith.constant 0 : i32
    %c0_i32_0 = arith.constant 0 : i32
    return %c0_i32, %arg0 : i32, i32
  }
  func.func @transform_1(%arg0: i32) -> (i32, i32) {
    %c0_i32 = arith.constant 0 : i32
    %c0_i32_0 = arith.constant 0 : i32
    return %arg0, %c0_i32 : i32, i32
  }
  func.func @transform_2(%arg0: i32) -> (i32, i32) {
    %c0_i32 = arith.constant 0 : i32
    %c0_i32_0 = arith.constant 0 : i32
    %c0_i32_1 = arith.constant 0 : i32
    return %c0_i32, %c0_i32_0 : i32, i32
  }
  func.func @transform_3(%arg0: i32) -> (i32, i32) {
    %c0_i32 = arith.constant 0 : i32
    %c0_i32_0 = arith.constant 0 : i32
    %c0_i32_1 = arith.constant 0 : i32
    return %c0_i32, %c0_i32_0 : i32, i32
  }
  func.func @transform_4(%arg0: i32) -> (i32, i32) {
    %c0_i32 = arith.constant 0 : i32
    %c0_i32_0 = arith.constant 0 : i32
    %c0_i32_1 = arith.constant 0 : i32
    return %c0_i32, %c0_i32_0 : i32, i32
  }
  func.func @transform_5(%arg0: i32) -> (i32, i32) {
    %c0_i32 = arith.constant 0 : i32
    %c0_i32_0 = arith.constant 0 : i32
    %c0_i32_1 = arith.constant 0 : i32
    return %c0_i32, %c0_i32_0 : i32, i32
  }
  func.func @transform_6(%arg0: i32) -> (i32, i32) {
    %c0_i32 = arith.constant 0 : i32
    %c0_i32_0 = arith.constant 0 : i32
    %c0_i32_1 = arith.constant 0 : i32
    return %c0_i32, %c0_i32_0 : i32, i32
  }
  func.func @transform_7(%arg0: i32) -> (i32, i32) {
    %c0_i32 = arith.constant 0 : i32
    %c0_i32_0 = arith.constant 0 : i32
    %c0_i32_1 = arith.constant 0 : i32
    return %c0_i32, %c0_i32_0 : i32, i32
  }
  func.func @transform_8(%arg0: i32) -> (i32, i32) {
    %c0_i32 = arith.constant 0 : i32
    %c0_i32_0 = arith.constant 0 : i32
    %c0_i32_1 = arith.constant 0 : i32
    return %c0_i32, %c0_i32_0 : i32, i32
  }
  func.func @transform_9(%arg0: i32) -> (i32, i32) {
    %c0_i32 = arith.constant 0 : i32
    %c0_i32_0 = arith.constant 0 : i32
    %c0_i32_1 = arith.constant 0 : i32
    return %c0_i32, %c0_i32_0 : i32, i32
  }
}

module attributes {stable_mosaic.version = 11 : i64} {
  func.func @_decoder_kernel(%arg0: i32, %arg1: memref<8x16xf32, #tpu.memory_space<vmem>>, %arg2: memref<16x256xbf16, #tpu.memory_space<vmem>>, %arg3: memref<1x256xf32, #tpu.memory_space<vmem>>, %arg4: memref<256x512xbf16, #tpu.memory_space<vmem>>, %arg5: memref<1x512xf32, #tpu.memory_space<vmem>>, %arg6: memref<512x1024xbf16, #tpu.memory_space<vmem>>, %arg7: memref<1x1024xf32, #tpu.memory_space<vmem>>, %arg8: memref<1024x256xbf16, #tpu.memory_space<vmem>>, %arg9: memref<1x256xf32, #tpu.memory_space<vmem>>, %arg10: memref<8x256xf32, #tpu.memory_space<vmem>>) attributes {dimension_semantics = [#tpu.dimension_semantics<parallel>], iteration_bounds = array<i64: 1>, scalar_prefetch = 0 : i64, scratch_operands = 0 : i64, tpu.core_type = #tpu.core_type<tc>, window_params = [{pipeline_mode = #tpu.pipeline_mode<synchronous>, transform_indices = @transform_0, window_bounds = array<i64: 8, 16>}, {pipeline_mode = #tpu.pipeline_mode<synchronous>, transform_indices = @transform_1, window_bounds = array<i64: 16, 256>}, {pipeline_mode = #tpu.pipeline_mode<synchronous>, transform_indices = @transform_2, window_bounds = array<i64: 1, 256>}, {pipeline_mode = #tpu.pipeline_mode<synchronous>, transform_indices = @transform_3, window_bounds = array<i64: 256, 512>}, {pipeline_mode = #tpu.pipeline_mode<synchronous>, transform_indices = @transform_4, window_bounds = array<i64: 1, 512>}, {pipeline_mode = #tpu.pipeline_mode<synchronous>, transform_indices = @transform_5, window_bounds = array<i64: 512, 1024>}, {pipeline_mode = #tpu.pipeline_mode<synchronous>, transform_indices = @transform_6, window_bounds = array<i64: 1, 1024>}, {transform_indices = @transform_7, window_bounds = array<i64: 1024, 256>}, {transform_indices = @transform_8, window_bounds = array<i64: 1, 256>}, {transform_indices = @transform_9, window_bounds = array<i64: 8, 256>}]} {
    %c0 = arith.constant 0 : index
    %c0_0 = arith.constant 0 : index
    %0 = vector.load %arg1[%c0, %c0_0] : memref<8x16xf32, #tpu.memory_space<vmem>>, vector<8x16xf32>
    %c0_1 = arith.constant 0 : index
    %c0_2 = arith.constant 0 : index
    %1 = vector.load %arg2[%c0_1, %c0_2] : memref<16x256xbf16, #tpu.memory_space<vmem>>, vector<16x256xbf16>
    %2 = arith.extf %1 : vector<16x256xbf16> to vector<16x256xf32>
    %cst = arith.constant dense<0.000000e+00> : vector<8x256xf32>
    %3 = tpu.matmul %0, %2, %cst {dimension_numbers = #tpu.dot_dimension_numbers<[1], [0], [0], [1], [0, 0, 1, 1], [], []>} : vector<8x16xf32>, vector<16x256xf32>, vector<8x256xf32> -> vector<8x256xf32>
    %c0_3 = arith.constant 0 : index
    %c0_4 = arith.constant 0 : index
    %4 = vector.load %arg3[%c0_3, %c0_4] : memref<1x256xf32, #tpu.memory_space<vmem>>, vector<1x256xf32>
    %5 = vector.broadcast %4 : vector<1x256xf32> to vector<8x256xf32>
    %6 = arith.addf %3, %5 : vector<8x256xf32>
    %cst_5 = arith.constant 0.000000e+00 : f32
    %7 = vector.broadcast %cst_5 : f32 to vector<8x256xf32>
    %8 = arith.maximumf %6, %7 : vector<8x256xf32>
    %c0_6 = arith.constant 0 : index
    %c0_7 = arith.constant 0 : index
    %9 = vector.load %arg4[%c0_6, %c0_7] : memref<256x512xbf16, #tpu.memory_space<vmem>>, vector<256x512xbf16>
    %10 = arith.extf %9 : vector<256x512xbf16> to vector<256x512xf32>
    %cst_8 = arith.constant dense<0.000000e+00> : vector<8x512xf32>
    %11 = tpu.matmul %8, %10, %cst_8 {dimension_numbers = #tpu.dot_dimension_numbers<[1], [0], [0], [1], [0, 0, 1, 1], [], []>} : vector<8x256xf32>, vector<256x512xf32>, vector<8x512xf32> -> vector<8x512xf32>
    %c0_9 = arith.constant 0 : index
    %c0_10 = arith.constant 0 : index
    %12 = vector.load %arg5[%c0_9, %c0_10] : memref<1x512xf32, #tpu.memory_space<vmem>>, vector<1x512xf32>
    %13 = vector.broadcast %12 : vector<1x512xf32> to vector<8x512xf32>
    %14 = arith.addf %11, %13 : vector<8x512xf32>
    %cst_11 = arith.constant 0.000000e+00 : f32
    %15 = vector.broadcast %cst_11 : f32 to vector<8x512xf32>
    %16 = arith.maximumf %14, %15 : vector<8x512xf32>
    %c0_12 = arith.constant 0 : index
    %c0_13 = arith.constant 0 : index
    %17 = vector.load %arg6[%c0_12, %c0_13] : memref<512x1024xbf16, #tpu.memory_space<vmem>>, vector<512x1024xbf16>
    %18 = arith.extf %17 : vector<512x1024xbf16> to vector<512x1024xf32>
    %cst_14 = arith.constant dense<0.000000e+00> : vector<8x1024xf32>
    %19 = tpu.matmul %16, %18, %cst_14 {dimension_numbers = #tpu.dot_dimension_numbers<[1], [0], [0], [1], [0, 0, 1, 1], [], []>} : vector<8x512xf32>, vector<512x1024xf32>, vector<8x1024xf32> -> vector<8x1024xf32>
    %c0_15 = arith.constant 0 : index
    %c0_16 = arith.constant 0 : index
    %20 = vector.load %arg7[%c0_15, %c0_16] : memref<1x1024xf32, #tpu.memory_space<vmem>>, vector<1x1024xf32>
    %21 = vector.broadcast %20 : vector<1x1024xf32> to vector<8x1024xf32>
    %22 = arith.addf %19, %21 : vector<8x1024xf32>
    %cst_17 = arith.constant 0.000000e+00 : f32
    %23 = vector.broadcast %cst_17 : f32 to vector<8x1024xf32>
    %24 = arith.maximumf %22, %23 : vector<8x1024xf32>
    %c0_18 = arith.constant 0 : index
    %c0_19 = arith.constant 0 : index
    %25 = vector.load %arg8[%c0_18, %c0_19] : memref<1024x256xbf16, #tpu.memory_space<vmem>>, vector<1024x256xbf16>
    %26 = arith.extf %25 : vector<1024x256xbf16> to vector<1024x256xf32>
    %cst_20 = arith.constant dense<0.000000e+00> : vector<8x256xf32>
    %27 = tpu.matmul %24, %26, %cst_20 {dimension_numbers = #tpu.dot_dimension_numbers<[1], [0], [0], [1], [0, 0, 1, 1], [], []>} : vector<8x1024xf32>, vector<1024x256xf32>, vector<8x256xf32> -> vector<8x256xf32>
    %c0_21 = arith.constant 0 : index
    %c0_22 = arith.constant 0 : index
    %28 = vector.load %arg9[%c0_21, %c0_22] : memref<1x256xf32, #tpu.memory_space<vmem>>, vector<1x256xf32>
    %29 = vector.broadcast %28 : vector<1x256xf32> to vector<8x256xf32>
    %30 = arith.addf %27, %29 : vector<8x256xf32>
    %c0_23 = arith.constant 0 : index
    %c0_24 = arith.constant 0 : index
    %31 = vector.load %arg10[%c0_23, %c0_24] : memref<8x256xf32, #tpu.memory_space<vmem>>, vector<8x256xf32>
    tpu.vector_store %arg10[%c0_23, %c0_24], %30 {strides = array<i32>} : memref<8x256xf32, #tpu.memory_space<vmem>>, vector<8x256xf32>,
    return
  }
  func.func @transform_0(%arg0: i32) -> (i32, i32) {
    %c0_i32 = arith.constant 0 : i32
    %c0_i32_0 = arith.constant 0 : i32
    %c0_i32_1 = arith.constant 0 : i32
    return %c0_i32, %c0_i32_0 : i32, i32
  }
  func.func @transform_1(%arg0: i32) -> (i32, i32) {
    %c0_i32 = arith.constant 0 : i32
    %c0_i32_0 = arith.constant 0 : i32
    %c0_i32_1 = arith.constant 0 : i32
    return %c0_i32, %c0_i32_0 : i32, i32
  }
  func.func @transform_2(%arg0: i32) -> (i32, i32) {
    %c0_i32 = arith.constant 0 : i32
    %c0_i32_0 = arith.constant 0 : i32
    %c0_i32_1 = arith.constant 0 : i32
    return %c0_i32, %c0_i32_0 : i32, i32
  }
  func.func @transform_3(%arg0: i32) -> (i32, i32) {
    %c0_i32 = arith.constant 0 : i32
    %c0_i32_0 = arith.constant 0 : i32
    %c0_i32_1 = arith.constant 0 : i32
    return %c0_i32, %c0_i32_0 : i32, i32
  }
  func.func @transform_4(%arg0: i32) -> (i32, i32) {
    %c0_i32 = arith.constant 0 : i32
    %c0_i32_0 = arith.constant 0 : i32
    %c0_i32_1 = arith.constant 0 : i32
    return %c0_i32, %c0_i32_0 : i32, i32
  }
  func.func @transform_5(%arg0: i32) -> (i32, i32) {
    %c0_i32 = arith.constant 0 : i32
    %c0_i32_0 = arith.constant 0 : i32
    %c0_i32_1 = arith.constant 0 : i32
    return %c0_i32, %c0_i32_0 : i32, i32
  }
  func.func @transform_6(%arg0: i32) -> (i32, i32) {
    %c0_i32 = arith.constant 0 : i32
    %c0_i32_0 = arith.constant 0 : i32
    %c0_i32_1 = arith.constant 0 : i32
    return %c0_i32, %c0_i32_0 : i32, i32
  }
  func.func @transform_7(%arg0: i32) -> (i32, i32) {
    %c0_i32 = arith.constant 0 : i32
    %c0_i32_0 = arith.constant 0 : i32
    return %c0_i32, %arg0 : i32, i32
  }
  func.func @transform_8(%arg0: i32) -> (i32, i32) {
    %c0_i32 = arith.constant 0 : i32
    %c0_i32_0 = arith.constant 0 : i32
    return %c0_i32, %arg0 : i32, i32
  }
  func.func @transform_9(%arg0: i32) -> (i32, i32) {
    %c0_i32 = arith.constant 0 : i32
    %c0_i32_0 = arith.constant 0 : i32
    return %c0_i32, %arg0 : i32, i32
  }
}

</mosaic_0001>

<bundles_post_ra>
// kernel: mlp_ae_forward.3
= control target key start
LH: loop header
LB: loop body
LE: loop exit
PB: predicated region body
PF: predicated region fallthrough
CT: control target
= control target key end

     0   :  { %vm45_vm0 = vcmask 130048   ;;  %s5694_s1 = inlined_call_operand.vmem [shape: bf16[16,256], index: 1, kind: input, shape index: {}]   ;;  %s5695_s3 = inlined_call_operand.vmem [shape: bf16[256,512], index: 3, kind: input, shape index: {}]   ;;  %s5696_s0 = inlined_call_operand.vmem [shape: f32[8,16], index: 0, kind: input, shape index: {}]   ;;  %s5697_s2 = inlined_call_operand.vmem [shape: f32[1,256], index: 2, kind: input, shape index: {}]   ;;  %s5698_s5 = inlined_call_operand.vmem [shape: bf16[512,1024], index: 5, kind: input, shape index: {}]   ;;  %s5699_s4 = inlined_call_operand.vmem [shape: f32[1,512], index: 4, kind: input, shape index: {}]   ;;  %s5700_s7 = inlined_call_operand.vmem [shape: bf16[1024,256], index: 7, kind: input, shape index: {}]   ;;  %s5701_s6 = inlined_call_operand.vmem [shape: f32[1,1024], index: 6, kind: input, shape index: {}]   ;;  %s5702_s8 = inlined_call_operand.vmem [shape: f32[1,256], index: 8, kind: input, shape index: {}]   ;;  %s5703_s9 = inlined_call_operand.vmem [shape: f32[8,256], index: 9, kind: output, shape index: {}]  }
   0x1   :  { %v34_v0 = vld [vmem:[%s5694_s1 + $0x8] sm:$0xff]  ;;  %v33_v1 = vld [vmem:[%s5694_s1] sm:$0xff]  ;;  %v121_v6 = vld [vmem:[%s5695_s3 + $0xf0] sm:$0xff] }
   0x2   :  { %v37_v2 = vunpack.c.l.bf16 %v34_v0  ;;  %v38_v3 = vunpack.c.h.bf16 %v34_v0  ;;  %v35_v4 = vunpack.c.l.bf16 %v33_v1  ;;  %v36_v5 = vunpack.c.h.bf16 %v33_v1  ;;  %v153_v7 = vld [vmem:[%s5695_s3 + $0x1f0] sm:$0xff]  ;;  %v119_v8 = vld [vmem:[%s5695_s3 + $0xe0] sm:$0xff] }
   0x3   :  { %v215_v9 = vunpack.c.l.bf16 %v121_v6  ;;  %v279_v10 = vunpack.c.l.bf16 %v153_v7  ;;  %v151_v11 = vld [vmem:[%s5695_s3 + $0x1e0] sm:$0xff]  ;;  %v216_v13 = vunpack.c.h.bf16 %v121_v6  ;;  %v280_v14 = vunpack.c.h.bf16 %v153_v7  ;;  %v117_v15 = vld [vmem:[%s5695_s3 + $0xd0] sm:$0xff] }
   0x4   :  { %63 = vmatpush.msra.mxu0 %v37_v2  ;;  %83 = vmatpush.msra.mxu1 %v38_v3  ;;  %v32_v12 = vld [vmem:[%s5696_s0] sm:$0xff]  ;;  %v149_v16 = vld [vmem:[%s5695_s3 + $0x1d0] sm:$0xff]  ;;  %v211_v17 = vunpack.c.l.bf16 %v119_v8  ;;  %v275_v18 = vunpack.c.l.bf16 %v151_v11  ;;  %v212_v19 = vunpack.c.h.bf16 %v119_v8  ;;  %v276_v20 = vunpack.c.h.bf16 %v151_v11 }
   0x5   :  { %293 = vmatpush.msra.mxu2 %v215_v9  ;;  %313 = vmatpush.msra.mxu3 %v279_v10  ;;  %v115_v21 = vld [vmem:[%s5695_s3 + $0xc0] sm:$0xff]  ;;  %v207_v23 = vunpack.c.l.bf16 %v117_v15  ;;  %v271_v24 = vunpack.c.l.bf16 %v149_v16  ;;  %v208_v25 = vunpack.c.h.bf16 %v117_v15  ;;  %v272_v26 = vunpack.c.h.bf16 %v149_v16  ;;  %v113_v27 = vld [vmem:[%s5695_s3 + $0xb0] sm:$0xff] }
   0x6   :  { %64 = vmatpush.msra.mxu0 %v35_v4  ;;  %84 = vmatpush.msra.mxu1 %v36_v5  ;;  %v147_v22 = vld [vmem:[%s5695_s3 + $0x1c0] sm:$0xff]  ;;  %v145_v28 = vld [vmem:[%s5695_s3 + $0x1b0] sm:$0xff]  ;;  %v203_v29 = vunpack.c.l.bf16 %v115_v21  ;;  %v204_v31 = vunpack.c.h.bf16 %v115_v21  ;;  %v199_v35 = vunpack.c.l.bf16 %v113_v27  ;;  %v200_v37 = vunpack.c.h.bf16 %v113_v27 }
   0x7   :  { %2607 = vmatmul.msk.f32.vlgmr.msra.gmra.mxu0 %vm45_vm0, %v32_v12  ;;  %2608 = vmatmul.msk.f32.vlgmr.msra.gmra.mxu1 %vm45_vm0, %v32_v12  ;;  %v267_v30 = vunpack.c.l.bf16 %v147_v22  ;;  %v268_v32 = vunpack.c.h.bf16 %v147_v22  ;;  %v111_v33 = vld [vmem:[%s5695_s3 + $0xa0] sm:$0xff]  ;;  %v263_v36 = vunpack.c.l.bf16 %v145_v28  ;;  %v264_v38 = vunpack.c.h.bf16 %v145_v28  ;;  %v109_v39 = vld [vmem:[%s5695_s3 + $0x90] sm:$0xff] }
   0x8   :  { %333 = vmatpush.msrb.mxu0 %v216_v13  ;;  %353 = vmatpush.msrb.mxu1 %v280_v14  ;;  %v143_v34 = vld [vmem:[%s5695_s3 + $0x1a0] sm:$0xff]  ;;  %v141_v40 = vld [vmem:[%s5695_s3 + $0x190] sm:$0xff]  ;;  %v195_v41 = vunpack.c.l.bf16 %v111_v33  ;;  %v196_v43 = vunpack.c.h.bf16 %v111_v33  ;;  %v191_v47 = vunpack.c.l.bf16 %v109_v39  ;;  %v192_v49 = vunpack.c.h.bf16 %v109_v39 }
   0x9   :  { %294 = vmatpush.msra.mxu2 %v211_v17  ;;  %314 = vmatpush.msra.mxu3 %v275_v18  ;;  %v259_v42 = vunpack.c.l.bf16 %v143_v34  ;;  %v260_v44 = vunpack.c.h.bf16 %v143_v34  ;;  %v107_v45 = vld [vmem:[%s5695_s3 + $0x80] sm:$0xff]  ;;  %v255_v48 = vunpack.c.l.bf16 %v141_v40  ;;  %v256_v50 = vunpack.c.h.bf16 %v141_v40  ;;  %v105_v51 = vld [vmem:[%s5695_s3 + $0x70] sm:$0xff] }
   0xa   :  { %334 = vmatpush.msrb.mxu0 %v212_v19  ;;  %354 = vmatpush.msrb.mxu1 %v276_v20  ;;  %v139_v46 = vld [vmem:[%s5695_s3 + $0x180] sm:$0xff]  ;;  %v137_v52 = vld [vmem:[%s5695_s3 + $0x170] sm:$0xff]  ;;  %v187_v53 = vunpack.c.l.bf16 %v107_v45  ;;  %v188_v55 = vunpack.c.h.bf16 %v107_v45  ;;  %v183_v59 = vunpack.c.l.bf16 %v105_v51  ;;  %v184_v61 = vunpack.c.h.bf16 %v105_v51 }
   0xb   :  { %295 = vmatpush.msra.mxu2 %v207_v23  ;;  %315 = vmatpush.msra.mxu3 %v271_v24  ;;  %v251_v54 = vunpack.c.l.bf16 %v139_v46  ;;  %v252_v56 = vunpack.c.h.bf16 %v139_v46  ;;  %v103_v57 = vld [vmem:[%s5695_s3 + $0x60] sm:$0xff]  ;;  %v247_v60 = vunpack.c.l.bf16 %v137_v52  ;;  %v248_v62 = vunpack.c.h.bf16 %v137_v52  ;;  %v101_v63 = vld [vmem:[%s5695_s3 + $0x50] sm:$0xff] }
   0xc   :  { %335 = vmatpush.msrb.mxu0 %v208_v25  ;;  %355 = vmatpush.msrb.mxu1 %v272_v26  ;;  %v135_v58 = vld [vmem:[%s5695_s3 + $0x160] sm:$0xff]  ;;  %v133_v0 = vld [vmem:[%s5695_s3 + $0x150] sm:$0xff]  ;;  %v179_v1 = vunpack.c.l.bf16 %v103_v57  ;;  %v180_v3 = vunpack.c.h.bf16 %v103_v57  ;;  %v175_v7 = vunpack.c.l.bf16 %v101_v63  ;;  %v176_v9 = vunpack.c.h.bf16 %v101_v63 }
   0xd   :  { %296 = vmatpush.msra.mxu2 %v203_v29  ;;  %316 = vmatpush.msra.mxu3 %v267_v30  ;;  %v243_v2 = vunpack.c.l.bf16 %v135_v58  ;;  %v244_v4 = vunpack.c.h.bf16 %v135_v58  ;;  %v99_v5 = vld [vmem:[%s5695_s3 + $0x40] sm:$0xff]  ;;  %v239_v8 = vunpack.c.l.bf16 %v133_v0  ;;  %v240_v10 = vunpack.c.h.bf16 %v133_v0  ;;  %v97_v11 = vld [vmem:[%s5695_s3 + $0x30] sm:$0xff] }
   0xe   :  { %336 = vmatpush.msrb.mxu0 %v204_v31  ;;  %356 = vmatpush.msrb.mxu1 %v268_v32  ;;  %v131_v6 = vld [vmem:[%s5695_s3 + $0x140] sm:$0xff]  ;;  %v129_v12 = vld [vmem:[%s5695_s3 + $0x130] sm:$0xff]  ;;  %v171_v13 = vunpack.c.l.bf16 %v99_v5  ;;  %v172_v15 = vunpack.c.h.bf16 %v99_v5  ;;  %v167_v19 = vunpack.c.l.bf16 %v97_v11  ;;  %v168_v21 = vunpack.c.h.bf16 %v97_v11 }
   0xf   :  { %297 = vmatpush.msra.mxu2 %v199_v35  ;;  %317 = vmatpush.msra.mxu3 %v263_v36  ;;  %v235_v14 = vunpack.c.l.bf16 %v131_v6  ;;  %v236_v16 = vunpack.c.h.bf16 %v131_v6  ;;  %v95_v17 = vld [vmem:[%s5695_s3 + $0x20] sm:$0xff]  ;;  %v231_v20 = vunpack.c.l.bf16 %v129_v12  ;;  %v232_v22 = vunpack.c.h.bf16 %v129_v12  ;;  %v93_v23 = vld [vmem:[%s5695_s3 + $0x10] sm:$0xff]  ;;  %v122_v35 = vld [vmem:[%s5695_s3 + $0xf8] sm:$0xff] }
  0x10   :  { %337 = vmatpush.msrb.mxu0 %v200_v37  ;;  %357 = vmatpush.msrb.mxu1 %v264_v38  ;;  %v127_v18 = vld [vmem:[%s5695_s3 + $0x120] sm:$0xff]  ;;  %v125_v24 = vld [vmem:[%s5695_s3 + $0x110] sm:$0xff]  ;;  %v163_v25 = vunpack.c.l.bf16 %v95_v17  ;;  %v164_v27 = vunpack.c.h.bf16 %v95_v17  ;;  %v159_v31 = vunpack.c.l.bf16 %v93_v23  ;;  %v160_v33 = vunpack.c.h.bf16 %v93_v23  ;;  %v154_v36 = vld [vmem:[%s5695_s3 + $0x1f8] sm:$0xff] }
  0x11   :  { %298 = vmatpush.msra.mxu2 %v195_v41  ;;  %318 = vmatpush.msra.mxu3 %v259_v42  ;;  %v227_v26 = vunpack.c.l.bf16 %v127_v18  ;;  %v228_v28 = vunpack.c.h.bf16 %v127_v18  ;;  %v91_v29 = vld [vmem:[%s5695_s3] sm:$0xff]  ;;  %v223_v32 = vunpack.c.l.bf16 %v125_v24  ;;  %v224_v34 = vunpack.c.h.bf16 %v125_v24  ;;  %v120_v41 = vld [vmem:[%s5695_s3 + $0xe8] sm:$0xff] }
  0x12   :  { %338 = vmatpush.msrb.mxu0 %v196_v43  ;;  %358 = vmatpush.msrb.mxu1 %v260_v44  ;;  %v123_v30 = vld [vmem:[%s5695_s3 + $0x100] sm:$0xff]  ;;  %v155_v37 = vunpack.c.l.bf16 %v91_v29  ;;  %v156_v39 = vunpack.c.h.bf16 %v91_v29  ;;  %v152_v42 = vld [vmem:[%s5695_s3 + $0x1e8] sm:$0xff]  ;;  %v217_v43 = vunpack.c.l.bf16 %v122_v35  ;;  %v281_v44 = vunpack.c.l.bf16 %v154_v36 }
  0x13   :  { %299 = vmatpush.msra.mxu2 %v191_v47  ;;  %319 = vmatpush.msra.mxu3 %v255_v48  ;;  %v219_v38 = vunpack.c.l.bf16 %v123_v30  ;;  %v220_v40 = vunpack.c.h.bf16 %v123_v30  ;;  %v218_v45 = vunpack.c.h.bf16 %v122_v35  ;;  %v282_v46 = vunpack.c.h.bf16 %v154_v36  ;;  %v118_v47 = vld [vmem:[%s5695_s3 + $0xd8] sm:$0xff]  ;;  %v104_v29 = vld [vmem:[%s5695_s3 + $0x68] sm:$0xff] }
  0x14   :  { %339 = vmatpush.msrb.mxu0 %v192_v49  ;;  %359 = vmatpush.msrb.mxu1 %v256_v50  ;;  %v150_v48 = vld [vmem:[%s5695_s3 + $0x1d8] sm:$0xff]  ;;  %v213_v49 = vunpack.c.l.bf16 %v120_v41  ;;  %v277_v50 = vunpack.c.l.bf16 %v152_v42  ;;  %v214_v51 = vunpack.c.h.bf16 %v120_v41  ;;  %v278_v52 = vunpack.c.h.bf16 %v152_v42  ;;  %v136_v30 = vld [vmem:[%s5695_s3 + $0x168] sm:$0xff] }
  0x15   :  { %300 = vmatpush.msra.mxu2 %v187_v53  ;;  %320 = vmatpush.msra.mxu3 %v251_v54  ;;  %v116_v53 = vld [vmem:[%s5695_s3 + $0xc8] sm:$0xff]  ;;  %v210_v57 = vunpack.c.h.bf16 %v118_v47  ;;  %v274_v58 = vunpack.c.h.bf16 %v150_v48  ;;  %v102_v35 = vld [vmem:[%s5695_s3 + $0x58] sm:$0xff] }
  0x16   :  { %340 = vmatpush.msrb.mxu0 %v188_v55  ;;  %360 = vmatpush.msrb.mxu1 %v252_v56  ;;  %v148_v54 = vld [vmem:[%s5695_s3 + $0x1c8] sm:$0xff]  ;;  %v209_v55 = vunpack.c.l.bf16 %v118_v47  ;;  %v273_v56 = vunpack.c.l.bf16 %v150_v48  ;;  %v206_v63 = vunpack.c.h.bf16 %v116_v53  ;;  %v134_v36 = vld [vmem:[%s5695_s3 + $0x158] sm:$0xff] }
  0x17   :  { %301 = vmatpush.msra.mxu2 %v183_v59  ;;  %321 = vmatpush.msra.mxu3 %v247_v60  ;;  %v114_v59 = vld [vmem:[%s5695_s3 + $0xb8] sm:$0xff]  ;;  %v270_v0 = vunpack.c.h.bf16 %v148_v54  ;;  %v100_v41 = vld [vmem:[%s5695_s3 + $0x48] sm:$0xff] }
  0x18   :  { %341 = vmatpush.msrb.mxu0 %v184_v61  ;;  %361 = vmatpush.msrb.mxu1 %v248_v62  ;;  %v146_v60 = vld [vmem:[%s5695_s3 + $0x1b8] sm:$0xff]  ;;  %v205_v61 = vunpack.c.l.bf16 %v116_v53  ;;  %v269_v62 = vunpack.c.l.bf16 %v148_v54  ;;  %v202_v5 = vunpack.c.h.bf16 %v114_v59  ;;  %v132_v42 = vld [vmem:[%s5695_s3 + $0x148] sm:$0xff] }
  0x19   :  { %302 = vmatpush.msra.mxu2 %v179_v1  ;;  %322 = vmatpush.msra.mxu3 %v243_v2  ;;  %v112_v1 = vld [vmem:[%s5695_s3 + $0xa8] sm:$0xff]  ;;  %v266_v6 = vunpack.c.h.bf16 %v146_v60  ;;  %v98_v47 = vld [vmem:[%s5695_s3 + $0x38] sm:$0xff] }
  0x1a   :  { %342 = vmatpush.msrb.mxu0 %v180_v3  ;;  %362 = vmatpush.msrb.mxu1 %v244_v4  ;;  %v144_v2 = vld [vmem:[%s5695_s3 + $0x1a8] sm:$0xff]  ;;  %v201_v3 = vunpack.c.l.bf16 %v114_v59  ;;  %v265_v4 = vunpack.c.l.bf16 %v146_v60  ;;  %v198_v11 = vunpack.c.h.bf16 %v112_v1  ;;  %v130_v48 = vld [vmem:[%s5695_s3 + $0x138] sm:$0xff] }
  0x1b   :  { %303 = vmatpush.msra.mxu2 %v175_v7  ;;  %323 = vmatpush.msra.mxu3 %v239_v8  ;;  %v110_v7 = vld [vmem:[%s5695_s3 + $0x98] sm:$0xff]  ;;  %v262_v12 = vunpack.c.h.bf16 %v144_v2  ;;  %v96_v53 = vld [vmem:[%s5695_s3 + $0x28] sm:$0xff] }
  0x1c   :  { %343 = vmatpush.msrb.mxu0 %v176_v9  ;;  %363 = vmatpush.msrb.mxu1 %v240_v10  ;;  %v142_v8 = vld [vmem:[%s5695_s3 + $0x198] sm:$0xff]  ;;  %v197_v9 = vunpack.c.l.bf16 %v112_v1  ;;  %v261_v10 = vunpack.c.l.bf16 %v144_v2  ;;  %v194_v17 = vunpack.c.h.bf16 %v110_v7  ;;  %v128_v54 = vld [vmem:[%s5695_s3 + $0x128] sm:$0xff] }
  0x1d   :  { %304 = vmatpush.msra.mxu2 %v171_v13  ;;  %324 = vmatpush.msra.mxu3 %v235_v14  ;;  %v108_v13 = vld [vmem:[%s5695_s3 + $0x88] sm:$0xff]  ;;  %v258_v18 = vunpack.c.h.bf16 %v142_v8  ;;  %v230_v59 = vunpack.c.h.bf16 %v128_v54  ;;  %v126_v60 = vld [vmem:[%s5695_s3 + $0x118] sm:$0xff] }
  0x1e   :  { %344 = vmatpush.msrb.mxu0 %v172_v15  ;;  %364 = vmatpush.msrb.mxu1 %v236_v16  ;;  %v140_v14 = vld [vmem:[%s5695_s3 + $0x188] sm:$0xff]  ;;  %v193_v15 = vunpack.c.l.bf16 %v110_v7  ;;  %v257_v16 = vunpack.c.l.bf16 %v142_v8  ;;  %v190_v23 = vunpack.c.h.bf16 %v108_v13  ;;  %v225_v1 = vunpack.c.l.bf16 %v126_v60  ;;  %v39_v7 = vld [vmem:[%s5697_s2] sm:$0x3] }
  0x1f   :  { %305 = vmatpush.msra.mxu2 %v167_v19  ;;  %325 = vmatpush.msra.mxu3 %v231_v20  ;;  %v106_v19 = vld [vmem:[%s5695_s3 + $0x78] sm:$0xff]  ;;  %v254_v24 = vunpack.c.h.bf16 %v140_v14  ;;  %v226_v2 = vunpack.c.h.bf16 %v126_v60  ;;  %v41_v8 = vperm.slane %v39_v7, 0  ;;  %v3017_v60 = vld [vmem:[%s5698_s5 + $0x120] sm:$0xff] }
  0x20   :  { %345 = vmatpush.msrb.mxu0 %v168_v21  ;;  %365 = vmatpush.msrb.mxu1 %v232_v22  ;;  %v138_v20 = vld [vmem:[%s5695_s3 + $0x178] sm:$0xff]  ;;  %v189_v21 = vunpack.c.l.bf16 %v108_v13  ;;  %v253_v22 = vunpack.c.l.bf16 %v140_v14  ;;  %v2878_v13 = vld [vmem:[%s5698_s5 + $0x1e0] sm:$0xff] }
  0x21   :  { %306 = vmatpush.msra.mxu2 %v163_v25  ;;  %326 = vmatpush.msra.mxu3 %v227_v26  ;;  %v185_v25 = vunpack.c.l.bf16 %v106_v19  ;;  %v249_v26 = vunpack.c.l.bf16 %v138_v20 }
  0x22   :  { %346 = vmatpush.msrb.mxu0 %v164_v27  ;;  %366 = vmatpush.msrb.mxu1 %v228_v28  ;;  %v186_v27 = vunpack.c.h.bf16 %v106_v19  ;;  %v250_v28 = vunpack.c.h.bf16 %v138_v20  ;;  %v2898_v19 = vld [vmem:[%s5698_s5 + $0x1c0] sm:$0xff] }
  0x23   :  { %307 = vmatpush.msra.mxu2 %v159_v31  ;;  %327 = vmatpush.msra.mxu3 %v223_v32  ;;  %v181_v31 = vunpack.c.l.bf16 %v104_v29  ;;  %v182_v32 = vunpack.c.h.bf16 %v104_v29 }
  0x24   :  { %347 = vmatpush.msrb.mxu0 %v160_v33  ;;  %367 = vmatpush.msrb.mxu1 %v224_v34  ;;  %v245_v33 = vunpack.c.l.bf16 %v136_v30  ;;  %v246_v34 = vunpack.c.h.bf16 %v136_v30 }
  0x25   :  { %308 = vmatpush.msra.mxu2 %v155_v37  ;;  %328 = vmatpush.msra.mxu3 %v219_v38  ;;  %v177_v37 = vunpack.c.l.bf16 %v102_v35  ;;  %v178_v38 = vunpack.c.h.bf16 %v102_v35 }
  0x26   :  { %348 = vmatpush.msrb.mxu0 %v156_v39  ;;  %368 = vmatpush.msrb.mxu1 %v220_v40  ;;  %v241_v39 = vunpack.c.l.bf16 %v134_v36  ;;  %v242_v40 = vunpack.c.h.bf16 %v134_v36 }
  0x27   :  { %373 = vmatpush.msrb.mxu2 %v217_v43  ;;  %393 = vmatpush.msrb.mxu3 %v281_v44  ;;  %v173_v43 = vunpack.c.l.bf16 %v100_v41  ;;  %v174_v44 = vunpack.c.h.bf16 %v100_v41 }
  0x28   :  { %413 = vmatpush.msra.mxu0 %v218_v45  ;;  %433 = vmatpush.msra.mxu1 %v282_v46  ;;  %v237_v45 = vunpack.c.l.bf16 %v132_v42  ;;  %v238_v46 = vunpack.c.h.bf16 %v132_v42  ;;  %v2955_v42 = vld [vmem:[%s5698_s5 + $0x780] sm:$0xff] }
  0x29   :  { %374 = vmatpush.msrb.mxu2 %v213_v49  ;;  %394 = vmatpush.msrb.mxu3 %v277_v50  ;;  %v169_v49 = vunpack.c.l.bf16 %v98_v47  ;;  %v170_v50 = vunpack.c.h.bf16 %v98_v47 }
  0x2a   :  { %414 = vmatpush.msra.mxu0 %v214_v51  ;;  %434 = vmatpush.msra.mxu1 %v278_v52  ;;  %v233_v51 = vunpack.c.l.bf16 %v130_v48  ;;  %v234_v52 = vunpack.c.h.bf16 %v130_v48  ;;  %v2977_v48 = vld [vmem:[%s5698_s5 + $0x760] sm:$0xff] }
  0x2b   :  { %375 = vmatpush.msrb.mxu2 %v209_v55  ;;  %395 = vmatpush.msrb.mxu3 %v273_v56  ;;  %v94_v55 = vld [vmem:[%s5695_s3 + $0x18] sm:$0xff]  ;;  %v165_v56 = vunpack.c.l.bf16 %v96_v53 }
  0x2c   :  { %415 = vmatpush.msra.mxu0 %v210_v57  ;;  %435 = vmatpush.msra.mxu1 %v274_v58  ;;  %v166_v57 = vunpack.c.h.bf16 %v96_v53  ;;  %v229_v58 = vunpack.c.l.bf16 %v128_v54 }
  0x2d   :  { %376 = vmatpush.msrb.mxu2 %v205_v61  ;;  %396 = vmatpush.msrb.mxu3 %v269_v62  ;;  %v92_v61 = vld [vmem:[%s5695_s3 + $0x8] sm:$0xff] }
  0x2e   :  { %416 = vmatpush.msra.mxu0 %v206_v63  ;;  %436 = vmatpush.msra.mxu1 %v270_v0  ;;  %v124_v62 = vld [vmem:[%s5695_s3 + $0x108] sm:$0xff]  ;;  %v161_v63 = vunpack.c.l.bf16 %v94_v55  ;;  %v162_v0 = vunpack.c.h.bf16 %v94_v55 }
  0x2f   :  { %377 = vmatpush.msrb.mxu2 %v201_v3  ;;  %397 = vmatpush.msrb.mxu3 %v265_v4  ;;  %v157_v3 = vunpack.c.l.bf16 %v92_v61  ;;  %v221_v4 = vunpack.c.l.bf16 %v124_v62 }
  0x30   :  { %417 = vmatpush.msra.mxu0 %v202_v5  ;;  %437 = vmatpush.msra.mxu1 %v266_v6  ;;  %v158_v5 = vunpack.c.h.bf16 %v92_v61  ;;  %v222_v6 = vunpack.c.h.bf16 %v124_v62 }
  0x31   :  { %378 = vmatpush.msrb.mxu2 %v197_v9  ;;  %398 = vmatpush.msrb.mxu3 %v261_v10  ;;  %v42_v9 = vperm.slane %v39_v7, 1  ;;  %v785_v7 = vunpack.c.l.bf16 %v3017_v60 }
  0x32   :  { %418 = vmatpush.msra.mxu0 %v198_v11  ;;  %438 = vmatpush.msra.mxu1 %v262_v12  ;;  %v2873_v12 = vld [vmem:[%s5698_s5 + $0x3e0] sm:$0xff] }
  0x33   :  { %379 = vmatpush.msrb.mxu2 %v193_v15  ;;  %399 = vmatpush.msrb.mxu3 %v257_v16  ;;  %v2883_v16 = vld [vmem:[%s5698_s5 + $0x7e0] sm:$0xff] }
  0x34   :  { %419 = vmatpush.msra.mxu0 %v194_v17  ;;  %439 = vmatpush.msra.mxu1 %v258_v18  ;;  %v2888_v17 = vld [vmem:[%s5698_s5 + $0x5e0] sm:$0xff] }
  0x35   :  { %380 = vmatpush.msrb.mxu2 %v189_v21  ;;  %400 = vmatpush.msrb.mxu3 %v253_v22  ;;  %v2893_v18 = vld [vmem:[%s5698_s5 + $0x3c0] sm:$0xff]  ;;  %v961_v22 = vunpack.c.l.bf16 %v2873_v12  ;;  %v1089_v29 = vunpack.c.l.bf16 %v2888_v17 }
  0x36   :  { %420 = vmatpush.msra.mxu0 %v190_v23  ;;  %440 = vmatpush.msra.mxu1 %v254_v24  ;;  %v833_v23 = vunpack.c.l.bf16 %v2878_v13  ;;  %v2905_v24 = vld [vmem:[%s5698_s5 + $0x7c0] sm:$0xff]  ;;  %v953_v30 = vunpack.c.l.bf16 %v2893_v18 }
  0x37   :  { %381 = vmatpush.msrb.mxu2 %v185_v25  ;;  %401 = vmatpush.msrb.mxu3 %v249_v26  ;;  %v2910_v25 = vld [vmem:[%s5698_s5 + $0x5c0] sm:$0xff] }
  0x38   :  { %421 = vmatpush.msra.mxu0 %v186_v27  ;;  %441 = vmatpush.msra.mxu1 %v250_v28  ;;  %v2915_v26 = vld [vmem:[%s5698_s5 + $0x3a0] sm:$0xff]  ;;  %v1217_v27 = vunpack.c.l.bf16 %v2883_v16  ;;  %v1081_v35 = vunpack.c.l.bf16 %v2910_v25 }
  0x39   :  { %382 = vmatpush.msrb.mxu2 %v181_v31  ;;  %402 = vmatpush.msrb.mxu3 %v245_v33  ;;  %v2921_v28 = vld [vmem:[%s5698_s5 + $0x1a0] sm:$0xff]  ;;  %v825_v31 = vunpack.c.l.bf16 %v2898_v19  ;;  %v945_v36 = vunpack.c.l.bf16 %v2915_v26 }
  0x3a   :  { %422 = vmatpush.msra.mxu0 %v182_v32  ;;  %442 = vmatpush.msra.mxu1 %v246_v34  ;;  %v2929_v32 = vld [vmem:[%s5698_s5 + $0x7a0] sm:$0xff]  ;;  %v1209_v34 = vunpack.c.l.bf16 %v2905_v24 }
  0x3b   :  { %383 = vmatpush.msrb.mxu2 %v177_v37  ;;  %403 = vmatpush.msrb.mxu3 %v241_v39  ;;  %v2934_v33 = vld [vmem:[%s5698_s5 + $0x5a0] sm:$0xff]  ;;  %v817_v37 = vunpack.c.l.bf16 %v2921_v28 }
  0x3c   :  { %423 = vmatpush.msra.mxu0 %v178_v38  ;;  %443 = vmatpush.msra.mxu1 %v242_v40  ;;  %v2943_v38 = vld [vmem:[%s5698_s5 + $0x380] sm:$0xff]  ;;  %v1201_v40 = vunpack.c.l.bf16 %v2929_v32  ;;  %v1073_v41 = vunpack.c.l.bf16 %v2934_v33 }
  0x3d   :  { %384 = vmatpush.msrb.mxu2 %v173_v43  ;;  %404 = vmatpush.msrb.mxu3 %v237_v45  ;;  %v2948_v39 = vld [vmem:[%s5698_s5 + $0x180] sm:$0xff] }
  0x3e   :  { %424 = vmatpush.msra.mxu0 %v174_v44  ;;  %444 = vmatpush.msra.mxu1 %v238_v46  ;;  %v2960_v43 = vld [vmem:[%s5698_s5 + $0x580] sm:$0xff]  ;;  %v937_v46 = vunpack.c.l.bf16 %v2943_v38  ;;  %v809_v47 = vunpack.c.l.bf16 %v2948_v39 }
  0x3f   :  { %385 = vmatpush.msrb.mxu2 %v169_v49  ;;  %405 = vmatpush.msrb.mxu3 %v233_v51  ;;  %v2965_v44 = vld [vmem:[%s5698_s5 + $0x360] sm:$0xff]  ;;  %v1193_v51 = vunpack.c.l.bf16 %v2955_v42  ;;  %v1065_v53 = vunpack.c.l.bf16 %v2960_v43 }
  0x40   :  { %425 = vmatpush.msra.mxu0 %v170_v50  ;;  %445 = vmatpush.msra.mxu1 %v234_v52  ;;  %v2970_v45 = vld [vmem:[%s5698_s5 + $0x160] sm:$0xff]  ;;  %v929_v54 = vunpack.c.l.bf16 %v2965_v44 }
  0x41   :  { %386 = vmatpush.msrb.mxu2 %v165_v56  ;;  %406 = vmatpush.msrb.mxu3 %v229_v58  ;;  %v2982_v49 = vld [vmem:[%s5698_s5 + $0x560] sm:$0xff]  ;;  %v801_v55 = vunpack.c.l.bf16 %v2970_v45 }
  0x42   :  { %426 = vmatpush.msra.mxu0 %v166_v57  ;;  %446 = vmatpush.msra.mxu1 %v230_v59  ;;  %v2987_v50 = vld [vmem:[%s5698_s5 + $0x340] sm:$0xff]  ;;  %v1185_v59 = vunpack.c.l.bf16 %v2977_v48  ;;  %v1057_v61 = vunpack.c.l.bf16 %v2982_v49 }
  0x43   :  { %387 = vmatpush.msrb.mxu2 %v161_v63  ;;  %407 = vmatpush.msrb.mxu3 %v225_v1  ;;  %v2993_v52 = vld [vmem:[%s5698_s5 + $0x140] sm:$0xff]  ;;  %v921_v62 = vunpack.c.l.bf16 %v2987_v50 }
  0x44   :  { %427 = vmatpush.msra.mxu0 %v162_v0  ;;  %447 = vmatpush.msra.mxu1 %v226_v2  ;;  %v3001_v56 = vld [vmem:[%s5698_s5 + $0x740] sm:$0xff]  ;;  %v793_v63 = vunpack.c.l.bf16 %v2993_v52 }
  0x45   :  { %388 = vmatpush.msrb.mxu2 %v157_v3  ;;  %408 = vmatpush.msrb.mxu3 %v221_v4  ;;  %v3006_v57 = vld [vmem:[%s5698_s5 + $0x540] sm:$0xff]  ;;  %v1177_v3 = vunpack.c.l.bf16 %v3001_v56 }
  0x46   :  { %428 = vmatpush.msra.mxu0 %v158_v5  ;;  %448 = vmatpush.msra.mxu1 %v222_v6  ;;  %v3011_v58 = vld [vmem:[%s5698_s5 + $0x320] sm:$0xff]  ;;  %v1049_v5 = vunpack.c.l.bf16 %v3006_v57 }
  0x47   :  { %v3025_v0 = vld [vmem:[%s5698_s5 + $0x720] sm:$0xff]  ;;  %v913_v6 = vunpack.c.l.bf16 %v3011_v58 }
  0x48   :  { %v3030_v1 = vld [vmem:[%s5698_s5 + $0x520] sm:$0xff] }
  0x49   :  { %v3035_v2 = vld [vmem:[%s5698_s5 + $0x300] sm:$0xff] }
  0x4a   :  { %v3041_v4 = vld [vmem:[%s5698_s5 + $0x100] sm:$0xff] }
  0x84   :  { %v66_v10 = vpop.f32.mrf.mxu0  ;;  %v86_v11 = vpop.f32.mrf.mxu1 }
  0x85   :  { %v67_v14 = vadd.f32 %v66_v10, %v41_v8  ;;  %v87_v15 = vadd.f32 %v86_v11, %v42_v9  ;;  %v3049_v8 = vld [vmem:[%s5698_s5 + $0x700] sm:$0xff]  ;;  %v1169_v11 = vunpack.c.l.bf16 %v3025_v0 }
  0x86   :  { %v3054_v9 = vld [vmem:[%s5698_s5 + $0x500] sm:$0xff] }
  0x87   :  { %v89_v20 = vmax.f32 %v67_v14, 0.0  ;;  %v90_v21 = vmax.f32 %v87_v15, 0.0  ;;  %5822 = vst [vmem:[#allocation2_spill] sm:$0xff] %v3054_v9  ;;  %v3059_v10 = vld [vmem:[%s5698_s5 + $0x2e0] sm:$0xff]  ;;  %v1041_v15 = vunpack.c.l.bf16 %v3030_v1 }
  0x88   :  { %v3065_v14 = vld [vmem:[%s5698_s5 + $0xe0] sm:$0xff] }
  0x89   :  { %309 = vmatmul.f32.vlgmr.msra.gmra.mxu2 %v89_v20  ;;  %329 = vmatmul.f32.vlgmr.msra.gmra.mxu3 %v90_v21 }
  0x8a   :  { %349 = vmatmul.f32.vlgmr.msrb.gmra.mxu0 %v89_v20  ;;  %369 = vmatmul.f32.vlgmr.msrb.gmra.mxu1 %v90_v21 }
  0x8b   :  { %1263 = vmatpush.msra.mxu3 %v961_v22  ;;  %1243 = vmatpush.msra.mxu2 %v833_v23  ;;  %v3073_v22 = vld [vmem:[%s5698_s5 + $0x6e0] sm:$0xff] }
  0x8c   :  { %1303 = vmatpush.msrb.mxu1 %v1217_v27  ;;  %1283 = vmatpush.msrb.mxu0 %v1089_v29  ;;  %v3078_v23 = vld [vmem:[%s5698_s5 + $0x4e0] sm:$0xff]  ;;  %v1161_v29 = vunpack.c.l.bf16 %v3049_v8 }
  0x8d   :  { %1264 = vmatpush.msra.mxu3 %v953_v30  ;;  %1244 = vmatpush.msra.mxu2 %v825_v31  ;;  %5823 = vst [vmem:[#allocation3_spill] sm:$0xff] %v3078_v23  ;;  %v3083_v27 = vld [vmem:[%s5698_s5 + $0x2c0] sm:$0xff]  ;;  %v1033_v31 = vunpack.c.l.bf16 %v3054_v9 }
  0x8e   :  { %1304 = vmatpush.msrb.mxu1 %v1209_v34  ;;  %1284 = vmatpush.msrb.mxu0 %v1081_v35  ;;  %v3089_v30 = vld [vmem:[%s5698_s5 + $0xc0] sm:$0xff]  ;;  %v897_v34 = vunpack.c.l.bf16 %v3059_v10  ;;  %v769_v35 = vunpack.c.l.bf16 %v3065_v14 }
  0x8f   :  { %1265 = vmatpush.msra.mxu3 %v945_v36  ;;  %1245 = vmatpush.msra.mxu2 %v817_v37  ;;  %v3097_v36 = vld [vmem:[%s5698_s5 + $0x6c0] sm:$0xff] }
  0x90   :  { %1305 = vmatpush.msrb.mxu1 %v1201_v40  ;;  %1285 = vmatpush.msrb.mxu0 %v1073_v41  ;;  %v3102_v37 = vld [vmem:[%s5698_s5 + $0x4c0] sm:$0xff]  ;;  %v1153_v41 = vunpack.c.l.bf16 %v3073_v22 }
  0x91   :  { %389 = vmatmul.f32.vlgmr.msrb.gmra.mxu2 %v89_v20  ;;  %409 = vmatmul.f32.vlgmr.msrb.gmra.mxu3 %v90_v21  ;;  %5824 = vst [vmem:[#allocation4_spill] sm:$0xff] %v3102_v37  ;;  %v3107_v40 = vld [vmem:[%s5698_s5 + $0x2a0] sm:$0xff] }
  0x92   :  { %429 = vmatmul.f32.vlgmr.msra.gmra.mxu0 %v89_v20  ;;  %449 = vmatmul.f32.vlgmr.msra.gmra.mxu1 %v90_v21  ;;  %v905_v20 = vunpack.c.l.bf16 %v3035_v2  ;;  %v777_v21 = vunpack.c.l.bf16 %v3041_v4 }
  0x93   :  { %1266 = vmatpush.msra.mxu3 %v937_v46  ;;  %1246 = vmatpush.msra.mxu2 %v809_v47  ;;  %v3113_v46 = vld [vmem:[%s5698_s5 + $0xa0] sm:$0xff]  ;;  %v1025_v47 = vunpack.c.l.bf16 %v3078_v23 }
  0x94   :  { %1306 = vmatpush.msrb.mxu1 %v1193_v51  ;;  %1286 = vmatpush.msrb.mxu0 %v1065_v53  ;;  %v889_v51 = vunpack.c.l.bf16 %v3083_v27  ;;  %v761_v53 = vunpack.c.l.bf16 %v3089_v30 }
  0x95   :  { %1267 = vmatpush.msra.mxu3 %v929_v54  ;;  %1247 = vmatpush.msra.mxu2 %v801_v55  ;;  %v3121_v54 = vld [vmem:[%s5698_s5 + $0x6a0] sm:$0xff] }
  0x96   :  { %1307 = vmatpush.msrb.mxu1 %v1185_v59  ;;  %1287 = vmatpush.msrb.mxu0 %v1057_v61  ;;  %5825 = vst [vmem:[#allocation5_spill] sm:$0xff] %v3121_v54  ;;  %v3126_v55 = vld [vmem:[%s5698_s5 + $0x4a0] sm:$0xff]  ;;  %v1145_v61 = vunpack.c.l.bf16 %v3097_v36 }
  0x97   :  { %1268 = vmatpush.msra.mxu3 %v921_v62  ;;  %1248 = vmatpush.msra.mxu2 %v793_v63  ;;  %5826 = vst [vmem:[#allocation6_spill] sm:$0xff] %v3126_v55  ;;  %v3131_v59 = vld [vmem:[%s5698_s5 + $0x280] sm:$0xff]  ;;  %v1017_v63 = vunpack.c.l.bf16 %v3102_v37 }
  0x98   :  { %1308 = vmatpush.msrb.mxu1 %v1177_v3  ;;  %1288 = vmatpush.msrb.mxu0 %v1049_v5  ;;  %v3137_v62 = vld [vmem:[%s5698_s5 + $0x80] sm:$0xff]  ;;  %v881_v3 = vunpack.c.l.bf16 %v3107_v40  ;;  %v753_v5 = vunpack.c.l.bf16 %v3113_v46 }
  0x99   :  { %1269 = vmatpush.msra.mxu3 %v913_v6  ;;  %1249 = vmatpush.msra.mxu2 %v785_v7  ;;  %v3145_v6 = vld [vmem:[%s5698_s5 + $0x680] sm:$0xff] }
  0x9a   :  { %1309 = vmatpush.msrb.mxu1 %v1169_v11  ;;  %1289 = vmatpush.msrb.mxu0 %v1041_v15  ;;  %5827 = vst [vmem:[#allocation7_spill] sm:$0xff] %v3145_v6  ;;  %v3150_v7 = vld [vmem:[%s5698_s5 + $0x480] sm:$0xff]  ;;  %v1137_v15 = vunpack.c.l.bf16 %v3121_v54 }
  0x9b   :  { %1270 = vmatpush.msra.mxu3 %v905_v20  ;;  %1250 = vmatpush.msra.mxu2 %v777_v21  ;;  %5828 = vst [vmem:[#allocation8_spill] sm:$0xff] %v3150_v7  ;;  %v3155_v11 = vld [vmem:[%s5698_s5 + $0x260] sm:$0xff]  ;;  %v1009_v21 = vunpack.c.l.bf16 %v3126_v55 }
  0x9c   :  { %1310 = vmatpush.msrb.mxu1 %v1161_v29  ;;  %1290 = vmatpush.msrb.mxu0 %v1033_v31  ;;  %v3161_v20 = vld [vmem:[%s5698_s5 + $0x60] sm:$0xff]  ;;  %v873_v29 = vunpack.c.l.bf16 %v3131_v59  ;;  %v745_v31 = vunpack.c.l.bf16 %v3137_v62  ;;  %v865_v55 = vunpack.c.l.bf16 %v3155_v11 }
  0x9d   :  { %1271 = vmatpush.msra.mxu3 %v897_v34  ;;  %1251 = vmatpush.msra.mxu2 %v769_v35  ;;  %5829 = vst [vmem:[#allocation9_spill] sm:$0xff] %v3161_v20  ;;  %v3169_v34 = vld [vmem:[%s5698_s5 + $0x660] sm:$0xff]  ;;  %v737_v37 = vunpack.c.l.bf16 %v3161_v20 }
  0x9e   :  { %1311 = vmatpush.msrb.mxu1 %v1153_v41  ;;  %1291 = vmatpush.msrb.mxu0 %v1025_v47  ;;  %5830 = vst [vmem:[#allocation10_spill] sm:$0xff] %v3169_v34  ;;  %v3174_v35 = vld [vmem:[%s5698_s5 + $0x460] sm:$0xff]  ;;  %v1129_v47 = vunpack.c.l.bf16 %v3145_v6 }
  0x9f   :  { %1272 = vmatpush.msra.mxu3 %v889_v51  ;;  %1252 = vmatpush.msra.mxu2 %v761_v53  ;;  %5831 = vst [vmem:[#allocation11_spill] sm:$0xff] %v3174_v35  ;;  %v3179_v41 = vld [vmem:[%s5698_s5 + $0x240] sm:$0xff]  ;;  %v1001_v53 = vunpack.c.l.bf16 %v3150_v7  ;;  %v993_v7 = vunpack.c.l.bf16 %v3174_v35 }
  0xa0   :  { %1312 = vmatpush.msrb.mxu1 %v1145_v61  ;;  %v3185_v51 = vld [vmem:[%s5698_s5 + $0x40] sm:$0xff]  ;;  %1292 = vmatpush.msrb.mxu0 %v1017_v63  ;;  %v857_v23 = vunpack.c.l.bf16 %v3179_v41 }
  0xa1   :  { %5832 = vst [vmem:[#allocation12_spill] sm:$0xff] %v3185_v51  ;;  %1273 = vmatpush.msra.mxu3 %v881_v3  ;;  %1253 = vmatpush.msra.mxu2 %v753_v5  ;;  %v3193_v61 = vld [vmem:[%s5698_s5 + $0x640] sm:$0xff]  ;;  %v1121_v3 = vunpack.c.l.bf16 %v3169_v34  ;;  %v729_v20 = vunpack.c.l.bf16 %v3185_v51 }
  0xa2   :  { %5833 = vst [vmem:[#allocation13_spill] sm:$0xff] %v3193_v61  ;;  %v3198_v6 = vld [vmem:[%s5698_s5 + $0x440] sm:$0xff]  ;;  %1313 = vmatpush.msrb.mxu1 %v1137_v15  ;;  %1293 = vmatpush.msrb.mxu0 %v1009_v21 }
  0xa3   :  { %5834 = vst [vmem:[#allocation14_spill] sm:$0xff] %v3198_v6  ;;  %v3203_v63 = vld [vmem:[%s5698_s5 + $0x220] sm:$0xff]  ;;  %1274 = vmatpush.msra.mxu3 %v873_v29  ;;  %1254 = vmatpush.msra.mxu2 %v745_v31  ;;  %v1113_v29 = vunpack.c.l.bf16 %v3193_v61  ;;  %v985_v35 = vunpack.c.l.bf16 %v3198_v6 }
  0xa4   :  { %v3209_v5 = vld [vmem:[%s5698_s5 + $0x20] sm:$0xff]  ;;  %1314 = vmatpush.msrb.mxu1 %v1129_v47  ;;  %1294 = vmatpush.msrb.mxu0 %v1001_v53  ;;  %v849_v51 = vunpack.c.l.bf16 %v3203_v63 }
  0xa5   :  { %v3217_v15 = vld [vmem:[%s5698_s5 + $0x620] sm:$0xff]  ;;  %1275 = vmatpush.msra.mxu3 %v865_v55  ;;  %1255 = vmatpush.msra.mxu2 %v737_v37  ;;  %v721_v54 = vunpack.c.l.bf16 %v3209_v5 }
  0xa6   :  { %5835 = vst [vmem:[#allocation15_spill] sm:$0xff] %v3217_v15  ;;  %v3222_v34 = vld [vmem:[%s5698_s5 + $0x420] sm:$0xff]  ;;  %1315 = vmatpush.msrb.mxu1 %v1121_v3  ;;  %v1105_v9 = vunpack.c.l.bf16 %v3217_v15  ;;  %1295 = vmatpush.msrb.mxu0 %v993_v7  ;;  %v962_v7 = vunpack.c.h.bf16 %v2873_v12  ;;  %v834_v3 = vunpack.c.h.bf16 %v2878_v13  ;;  %v954_v15 = vunpack.c.h.bf16 %v2893_v18 }
  0xa7   :  { %5836 = vst [vmem:[#allocation16_spill] sm:$0xff] %v3222_v34  ;;  %v3227_v21 = vld [vmem:[%s5698_s5 + $0x200] sm:$0xff]  ;;  %v977_v61 = vunpack.c.l.bf16 %v3222_v34  ;;  %1276 = vmatpush.msra.mxu3 %v857_v23  ;;  %1256 = vmatpush.msra.mxu2 %v729_v20  ;;  %v826_v23 = vunpack.c.h.bf16 %v2898_v19  ;;  %v1218_v12 = vunpack.c.h.bf16 %v2883_v16  ;;  %v1090_v20 = vunpack.c.h.bf16 %v2888_v17 }
  0xa8   :  { %v3233_v31 = vld [vmem:[%s5698_s5] sm:$0xff]  ;;  %v841_v37 = vunpack.c.l.bf16 %v3227_v21  ;;  %1316 = vmatpush.msrb.mxu1 %v1113_v29  ;;  %1296 = vmatpush.msrb.mxu0 %v985_v35  ;;  %v946_v13 = vunpack.c.h.bf16 %v2915_v26  ;;  %v1210_v35 = vunpack.c.h.bf16 %v2905_v24  ;;  %v1082_v18 = vunpack.c.h.bf16 %v2910_v25  ;;  %v5843_v29 = vld [vmem:[#allocation4_spill] sm:$0xff] }
  0xa9   :  { %v3242_v47 = vld [vmem:[%s5698_s5 + $0x600] sm:$0xff]  ;;  %v713_v53 = vunpack.c.l.bf16 %v3233_v31  ;;  %1277 = vmatpush.msra.mxu3 %v849_v51  ;;  %1257 = vmatpush.msra.mxu2 %v721_v54  ;;  %v818_v54 = vunpack.c.h.bf16 %v2921_v28  ;;  %v938_v19 = vunpack.c.h.bf16 %v2943_v38  ;;  %v810_v16 = vunpack.c.h.bf16 %v2948_v39 }
  0xaa   :  { %v3248_v55 = vld [vmem:[%s5698_s5 + $0x400] sm:$0xff]  ;;  %v1097_v34 = vunpack.c.l.bf16 %v3242_v47  ;;  %1317 = vmatpush.msrb.mxu1 %v1105_v9  ;;  %1297 = vmatpush.msrb.mxu0 %v977_v61  ;;  %v1202_v17 = vunpack.c.h.bf16 %v2929_v32  ;;  %v1074_v26 = vunpack.c.h.bf16 %v2934_v33  ;;  %v930_v28 = vunpack.c.h.bf16 %v2965_v44  ;;  %v5841_v61 = vld [vmem:[#allocation7_spill] sm:$0xff] }
  0xab   :  { %v969_v6 = vunpack.c.l.bf16 %v3248_v55  ;;  %1278 = vmatpush.msra.mxu3 %v841_v37  ;;  %1258 = vmatpush.msra.mxu2 %v713_v53  ;;  %v802_v24 = vunpack.c.h.bf16 %v2970_v45  ;;  %v1194_v25 = vunpack.c.h.bf16 %v2955_v42  ;;  %v1066_v38 = vunpack.c.h.bf16 %v2960_v43  ;;  %v5844_v53 = vld [vmem:[#allocation10_spill] sm:$0xff] }
  0xac   :  { %1318 = vmatpush.msrb.mxu1 %v1097_v34  ;;  %v922_v39 = vunpack.c.h.bf16 %v2987_v50  ;;  %v794_v32 = vunpack.c.h.bf16 %v2993_v52  ;;  %v1186_v33 = vunpack.c.h.bf16 %v2977_v48  ;;  %v1058_v44 = vunpack.c.h.bf16 %v2982_v49 }
  0xad   :  { %1343 = vmatpush.msrb.mxu3 %v962_v7  ;;  %1323 = vmatpush.msrb.mxu2 %v834_v3  ;;  %v914_v45 = vunpack.c.h.bf16 %v3011_v58  ;;  %v786_v42 = vunpack.c.h.bf16 %v3017_v60  ;;  %v1178_v43 = vunpack.c.h.bf16 %v3001_v56  ;;  %v906_v50 = vunpack.c.h.bf16 %v3035_v2  ;;  %v5845_v3 = vld [vmem:[#allocation6_spill] sm:$0xff] }
  0xae   :  { %1298 = vmatpush.msrb.mxu0 %v969_v6  ;;  %1383 = vmatpush.msra.mxu1 %v1218_v12  ;;  %v778_v52 = vunpack.c.h.bf16 %v3041_v4  ;;  %v1170_v48 = vunpack.c.h.bf16 %v3025_v0  ;;  %v898_v49 = vunpack.c.h.bf16 %v3059_v10  ;;  %v770_v58 = vunpack.c.h.bf16 %v3065_v14  ;;  %v5837_v6 = vld [vmem:[#allocation2_spill] sm:$0xff]  ;;  %v5846_v12 = vld [vmem:[#allocation13_spill] sm:$0xff] }
  0xaf   :  { %1344 = vmatpush.msrb.mxu3 %v954_v15  ;;  %1324 = vmatpush.msrb.mxu2 %v826_v23  ;;  %v1162_v56 = vunpack.c.h.bf16 %v3049_v8  ;;  %v890_v60 = vunpack.c.h.bf16 %v3083_v27  ;;  %v882_v2 = vunpack.c.h.bf16 %v3107_v40  ;;  %v874_v0 = vunpack.c.h.bf16 %v3131_v59 }
  0xb0   :  { %1363 = vmatpush.msra.mxu0 %v1090_v20  ;;  %1384 = vmatpush.msra.mxu1 %v1210_v35  ;;  %v762_v4 = vunpack.c.h.bf16 %v3089_v30  ;;  %v866_v9 = vunpack.c.h.bf16 %v3155_v11  ;;  %v1050_v8 = vunpack.c.h.bf16 %v3006_v57  ;;  %v1154_v10 = vunpack.c.h.bf16 %v3073_v22  ;;  %v5838_v11 = vld [vmem:[#allocation5_spill] sm:$0xff] }
  0xb1   :  { %1345 = vmatpush.msrb.mxu3 %v946_v13  ;;  %1325 = vmatpush.msrb.mxu2 %v818_v54  ;;  %v754_v14 = vunpack.c.h.bf16 %v3113_v46  ;;  %v858_v27 = vunpack.c.h.bf16 %v3179_v41  ;;  %v1042_v40 = vunpack.c.h.bf16 %v3030_v1  ;;  %v1146_v59 = vunpack.c.h.bf16 %v3097_v36  ;;  %v5839_v46 = vld [vmem:[#allocation9_spill] sm:$0xff]  ;;  %v5840_v41 = vld [vmem:[#allocation3_spill] sm:$0xff]  ;;  %v5847_v54 = vld [vmem:[#allocation8_spill] sm:$0xff] }
  0xb2   :  { %1364 = vmatpush.msra.mxu0 %v1082_v18  ;;  %1385 = vmatpush.msra.mxu1 %v1202_v17  ;;  %v746_v30 = vunpack.c.h.bf16 %v3137_v62  ;;  %v850_v57 = vunpack.c.h.bf16 %v3203_v63  ;;  %v1034_v22 = vunpack.c.h.bf16 %v5837_v6  ;;  %v1138_v34 = vunpack.c.h.bf16 %v5838_v11  ;;  %v5842_v62 = vld [vmem:[#allocation12_spill] sm:$0xff]  ;;  %v5848_v18 = vld [vmem:[#allocation15_spill] sm:$0xff] }
  0xb3   :  { %1346 = vmatpush.msrb.mxu3 %v938_v19  ;;  %1326 = vmatpush.msrb.mxu2 %v810_v16  ;;  %v738_v1 = vunpack.c.h.bf16 %v5839_v46  ;;  %v842_v36 = vunpack.c.h.bf16 %v3227_v21  ;;  %v1026_v51 = vunpack.c.h.bf16 %v5840_v41  ;;  %v1130_v15 = vunpack.c.h.bf16 %v5841_v61  ;;  %v5849_v16 = vld [vmem:[#allocation11_spill] sm:$0xff] }
  0xb4   :  { %1365 = vmatpush.msra.mxu0 %v1074_v26  ;;  %1386 = vmatpush.msra.mxu1 %v1194_v25  ;;  %v730_v63 = vunpack.c.h.bf16 %v5842_v62  ;;  %v1018_v37 = vunpack.c.h.bf16 %v5843_v29  ;;  %v1122_v7 = vunpack.c.h.bf16 %v5844_v53  ;;  %v722_v21 = vunpack.c.h.bf16 %v3209_v5  ;;  %v5850_v26 = vld [vmem:[#allocation14_spill] sm:$0xff]  ;;  %v3379_v46 = vld [vmem:[%s5698_s5 + $0x348] sm:$0xff] }
  0xb5   :  { %1347 = vmatpush.msrb.mxu3 %v930_v28  ;;  %1327 = vmatpush.msrb.mxu2 %v802_v24  ;;  %v1010_v23 = vunpack.c.h.bf16 %v5845_v3  ;;  %v1114_v20 = vunpack.c.h.bf16 %v5846_v12  ;;  %v714_v13 = vunpack.c.h.bf16 %v3233_v31  ;;  %v1002_v35 = vunpack.c.h.bf16 %v5847_v54  ;;  %v5851_v24 = vld [vmem:[#allocation16_spill] sm:$0xff]  ;;  %v3387_v41 = vld [vmem:[%s5698_s5 + $0x7c8] sm:$0xff] }
  0xb6   :  { %1366 = vmatpush.msra.mxu0 %v1066_v38  ;;  %1387 = vmatpush.msra.mxu1 %v1186_v33  ;;  %v1106_v19 = vunpack.c.h.bf16 %v5848_v18  ;;  %v994_v17 = vunpack.c.h.bf16 %v5849_v16  ;;  %v1098_v5 = vunpack.c.h.bf16 %v3242_v47  ;;  %v986_v28 = vunpack.c.h.bf16 %v5850_v26  ;;  %v283_v38 = vld [vmem:[%s5699_s4] sm:$0xf]  ;;  %v3395_v62 = vld [vmem:[%s5698_s5 + $0x188] sm:$0xff] }
  0xb7   :  { %1348 = vmatpush.msrb.mxu3 %v922_v39  ;;  %1328 = vmatpush.msrb.mxu2 %v794_v32  ;;  %v978_v25 = vunpack.c.h.bf16 %v5851_v24  ;;  %v970_v31 = vunpack.c.h.bf16 %v3248_v55  ;;  %v286_v39 = vperm.slane %v283_v38, 1  ;;  %v3329_v55 = vld [vmem:[%s5698_s5 + $0x3c8] sm:$0xff]  ;;  %v287_v6 = vperm.slane %v283_v38, 2 }
  0xb8   :  { %1367 = vmatpush.msra.mxu0 %v1058_v44  ;;  %1388 = vmatpush.msra.mxu1 %v1178_v43  ;;  %v3324_v44 = vld [vmem:[%s5698_s5 + $0x3e8] sm:$0xff]  ;;  %v923_v53 = vunpack.c.l.bf16 %v3379_v46  ;;  %v1211_v3 = vunpack.c.l.bf16 %v3387_v41 }
  0xb9   :  { %1349 = vmatpush.msrb.mxu3 %v914_v45  ;;  %1329 = vmatpush.msrb.mxu2 %v786_v42  ;;  %v285_v45 = vperm.slane %v283_v38, 0  ;;  %v963_v43 = vunpack.c.l.bf16 %v3324_v44  ;;  %v3422_v54 = vld [vmem:[%s5698_s5 + $0x168] sm:$0xff] }
  0xba   :  { %1389 = vmatpush.msra.mxu1 %v1170_v48  ;;  %1368 = vmatpush.msra.mxu0 %v1050_v8  ;;  %v3438_v16 = vld [vmem:[%s5698_s5 + $0x2e8] sm:$0xff] }
  0xbb   :  { %1350 = vmatpush.msrb.mxu3 %v906_v50  ;;  %1330 = vmatpush.msrb.mxu2 %v778_v52  ;;  %v3446_v26 = vld [vmem:[%s5698_s5 + $0x148] sm:$0xff] }
  0xbc   :  { %1390 = vmatpush.msra.mxu1 %v1162_v56  ;;  %1369 = vmatpush.msra.mxu0 %v1042_v40  ;;  %v3361_v40 = vld [vmem:[%s5698_s5 + $0x368] sm:$0xff] }
  0xbd   :  { %1351 = vmatpush.msrb.mxu3 %v898_v49  ;;  %1331 = vmatpush.msrb.mxu2 %v770_v58  ;;  %v288_v49 = vperm.slane %v283_v38, 3  ;;  %v3337_v58 = vld [vmem:[%s5698_s5 + $0x3a8] sm:$0xff] }
  0xbe   :  { %1391 = vmatpush.msra.mxu1 %v1154_v10  ;;  %1370 = vmatpush.msra.mxu0 %v1034_v22  ;;  %v947_v8 = vunpack.c.l.bf16 %v3337_v58  ;;  %v3369_v22 = vld [vmem:[%s5698_s5 + $0x7e8] sm:$0xff] }
  0xbf   :  { %1352 = vmatpush.msrb.mxu3 %v890_v60  ;;  %1332 = vmatpush.msrb.mxu2 %v762_v4  ;;  %v955_v60 = vunpack.c.l.bf16 %v3329_v55 }
  0xc0   :  { %1392 = vmatpush.msra.mxu1 %v1146_v59  ;;  %1371 = vmatpush.msra.mxu0 %v1026_v51 }
  0xc1   :  { %1353 = vmatpush.msrb.mxu3 %v882_v2  ;;  %1333 = vmatpush.msrb.mxu2 %v754_v14  ;;  %v3343_v2 = vld [vmem:[%s5698_s5 + $0x1e8] sm:$0xff] }
  0xc2   :  { %1393 = vmatpush.msra.mxu1 %v1138_v34  ;;  %1372 = vmatpush.msra.mxu0 %v1018_v37  ;;  %v835_v14 = vunpack.c.l.bf16 %v3343_v2  ;;  %v3374_v34 = vld [vmem:[%s5698_s5 + $0x1a8] sm:$0xff] }
  0xc3   :  { %1354 = vmatpush.msrb.mxu3 %v874_v0  ;;  %1334 = vmatpush.msrb.mxu2 %v746_v30  ;;  %v3349_v0 = vld [vmem:[%s5698_s5 + $0x388] sm:$0xff]  ;;  %v819_v37 = vunpack.c.l.bf16 %v3374_v34 }
  0xc4   :  { %1394 = vmatpush.msra.mxu1 %v1130_v15  ;;  %1373 = vmatpush.msra.mxu0 %v1010_v23  ;;  %v1219_v15 = vunpack.c.l.bf16 %v3369_v22  ;;  %v3415_v23 = vld [vmem:[%s5698_s5 + $0x308] sm:$0xff] }
  0xc5   :  { %1355 = vmatpush.msrb.mxu3 %v866_v9  ;;  %1335 = vmatpush.msrb.mxu2 %v738_v1 }
  0xc6   :  { %1395 = vmatpush.msra.mxu1 %v1122_v7  ;;  %1374 = vmatpush.msra.mxu0 %v1002_v35  ;;  %v3407_v7 = vld [vmem:[%s5698_s5 + $0x7a8] sm:$0xff] }
  0xc7   :  { %1356 = vmatpush.msrb.mxu3 %v858_v27  ;;  %1336 = vmatpush.msrb.mxu2 %v730_v63  ;;  %v3356_v27 = vld [vmem:[%s5698_s5 + $0x1c8] sm:$0xff]  ;;  %v1203_v18 = vunpack.c.l.bf16 %v3407_v7 }
  0xc8   :  { %1396 = vmatpush.msra.mxu1 %v1114_v20  ;;  %1375 = vmatpush.msra.mxu0 %v994_v17  ;;  %v827_v1 = vunpack.c.l.bf16 %v3356_v27  ;;  %v3400_v63 = vld [vmem:[%s5698_s5 + $0x328] sm:$0xff]  ;;  %v811_v20 = vunpack.c.l.bf16 %v3395_v62 }
  0xc9   :  { %1357 = vmatpush.msrb.mxu3 %v850_v57  ;;  %1337 = vmatpush.msrb.mxu2 %v722_v21  ;;  %v939_v57 = vunpack.c.l.bf16 %v3349_v0  ;;  %v3427_v35 = vld [vmem:[%s5698_s5 + $0x5e8] sm:$0xff] }
  0xca   :  { %1397 = vmatpush.msra.mxu1 %v1106_v19  ;;  %1376 = vmatpush.msra.mxu0 %v986_v28  ;;  %v3433_v19 = vld [vmem:[%s5698_s5 + $0x788] sm:$0xff]  ;;  %v803_v28 = vunpack.c.l.bf16 %v3422_v54  ;;  %v1091_v24 = vunpack.c.l.bf16 %v3427_v35 }
  0xcb   :  { %1358 = vmatpush.msrb.mxu3 %v842_v36  ;;  %1338 = vmatpush.msrb.mxu2 %v714_v13  ;;  %v931_v36 = vunpack.c.l.bf16 %v3361_v40  ;;  %v915_v13 = vunpack.c.l.bf16 %v3400_v63  ;;  %v1195_v38 = vunpack.c.l.bf16 %v3433_v19 }
  0xcc   :  { %1398 = vmatpush.msra.mxu1 %v1098_v5  ;;  %1377 = vmatpush.msra.mxu0 %v978_v25  ;;  %v907_v5 = vunpack.c.l.bf16 %v3415_v23  ;;  %v3453_v25 = vld [vmem:[%s5698_s5 + $0x5c8] sm:$0xff] }
  0xce   :  { %1378 = vmatpush.msra.mxu0 %v970_v31  ;;  %v3458_v31 = vld [vmem:[%s5698_s5 + $0x768] sm:$0xff] }
 0x107   :  { %v350_v32 = vpop.f32.mrf.mxu0  ;;  %v370_v33 = vpop.f32.mrf.mxu1 }
 0x108   :  { %v351_v47 = vadd.f32 %v350_v32, %v286_v39  ;;  %v899_v39 = vunpack.c.l.bf16 %v3438_v16  ;;  %v3465_v32 = vld [vmem:[%s5698_s5 + $0x128] sm:$0xff] }
 0x10a   :  { %v371_v42 = vadd.f32 %v370_v33, %v351_v47  ;;  %v3470_v33 = vld [vmem:[%s5698_s5 + $0x2c8] sm:$0xff]  ;;  %v795_v47 = vunpack.c.l.bf16 %v3446_v26 }
 0x10c   :  { %v3332_v50 = vmax.f32 %v371_v42, 0.0  ;;  %v310_v52 = vpop.f32.mrf.mxu2  ;;  %v330_v48 = vpop.f32.mrf.mxu3  ;;  %v3482_v42 = vld [vmem:[%s5698_s5 + $0x748] sm:$0xff] }
 0x10d   :  { %v311_v56 = vadd.f32 %v310_v52, %v285_v45  ;;  %v3477_v45 = vld [vmem:[%s5698_s5 + $0x5a8] sm:$0xff]  ;;  %v1187_v52 = vunpack.c.l.bf16 %v3458_v31 }
 0x10e   :  { %5852 = vst [vmem:[#allocation2_spill] sm:$0xff] %v3332_v50  ;;  %1279 = vmatmul.f32.vlgmr.msra.gmra.mxu3 %v3332_v50 }
 0x10f   :  { %v331_v4 = vadd.f32 %v330_v48, %v311_v56  ;;  %1423 = vmatpush.msra.mxu3 %v963_v43  ;;  %v430_v9 = vpop.f32.mrf.mxu0  ;;  %v450_v30 = vpop.f32.mrf.mxu1  ;;  %v1083_v43 = vunpack.c.l.bf16 %v3453_v25  ;;  %v3490_v48 = vld [vmem:[%s5698_s5 + $0x108] sm:$0xff]  ;;  %v787_v56 = vunpack.c.l.bf16 %v3465_v32 }
 0x110   :  { %v431_v10 = vadd.f32 %v430_v9, %v288_v49  ;;  %v3495_v49 = vld [vmem:[%s5698_s5 + $0x2a8] sm:$0xff] }
 0x111   :  { %v3363_v59 = vmax.f32 %v331_v4, 0.0  ;;  %1424 = vmatpush.msra.mxu3 %v955_v60  ;;  %v891_v60 = vunpack.c.l.bf16 %v3470_v33  ;;  %v3502_v4 = vld [vmem:[%s5698_s5 + $0x588] sm:$0xff] }
 0x112   :  { %v451_v11 = vadd.f32 %v450_v30, %v431_v10  ;;  %v3507_v9 = vld [vmem:[%s5698_s5 + $0x728] sm:$0xff]  ;;  %v1179_v10 = vunpack.c.l.bf16 %v3482_v42  ;;  %v779_v30 = vunpack.c.l.bf16 %v3490_v48 }
 0x113   :  { %1425 = vmatpush.msra.mxu3 %v947_v8  ;;  %1259 = vmatmul.f32.vlgmr.msra.gmra.mxu2 %v3363_v59  ;;  %v1075_v8 = vunpack.c.l.bf16 %v3477_v45 }
 0x114   :  { %v3389_v51 = vmax.f32 %v451_v11, 0.0  ;;  %1403 = vmatpush.msra.mxu2 %v835_v14  ;;  %v390_v61 = vpop.f32.mrf.mxu2  ;;  %v410_v21 = vpop.f32.mrf.mxu3  ;;  %v3514_v14 = vld [vmem:[%s5698_s5 + $0xe8] sm:$0xff] }
 0x115   :  { %1426 = vmatpush.msra.mxu3 %v939_v57  ;;  %v391_v29 = vadd.f32 %v390_v61, %v287_v6  ;;  %v883_v57 = vunpack.c.l.bf16 %v3495_v49  ;;  %v3522_v6 = vld [vmem:[%s5698_s5 + $0x288] sm:$0xff] }
 0x116   :  { %1319 = vmatmul.f32.vlgmr.msrb.gmra.mxu1 %v3389_v51  ;;  %1359 = vmatmul.f32.vlgmr.msrb.gmra.mxu3 %v3332_v50  ;;  %v3527_v11 = vld [vmem:[%s5698_s5 + $0x568] sm:$0xff] }
 0x117   :  { %v411_v12 = vadd.f32 %v410_v21, %v391_v29  ;;  %1404 = vmatpush.msra.mxu2 %v827_v1  ;;  %1427 = vmatpush.msra.mxu3 %v931_v36  ;;  %v1067_v1 = vunpack.c.l.bf16 %v3502_v4  ;;  %v1171_v36 = vunpack.c.l.bf16 %v3507_v9  ;;  %v3534_v61 = vld [vmem:[%s5698_s5 + $0x708] sm:$0xff]  ;;  %v771_v29 = vunpack.c.l.bf16 %v3514_v14 }
 0x118   :  { %1463 = vmatpush.msrb.mxu1 %v1219_v15  ;;  %v3539_v15 = vld [vmem:[%s5698_s5 + $0xc8] sm:$0xff]  ;;  %v875_v21 = vunpack.c.l.bf16 %v3522_v6 }
 0x119   :  { %v3440_v17 = vmax.f32 %v411_v12, 0.0  ;;  %1405 = vmatpush.msra.mxu2 %v819_v37  ;;  %1428 = vmatpush.msra.mxu3 %v923_v53  ;;  %v3545_v37 = vld [vmem:[%s5698_s5 + $0x268] sm:$0xff] }
 0x11a   :  { %1464 = vmatpush.msrb.mxu1 %v1211_v3  ;;  %v3550_v53 = vld [vmem:[%s5698_s5 + $0x548] sm:$0xff]  ;;  %v1059_v3 = vunpack.c.l.bf16 %v3527_v11 }
 0x11b   :  { %1406 = vmatpush.msra.mxu2 %v811_v20  ;;  %1429 = vmatpush.msra.mxu3 %v915_v13  ;;  %v3557_v12 = vld [vmem:[%s5698_s5 + $0x6e8] sm:$0xff]  ;;  %v1163_v13 = vunpack.c.l.bf16 %v3534_v61 }
 0x11c   :  { %1465 = vmatpush.msrb.mxu1 %v1203_v18  ;;  %1299 = vmatmul.f32.vlgmr.msrb.gmra.mxu0 %v3440_v17  ;;  %v3562_v20 = vld [vmem:[%s5698_s5 + $0xa8] sm:$0xff]  ;;  %v763_v18 = vunpack.c.l.bf16 %v3539_v15 }
 0x11d   :  { %1339 = vmatmul.f32.vlgmr.msrb.gmra.mxu2 %v3363_v59  ;;  %1430 = vmatpush.msra.mxu3 %v907_v5  ;;  %v3569_v5 = vld [vmem:[%s5698_s5 + $0x248] sm:$0xff] }
 0x11e   :  { %1407 = vmatpush.msra.mxu2 %v803_v28  ;;  %1443 = vmatpush.msrb.mxu0 %v1091_v24  ;;  %v3574_v28 = vld [vmem:[%s5698_s5 + $0x528] sm:$0xff]  ;;  %v867_v24 = vunpack.c.l.bf16 %v3545_v37 }
 0x11f   :  { %1466 = vmatpush.msrb.mxu1 %v1195_v38  ;;  %1431 = vmatpush.msra.mxu3 %v899_v39  ;;  %v1051_v38 = vunpack.c.l.bf16 %v3550_v53  ;;  %v3581_v39 = vld [vmem:[%s5698_s5 + $0x6c8] sm:$0xff] }
 0x120   :  { %1399 = vmatmul.f32.vlgmr.msra.gmra.mxu1 %v3389_v51  ;;  %1408 = vmatpush.msra.mxu2 %v795_v47  ;;  %5853 = vst [vmem:[#allocation5_spill] sm:$0xff] %v3581_v39  ;;  %v3586_v47 = vld [vmem:[%s5698_s5 + $0x88] sm:$0xff] }
 0x121   :  { %1444 = vmatpush.msrb.mxu0 %v1083_v43  ;;  %1467 = vmatpush.msrb.mxu1 %v1187_v52  ;;  %5854 = vst [vmem:[#allocation9_spill] sm:$0xff] %v3586_v47  ;;  %v1155_v43 = vunpack.c.l.bf16 %v3557_v12  ;;  %v755_v52 = vunpack.c.l.bf16 %v3562_v20 }
 0x122   :  { %1409 = vmatpush.msra.mxu2 %v787_v56  ;;  %1432 = vmatpush.msra.mxu3 %v891_v60  ;;  %v3594_v56 = vld [vmem:[%s5698_s5 + $0x228] sm:$0xff] }
 0x123   :  { %1445 = vmatpush.msrb.mxu0 %v1075_v8  ;;  %1468 = vmatpush.msrb.mxu1 %v1179_v10  ;;  %v3599_v60 = vld [vmem:[%s5698_s5 + $0x508] sm:$0xff]  ;;  %v859_v8 = vunpack.c.l.bf16 %v3569_v5  ;;  %v1043_v10 = vunpack.c.l.bf16 %v3574_v28 }
 0x124   :  { %1410 = vmatpush.msra.mxu2 %v779_v30  ;;  %1433 = vmatpush.msra.mxu3 %v883_v57  ;;  %5855 = vst [vmem:[#allocation3_spill] sm:$0xff] %v3599_v60  ;;  %v3606_v30 = vld [vmem:[%s5698_s5 + $0x6a8] sm:$0xff] }
 0x125   :  { %1446 = vmatpush.msrb.mxu0 %v1067_v1  ;;  %1469 = vmatpush.msrb.mxu1 %v1171_v36  ;;  %v3611_v57 = vld [vmem:[%s5698_s5 + $0x68] sm:$0xff]  ;;  %v1147_v1 = vunpack.c.l.bf16 %v3581_v39  ;;  %v747_v36 = vunpack.c.l.bf16 %v3586_v47  ;;  %v1139_v47 = vunpack.c.l.bf16 %v3606_v30 }
 0x126   :  { %1379 = vmatmul.f32.vlgmr.msra.gmra.mxu0 %v3440_v17  ;;  %1411 = vmatpush.msra.mxu2 %v771_v29  ;;  %5856 = vst [vmem:[#allocation7_spill] sm:$0xff] %v3611_v57  ;;  %v3618_v29 = vld [vmem:[%s5698_s5 + $0x208] sm:$0xff]  ;;  %v739_v39 = vunpack.c.l.bf16 %v3611_v57 }
 0x127   :  { %1434 = vmatpush.msra.mxu3 %v875_v21  ;;  %1447 = vmatpush.msrb.mxu0 %v1059_v3  ;;  %5857 = vst [vmem:[#allocation12_spill] sm:$0xff] %v3618_v29  ;;  %v3623_v21 = vld [vmem:[%s5698_s5 + $0x4e8] sm:$0xff]  ;;  %v851_v3 = vunpack.c.l.bf16 %v3594_v56 }
 0x128   :  { %1470 = vmatpush.msrb.mxu1 %v1163_v13  ;;  %1412 = vmatpush.msra.mxu2 %v763_v18  ;;  %5858 = vst [vmem:[#allocation4_spill] sm:$0xff] %v3623_v21  ;;  %v1035_v13 = vunpack.c.l.bf16 %v3599_v60  ;;  %v3630_v18 = vld [vmem:[%s5698_s5 + $0x688] sm:$0xff]  ;;  %v1027_v60 = vunpack.c.l.bf16 %v3623_v21 }
 0x129   :  { %1435 = vmatpush.msra.mxu3 %v867_v24  ;;  %1448 = vmatpush.msrb.mxu0 %v1051_v38  ;;  %v3637_v24 = vld [vmem:[%s5698_s5 + $0x48] sm:$0xff]  ;;  %v843_v38 = vunpack.c.l.bf16 %v3618_v29  ;;  %v1131_v57 = vunpack.c.l.bf16 %v3630_v18 }
 0x12a   :  { %1471 = vmatpush.msrb.mxu1 %v1155_v43  ;;  %1413 = vmatpush.msra.mxu2 %v755_v52  ;;  %5859 = vst [vmem:[#allocation10_spill] sm:$0xff] %v3637_v24  ;;  %v3644_v43 = vld [vmem:[%s5698_s5 + $0x4c8] sm:$0xff]  ;;  %v731_v21 = vunpack.c.l.bf16 %v3637_v24 }
 0x12b   :  { %1436 = vmatpush.msra.mxu3 %v859_v8  ;;  %1449 = vmatpush.msrb.mxu0 %v1043_v10  ;;  %v3649_v52 = vld [vmem:[%s5698_s5 + $0x668] sm:$0xff]  ;;  %v964_v10 = vunpack.c.h.bf16 %v3324_v44 }
 0x12c   :  { %5860 = vst [vmem:[#allocation6_spill] sm:$0xff] %v3649_v52  ;;  %1472 = vmatpush.msrb.mxu1 %v1147_v1  ;;  %1414 = vmatpush.msra.mxu2 %v747_v36  ;;  %v3655_v8 = vld [vmem:[%s5698_s5 + $0x28] sm:$0xff]  ;;  %v1019_v36 = vunpack.c.l.bf16 %v3644_v43 }
 0x12d   :  { %5861 = vst [vmem:[#allocation13_spill] sm:$0xff] %v3655_v8  ;;  %1437 = vmatpush.msra.mxu3 %v851_v3  ;;  %1450 = vmatpush.msrb.mxu0 %v1035_v13  ;;  %v3662_v29 = vld [vmem:[%s5698_s5 + $0x4a8] sm:$0xff]  ;;  %v1123_v3 = vunpack.c.l.bf16 %v3649_v52  ;;  %v956_v13 = vunpack.c.h.bf16 %v3329_v55  ;;  %v723_v24 = vunpack.c.l.bf16 %v3655_v8  ;;  %v948_v55 = vunpack.c.h.bf16 %v3337_v58 }
 0x12e   :  { %v3667_v1 = vld [vmem:[%s5698_s5 + $0x648] sm:$0xff]  ;;  %1473 = vmatpush.msrb.mxu1 %v1139_v47  ;;  %1415 = vmatpush.msra.mxu2 %v739_v39  ;;  %v940_v58 = vunpack.c.h.bf16 %v3349_v0  ;;  %v828_v0 = vunpack.c.h.bf16 %v3356_v27 }
 0x12f   :  { %v3674_v44 = vld [vmem:[%s5698_s5 + $0x8] sm:$0xff]  ;;  %1438 = vmatpush.msra.mxu3 %v843_v38  ;;  %1451 = vmatpush.msrb.mxu0 %v1027_v60  ;;  %v1011_v38 = vunpack.c.l.bf16 %v3662_v29  ;;  %v1115_v60 = vunpack.c.l.bf16 %v3667_v1 }
 0x130   :  { %v3681_v47 = vld [vmem:[%s5698_s5 + $0x488] sm:$0xff]  ;;  %1474 = vmatpush.msrb.mxu1 %v1131_v57  ;;  %1439 = vmatmul.f32.vlgmr.msra.gmra.mxu3 %v3332_v50  ;;  %v715_v8 = vunpack.c.l.bf16 %v3674_v44 }
 0x131   :  { %v3686_v39 = vld [vmem:[%s5698_s5 + $0x628] sm:$0xff]  ;;  %1503 = vmatpush.msrb.mxu3 %v964_v10  ;;  %1416 = vmatpush.msra.mxu2 %v731_v21  ;;  %v1003_v57 = vunpack.c.l.bf16 %v3681_v47  ;;  %v836_v21 = vunpack.c.h.bf16 %v3343_v2 }
 0x132   :  { %5862 = vst [vmem:[#allocation8_spill] sm:$0xff] %v3686_v39  ;;  %v3696_v52 = vld [vmem:[%s5698_s5 + $0x468] sm:$0xff]  ;;  %1452 = vmatpush.msrb.mxu0 %v1019_v36  ;;  %1475 = vmatpush.msrb.mxu1 %v1123_v3  ;;  %v1107_v50 = vunpack.c.l.bf16 %v3686_v39 }
 0x133   :  { %v3703_v10 = vld [vmem:[%s5698_s5 + $0x608] sm:$0xff]  ;;  %1504 = vmatpush.msrb.mxu3 %v956_v13  ;;  %1417 = vmatpush.msra.mxu2 %v723_v24  ;;  %v995_v36 = vunpack.c.l.bf16 %v3696_v52  ;;  %v932_v13 = vunpack.c.h.bf16 %v3361_v40  ;;  %v1220_v24 = vunpack.c.h.bf16 %v3369_v22  ;;  %v820_v40 = vunpack.c.h.bf16 %v3374_v34 }
 0x134   :  { %1453 = vmatpush.msrb.mxu0 %v1011_v38  ;;  %1476 = vmatpush.msrb.mxu1 %v1115_v60  ;;  %v3711_v3 = vld [vmem:[%s5698_s5 + $0x448] sm:$0xff]  ;;  %v1099_v39 = vunpack.c.l.bf16 %v3703_v10  ;;  %v1212_v38 = vunpack.c.h.bf16 %v3387_v41  ;;  %v812_v22 = vunpack.c.h.bf16 %v3395_v62  ;;  %v916_v34 = vunpack.c.h.bf16 %v3400_v63 }
 0x135   :  { %1505 = vmatpush.msrb.mxu3 %v948_v55  ;;  %1418 = vmatpush.msra.mxu2 %v715_v8  ;;  %v3719_v2 = vld [vmem:[%s5698_s5 + $0x428] sm:$0xff]  ;;  %v987_v8 = vunpack.c.l.bf16 %v3711_v3  ;;  %v908_v41 = vunpack.c.h.bf16 %v3415_v23  ;;  %v1196_v62 = vunpack.c.h.bf16 %v3433_v19  ;;  %v796_v63 = vunpack.c.h.bf16 %v3446_v26 }
 0x136   :  { %1454 = vmatpush.msrb.mxu0 %v1003_v57  ;;  %1477 = vmatpush.msrb.mxu1 %v1107_v50  ;;  %v924_v50 = vunpack.c.h.bf16 %v3379_v46  ;;  %v3729_v27 = vld [vmem:[%s5698_s5 + $0x408] sm:$0xff]  ;;  %v979_v60 = vunpack.c.l.bf16 %v3719_v2  ;;  %v1204_v46 = vunpack.c.h.bf16 %v3407_v7  ;;  %v1092_v57 = vunpack.c.h.bf16 %v3427_v35 }
 0x137   :  { %1419 = vmatmul.f32.vlgmr.msra.gmra.mxu2 %v3363_v59  ;;  %1506 = vmatpush.msrb.mxu3 %v940_v58  ;;  %v971_v55 = vunpack.c.l.bf16 %v3729_v27  ;;  %v900_v7 = vunpack.c.h.bf16 %v3438_v16  ;;  %v1084_v58 = vunpack.c.h.bf16 %v3453_v25  ;;  %v788_v23 = vunpack.c.h.bf16 %v3465_v32 }
 0x138   :  { %1483 = vmatpush.msrb.mxu2 %v836_v21  ;;  %1455 = vmatpush.msrb.mxu0 %v995_v36  ;;  %v892_v35 = vunpack.c.h.bf16 %v3470_v33  ;;  %v1076_v19 = vunpack.c.h.bf16 %v3477_v45  ;;  %v1180_v26 = vunpack.c.h.bf16 %v3482_v42  ;;  %v780_v16 = vunpack.c.h.bf16 %v3490_v48  ;;  %v5864_v36 = vld [vmem:[#allocation9_spill] sm:$0xff] }
 0x139   :  { %1478 = vmatpush.msrb.mxu1 %v1099_v39  ;;  %1507 = vmatpush.msrb.mxu3 %v932_v13  ;;  %v804_v39 = vunpack.c.h.bf16 %v3422_v54  ;;  %v1188_v54 = vunpack.c.h.bf16 %v3458_v31  ;;  %v884_v25 = vunpack.c.h.bf16 %v3495_v49  ;;  %v1068_v31 = vunpack.c.h.bf16 %v3502_v4  ;;  %v5865_v13 = vld [vmem:[#allocation3_spill] sm:$0xff] }
 0x13a   :  { %1479 = vmatmul.f32.vlgmr.msrb.gmra.mxu1 %v3389_v51  ;;  %1484 = vmatpush.msrb.mxu2 %v828_v0  ;;  %v1172_v32 = vunpack.c.h.bf16 %v3507_v9  ;;  %v772_v33 = vunpack.c.h.bf16 %v3514_v14  ;;  %v876_v45 = vunpack.c.h.bf16 %v3522_v6  ;;  %v1060_v42 = vunpack.c.h.bf16 %v3527_v11  ;;  %v5866_v0 = vld [vmem:[#allocation7_spill] sm:$0xff] }
 0x13b   :  { %1543 = vmatpush.msra.mxu1 %v1220_v24  ;;  %1456 = vmatpush.msrb.mxu0 %v987_v8  ;;  %v1164_v48 = vunpack.c.h.bf16 %v3534_v61  ;;  %v764_v49 = vunpack.c.h.bf16 %v3539_v15  ;;  %v868_v4 = vunpack.c.h.bf16 %v3545_v37  ;;  %v1052_v9 = vunpack.c.h.bf16 %v3550_v53  ;;  %v5863_v15 = vld [vmem:[#allocation5_spill] sm:$0xff]  ;;  %v5867_v24 = vld [vmem:[#allocation12_spill] sm:$0xff] }
 0x13c   :  { %1485 = vmatpush.msrb.mxu2 %v820_v40  ;;  %1508 = vmatpush.msrb.mxu3 %v924_v50  ;;  %v1156_v14 = vunpack.c.h.bf16 %v3557_v12  ;;  %v756_v6 = vunpack.c.h.bf16 %v3562_v20  ;;  %v860_v11 = vunpack.c.h.bf16 %v3569_v5  ;;  %v1044_v61 = vunpack.c.h.bf16 %v3574_v28  ;;  %v3775_v28 = vld [vmem:[%s5698_s5 + $0x3f0] sm:$0xff] }
 0x13d   :  { %1544 = vmatpush.msra.mxu1 %v1212_v38  ;;  %1457 = vmatpush.msrb.mxu0 %v979_v60  ;;  %v1148_v21 = vunpack.c.h.bf16 %v5863_v15  ;;  %v748_v37 = vunpack.c.h.bf16 %v5864_v36  ;;  %v852_v53 = vunpack.c.h.bf16 %v3594_v56  ;;  %v1036_v12 = vunpack.c.h.bf16 %v5865_v13  ;;  %v5868_v40 = vld [vmem:[#allocation4_spill] sm:$0xff]  ;;  %v5869_v60 = vld [vmem:[#allocation10_spill] sm:$0xff] }
 0x13e   :  { %1486 = vmatpush.msrb.mxu2 %v812_v22  ;;  %1509 = vmatpush.msrb.mxu3 %v916_v34  ;;  %v1140_v20 = vunpack.c.h.bf16 %v3606_v30  ;;  %v740_v5 = vunpack.c.h.bf16 %v5866_v0  ;;  %v844_v8 = vunpack.c.h.bf16 %v5867_v24  ;;  %v1028_v50 = vunpack.c.h.bf16 %v5868_v40  ;;  %v3783_v30 = vld [vmem:[%s5698_s5 + $0x3d0] sm:$0xff] }
 0x13f   :  { %1545 = vmatpush.msra.mxu1 %v1204_v46  ;;  %1458 = vmatpush.msrb.mxu0 %v971_v55  ;;  %v1132_v56 = vunpack.c.h.bf16 %v3630_v18  ;;  %v965_v38 = vunpack.c.l.bf16 %v3775_v28  ;;  %v732_v22 = vunpack.c.h.bf16 %v5869_v60  ;;  %v1020_v34 = vunpack.c.h.bf16 %v3644_v43  ;;  %v5870_v46 = vld [vmem:[#allocation6_spill] sm:$0xff]  ;;  %v3792_v18 = vld [vmem:[%s5698_s5 + $0x3b0] sm:$0xff] }
 0x140   :  { %1459 = vmatmul.f32.vlgmr.msrb.gmra.mxu0 %v3440_v17  ;;  %1487 = vmatpush.msrb.mxu2 %v804_v39  ;;  %v1124_v55 = vunpack.c.h.bf16 %v5870_v46  ;;  %v957_v39 = vunpack.c.l.bf16 %v3783_v30  ;;  %v1116_v43 = vunpack.c.h.bf16 %v3667_v1  ;;  %v5873_v1 = vld [vmem:[#allocation8_spill] sm:$0xff] }
 0x141   :  { %1510 = vmatpush.msrb.mxu3 %v908_v41  ;;  %1523 = vmatpush.msra.mxu0 %v1092_v57  ;;  %v5871_v41 = vld [vmem:[#allocation13_spill] sm:$0xff]  ;;  %v3882_v36 = vld [vmem:[%s5698_s5 + $0x310] sm:$0xff] }
 0x142   :  { %1546 = vmatpush.msra.mxu1 %v1196_v62  ;;  %1488 = vmatpush.msrb.mxu2 %v796_v63  ;;  %v724_v57 = vunpack.c.h.bf16 %v5871_v41  ;;  %v5872_v62 = vld [vmem:[#allocation2_spill] sm:$0xff]  ;;  %v1012_v63 = vunpack.c.h.bf16 %v3662_v29  ;;  %v1004_v29 = vunpack.c.h.bf16 %v3681_v47  ;;  %v3894_v13 = vld [vmem:[%s5698_s5 + $0x790] sm:$0xff] }
 0x143   :  { %1511 = vmatpush.msrb.mxu3 %v900_v7  ;;  %1524 = vmatpush.msra.mxu0 %v1084_v58  ;;  %v3802_v7 = vld [vmem:[%s5698_s5 + $0x390] sm:$0xff]  ;;  %v949_v58 = vunpack.c.l.bf16 %v3792_v18 }
 0x144   :  { %1547 = vmatpush.msra.mxu1 %v1188_v54  ;;  %1489 = vmatpush.msrb.mxu2 %v788_v23  ;;  %v716_v54 = vunpack.c.h.bf16 %v3674_v44  ;;  %v3809_v23 = vld [vmem:[%s5698_s5 + $0x1f0] sm:$0xff]  ;;  %v941_v44 = vunpack.c.l.bf16 %v3802_v7 }
 0x145   :  { %1512 = vmatpush.msrb.mxu3 %v892_v35  ;;  %1525 = vmatpush.msra.mxu0 %v1076_v19  ;;  %v1108_v35 = vunpack.c.h.bf16 %v5873_v1  ;;  %v3816_v19 = vld [vmem:[%s5698_s5 + $0x370] sm:$0xff]  ;;  %v837_v47 = vunpack.c.l.bf16 %v3809_v23 }
 0x146   :  { %1548 = vmatpush.msra.mxu1 %v1180_v26  ;;  %1490 = vmatpush.msrb.mxu2 %v780_v16  ;;  %v3822_v26 = vld [vmem:[%s5698_s5 + $0x1d0] sm:$0xff]  ;;  %v996_v16 = vunpack.c.h.bf16 %v3696_v52 }
 0x147   :  { %1513 = vmatpush.msrb.mxu3 %v884_v25  ;;  %1526 = vmatpush.msra.mxu0 %v1068_v31  ;;  %v3829_v25 = vld [vmem:[%s5698_s5 + $0x7f0] sm:$0xff]  ;;  %v1100_v31 = vunpack.c.h.bf16 %v3703_v10 }
 0x148   :  { %1549 = vmatpush.msra.mxu1 %v1172_v32  ;;  %1491 = vmatpush.msrb.mxu2 %v772_v33  ;;  %v933_v32 = vunpack.c.l.bf16 %v3816_v19  ;;  %v3836_v33 = vld [vmem:[%s5698_s5 + $0x1b0] sm:$0xff] }
 0x149   :  { %1514 = vmatpush.msrb.mxu3 %v876_v45  ;;  %1527 = vmatpush.msra.mxu0 %v1060_v42  ;;  %v3841_v52 = vld [vmem:[%s5698_s5 + $0x350] sm:$0xff]  ;;  %v829_v45 = vunpack.c.l.bf16 %v3822_v26  ;;  %v1221_v42 = vunpack.c.l.bf16 %v3829_v25 }
 0x14a   :  { %1550 = vmatpush.msra.mxu1 %v1164_v48  ;;  %1492 = vmatpush.msrb.mxu2 %v764_v49  ;;  %v3847_v10 = vld [vmem:[%s5698_s5 + $0x7d0] sm:$0xff]  ;;  %v988_v48 = vunpack.c.h.bf16 %v3711_v3 }
 0x14b   :  { %1515 = vmatpush.msrb.mxu3 %v868_v4  ;;  %1528 = vmatpush.msra.mxu0 %v1052_v9  ;;  %v3855_v49 = vld [vmem:[%s5698_s5 + $0x190] sm:$0xff]  ;;  %v821_v9 = vunpack.c.l.bf16 %v3836_v33 }
 0x14c   :  { %1551 = vmatpush.msra.mxu1 %v1156_v14  ;;  %1493 = vmatpush.msrb.mxu2 %v756_v6  ;;  %v3860_v4 = vld [vmem:[%s5698_s5 + $0x330] sm:$0xff]  ;;  %v925_v14 = vunpack.c.l.bf16 %v3841_v52  ;;  %v1213_v6 = vunpack.c.l.bf16 %v3847_v10  ;;  %v813_v15 = vunpack.c.l.bf16 %v3855_v49 }
 0x14d   :  { %1516 = vmatpush.msrb.mxu3 %v860_v11  ;;  %1529 = vmatpush.msra.mxu0 %v1044_v61  ;;  %v3867_v3 = vld [vmem:[%s5698_s5 + $0x7b0] sm:$0xff]  ;;  %v980_v11 = vunpack.c.h.bf16 %v3719_v2 }
 0x14e   :  { %1552 = vmatpush.msra.mxu1 %v1148_v21  ;;  %1494 = vmatpush.msrb.mxu2 %v748_v37  ;;  %v3874_v61 = vld [vmem:[%s5698_s5 + $0x170] sm:$0xff]  ;;  %v917_v21 = vunpack.c.l.bf16 %v3860_v4  ;;  %v1205_v37 = vunpack.c.l.bf16 %v3867_v3 }
 0x14f   :  { %1517 = vmatpush.msrb.mxu3 %v852_v53  ;;  %1530 = vmatpush.msra.mxu0 %v1036_v12  ;;  %v3887_v2 = vld [vmem:[%s5698_s5 + $0x5f0] sm:$0xff]  ;;  %v972_v53 = vunpack.c.h.bf16 %v3729_v27 }
 0x150   :  { %1553 = vmatpush.msra.mxu1 %v1140_v20  ;;  %1495 = vmatpush.msrb.mxu2 %v740_v5  ;;  %v3899_v12 = vld [vmem:[%s5698_s5 + $0x150] sm:$0xff]  ;;  %v805_v20 = vunpack.c.l.bf16 %v3874_v61  ;;  %v909_v5 = vunpack.c.l.bf16 %v3882_v36  ;;  %v1093_v24 = vunpack.c.l.bf16 %v3887_v2 }
 0x151   :  { %1518 = vmatpush.msrb.mxu3 %v844_v8  ;;  %1531 = vmatpush.msra.mxu0 %v1028_v50  ;;  %v3905_v0 = vld [vmem:[%s5698_s5 + $0x2f0] sm:$0xff]  ;;  %v1197_v50 = vunpack.c.l.bf16 %v3894_v13 }
 0x152   :  { %1554 = vmatpush.msra.mxu1 %v1132_v56  ;;  %1519 = vmatmul.f32.vlgmr.msrb.gmra.mxu3 %v5872_v62  ;;  %v3910_v27 = vld [vmem:[%s5698_s5 + $0x5d0] sm:$0xff]  ;;  %v797_v56 = vunpack.c.l.bf16 %v3899_v12 }
 0x153   :  { %1583 = vmatpush.msra.mxu3 %v965_v38  ;;  %1496 = vmatpush.msrb.mxu2 %v732_v22  ;;  %v3917_v8 = vld [vmem:[%s5698_s5 + $0x770] sm:$0xff]  ;;  %v901_v22 = vunpack.c.l.bf16 %v3905_v0 }
 0x154   :  { %1532 = vmatpush.msra.mxu0 %v1020_v34  ;;  %1555 = vmatpush.msra.mxu1 %v1124_v55  ;;  %v3922_v40 = vld [vmem:[%s5698_s5 + $0x130] sm:$0xff]  ;;  %v1085_v34 = vunpack.c.l.bf16 %v3910_v27 }
 0x155   :  { %1584 = vmatpush.msra.mxu3 %v957_v39  ;;  %1497 = vmatpush.msrb.mxu2 %v724_v57  ;;  %v3929_v38 = vld [vmem:[%s5698_s5 + $0x2d0] sm:$0xff]  ;;  %v1189_v39 = vunpack.c.l.bf16 %v3917_v8  ;;  %v789_v41 = vunpack.c.l.bf16 %v3922_v40 }
 0x156   :  { %1533 = vmatpush.msra.mxu0 %v1012_v63  ;;  %1556 = vmatpush.msra.mxu1 %v1116_v43  ;;  %v3934_v60 = vld [vmem:[%s5698_s5 + $0x5b0] sm:$0xff]  ;;  %v893_v43 = vunpack.c.l.bf16 %v3929_v38 }
 0x157   :  { %1585 = vmatpush.msra.mxu3 %v949_v58  ;;  %1498 = vmatpush.msrb.mxu2 %v716_v54  ;;  %v3941_v46 = vld [vmem:[%s5698_s5 + $0x750] sm:$0xff]  ;;  %v1077_v58 = vunpack.c.l.bf16 %v3934_v60 }
 0x158   :  { %1534 = vmatpush.msra.mxu0 %v1004_v29  ;;  %1557 = vmatpush.msra.mxu1 %v1108_v35  ;;  %v3946_v55 = vld [vmem:[%s5698_s5 + $0x110] sm:$0xff]  ;;  %v1181_v1 = vunpack.c.l.bf16 %v3941_v46 }
 0x159   :  { %1499 = vmatmul.f32.vlgmr.msrb.gmra.mxu2 %v3363_v59  ;;  %1586 = vmatpush.msra.mxu3 %v941_v44  ;;  %v3954_v57 = vld [vmem:[%s5698_s5 + $0x2b0] sm:$0xff]  ;;  %v781_v35 = vunpack.c.l.bf16 %v3946_v55 }
 0x15a   :  { %1563 = vmatpush.msra.mxu2 %v837_v47  ;;  %1535 = vmatpush.msra.mxu0 %v996_v16  ;;  %v3959_v63 = vld [vmem:[%s5698_s5 + $0x590] sm:$0xff]  ;;  %v885_v16 = vunpack.c.l.bf16 %v3954_v57 }
 0x15b   :  { %1558 = vmatpush.msra.mxu1 %v1100_v31  ;;  %1587 = vmatpush.msra.mxu3 %v933_v32  ;;  %v3966_v54 = vld [vmem:[%s5698_s5 + $0x730] sm:$0xff]  ;;  %v1069_v31 = vunpack.c.l.bf16 %v3959_v63 }
 0x15c   :  { %1559 = vmatmul.f32.vlgmr.msra.gmra.mxu1 %v3389_v51  ;;  %1564 = vmatpush.msra.mxu2 %v829_v45  ;;  %v3971_v29 = vld [vmem:[%s5698_s5 + $0xf0] sm:$0xff] }
 0x15d   :  { %1623 = vmatpush.msrb.mxu1 %v1221_v42  ;;  %1536 = vmatpush.msra.mxu0 %v988_v48  ;;  %v3978_v44 = vld [vmem:[%s5698_s5 + $0x290] sm:$0xff]  ;;  %v1173_v42 = vunpack.c.l.bf16 %v3966_v54  ;;  %v773_v48 = vunpack.c.l.bf16 %v3971_v29 }
 0x15e   :  { %1565 = vmatpush.msra.mxu2 %v821_v9  ;;  %1588 = vmatpush.msra.mxu3 %v925_v14  ;;  %v3983_v47 = vld [vmem:[%s5698_s5 + $0x570] sm:$0xff] }
 0x15f   :  { %1624 = vmatpush.msrb.mxu1 %v1213_v6  ;;  %1537 = vmatpush.msra.mxu0 %v980_v11  ;;  %v3990_v32 = vld [vmem:[%s5698_s5 + $0x710] sm:$0xff]  ;;  %v877_v6 = vunpack.c.l.bf16 %v3978_v44  ;;  %v1061_v11 = vunpack.c.l.bf16 %v3983_v47 }
 0x160   :  { %1566 = vmatpush.msra.mxu2 %v813_v15  ;;  %1589 = vmatpush.msra.mxu3 %v917_v21  ;;  %v3995_v45 = vld [vmem:[%s5698_s5 + $0xd0] sm:$0xff] }
 0x161   :  { %1625 = vmatpush.msrb.mxu1 %v1205_v37  ;;  %1538 = vmatpush.msra.mxu0 %v972_v53  ;;  %v4002_v9 = vld [vmem:[%s5698_s5 + $0x270] sm:$0xff]  ;;  %v1165_v37 = vunpack.c.l.bf16 %v3990_v32  ;;  %v765_v53 = vunpack.c.l.bf16 %v3995_v45 }
 0x162   :  { %1539 = vmatmul.f32.vlgmr.msra.gmra.mxu0 %v3440_v17  ;;  %1567 = vmatpush.msra.mxu2 %v805_v20  ;;  %v4007_v14 = vld [vmem:[%s5698_s5 + $0x550] sm:$0xff] }
 0x163   :  { %1590 = vmatpush.msra.mxu3 %v909_v5  ;;  %1603 = vmatpush.msrb.mxu0 %v1093_v24  ;;  %v4014_v15 = vld [vmem:[%s5698_s5 + $0x6f0] sm:$0xff]  ;;  %v869_v24 = vunpack.c.l.bf16 %v4002_v9 }
 0x164   :  { %1626 = vmatpush.msrb.mxu1 %v1197_v50  ;;  %1568 = vmatpush.msra.mxu2 %v797_v56  ;;  %v4019_v21 = vld [vmem:[%s5698_s5 + $0xb0] sm:$0xff]  ;;  %v1053_v50 = vunpack.c.l.bf16 %v4007_v14 }
 0x165   :  { %1591 = vmatpush.msra.mxu3 %v901_v22  ;;  %1604 = vmatpush.msrb.mxu0 %v1085_v34  ;;  %v4026_v20 = vld [vmem:[%s5698_s5 + $0x250] sm:$0xff]  ;;  %v1157_v34 = vunpack.c.l.bf16 %v4014_v15 }
 0x166   :  { %1627 = vmatpush.msrb.mxu1 %v1189_v39  ;;  %1569 = vmatpush.msra.mxu2 %v789_v41  ;;  %v4031_v5 = vld [vmem:[%s5698_s5 + $0x530] sm:$0xff]  ;;  %v757_v39 = vunpack.c.l.bf16 %v4019_v21 }
 0x167   :  { %1592 = vmatpush.msra.mxu3 %v893_v43  ;;  %1605 = vmatpush.msrb.mxu0 %v1077_v58  ;;  %v4038_v56 = vld [vmem:[%s5698_s5 + $0x6d0] sm:$0xff]  ;;  %v861_v58 = vunpack.c.l.bf16 %v4026_v20 }
 0x168   :  { %1628 = vmatpush.msrb.mxu1 %v1181_v1  ;;  %1570 = vmatpush.msra.mxu2 %v781_v35  ;;  %5874 = vst [vmem:[#allocation15_spill] sm:$0xff] %v4038_v56  ;;  %v4043_v22 = vld [vmem:[%s5698_s5 + $0x90] sm:$0xff]  ;;  %v1045_v1 = vunpack.c.l.bf16 %v4031_v5 }
 0x169   :  { %1593 = vmatpush.msra.mxu3 %v885_v16  ;;  %1606 = vmatpush.msrb.mxu0 %v1069_v31  ;;  %5875 = vst [vmem:[#allocation11_spill] sm:$0xff] %v4043_v22  ;;  %v4050_v41 = vld [vmem:[%s5698_s5 + $0x230] sm:$0xff]  ;;  %v1149_v31 = vunpack.c.l.bf16 %v4038_v56 }
 0x16a   :  { %1629 = vmatpush.msrb.mxu1 %v1173_v42  ;;  %1571 = vmatpush.msra.mxu2 %v773_v48  ;;  %v4055_v43 = vld [vmem:[%s5698_s5 + $0x510] sm:$0xff]  ;;  %v749_v42 = vunpack.c.l.bf16 %v4043_v22 }
 0x16b   :  { %5876 = vst [vmem:[#allocation14_spill] sm:$0xff] %v4055_v43  ;;  %1594 = vmatpush.msra.mxu3 %v877_v6  ;;  %1607 = vmatpush.msrb.mxu0 %v1061_v11  ;;  %v4062_v35 = vld [vmem:[%s5698_s5 + $0x6b0] sm:$0xff]  ;;  %v853_v11 = vunpack.c.l.bf16 %v4050_v41 }
 0x16c   :  { %v4067_v16 = vld [vmem:[%s5698_s5 + $0x70] sm:$0xff]  ;;  %1630 = vmatpush.msrb.mxu1 %v1165_v37  ;;  %1572 = vmatpush.msra.mxu2 %v765_v53  ;;  %v1037_v37 = vunpack.c.l.bf16 %v4055_v43  ;;  %v1141_v22 = vunpack.c.l.bf16 %v4062_v35 }
 0x16d   :  { %5877 = vst [vmem:[#allocation16_spill] sm:$0xff] %v4067_v16  ;;  %v4074_v48 = vld [vmem:[%s5698_s5 + $0x210] sm:$0xff]  ;;  %1595 = vmatpush.msra.mxu3 %v869_v24  ;;  %1608 = vmatpush.msrb.mxu0 %v1053_v50  ;;  %v741_v56 = vunpack.c.l.bf16 %v4067_v16 }
 0x16e   :  { %5878 = vst [vmem:[#allocation5_spill] sm:$0xff] %v4074_v48  ;;  %v4079_v6 = vld [vmem:[%s5698_s5 + $0x4f0] sm:$0xff]  ;;  %1631 = vmatpush.msrb.mxu1 %v1157_v34  ;;  %1573 = vmatpush.msra.mxu2 %v757_v39  ;;  %v845_v50 = vunpack.c.l.bf16 %v4074_v48 }
 0x16f   :  { %5879 = vst [vmem:[#allocation9_spill] sm:$0xff] %v4079_v6  ;;  %v4086_v53 = vld [vmem:[%s5698_s5 + $0x690] sm:$0xff]  ;;  %1596 = vmatpush.msra.mxu3 %v861_v58  ;;  %1609 = vmatpush.msrb.mxu0 %v1045_v1  ;;  %v1029_v43 = vunpack.c.l.bf16 %v4079_v6  ;;  %v966_v1 = vunpack.c.h.bf16 %v3775_v28 }
 0x170   :  { %v4093_v24 = vld [vmem:[%s5698_s5 + $0x50] sm:$0xff]  ;;  %1632 = vmatpush.msrb.mxu1 %v1149_v31  ;;  %1574 = vmatpush.msra.mxu2 %v749_v42  ;;  %v1133_v16 = vunpack.c.l.bf16 %v4086_v53 }
 0x171   :  { %5880 = vst [vmem:[#allocation3_spill] sm:$0xff] %v4093_v24  ;;  %v4100_v34 = vld [vmem:[%s5698_s5 + $0x4d0] sm:$0xff]  ;;  %1597 = vmatpush.msra.mxu3 %v853_v11  ;;  %1610 = vmatpush.msrb.mxu0 %v1037_v37  ;;  %v733_v6 = vunpack.c.l.bf16 %v4093_v24  ;;  %v958_v37 = vunpack.c.h.bf16 %v3783_v30  ;;  %v950_v30 = vunpack.c.h.bf16 %v3792_v18  ;;  %v942_v18 = vunpack.c.h.bf16 %v3802_v7 }
 0x172   :  { %v4105_v39 = vld [vmem:[%s5698_s5 + $0x670] sm:$0xff]  ;;  %1633 = vmatpush.msrb.mxu1 %v1141_v22  ;;  %1575 = vmatpush.msra.mxu2 %v741_v56  ;;  %v1021_v42 = vunpack.c.l.bf16 %v4100_v34  ;;  %v830_v7 = vunpack.c.h.bf16 %v3822_v26 }
 0x173   :  { %5881 = vst [vmem:[#allocation7_spill] sm:$0xff] %v4105_v39  ;;  %v4111_v58 = vld [vmem:[%s5698_s5 + $0x30] sm:$0xff]  ;;  %v1125_v11 = vunpack.c.l.bf16 %v4105_v39  ;;  %1598 = vmatpush.msra.mxu3 %v845_v50  ;;  %1611 = vmatpush.msrb.mxu0 %v1029_v43 }
 0x174   :  { %5882 = vst [vmem:[#allocation12_spill] sm:$0xff] %v4111_v58  ;;  %v4118_v48 = vld [vmem:[%s5698_s5 + $0x4b0] sm:$0xff]  ;;  %v725_v24 = vunpack.c.l.bf16 %v4111_v58  ;;  %1634 = vmatpush.msrb.mxu1 %v1133_v16  ;;  %1599 = vmatmul.f32.vlgmr.msra.gmra.mxu3 %v5872_v62 }
 0x175   :  { %v4123_v31 = vld [vmem:[%s5698_s5 + $0x650] sm:$0xff]  ;;  %v1013_v50 = vunpack.c.l.bf16 %v4118_v48  ;;  %1663 = vmatpush.msrb.mxu3 %v966_v1  ;;  %1576 = vmatpush.msra.mxu2 %v733_v6  ;;  %v838_v6 = vunpack.c.h.bf16 %v3809_v23 }
 0x176   :  { %v4130_v28 = vld [vmem:[%s5698_s5 + $0x10] sm:$0xff]  ;;  %v1117_v43 = vunpack.c.l.bf16 %v4123_v31  ;;  %1612 = vmatpush.msrb.mxu0 %v1021_v42  ;;  %1635 = vmatpush.msrb.mxu1 %v1125_v11 }
 0x177   :  { %v4137_v22 = vld [vmem:[%s5698_s5 + $0x490] sm:$0xff]  ;;  %v717_v58 = vunpack.c.l.bf16 %v4130_v28  ;;  %1664 = vmatpush.msrb.mxu3 %v958_v37  ;;  %1577 = vmatpush.msra.mxu2 %v725_v24  ;;  %v934_v37 = vunpack.c.h.bf16 %v3816_v19  ;;  %v1222_v24 = vunpack.c.h.bf16 %v3829_v25  ;;  %v822_v19 = vunpack.c.h.bf16 %v3836_v33 }
 0x178   :  { %v4142_v56 = vld [vmem:[%s5698_s5 + $0x630] sm:$0xff]  ;;  %v1005_v16 = vunpack.c.l.bf16 %v4137_v22  ;;  %1613 = vmatpush.msrb.mxu0 %v1013_v50  ;;  %1636 = vmatpush.msrb.mxu1 %v1117_v43  ;;  %v1214_v50 = vunpack.c.h.bf16 %v3847_v10  ;;  %v814_v25 = vunpack.c.h.bf16 %v3855_v49  ;;  %v918_v33 = vunpack.c.h.bf16 %v3860_v4 }
 0x179   :  { %5883 = vst [vmem:[#allocation4_spill] sm:$0xff] %v4142_v56  ;;  %v4152_v39 = vld [vmem:[%s5698_s5 + $0x470] sm:$0xff]  ;;  %v1109_v62 = vunpack.c.l.bf16 %v4142_v56  ;;  %1665 = vmatpush.msrb.mxu3 %v950_v30  ;;  %1578 = vmatpush.msra.mxu2 %v717_v58  ;;  %v910_v10 = vunpack.c.h.bf16 %v3882_v36  ;;  %v1198_v49 = vunpack.c.h.bf16 %v3894_v13  ;;  %v798_v4 = vunpack.c.h.bf16 %v3899_v12 }
 0x17a   :  { %v4159_v1 = vld [vmem:[%s5698_s5 + $0x610] sm:$0xff]  ;;  %v997_v42 = vunpack.c.l.bf16 %v4152_v39  ;;  %1614 = vmatpush.msrb.mxu0 %v1005_v16  ;;  %1579 = vmatmul.f32.vlgmr.msra.gmra.mxu2 %v3363_v59  ;;  %v1094_v16 = vunpack.c.h.bf16 %v3887_v2  ;;  %v790_v36 = vunpack.c.h.bf16 %v3922_v40  ;;  %v894_v2 = vunpack.c.h.bf16 %v3929_v38 }
 0x17b   :  { %v4167_v11 = vld [vmem:[%s5698_s5 + $0x450] sm:$0xff]  ;;  %v1101_v56 = vunpack.c.l.bf16 %v4159_v1  ;;  %1637 = vmatpush.msrb.mxu1 %v1109_v62  ;;  %1666 = vmatpush.msrb.mxu3 %v942_v18  ;;  %v926_v62 = vunpack.c.h.bf16 %v3841_v52  ;;  %v1206_v52 = vunpack.c.h.bf16 %v3867_v3  ;;  %v902_v3 = vunpack.c.h.bf16 %v3905_v0 }
 0x17c   :  { %v4175_v23 = vld [vmem:[%s5698_s5 + $0x430] sm:$0xff]  ;;  %v989_v58 = vunpack.c.l.bf16 %v4167_v11  ;;  %1643 = vmatpush.msrb.mxu2 %v838_v6  ;;  %1615 = vmatpush.msrb.mxu0 %v997_v42  ;;  %v1086_v18 = vunpack.c.h.bf16 %v3910_v27  ;;  %v1078_v13 = vunpack.c.h.bf16 %v3934_v60  ;;  %v1182_v12 = vunpack.c.h.bf16 %v3941_v46  ;;  %v5885_v42 = vld [vmem:[#allocation11_spill] sm:$0xff] }
 0x17d   :  { %v4185_v26 = vld [vmem:[%s5698_s5 + $0x410] sm:$0xff]  ;;  %1638 = vmatpush.msrb.mxu1 %v1101_v56  ;;  %1667 = vmatpush.msrb.mxu3 %v934_v37  ;;  %v981_v43 = vunpack.c.l.bf16 %v4175_v23  ;;  %v806_v56 = vunpack.c.h.bf16 %v3874_v61  ;;  %v1190_v61 = vunpack.c.h.bf16 %v3917_v8  ;;  %v782_v0 = vunpack.c.h.bf16 %v3946_v55  ;;  %v5886_v37 = vld [vmem:[#allocation14_spill] sm:$0xff] }
 0x17e   :  { %1639 = vmatmul.f32.vlgmr.msrb.gmra.mxu1 %v3389_v51  ;;  %1644 = vmatpush.msrb.mxu2 %v830_v7  ;;  %v973_v30 = vunpack.c.l.bf16 %v4185_v26  ;;  %v886_v27 = vunpack.c.h.bf16 %v3954_v57  ;;  %v1070_v8 = vunpack.c.h.bf16 %v3959_v63  ;;  %v1174_v40 = vunpack.c.h.bf16 %v3966_v54  ;;  %v5887_v7 = vld [vmem:[#allocation16_spill] sm:$0xff] }
 0x17f   :  { %1703 = vmatpush.msra.mxu1 %v1222_v24  ;;  %1616 = vmatpush.msrb.mxu0 %v989_v58  ;;  %v774_v38 = vunpack.c.h.bf16 %v3971_v29  ;;  %v878_v60 = vunpack.c.h.bf16 %v3978_v44  ;;  %v1062_v46 = vunpack.c.h.bf16 %v3983_v47  ;;  %v1166_v55 = vunpack.c.h.bf16 %v3990_v32  ;;  %v5888_v24 = vld [vmem:[#allocation5_spill] sm:$0xff] }
 0x180   :  { %1645 = vmatpush.msrb.mxu2 %v822_v19  ;;  %1668 = vmatpush.msrb.mxu3 %v926_v62  ;;  %v766_v57 = vunpack.c.h.bf16 %v3995_v45  ;;  %v870_v63 = vunpack.c.h.bf16 %v4002_v9  ;;  %v1054_v54 = vunpack.c.h.bf16 %v4007_v14  ;;  %v1158_v29 = vunpack.c.h.bf16 %v4014_v15  ;;  %v5884_v45 = vld [vmem:[#allocation15_spill] sm:$0xff]  ;;  %v5889_v19 = vld [vmem:[#allocation9_spill] sm:$0xff] }
 0x181   :  { %1704 = vmatpush.msra.mxu1 %v1214_v50  ;;  %1617 = vmatpush.msrb.mxu0 %v981_v43  ;;  %v758_v44 = vunpack.c.h.bf16 %v4019_v21  ;;  %v862_v47 = vunpack.c.h.bf16 %v4026_v20  ;;  %v1046_v32 = vunpack.c.h.bf16 %v4031_v5  ;;  %v1150_v6 = vunpack.c.h.bf16 %v5884_v45  ;;  %v4231_v5 = vld [vmem:[%s5698_s5 + $0x3f8] sm:$0xff]  ;;  %v5890_v43 = vld [vmem:[#allocation3_spill] sm:$0xff] }
 0x182   :  { %1646 = vmatpush.msrb.mxu2 %v814_v25  ;;  %1669 = vmatpush.msrb.mxu3 %v918_v33  ;;  %v750_v9 = vunpack.c.h.bf16 %v5885_v42  ;;  %v854_v14 = vunpack.c.h.bf16 %v4050_v41  ;;  %v1038_v15 = vunpack.c.h.bf16 %v5886_v37  ;;  %v1142_v21 = vunpack.c.h.bf16 %v4062_v35  ;;  %v4239_v35 = vld [vmem:[%s5698_s5 + $0x3d8] sm:$0xff] }
 0x183   :  { %1705 = vmatpush.msra.mxu1 %v1206_v52  ;;  %1618 = vmatpush.msrb.mxu0 %v973_v30  ;;  %v742_v20 = vunpack.c.h.bf16 %v5887_v7  ;;  %v846_v58 = vunpack.c.h.bf16 %v5888_v24  ;;  %v1030_v62 = vunpack.c.h.bf16 %v5889_v19  ;;  %v1134_v41 = vunpack.c.h.bf16 %v4086_v53  ;;  %v5891_v52 = vld [vmem:[#allocation7_spill] sm:$0xff]  ;;  %v4248_v53 = vld [vmem:[%s5698_s5 + $0x3b8] sm:$0xff] }
 0x184   :  { %1619 = vmatmul.f32.vlgmr.msrb.gmra.mxu0 %v3440_v17  ;;  %1647 = vmatpush.msrb.mxu2 %v806_v56  ;;  %v967_v50 = vunpack.c.l.bf16 %v4231_v5  ;;  %v734_v25 = vunpack.c.h.bf16 %v5890_v43  ;;  %v1022_v33 = vunpack.c.h.bf16 %v4100_v34  ;;  %v1126_v30 = vunpack.c.h.bf16 %v5891_v52  ;;  %v4338_v42 = vld [vmem:[%s5698_s5 + $0x318] sm:$0xff] }
 0x185   :  { %1670 = vmatpush.msrb.mxu3 %v910_v10  ;;  %1683 = vmatpush.msra.mxu0 %v1094_v16  ;;  %v959_v56 = vunpack.c.l.bf16 %v4239_v35  ;;  %v5892_v10 = vld [vmem:[#allocation12_spill] sm:$0xff]  ;;  %v1118_v34 = vunpack.c.h.bf16 %v4123_v31  ;;  %v4350_v37 = vld [vmem:[%s5698_s5 + $0x798] sm:$0xff] }
 0x186   :  { %1706 = vmatpush.msra.mxu1 %v1198_v49  ;;  %1648 = vmatpush.msrb.mxu2 %v798_v4  ;;  %v726_v16 = vunpack.c.h.bf16 %v5892_v10  ;;  %v5893_v49 = vld [vmem:[#allocation2_spill] sm:$0xff]  ;;  %v1014_v4 = vunpack.c.h.bf16 %v4118_v48  ;;  %v1006_v48 = vunpack.c.h.bf16 %v4137_v22  ;;  %v5894_v31 = vld [vmem:[#allocation4_spill] sm:$0xff]  ;;  %v4361_v7 = vld [vmem:[%s5698_s5 + $0x2f8] sm:$0xff] }
 0x187   :  { %1671 = vmatpush.msrb.mxu3 %v902_v3  ;;  %1684 = vmatpush.msra.mxu0 %v1086_v18  ;;  %v4258_v3 = vld [vmem:[%s5698_s5 + $0x398] sm:$0xff]  ;;  %v951_v18 = vunpack.c.l.bf16 %v4248_v53 }
 0x188   :  { %1707 = vmatpush.msra.mxu1 %v1190_v61  ;;  %1649 = vmatpush.msrb.mxu2 %v790_v36  ;;  %v718_v61 = vunpack.c.h.bf16 %v4130_v28  ;;  %v4265_v36 = vld [vmem:[%s5698_s5 + $0x1f8] sm:$0xff]  ;;  %v943_v28 = vunpack.c.l.bf16 %v4258_v3 }
 0x189   :  { %1672 = vmatpush.msrb.mxu3 %v894_v2  ;;  %1685 = vmatpush.msra.mxu0 %v1078_v13  ;;  %v1110_v2 = vunpack.c.h.bf16 %v5894_v31  ;;  %v4272_v13 = vld [vmem:[%s5698_s5 + $0x378] sm:$0xff]  ;;  %v839_v22 = vunpack.c.l.bf16 %v4265_v36 }
 0x18a   :  { %1708 = vmatpush.msra.mxu1 %v1182_v12  ;;  %1650 = vmatpush.msrb.mxu2 %v782_v0  ;;  %v4278_v12 = vld [vmem:[%s5698_s5 + $0x1d8] sm:$0xff]  ;;  %v998_v0 = vunpack.c.h.bf16 %v4152_v39 }
 0x18b   :  { %1673 = vmatpush.msrb.mxu3 %v886_v27  ;;  %1686 = vmatpush.msra.mxu0 %v1070_v8  ;;  %v4285_v27 = vld [vmem:[%s5698_s5 + $0x7f8] sm:$0xff]  ;;  %v1102_v8 = vunpack.c.h.bf16 %v4159_v1 }
 0x18c   :  { %1709 = vmatpush.msra.mxu1 %v1174_v40  ;;  %1651 = vmatpush.msrb.mxu2 %v774_v38  ;;  %v935_v40 = vunpack.c.l.bf16 %v4272_v13  ;;  %v4292_v38 = vld [vmem:[%s5698_s5 + $0x1b8] sm:$0xff] }
 0x18d   :  { %1674 = vmatpush.msrb.mxu3 %v878_v60  ;;  %1687 = vmatpush.msra.mxu0 %v1062_v46  ;;  %v4297_v39 = vld [vmem:[%s5698_s5 + $0x358] sm:$0xff]  ;;  %v831_v60 = vunpack.c.l.bf16 %v4278_v12  ;;  %v1223_v46 = vunpack.c.l.bf16 %v4285_v27 }
 0x18e   :  { %1710 = vmatpush.msra.mxu1 %v1166_v55  ;;  %1652 = vmatpush.msrb.mxu2 %v766_v57  ;;  %v4303_v1 = vld [vmem:[%s5698_s5 + $0x7d8] sm:$0xff]  ;;  %v990_v55 = vunpack.c.h.bf16 %v4167_v11 }
 0x18f   :  { %1675 = vmatpush.msrb.mxu3 %v870_v63  ;;  %1688 = vmatpush.msra.mxu0 %v1054_v54  ;;  %v4311_v57 = vld [vmem:[%s5698_s5 + $0x198] sm:$0xff]  ;;  %v823_v54 = vunpack.c.l.bf16 %v4292_v38 }
 0x190   :  { %1711 = vmatpush.msra.mxu1 %v1158_v29  ;;  %1653 = vmatpush.msrb.mxu2 %v758_v44  ;;  %v4316_v63 = vld [vmem:[%s5698_s5 + $0x338] sm:$0xff]  ;;  %v927_v29 = vunpack.c.l.bf16 %v4297_v39  ;;  %v1215_v44 = vunpack.c.l.bf16 %v4303_v1  ;;  %v815_v45 = vunpack.c.l.bf16 %v4311_v57 }
 0x191   :  { %1676 = vmatpush.msrb.mxu3 %v862_v47  ;;  %1689 = vmatpush.msra.mxu0 %v1046_v32  ;;  %v4323_v11 = vld [vmem:[%s5698_s5 + $0x7b8] sm:$0xff]  ;;  %v982_v47 = vunpack.c.h.bf16 %v4175_v23 }
 0x192   :  { %1712 = vmatpush.msra.mxu1 %v1150_v6  ;;  %1654 = vmatpush.msrb.mxu2 %v750_v9  ;;  %v4330_v32 = vld [vmem:[%s5698_s5 + $0x178] sm:$0xff]  ;;  %v919_v6 = vunpack.c.l.bf16 %v4316_v63  ;;  %v1207_v9 = vunpack.c.l.bf16 %v4323_v11 }
 0x193   :  { %1677 = vmatpush.msrb.mxu3 %v854_v14  ;;  %1690 = vmatpush.msra.mxu0 %v1038_v15  ;;  %v4343_v23 = vld [vmem:[%s5698_s5 + $0x5f8] sm:$0xff]  ;;  %v974_v14 = vunpack.c.h.bf16 %v4185_v26 }
 0x194   :  { %1713 = vmatpush.msra.mxu1 %v1142_v21  ;;  %1655 = vmatpush.msrb.mxu2 %v742_v20  ;;  %v4355_v15 = vld [vmem:[%s5698_s5 + $0x158] sm:$0xff]  ;;  %v807_v21 = vunpack.c.l.bf16 %v4330_v32  ;;  %v911_v20 = vunpack.c.l.bf16 %v4338_v42  ;;  %v1095_v24 = vunpack.c.l.bf16 %v4343_v23 }
 0x195   :  { %1678 = vmatpush.msrb.mxu3 %v846_v58  ;;  %1691 = vmatpush.msra.mxu0 %v1030_v62  ;;  %v4366_v26 = vld [vmem:[%s5698_s5 + $0x5d8] sm:$0xff]  ;;  %v1199_v62 = vunpack.c.l.bf16 %v4350_v37 }
 0x196   :  { %1714 = vmatpush.msra.mxu1 %v1134_v41  ;;  %1679 = vmatmul.f32.vlgmr.msrb.gmra.mxu3 %v5893_v49  ;;  %v4373_v58 = vld [vmem:[%s5698_s5 + $0x778] sm:$0xff]  ;;  %v799_v41 = vunpack.c.l.bf16 %v4355_v15 }
 0x197   :  { %1743 = vmatpush.msra.mxu3 %v967_v50  ;;  %1656 = vmatpush.msrb.mxu2 %v734_v25  ;;  %v4378_v19 = vld [vmem:[%s5698_s5 + $0x138] sm:$0xff]  ;;  %v903_v25 = vunpack.c.l.bf16 %v4361_v7 }
 0x198   :  { %1692 = vmatpush.msra.mxu0 %v1022_v33  ;;  %1715 = vmatpush.msra.mxu1 %v1126_v30  ;;  %v4385_v50 = vld [vmem:[%s5698_s5 + $0x2d8] sm:$0xff]  ;;  %v1087_v33 = vunpack.c.l.bf16 %v4366_v26  ;;  %v791_v10 = vunpack.c.l.bf16 %v4378_v19 }
 0x199   :  { %1744 = vmatpush.msra.mxu3 %v959_v56  ;;  %1657 = vmatpush.msrb.mxu2 %v726_v16  ;;  %v4390_v43 = vld [vmem:[%s5698_s5 + $0x5b8] sm:$0xff]  ;;  %v1191_v56 = vunpack.c.l.bf16 %v4373_v58 }
 0x19a   :  { %1693 = vmatpush.msra.mxu0 %v1014_v4  ;;  %1716 = vmatpush.msra.mxu1 %v1118_v34  ;;  %v4397_v52 = vld [vmem:[%s5698_s5 + $0x758] sm:$0xff]  ;;  %v895_v34 = vunpack.c.l.bf16 %v4385_v50 }
 0x19b   :  { %1745 = vmatpush.msra.mxu3 %v951_v18  ;;  %1658 = vmatpush.msrb.mxu2 %v718_v61  ;;  %v4402_v30 = vld [vmem:[%s5698_s5 + $0x118] sm:$0xff]  ;;  %v1079_v18 = vunpack.c.l.bf16 %v4390_v43  ;;  %v1183_v31 = vunpack.c.l.bf16 %v4397_v52 }
 0x19c   :  { %1694 = vmatpush.msra.mxu0 %v1006_v48  ;;  %1717 = vmatpush.msra.mxu1 %v1110_v2  ;;  %v4410_v16 = vld [vmem:[%s5698_s5 + $0x2b8] sm:$0xff]  ;;  %v783_v2 = vunpack.c.l.bf16 %v4402_v30 }
 0x19d   :  { %1659 = vmatmul.f32.vlgmr.msrb.gmra.mxu2 %v3363_v59  ;;  %1746 = vmatpush.msra.mxu3 %v943_v28  ;;  %v4415_v4 = vld [vmem:[%s5698_s5 + $0x598] sm:$0xff] }
 0x19e   :  { %1723 = vmatpush.msra.mxu2 %v839_v22  ;;  %1695 = vmatpush.msra.mxu0 %v998_v0  ;;  %v4422_v61 = vld [vmem:[%s5698_s5 + $0x738] sm:$0xff]  ;;  %v887_v0 = vunpack.c.l.bf16 %v4410_v16 }
 0x19f   :  { %1718 = vmatpush.msra.mxu1 %v1102_v8  ;;  %1747 = vmatpush.msra.mxu3 %v935_v40  ;;  %v4427_v48 = vld [vmem:[%s5698_s5 + $0xf8] sm:$0xff]  ;;  %v1071_v8 = vunpack.c.l.bf16 %v4415_v4 }
 0x1a0   :  { %1719 = vmatmul.f32.vlgmr.msra.gmra.mxu1 %v3389_v51  ;;  %1724 = vmatpush.msra.mxu2 %v831_v60  ;;  %v4434_v28 = vld [vmem:[%s5698_s5 + $0x298] sm:$0xff] }
 0x1a1   :  { %1783 = vmatpush.msrb.mxu1 %v1223_v46  ;;  %1696 = vmatpush.msra.mxu0 %v990_v55  ;;  %v4439_v22 = vld [vmem:[%s5698_s5 + $0x578] sm:$0xff]  ;;  %v1175_v46 = vunpack.c.l.bf16 %v4422_v61  ;;  %v775_v55 = vunpack.c.l.bf16 %v4427_v48 }
 0x1a2   :  { %1725 = vmatpush.msra.mxu2 %v823_v54  ;;  %1748 = vmatpush.msra.mxu3 %v927_v29  ;;  %v4446_v40 = vld [vmem:[%s5698_s5 + $0x718] sm:$0xff] }
 0x1a3   :  { %1784 = vmatpush.msrb.mxu1 %v1215_v44  ;;  %1697 = vmatpush.msra.mxu0 %v982_v47  ;;  %v4451_v60 = vld [vmem:[%s5698_s5 + $0xd8] sm:$0xff]  ;;  %v879_v44 = vunpack.c.l.bf16 %v4434_v28  ;;  %v1063_v47 = vunpack.c.l.bf16 %v4439_v22 }
 0x1a4   :  { %1726 = vmatpush.msra.mxu2 %v815_v45  ;;  %1749 = vmatpush.msra.mxu3 %v919_v6  ;;  %v4458_v54 = vld [vmem:[%s5698_s5 + $0x278] sm:$0xff] }
 0x1a5   :  { %1785 = vmatpush.msrb.mxu1 %v1207_v9  ;;  %1698 = vmatpush.msra.mxu0 %v974_v14  ;;  %v4463_v29 = vld [vmem:[%s5698_s5 + $0x558] sm:$0xff]  ;;  %v1167_v9 = vunpack.c.l.bf16 %v4446_v40  ;;  %v767_v14 = vunpack.c.l.bf16 %v4451_v60 }
 0x1a6   :  { %1699 = vmatmul.f32.vlgmr.msra.gmra.mxu0 %v3440_v17  ;;  %1727 = vmatpush.msra.mxu2 %v807_v21  ;;  %v4470_v45 = vld [vmem:[%s5698_s5 + $0x6f8] sm:$0xff] }
 0x1a7   :  { %1750 = vmatpush.msra.mxu3 %v911_v20  ;;  %1763 = vmatpush.msrb.mxu0 %v1095_v24  ;;  %v4475_v6 = vld [vmem:[%s5698_s5 + $0xb8] sm:$0xff]  ;;  %v871_v24 = vunpack.c.l.bf16 %v4458_v54 }
 0x1a8   :  { %1786 = vmatpush.msrb.mxu1 %v1199_v62  ;;  %1728 = vmatpush.msra.mxu2 %v799_v41  ;;  %v4482_v21 = vld [vmem:[%s5698_s5 + $0x258] sm:$0xff]  ;;  %v1055_v62 = vunpack.c.l.bf16 %v4463_v29 }
 0x1a9   :  { %1751 = vmatpush.msra.mxu3 %v903_v25  ;;  %1764 = vmatpush.msrb.mxu0 %v1087_v33  ;;  %v4487_v20 = vld [vmem:[%s5698_s5 + $0x538] sm:$0xff]  ;;  %v1159_v33 = vunpack.c.l.bf16 %v4470_v45 }
 0x1aa   :  { %1787 = vmatpush.msrb.mxu1 %v1191_v56  ;;  %1729 = vmatpush.msra.mxu2 %v791_v10  ;;  %v4494_v41 = vld [vmem:[%s5698_s5 + $0x6d8] sm:$0xff]  ;;  %v759_v56 = vunpack.c.l.bf16 %v4475_v6 }
 0x1ab   :  { %1752 = vmatpush.msra.mxu3 %v895_v34  ;;  %1765 = vmatpush.msrb.mxu0 %v1079_v18  ;;  %5895 = vst [vmem:[#allocation10_spill] sm:$0xff] %v4494_v41  ;;  %v4499_v25 = vld [vmem:[%s5698_s5 + $0x98] sm:$0xff]  ;;  %v863_v18 = vunpack.c.l.bf16 %v4482_v21 }
 0x1ac   :  { %1788 = vmatpush.msrb.mxu1 %v1183_v31  ;;  %1730 = vmatpush.msra.mxu2 %v783_v2  ;;  %5896 = vst [vmem:[#allocation6_spill] sm:$0xff] %v4499_v25  ;;  %v4506_v10 = vld [vmem:[%s5698_s5 + $0x238] sm:$0xff]  ;;  %v1047_v31 = vunpack.c.l.bf16 %v4487_v20 }
 0x1ad   :  { %1753 = vmatpush.msra.mxu3 %v887_v0  ;;  %1766 = vmatpush.msrb.mxu0 %v1071_v8  ;;  %v4511_v34 = vld [vmem:[%s5698_s5 + $0x518] sm:$0xff]  ;;  %v1151_v8 = vunpack.c.l.bf16 %v4494_v41 }
 0x1ae   :  { %1789 = vmatpush.msrb.mxu1 %v1175_v46  ;;  %1731 = vmatpush.msra.mxu2 %v775_v55  ;;  %5897 = vst [vmem:[#allocation13_spill] sm:$0xff] %v4511_v34  ;;  %v4518_v2 = vld [vmem:[%s5698_s5 + $0x6b8] sm:$0xff]  ;;  %v751_v46 = vunpack.c.l.bf16 %v4499_v25 }
 0x1af   :  { %1754 = vmatpush.msra.mxu3 %v879_v44  ;;  %1767 = vmatpush.msrb.mxu0 %v1063_v47  ;;  %v4523_v0 = vld [vmem:[%s5698_s5 + $0x78] sm:$0xff]  ;;  %v855_v47 = vunpack.c.l.bf16 %v4506_v10  ;;  %v1143_v25 = vunpack.c.l.bf16 %v4518_v2 }
 0x1b0   :  { %5898 = vst [vmem:[#allocation8_spill] sm:$0xff] %v4523_v0  ;;  %1790 = vmatpush.msrb.mxu1 %v1167_v9  ;;  %1732 = vmatpush.msra.mxu2 %v767_v14  ;;  %v4530_v55 = vld [vmem:[%s5698_s5 + $0x218] sm:$0xff]  ;;  %v1039_v9 = vunpack.c.l.bf16 %v4511_v34  ;;  %v743_v41 = vunpack.c.l.bf16 %v4523_v0 }
 0x1b1   :  { %5899 = vst [vmem:[#allocation15_spill] sm:$0xff] %v4530_v55  ;;  %v4535_v44 = vld [vmem:[%s5698_s5 + $0x4f8] sm:$0xff]  ;;  %1755 = vmatpush.msra.mxu3 %v871_v24  ;;  %1768 = vmatpush.msrb.mxu0 %v1055_v62  ;;  %v847_v62 = vunpack.c.l.bf16 %v4530_v55 }
 0x1b2   :  { %5900 = vst [vmem:[#allocation11_spill] sm:$0xff] %v4535_v44  ;;  %v4542_v14 = vld [vmem:[%s5698_s5 + $0x698] sm:$0xff]  ;;  %1791 = vmatpush.msrb.mxu1 %v1159_v33  ;;  %1733 = vmatpush.msra.mxu2 %v759_v56  ;;  %v1031_v34 = vunpack.c.l.bf16 %v4535_v44 }
 0x1b3   :  { %v4549_v24 = vld [vmem:[%s5698_s5 + $0x58] sm:$0xff]  ;;  %1756 = vmatpush.msra.mxu3 %v863_v18  ;;  %1769 = vmatpush.msrb.mxu0 %v1047_v31  ;;  %v1135_v0 = vunpack.c.l.bf16 %v4542_v14  ;;  %v968_v31 = vunpack.c.h.bf16 %v4231_v5 }
 0x1b4   :  { %5901 = vst [vmem:[#allocation14_spill] sm:$0xff] %v4549_v24  ;;  %v4556_v33 = vld [vmem:[%s5698_s5 + $0x4d8] sm:$0xff]  ;;  %1792 = vmatpush.msrb.mxu1 %v1151_v8  ;;  %1734 = vmatpush.msra.mxu2 %v751_v46  ;;  %v735_v44 = vunpack.c.l.bf16 %v4549_v24 }
 0x1b5   :  { %v4561_v56 = vld [vmem:[%s5698_s5 + $0x678] sm:$0xff]  ;;  %1757 = vmatpush.msra.mxu3 %v855_v47  ;;  %1770 = vmatpush.msrb.mxu0 %v1039_v9  ;;  %v1023_v46 = vunpack.c.l.bf16 %v4556_v33  ;;  %v960_v9 = vunpack.c.h.bf16 %v4239_v35  ;;  %v952_v35 = vunpack.c.h.bf16 %v4248_v53  ;;  %v944_v53 = vunpack.c.h.bf16 %v4258_v3 }
 0x1b6   :  { %5902 = vst [vmem:[#allocation16_spill] sm:$0xff] %v4561_v56  ;;  %v4567_v18 = vld [vmem:[%s5698_s5 + $0x38] sm:$0xff]  ;;  %1793 = vmatpush.msrb.mxu1 %v1143_v25  ;;  %1735 = vmatpush.msra.mxu2 %v743_v41  ;;  %v1127_v47 = vunpack.c.l.bf16 %v4561_v56  ;;  %v832_v3 = vunpack.c.h.bf16 %v4278_v12 }
 0x1b7   :  { %5903 = vst [vmem:[#allocation5_spill] sm:$0xff] %v4567_v18  ;;  %v4574_v55 = vld [vmem:[%s5698_s5 + $0x4b8] sm:$0xff]  ;;  %1758 = vmatpush.msra.mxu3 %v847_v62  ;;  %1771 = vmatpush.msrb.mxu0 %v1031_v34  ;;  %v727_v24 = vunpack.c.l.bf16 %v4567_v18 }
 0x1b8   :  { %v4579_v8 = vld [vmem:[%s5698_s5 + $0x658] sm:$0xff]  ;;  %1794 = vmatpush.msrb.mxu1 %v1135_v0  ;;  %1759 = vmatmul.f32.vlgmr.msra.gmra.mxu3 %v5893_v49  ;;  %v1015_v62 = vunpack.c.l.bf16 %v4574_v55 }
 0x1b9   :  { %v4586_v5 = vld [vmem:[%s5698_s5 + $0x18] sm:$0xff]  ;;  %v1119_v34 = vunpack.c.l.bf16 %v4579_v8  ;;  %1823 = vmatpush.msrb.mxu3 %v968_v31  ;;  %1736 = vmatpush.msra.mxu2 %v735_v44  ;;  %v840_v44 = vunpack.c.h.bf16 %v4265_v36 }
 0x1ba   :  { %v4593_v25 = vld [vmem:[%s5698_s5 + $0x498] sm:$0xff]  ;;  %v719_v18 = vunpack.c.l.bf16 %v4586_v5  ;;  %1772 = vmatpush.msrb.mxu0 %v1023_v46  ;;  %1795 = vmatpush.msrb.mxu1 %v1127_v47 }
 0x1bb   :  { %v4598_v41 = vld [vmem:[%s5698_s5 + $0x638] sm:$0xff]  ;;  %v1007_v0 = vunpack.c.l.bf16 %v4593_v25  ;;  %1824 = vmatpush.msrb.mxu3 %v960_v9  ;;  %1737 = vmatpush.msra.mxu2 %v727_v24  ;;  %v936_v9 = vunpack.c.h.bf16 %v4272_v13  ;;  %v1224_v24 = vunpack.c.h.bf16 %v4285_v27  ;;  %v824_v13 = vunpack.c.h.bf16 %v4292_v38 }
 0x1bc   :  { %5904 = vst [vmem:[#allocation9_spill] sm:$0xff] %v4598_v41  ;;  %v4608_v56 = vld [vmem:[%s5698_s5 + $0x478] sm:$0xff]  ;;  %v1111_v49 = vunpack.c.l.bf16 %v4598_v41  ;;  %1773 = vmatpush.msrb.mxu0 %v1015_v62  ;;  %1796 = vmatpush.msrb.mxu1 %v1119_v34  ;;  %v1216_v62 = vunpack.c.h.bf16 %v4303_v1  ;;  %v816_v27 = vunpack.c.h.bf16 %v4311_v57  ;;  %v920_v38 = vunpack.c.h.bf16 %v4316_v63 }
 0x1bd   :  { %v4615_v31 = vld [vmem:[%s5698_s5 + $0x618] sm:$0xff]  ;;  %v999_v46 = vunpack.c.l.bf16 %v4608_v56  ;;  %1825 = vmatpush.msrb.mxu3 %v952_v35  ;;  %1738 = vmatpush.msra.mxu2 %v719_v18  ;;  %v912_v1 = vunpack.c.h.bf16 %v4338_v42  ;;  %v1200_v57 = vunpack.c.h.bf16 %v4350_v37  ;;  %v800_v63 = vunpack.c.h.bf16 %v4355_v15 }
 0x1be   :  { %v4623_v47 = vld [vmem:[%s5698_s5 + $0x458] sm:$0xff]  ;;  %v1103_v41 = vunpack.c.l.bf16 %v4615_v31  ;;  %1774 = vmatpush.msrb.mxu0 %v1007_v0  ;;  %1797 = vmatpush.msrb.mxu1 %v1111_v49  ;;  %v928_v49 = vunpack.c.h.bf16 %v4297_v39  ;;  %v1208_v39 = vunpack.c.h.bf16 %v4323_v11  ;;  %v1096_v0 = vunpack.c.h.bf16 %v4343_v23 }
 0x1bf   :  { %v4631_v36 = vld [vmem:[%s5698_s5 + $0x438] sm:$0xff]  ;;  %1739 = vmatmul.f32.vlgmr.msra.gmra.mxu2 %v3363_v59  ;;  %1826 = vmatpush.msrb.mxu3 %v944_v53  ;;  %v991_v18 = vunpack.c.l.bf16 %v4623_v47  ;;  %v904_v11 = vunpack.c.h.bf16 %v4361_v7  ;;  %v1088_v53 = vunpack.c.h.bf16 %v4366_v26  ;;  %v792_v42 = vunpack.c.h.bf16 %v4378_v19 }
 0x1c0   :  { %1803 = vmatpush.msrb.mxu2 %v840_v44  ;;  %1775 = vmatpush.msrb.mxu0 %v999_v46  ;;  %v4641_v12 = vld [vmem:[%s5698_s5 + $0x418] sm:$0xff]  ;;  %v983_v34 = vunpack.c.l.bf16 %v4631_v36  ;;  %v896_v23 = vunpack.c.h.bf16 %v4385_v50  ;;  %v1080_v37 = vunpack.c.h.bf16 %v4390_v43  ;;  %v1184_v15 = vunpack.c.h.bf16 %v4397_v52  ;;  %v5906_v46 = vld [vmem:[#allocation6_spill] sm:$0xff] }
 0x1c1   :  { %1798 = vmatpush.msrb.mxu1 %v1103_v41  ;;  %1827 = vmatpush.msrb.mxu3 %v936_v9  ;;  %v975_v35 = vunpack.c.l.bf16 %v4641_v12  ;;  %v808_v41 = vunpack.c.h.bf16 %v4330_v32  ;;  %v1192_v32 = vunpack.c.h.bf16 %v4373_v58  ;;  %v784_v7 = vunpack.c.h.bf16 %v4402_v30  ;;  %v5907_v9 = vld [vmem:[#allocation13_spill] sm:$0xff] }
 0x1c2   :  { %1799 = vmatmul.f32.vlgmr.msrb.gmra.mxu1 %v3389_v51  ;;  %1804 = vmatpush.msrb.mxu2 %v832_v3  ;;  %v888_v26 = vunpack.c.h.bf16 %v4410_v16  ;;  %v1072_v58 = vunpack.c.h.bf16 %v4415_v4  ;;  %v1176_v19 = vunpack.c.h.bf16 %v4422_v61  ;;  %v776_v50 = vunpack.c.h.bf16 %v4427_v48  ;;  %v5908_v3 = vld [vmem:[#allocation8_spill] sm:$0xff] }
 0x1c3   :  { %1863 = vmatpush.msra.mxu1 %v1224_v24  ;;  %1776 = vmatpush.msrb.mxu0 %v991_v18  ;;  %v880_v43 = vunpack.c.h.bf16 %v4434_v28  ;;  %v1064_v52 = vunpack.c.h.bf16 %v4439_v22  ;;  %v1168_v30 = vunpack.c.h.bf16 %v4446_v40  ;;  %v768_v16 = vunpack.c.h.bf16 %v4451_v60  ;;  %v5905_v60 = vld [vmem:[#allocation10_spill] sm:$0xff]  ;;  %v5909_v24 = vld [vmem:[#allocation15_spill] sm:$0xff] }
 0x1c4   :  { %1805 = vmatpush.msrb.mxu2 %v824_v13  ;;  %1828 = vmatpush.msrb.mxu3 %v928_v49  ;;  %v872_v4 = vunpack.c.h.bf16 %v4458_v54  ;;  %v1056_v61 = vunpack.c.h.bf16 %v4463_v29  ;;  %v1160_v48 = vunpack.c.h.bf16 %v4470_v45  ;;  %v760_v28 = vunpack.c.h.bf16 %v4475_v6  ;;  %v5910_v13 = vld [vmem:[#allocation11_spill] sm:$0xff] }
 0x1c5   :  { %1864 = vmatpush.msra.mxu1 %v1216_v62  ;;  %1777 = vmatpush.msrb.mxu0 %v983_v34  ;;  %v864_v22 = vunpack.c.h.bf16 %v4482_v21  ;;  %v1048_v40 = vunpack.c.h.bf16 %v4487_v20  ;;  %v1152_v44 = vunpack.c.h.bf16 %v5905_v60  ;;  %v752_v54 = vunpack.c.h.bf16 %v5906_v46  ;;  %v4687_v20 = vld [vmem:[%s5700_s7 + $0xf8] sm:$0xff]  ;;  %v4697_v62 = vpop.f32.mrf.mxu2 }
 0x1c6   :  { %1806 = vmatpush.msrb.mxu2 %v816_v27  ;;  %1829 = vmatpush.msrb.mxu3 %v920_v38  ;;  %v856_v29 = vunpack.c.h.bf16 %v4506_v10  ;;  %v1040_v45 = vunpack.c.h.bf16 %v5907_v9  ;;  %v1144_v6 = vunpack.c.h.bf16 %v4518_v2  ;;  %v744_v21 = vunpack.c.h.bf16 %v5908_v3  ;;  %v4695_v2 = vld [vmem:[%s5700_s7 + $0xf0] sm:$0xff]  ;;  %v5911_v27 = vld [vmem:[#allocation14_spill] sm:$0xff]  ;;  %v4784_v46 = vld [vmem:[%s5700_s7 + $0x58] sm:$0xff] }
 0x1c7   :  { %1865 = vmatpush.msra.mxu1 %v1208_v39  ;;  %1778 = vmatpush.msrb.mxu0 %v975_v35  ;;  %v848_v18 = vunpack.c.h.bf16 %v5909_v24  ;;  %v1032_v49 = vunpack.c.h.bf16 %v5910_v13  ;;  %v1136_v10 = vunpack.c.h.bf16 %v4542_v14  ;;  %v2081_v34 = vunpack.c.l.bf16 %v4687_v20  ;;  %v5912_v35 = vld [vmem:[#allocation16_spill] sm:$0xff]  ;;  %v4706_v14 = vld [vmem:[%s5700_s7 + $0xe8] sm:$0xff]  ;;  %v4792_v9 = vld [vmem:[%s5700_s7 + $0xc0] sm:$0xff] }
 0x1c8   :  { %1779 = vmatmul.f32.vlgmr.msrb.gmra.mxu0 %v3440_v17  ;;  %1807 = vmatpush.msrb.mxu2 %v808_v41  ;;  %v736_v38 = vunpack.c.h.bf16 %v5911_v27  ;;  %v1024_v39 = vunpack.c.h.bf16 %v4556_v33  ;;  %v1128_v41 = vunpack.c.h.bf16 %v5912_v35  ;;  %v1120_v33 = vunpack.c.h.bf16 %v4579_v8  ;;  %v5915_v8 = vld [vmem:[#allocation9_spill] sm:$0xff]  ;;  %v4813_v24 = vld [vmem:[%s5700_s7 + $0x50] sm:$0xff] }
 0x1c9   :  { %1830 = vmatpush.msrb.mxu3 %v912_v1  ;;  %1843 = vmatpush.msra.mxu0 %v1096_v0  ;;  %v2079_v1 = vunpack.c.l.bf16 %v4695_v2  ;;  %v5913_v0 = vld [vmem:[#allocation5_spill] sm:$0xff]  ;;  %v976_v3 = vunpack.c.h.bf16 %v4641_v12  ;;  %v2041_v13 = vunpack.c.l.bf16 %v4784_v46  ;;  %v4825_v12 = vld [vmem:[%s5700_s7 + $0x170] sm:$0xff] }
 0x1ca   :  { %1866 = vmatpush.msra.mxu1 %v1200_v57  ;;  %1808 = vmatpush.msrb.mxu2 %v800_v63  ;;  %v728_v57 = vunpack.c.h.bf16 %v5913_v0  ;;  %v5914_v63 = vld [vmem:[#allocation2_spill] sm:$0xff]  ;;  %v4848_v0 = vld [vmem:[%s5700_s7 + $0x168] sm:$0xff] }
 0x1cb   :  { %1831 = vmatpush.msrb.mxu3 %v904_v11  ;;  %1844 = vmatpush.msra.mxu0 %v1088_v53  ;;  %v1016_v11 = vunpack.c.h.bf16 %v4574_v55  ;;  %v4716_v53 = vld [vmem:[%s5700_s7 + $0xe0] sm:$0xff]  ;;  %v1008_v55 = vunpack.c.h.bf16 %v4593_v25 }
 0x1cc   :  { %1867 = vmatpush.msra.mxu1 %v1192_v32  ;;  %1809 = vmatpush.msrb.mxu2 %v792_v42  ;;  %v2077_v32 = vunpack.c.l.bf16 %v4706_v14  ;;  %v720_v42 = vunpack.c.h.bf16 %v4586_v5  ;;  %v2075_v5 = vunpack.c.l.bf16 %v4716_v53 }
 0x1cd   :  { %1832 = vmatpush.msrb.mxu3 %v896_v23  ;;  %1845 = vmatpush.msra.mxu0 %v1080_v37  ;;  %v4723_v23 = vld [vmem:[%s5700_s7 + $0x78] sm:$0xff]  ;;  %v1112_v37 = vunpack.c.h.bf16 %v5915_v8 }
 0x1ce   :  { %1868 = vmatpush.msra.mxu1 %v1184_v15  ;;  %1810 = vmatpush.msrb.mxu2 %v784_v7  ;;  %v4730_v15 = vld [vmem:[%s5700_s7 + $0xd8] sm:$0xff]  ;;  %v4732_v7 = vpop.f32.mrf.mxu3  ;;  %v2049_v25 = vunpack.c.l.bf16 %v4723_v23 }
 0x1cf   :  { %1833 = vmatpush.msrb.mxu3 %v888_v26  ;;  %1846 = vmatpush.msra.mxu0 %v1072_v58  ;;  %v4738_v26 = vld [vmem:[%s5700_s7 + $0x70] sm:$0xff]  ;;  %v1000_v58 = vunpack.c.h.bf16 %v4608_v56 }
 0x1d0   :  { %1869 = vmatpush.msra.mxu1 %v1176_v19  ;;  %1811 = vmatpush.msrb.mxu2 %v776_v50  ;;  %v1954_v19 = vld [vmem:[%s5700_s7 + $0x1f8] sm:$0xff]  ;;  %v1104_v50 = vunpack.c.h.bf16 %v4615_v31  ;;  %v2047_v56 = vunpack.c.l.bf16 %v4738_v26  ;;  %v1953_v31 = vld [vmem:[%s5700_s7 + $0x1f0] sm:$0xff] }
 0x1d1   :  { %1834 = vmatpush.msrb.mxu3 %v880_v43  ;;  %1847 = vmatpush.msra.mxu0 %v1064_v52  ;;  %v2073_v43 = vunpack.c.l.bf16 %v4730_v15  ;;  %v4750_v52 = vld [vmem:[%s5700_s7 + $0x68] sm:$0xff]  ;;  %v2143_v60 = vunpack.c.l.bf16 %v1953_v31  ;;  %v4894_v31 = vld [vmem:[%s5700_s7 + $0xa0] sm:$0xff] }
 0x1d2   :  { %1870 = vmatpush.msra.mxu1 %v1168_v30  ;;  %1812 = vmatpush.msrb.mxu2 %v768_v16  ;;  %v4755_v30 = vld [vmem:[%s5700_s7 + $0xd0] sm:$0xff]  ;;  %v4761_v16 = vpop.f32.mrf.mxu0 }
 0x1d3   :  { %1835 = vmatpush.msrb.mxu3 %v872_v4  ;;  %1848 = vmatpush.msra.mxu0 %v1056_v61  ;;  %v1340_v4 = vpop.f32.mrf.mxu2  ;;  %v2145_v61 = vunpack.c.l.bf16 %v1954_v19  ;;  %v4882_v19 = vld [vmem:[%s5700_s7 + $0x1c8] sm:$0xff] }
 0x1d4   :  { %1871 = vmatpush.msra.mxu1 %v1160_v48  ;;  %1813 = vmatpush.msrb.mxu2 %v760_v28  ;;  %v992_v48 = vunpack.c.h.bf16 %v4623_v47  ;;  %v4768_v28 = vld [vmem:[%s5700_s7 + $0x60] sm:$0xff]  ;;  %v1952_v47 = vld [vmem:[%s5700_s7 + $0x1e8] sm:$0xff]  ;;  %5918 = vst [vmem:[#allocation12_spill] sm:$0xff] %v4882_v19 }
 0x1d5   :  { %1836 = vmatpush.msrb.mxu3 %v864_v22  ;;  %1849 = vmatpush.msra.mxu0 %v1048_v40  ;;  %v4773_v22 = vld [vmem:[%s5700_s7 + $0xc8] sm:$0xff]  ;;  %v2045_v40 = vunpack.c.l.bf16 %v4750_v52 }
 0x1d6   :  { %1872 = vmatpush.msra.mxu1 %v1152_v44  ;;  %1814 = vmatpush.msrb.mxu2 %v752_v54  ;;  %v984_v44 = vunpack.c.h.bf16 %v4631_v36  ;;  %v2043_v54 = vunpack.c.l.bf16 %v4768_v28  ;;  %v4797_v36 = vld [vmem:[%s5700_s7 + $0x178] sm:$0xff] }
 0x1d7   :  { %1837 = vmatpush.msrb.mxu3 %v856_v29  ;;  %1850 = vmatpush.msra.mxu0 %v1040_v45  ;;  %v2069_v29 = vunpack.c.l.bf16 %v4773_v22  ;;  %v4799_v45 = vpop.f32.mrf.mxu1  ;;  %v2113_v27 = vunpack.c.l.bf16 %v4797_v36 }
 0x1d8   :  { %1873 = vmatpush.msra.mxu1 %v1144_v6  ;;  %1815 = vmatpush.msrb.mxu2 %v744_v21  ;;  %v2141_v6 = vunpack.c.l.bf16 %v1952_v47  ;;  %v1951_v21 = vld [vmem:[%s5700_s7 + $0x1e0] sm:$0xff]  ;;  %v4912_v47 = vld [vmem:[%s5700_s7 + $0x30] sm:$0xff] }
 0x1d9   :  { %1838 = vmatpush.msrb.mxu3 %v848_v18  ;;  %1851 = vmatpush.msra.mxu0 %v1032_v49  ;;  %v4820_v49 = vld [vmem:[%s5700_s7 + $0xb8] sm:$0xff]  ;;  %v2139_v35 = vunpack.c.l.bf16 %v1951_v21 }
 0x1da   :  { %1874 = vmatpush.msra.mxu1 %v1136_v10  ;;  %1839 = vmatmul.f32.vlgmr.msrb.gmra.mxu3 %v5914_v63  ;;  %v1360_v10 = vpop.f32.mrf.mxu3  ;;  %v2065_v63 = vunpack.c.l.bf16 %v4820_v49 }
 0x1db   :  { %2301 = vmatpush.msra.mxu3 %v2081_v34  ;;  %1816 = vmatpush.msrb.mxu2 %v736_v38  ;;  %v2067_v34 = vunpack.c.l.bf16 %v4792_v9  ;;  %v4832_v38 = vld [vmem:[%s5700_s7 + $0x1d8] sm:$0xff] }
 0x1dc   :  { %1852 = vmatpush.msra.mxu0 %v1024_v39  ;;  %1875 = vmatpush.msra.mxu1 %v1128_v41  ;;  %5916 = vst [vmem:[#allocation3_spill] sm:$0xff] %v4832_v38  ;;  %v4837_v39 = vld [vmem:[%s5700_s7 + $0x48] sm:$0xff]  ;;  %v2039_v41 = vunpack.c.l.bf16 %v4813_v24 }
 0x1dd   :  { %2302 = vmatpush.msra.mxu3 %v2079_v1  ;;  %1817 = vmatpush.msrb.mxu2 %v728_v57  ;;  %v4843_v1 = vld [vmem:[%s5700_s7 + $0xb0] sm:$0xff]  ;;  %v4850_v57 = vpop.f32.mrf.mxu2  ;;  %v2037_v8 = vunpack.c.l.bf16 %v4837_v39 }
 0x1de   :  { %1853 = vmatpush.msra.mxu0 %v1016_v11  ;;  %1876 = vmatpush.msra.mxu1 %v1120_v33  ;;  %v2111_v11 = vunpack.c.l.bf16 %v4825_v12  ;;  %v4857_v33 = vld [vmem:[%s5700_s7 + $0x1d0] sm:$0xff] }
 0x1df   :  { %2303 = vmatpush.msra.mxu3 %v2077_v32  ;;  %1818 = vmatpush.msrb.mxu2 %v720_v42  ;;  %5917 = vst [vmem:[#allocation7_spill] sm:$0xff] %v4857_v33  ;;  %v4862_v32 = vld [vmem:[%s5700_s7 + $0x40] sm:$0xff] }
 0x1e0   :  { %1854 = vmatpush.msra.mxu0 %v1008_v55  ;;  %1877 = vmatpush.msra.mxu1 %v1112_v37  ;;  %v2137_v55 = vunpack.c.l.bf16 %v4832_v38  ;;  %v4870_v37 = vld [vmem:[%s5700_s7 + $0xa8] sm:$0xff] }
 0x1e1   :  { %1819 = vmatmul.f32.vlgmr.msrb.gmra.mxu2 %v3363_v59  ;;  %2304 = vmatpush.msra.mxu3 %v2075_v5  ;;  %v2071_v59 = vunpack.c.l.bf16 %v4755_v30  ;;  %v4875_v5 = vld [vmem:[%s5700_s7 + $0x160] sm:$0xff] }
 0x1e2   :  { %2281 = vmatpush.msra.mxu2 %v2049_v25  ;;  %1855 = vmatpush.msra.mxu0 %v1000_v58  ;;  %v1380_v25 = vpop.f32.mrf.mxu0  ;;  %v2109_v58 = vunpack.c.l.bf16 %v4848_v0  ;;  %v4926_v21 = vpop.f32.mrf.mxu3 }
 0x1e3   :  { %1878 = vmatpush.msra.mxu1 %v1104_v50  ;;  %2305 = vmatpush.msra.mxu3 %v2073_v43  ;;  %v4887_v50 = vld [vmem:[%s5700_s7 + $0x38] sm:$0xff]  ;;  %v2135_v43 = vunpack.c.l.bf16 %v4857_v33 }
 0x1e4   :  { %1879 = vmatmul.f32.vlgmr.msra.gmra.mxu1 %v3389_v51  ;;  %2282 = vmatpush.msra.mxu2 %v2047_v56  ;;  %v4804_v51 = vld [vmem:[%s5701_s6] sm:$0xff]  ;;  %v2035_v56 = vunpack.c.l.bf16 %v4862_v32  ;;  %v5002_v33 = vld [vmem:[%s5700_s7 + $0x138] sm:$0xff] }
 0x1e5   :  { %2341 = vmatpush.msrb.mxu1 %v2145_v61  ;;  %1856 = vmatpush.msra.mxu0 %v992_v48  ;;  %v1228_v18 = vperm.slane %v4804_v51, 1  ;;  %v1227_v61 = vperm.slane %v4804_v51, 0  ;;  %v2061_v48 = vunpack.c.l.bf16 %v4870_v37  ;;  %5926 = vst [vmem:[#allocation14_spill] sm:$0xff] %v5002_v33 }
 0x1e6   :  { %2283 = vmatpush.msra.mxu2 %v2045_v40  ;;  %2306 = vmatpush.msra.mxu3 %v2071_v59  ;;  %v2107_v40 = vunpack.c.l.bf16 %v4875_v5  ;;  %v4907_v59 = vld [vmem:[%s5700_s7 + $0x1c0] sm:$0xff] }
 0x1e7   :  { %2342 = vmatpush.msrb.mxu1 %v2143_v60  ;;  %1857 = vmatpush.msra.mxu0 %v984_v44  ;;  %v1341_v42 = vadd.f32 %v1340_v4, %v1228_v18  ;;  %v4899_v4 = vld [vmem:[%s5700_s7 + $0x158] sm:$0xff]  ;;  %5919 = vst [vmem:[#allocation4_spill] sm:$0xff] %v4907_v59  ;;  %v2133_v44 = vunpack.c.l.bf16 %v4882_v19  ;;  %v2059_v18 = vunpack.c.l.bf16 %v4894_v31  ;;  %v4997_v19 = vld [vmem:[%s5700_s7 + $0x80] sm:$0xff] }
 0x1e8   :  { %2284 = vmatpush.msra.mxu2 %v2043_v54  ;;  %2307 = vmatpush.msra.mxu3 %v2069_v29  ;;  %v2033_v54 = vunpack.c.l.bf16 %v4887_v50  ;;  %v4919_v29 = vld [vmem:[%s5700_s7 + $0x98] sm:$0xff] }
 0x1e9   :  { %2343 = vmatpush.msrb.mxu1 %v2141_v6  ;;  %1858 = vmatpush.msra.mxu0 %v976_v3  ;;  %v1361_v60 = vadd.f32 %v1360_v10, %v1341_v42  ;;  %v4924_v6 = vld [vmem:[%s5700_s7 + $0x150] sm:$0xff]  ;;  %v1400_v3 = vpop.f32.mrf.mxu1  ;;  %v4933_v10 = vld [vmem:[%s5700_s7 + $0x1b8] sm:$0xff]  ;;  %v1261_v42 = vadd.f32 %v4697_v62, %v1227_v61 }
 0x1ea   :  { %1859 = vmatmul.f32.vlgmr.msra.gmra.mxu0 %v3440_v17  ;;  %2285 = vmatpush.msra.mxu2 %v2041_v13  ;;  %v2063_v17 = vunpack.c.l.bf16 %v4843_v1  ;;  %v2105_v13 = vunpack.c.l.bf16 %v4899_v4  ;;  %5920 = vst [vmem:[#allocation10_spill] sm:$0xff] %v4933_v10  ;;  %v2129_v62 = vunpack.c.l.bf16 %v4933_v10 }
 0x1eb   :  { %2308 = vmatpush.msra.mxu3 %v2067_v34  ;;  %2321 = vmatpush.msrb.mxu0 %v2113_v27  ;;  %v4938_v34 = vld [vmem:[%s5700_s7 + $0x28] sm:$0xff]  ;;  %v1230_v27 = vperm.slane %v4804_v51, 3  ;;  %v1281_v38 = vadd.f32 %v4732_v7, %v1261_v42  ;;  %v5020_v42 = vld [vmem:[%s5700_s7 + $0x2f8] sm:$0xff] }
 0x1ec   :  { %2344 = vmatpush.msrb.mxu1 %v2139_v35  ;;  %2286 = vmatpush.msra.mxu2 %v2039_v41  ;;  %v2131_v35 = vunpack.c.l.bf16 %v4907_v59  ;;  %v2031_v41 = vunpack.c.l.bf16 %v4912_v47  ;;  %v2029_v61 = vunpack.c.l.bf16 %v4938_v34  ;;  %v4978_v59 = vpop.f32.mrf.mxu0  ;;  %5928 = vst [vmem:[#allocation5_spill] sm:$0xff] %v5020_v42 }
 0x1ed   :  { %2309 = vmatpush.msra.mxu3 %v2065_v63  ;;  %2322 = vmatpush.msrb.mxu0 %v2111_v11  ;;  %v4946_v63 = vld [vmem:[%s5700_s7 + $0x90] sm:$0xff]  ;;  %v4951_v11 = vld [vmem:[%s5700_s7 + $0x148] sm:$0xff] }
 0x1ee   :  { %2345 = vmatpush.msrb.mxu1 %v2137_v55  ;;  %2287 = vmatpush.msra.mxu2 %v2037_v8  ;;  %v1500_v55 = vpop.f32.mrf.mxu2  ;;  %v2057_v8 = vunpack.c.l.bf16 %v4919_v29 }
 0x1ef   :  { %2310 = vmatpush.msra.mxu3 %v2063_v17  ;;  %2323 = vmatpush.msrb.mxu0 %v2109_v58  ;;  %v2103_v17 = vunpack.c.l.bf16 %v4924_v6  ;;  %v4959_v58 = vld [vmem:[%s5700_s7 + $0x1b0] sm:$0xff]  ;;  %v1501_v10 = vadd.f32 %v1500_v55, %v1230_v27 }
 0x1f0   :  { %2346 = vmatpush.msrb.mxu1 %v2135_v43  ;;  %2288 = vmatpush.msra.mxu2 %v2035_v56  ;;  %5921 = vst [vmem:[#allocation6_spill] sm:$0xff] %v4959_v58  ;;  %v4964_v43 = vld [vmem:[%s5700_s7 + $0x20] sm:$0xff]  ;;  %v1381_v56 = vadd.f32 %v1380_v25, %v1361_v60  ;;  %v2055_v25 = vunpack.c.l.bf16 %v4946_v63  ;;  %v2101_v60 = vunpack.c.l.bf16 %v4951_v11 }
 0x1f1   :  { %2311 = vmatpush.msra.mxu3 %v2061_v48  ;;  %2324 = vmatpush.msrb.mxu0 %v2107_v40  ;;  %5922 = vst [vmem:[#allocation13_spill] sm:$0xff] %v4964_v43  ;;  %v4971_v48 = vld [vmem:[%s5700_s7 + $0x88] sm:$0xff]  ;;  %v4976_v40 = vld [vmem:[%s5700_s7 + $0x140] sm:$0xff] }
 0x1f2   :  { %2347 = vmatpush.msrb.mxu1 %v2133_v44  ;;  %2289 = vmatpush.msra.mxu2 %v2033_v54  ;;  %5923 = vst [vmem:[#allocation8_spill] sm:$0xff] %v4976_v40  ;;  %v4985_v44 = vld [vmem:[%s5700_s7 + $0x1a8] sm:$0xff]  ;;  %v4990_v54 = vld [vmem:[%s5700_s7 + $0x18] sm:$0xff]  ;;  %v2053_v27 = vunpack.c.l.bf16 %v4971_v48  ;;  %v5012_v55 = vadd.f32 %v1400_v3, %v1381_v56  ;;  %v5027_v3 = vpop.f32.mrf.mxu1  ;;  %v2051_v56 = vunpack.c.l.bf16 %v4997_v19 }
 0x1f3   :  { %2312 = vmatpush.msra.mxu3 %v2059_v18  ;;  %2325 = vmatpush.msrb.mxu0 %v2105_v13  ;;  %5924 = vst [vmem:[#allocation15_spill] sm:$0xff] %v4985_v44  ;;  %v2127_v18 = vunpack.c.l.bf16 %v4959_v58  ;;  %v2027_v13 = vunpack.c.l.bf16 %v4964_v43  ;;  %v1229_v58 = vperm.slane %v4804_v51, 2  ;;  %v2125_v43 = vunpack.c.l.bf16 %v4985_v44  ;;  %v5039_v44 = vld [vmem:[%s5700_s7 + $0x198] sm:$0xff] }
 0x1f4   :  { %5925 = vst [vmem:[#allocation11_spill] sm:$0xff] %v4990_v54  ;;  %2348 = vmatpush.msrb.mxu1 %v2131_v35  ;;  %2290 = vmatpush.msra.mxu2 %v2031_v41  ;;  %v2099_v35 = vunpack.c.l.bf16 %v4976_v40  ;;  %v5010_v41 = vld [vmem:[%s5700_s7 + $0x1a0] sm:$0xff]  ;;  %v2025_v7 = vunpack.c.l.bf16 %v4990_v54  ;;  %v1301_v40 = vadd.f32 %v4761_v16, %v1281_v38 }
 0x1f5   :  { %2313 = vmatpush.msra.mxu3 %v2057_v8  ;;  %2326 = vmatpush.msrb.mxu0 %v2103_v17  ;;  %5927 = vst [vmem:[#allocation16_spill] sm:$0xff] %v5010_v41  ;;  %v5025_v8 = vld [vmem:[%s5700_s7 + $0x10] sm:$0xff]  ;;  %v1520_v17 = vpop.f32.mrf.mxu3  ;;  %v1421_v16 = vadd.f32 %v4850_v57, %v1229_v58 }
 0x1f6   :  { %2349 = vmatpush.msrb.mxu1 %v2129_v62  ;;  %2291 = vmatpush.msra.mxu2 %v2029_v61  ;;  %5929 = vst [vmem:[#allocation2_spill] sm:$0xff] %v5025_v8  ;;  %v2097_v62 = vunpack.c.l.bf16 %v5002_v33  ;;  %v5034_v61 = vld [vmem:[%s5700_s7 + $0x130] sm:$0xff]  ;;  %v1521_v54 = vadd.f32 %v1520_v17, %v1501_v10  ;;  %v5050_v33 = vld [vmem:[%s5700_s7 + $0x8] sm:$0xff]  ;;  %v2209_v10 = vunpack.c.l.bf16 %v5020_v42  ;;  %v1540_v42 = vpop.f32.mrf.mxu0 }
 0x1f7   :  { %2314 = vmatpush.msra.mxu3 %v2055_v25  ;;  %2327 = vmatpush.msrb.mxu0 %v2101_v60  ;;  %5930 = vst [vmem:[#allocation9_spill] sm:$0xff] %v5034_v61  ;;  %v2123_v25 = vunpack.c.l.bf16 %v5010_v41  ;;  %v5045_v60 = vld [vmem:[%s5700_s7 + $0x2f0] sm:$0xff]  ;;  %v2095_v38 = vunpack.c.l.bf16 %v5034_v61  ;;  %v2021_v58 = vunpack.c.l.bf16 %v5050_v33  ;;  %v5101_v61 = vadd.f32 %v4799_v45, %v1301_v40 }
 0x1f8   :  { %5931 = vst [vmem:[#allocation17_spill] sm:$0xff] %v5039_v44  ;;  %2350 = vmatpush.msrb.mxu1 %v2127_v18  ;;  %2292 = vmatpush.msra.mxu2 %v2027_v13  ;;  %v2023_v18 = vunpack.c.l.bf16 %v5025_v8  ;;  %v5058_v13 = vld [vmem:[%s5700_s7 + $0x128] sm:$0xff]  ;;  %v5063_v17 = vld [vmem:[%s5700_s7 + $0x190] sm:$0xff]  ;;  %v5077_v8 = vld [vmem:[%s5700_s7] sm:$0xff]  ;;  %v2207_v57 = vunpack.c.l.bf16 %v5045_v60  ;;  %v1541_v41 = vadd.f32 %v1540_v42, %v1521_v54 }
 0x1f9   :  { %5932 = vst [vmem:[#allocation18_spill] sm:$0xff] %v5050_v33  ;;  %2315 = vmatpush.msra.mxu3 %v2053_v27  ;;  %2328 = vmatpush.msrb.mxu0 %v2099_v35  ;;  %v2121_v27 = vunpack.c.l.bf16 %v5039_v44  ;;  %v5072_v35 = vld [vmem:[%s5700_s7 + $0x2e8] sm:$0xff]  ;;  %v5937_v44 = vmax.f32 %v5012_v55, 0.0  ;;  %v5098_v33 = vld [vmem:[%s5700_s7 + $0x2e0] sm:$0xff]  ;;  %v2019_v42 = vunpack.c.l.bf16 %v5077_v8 }
 0x1fa   :  { %5933 = vst [vmem:[#allocation19_spill] sm:$0xff] %v5063_v17  ;;  %2351 = vmatpush.msrb.mxu1 %v2125_v43  ;;  %2293 = vmatpush.msra.mxu2 %v2025_v7  ;;  %v5084_v43 = vld [vmem:[%s5700_s7 + $0x120] sm:$0xff]  ;;  %v5089_v7 = vld [vmem:[%s5700_s7 + $0x188] sm:$0xff]  ;;  %v2205_v54 = vunpack.c.l.bf16 %v5072_v35 }
 0x1fb   :  { %5934 = vst [vmem:[#allocation20_spill] sm:$0xff] %v5077_v8  ;;  %2316 = vmatpush.msra.mxu3 %v2051_v56  ;;  %2329 = vmatpush.msrb.mxu0 %v2097_v62  ;;  %v2093_v56 = vunpack.c.l.bf16 %v5058_v13  ;;  %v2119_v62 = vunpack.c.l.bf16 %v5063_v17  ;;  %v1441_v17 = vadd.f32 %v4926_v21, %v1421_v16  ;;  %v2091_v45 = vunpack.c.l.bf16 %v5084_v43  ;;  %v1560_v8 = vpop.f32.mrf.mxu1  ;;  %v5132_v16 = vld [vmem:[%s5700_s7 + $0x270] sm:$0xff] }
 0x1fc   :  { %5935 = vst [vmem:[#allocation21_spill] sm:$0xff] %v5084_v43  ;;  %2352 = vmatpush.msrb.mxu1 %v2123_v25  ;;  %2317 = vmatmul.f32.vlgmr.msra.gmra.mxu3 %v5937_v44  ;;  %v5108_v44 = vld [vmem:[%s5700_s7 + $0x278] sm:$0xff]  ;;  %v2117_v40 = vunpack.c.l.bf16 %v5089_v7  ;;  %v2203_v21 = vunpack.c.l.bf16 %v5098_v33  ;;  %v5776_v43 = vmax.f32 %v5101_v61, 0.0 }
 0x1fd   :  { %5936 = vst [vmem:[#allocation22_spill] sm:$0xff] %v5089_v7  ;;  %2381 = vmatpush.msrb.mxu3 %v2209_v10  ;;  %2294 = vmatpush.msra.mxu2 %v2023_v18  ;;  %v5113_v25 = vld [vmem:[%s5700_s7 + $0x118] sm:$0xff]  ;;  %v5121_v10 = vld [vmem:[%s5700_s7 + $0x180] sm:$0xff] }
 0x1fe   :  { %5938 = vst [vmem:[#allocation23_spill] sm:$0xff] %v5101_v61  ;;  %2330 = vmatpush.msrb.mxu0 %v2095_v38  ;;  %2353 = vmatpush.msrb.mxu1 %v2121_v27  ;;  %v5126_v18 = vld [vmem:[%s5700_s7 + $0x2d8] sm:$0xff]  ;;  %v5134_v38 = vadd.f32 %v1560_v8, %v1541_v41  ;;  %v2177_v27 = vunpack.c.l.bf16 %v5108_v44  ;;  %v2089_v7 = vunpack.c.l.bf16 %v5113_v25  ;;  %v2115_v41 = vunpack.c.l.bf16 %v5121_v10 }
 0x1ff   :  { %5939 = vst [vmem:[#allocation24_spill] sm:$0xff] %v5113_v25  ;;  %2382 = vmatpush.msrb.mxu3 %v2207_v57  ;;  %2295 = vmatpush.msra.mxu2 %v2021_v58  ;;  %v5141_v57 = vld [vmem:[%s5700_s7 + $0x110] sm:$0xff]  ;;  %v2201_v8 = vunpack.c.l.bf16 %v5126_v18  ;;  %v2175_v25 = vunpack.c.l.bf16 %v5132_v16 }
 0x200   :  { %5940 = vst [vmem:[#allocation25_spill] sm:$0xff] %v5121_v10  ;;  %2331 = vmatpush.msrb.mxu0 %v2093_v56  ;;  %2354 = vmatpush.msrb.mxu1 %v2119_v62  ;;  %v5146_v58 = vld [vmem:[%s5700_s7 + $0x2d0] sm:$0xff]  ;;  %v5154_v56 = vld [vmem:[%s5700_s7 + $0x268] sm:$0xff]  ;;  %v1461_v62 = vadd.f32 %v4978_v59, %v1441_v17  ;;  %v2087_v59 = vunpack.c.l.bf16 %v5141_v57 }
 0x201   :  { %5941 = vst [vmem:[#allocation26_spill] sm:$0xff] %v5134_v38  ;;  %2383 = vmatpush.msrb.mxu3 %v2205_v54  ;;  %2296 = vmatpush.msra.mxu2 %v2019_v42  ;;  %v5161_v54 = vld [vmem:[%s5700_s7 + $0x108] sm:$0xff]  ;;  %v2199_v17 = vunpack.c.l.bf16 %v5146_v58  ;;  %v2173_v10 = vunpack.c.l.bf16 %v5154_v56 }
 0x202   :  { %5942 = vst [vmem:[#allocation27_spill] sm:$0xff] %v5141_v57  ;;  %2332 = vmatpush.msrb.mxu0 %v2091_v45  ;;  %2355 = vmatpush.msrb.mxu1 %v2117_v40  ;;  %v5166_v42 = vld [vmem:[%s5700_s7 + $0x2c8] sm:$0xff]  ;;  %v5175_v45 = vld [vmem:[%s5700_s7 + $0x260] sm:$0xff]  ;;  %v2085_v57 = vunpack.c.l.bf16 %v5161_v54 }
 0x203   :  { %5943 = vst [vmem:[#allocation28_spill] sm:$0xff] %v5154_v56  ;;  %2297 = vmatmul.f32.vlgmr.msra.gmra.mxu2 %v5776_v43  ;;  %2384 = vmatpush.msrb.mxu3 %v2203_v21  ;;  %v5182_v43 = vld [vmem:[%s5700_s7 + $0x100] sm:$0xff]  ;;  %v2197_v40 = vunpack.c.l.bf16 %v5166_v42  ;;  %v5951_v56 = vmax.f32 %v5134_v38, 0.0  ;;  %v2171_v61 = vunpack.c.l.bf16 %v5175_v45  ;;  %v5223_v38 = vld [vmem:[%s5700_s7 + $0x2b0] sm:$0xff] }
 0x204   :  { %5944 = vst [vmem:[#allocation29_spill] sm:$0xff] %v5161_v54  ;;  %2361 = vmatpush.msrb.mxu2 %v2177_v27  ;;  %2333 = vmatpush.msrb.mxu0 %v2089_v7  ;;  %v5187_v21 = vld [vmem:[%s5700_s7 + $0x2c0] sm:$0xff]  ;;  %v5194_v7 = vld [vmem:[%s5700_s7 + $0x258] sm:$0xff]  ;;  %v5197_v27 = vadd.f32 %v5027_v3, %v1461_v62  ;;  %v2083_v3 = vunpack.c.l.bf16 %v5182_v43 }
 0x205   :  { %5945 = vst [vmem:[#allocation30_spill] sm:$0xff] %v5166_v42  ;;  %2356 = vmatpush.msrb.mxu1 %v2115_v41  ;;  %2385 = vmatpush.msrb.mxu3 %v2201_v8  ;;  %v5205_v41 = vld [vmem:[%s5700_s7 + $0x2b8] sm:$0xff]  ;;  %v2195_v62 = vunpack.c.l.bf16 %v5187_v21  ;;  %v5358_v42 = vld [vmem:[%s5700_s7 + $0x3f0] sm:$0xff] }
 0x206   :  { %5946 = vst [vmem:[#allocation31_spill] sm:$0xff] %v5175_v45  ;;  %2357 = vmatmul.f32.vlgmr.msrb.gmra.mxu1 %v5951_v56  ;;  %2362 = vmatpush.msrb.mxu2 %v2175_v25  ;;  %v5210_v8 = vld [vmem:[%s5700_s7 + $0x378] sm:$0xff]  ;;  %v5217_v25 = vld [vmem:[%s5700_s7 + $0x250] sm:$0xff]  ;;  %v2169_v56 = vunpack.c.l.bf16 %v5194_v7  ;;  %v5242_v45 = vld [vmem:[%s5700_s7 + $0x2a8] sm:$0xff] }
 0x207   :  { %5947 = vst [vmem:[#allocation32_spill] sm:$0xff] %v5182_v43  ;;  %2334 = vmatpush.msrb.mxu0 %v2087_v59  ;;  %2386 = vmatpush.msrb.mxu3 %v2199_v17  ;;  %v5228_v59 = vld [vmem:[%s5700_s7 + $0x370] sm:$0xff]  ;;  %v2193_v17 = vunpack.c.l.bf16 %v5205_v41  ;;  %v2241_v43 = vunpack.c.l.bf16 %v5210_v8  ;;  %v2167_v54 = vunpack.c.l.bf16 %v5217_v25 }
 0x208   :  { %5948 = vst [vmem:[#allocation33_spill] sm:$0xff] %v5187_v21  ;;  %2363 = vmatpush.msrb.mxu2 %v2173_v10  ;;  %v5234_v10 = vld [vmem:[%s5700_s7 + $0x248] sm:$0xff] }
 0x209   :  { %5949 = vst [vmem:[#allocation34_spill] sm:$0xff] %v5194_v7  ;;  %2335 = vmatpush.msrb.mxu0 %v2085_v57  ;;  %2387 = vmatpush.msrb.mxu3 %v2197_v40  ;;  %v5247_v57 = vld [vmem:[%s5700_s7 + $0x368] sm:$0xff]  ;;  %v2191_v40 = vunpack.c.l.bf16 %v5223_v38  ;;  %v2239_v7 = vunpack.c.l.bf16 %v5228_v59 }
 0x20a   :  { %5950 = vst [vmem:[#allocation35_spill] sm:$0xff] %v5197_v27  ;;  %2364 = vmatpush.msrb.mxu2 %v2171_v61  ;;  %v5253_v61 = vld [vmem:[%s5700_s7 + $0x240] sm:$0xff] }
 0x20b   :  { %5952 = vst [vmem:[#allocation36_spill] sm:$0xff] %v5205_v41  ;;  %2336 = vmatpush.msrb.mxu0 %v2083_v3  ;;  %2388 = vmatpush.msrb.mxu3 %v2195_v62  ;;  %v5262_v3 = vld [vmem:[%s5700_s7 + $0x2a0] sm:$0xff]  ;;  %v5281_v41 = vld [vmem:[%s5700_s7 + $0x298] sm:$0xff] }
 0x20c   :  { %5953 = vst [vmem:[#allocation37_spill] sm:$0xff] %v5210_v8  ;;  %v5961_v8 = vmax.f32 %v5197_v27, 0.0  ;;  %2365 = vmatpush.msrb.mxu2 %v2169_v56  ;;  %v5267_v62 = vld [vmem:[%s5700_s7 + $0x360] sm:$0xff]  ;;  %v2237_v56 = vunpack.c.l.bf16 %v5247_v57  ;;  %v1580_v27 = vpop.f32.mrf.mxu2  ;;  %v2185_v21 = vunpack.c.l.bf16 %v5281_v41 }
 0x20d   :  { %5954 = vst [vmem:[#allocation38_spill] sm:$0xff] %v5217_v25  ;;  %v2165_v25 = vunpack.c.l.bf16 %v5234_v10  ;;  %2389 = vmatpush.msrb.mxu3 %v2193_v17  ;;  %2401 = vmatpush.msra.mxu0 %v2241_v43  ;;  %v5286_v17 = vld [vmem:[%s5700_s7 + $0x358] sm:$0xff]  ;;  %v5292_v43 = vld [vmem:[%s5700_s7 + $0x230] sm:$0xff] }
 0x20e   :  { %5955 = vst [vmem:[#allocation39_spill] sm:$0xff] %v5223_v38  ;;  %2337 = vmatmul.f32.vlgmr.msrb.gmra.mxu0 %v5961_v8  ;;  %v1231_v38 = vperm.slane %v4804_v51, 4  ;;  %v5274_v8 = vld [vmem:[%s5700_s7 + $0x238] sm:$0xff]  ;;  %2366 = vmatpush.msrb.mxu2 %v2167_v54  ;;  %v2235_v54 = vunpack.c.l.bf16 %v5267_v62 }
 0x20f   :  { %5956 = vst [vmem:[#allocation40_spill] sm:$0xff] %v5228_v59  ;;  %v2189_v59 = vunpack.c.l.bf16 %v5242_v45  ;;  %2390 = vmatpush.msrb.mxu3 %v2191_v40  ;;  %2402 = vmatpush.msra.mxu0 %v2239_v7  ;;  %v5304_v40 = vld [vmem:[%s5700_s7 + $0x350] sm:$0xff]  ;;  %v5310_v7 = vld [vmem:[%s5700_s7 + $0x228] sm:$0xff] }
 0x210   :  { %5957 = vst [vmem:[#allocation41_spill] sm:$0xff] %v5234_v10  ;;  %v2163_v10 = vunpack.c.l.bf16 %v5253_v61  ;;  %2367 = vmatpush.msrb.mxu2 %v2165_v25  ;;  %v2233_v25 = vunpack.c.l.bf16 %v5286_v17 }
 0x211   :  { %5958 = vst [vmem:[#allocation42_spill] sm:$0xff] %v5242_v45  ;;  %v2187_v45 = vunpack.c.l.bf16 %v5262_v3  ;;  %2391 = vmatpush.msrb.mxu3 %v2189_v59  ;;  %2403 = vmatpush.msra.mxu0 %v2237_v56  ;;  %v5328_v59 = vld [vmem:[%s5700_s7 + $0x220] sm:$0xff]  ;;  %v5334_v56 = vld [vmem:[%s5700_s7 + $0x3f8] sm:$0xff] }
 0x212   :  { %5959 = vst [vmem:[#allocation43_spill] sm:$0xff] %v5247_v57  ;;  %v2161_v57 = vunpack.c.l.bf16 %v5274_v8  ;;  %2368 = vmatpush.msrb.mxu2 %v2163_v10  ;;  %v2231_v10 = vunpack.c.l.bf16 %v5304_v40 }
 0x213   :  { %5960 = vst [vmem:[#allocation44_spill] sm:$0xff] %v5253_v61  ;;  %v5299_v61 = vld [vmem:[%s5700_s7 + $0x290] sm:$0xff]  ;;  %2392 = vmatpush.msrb.mxu3 %v2187_v45  ;;  %2404 = vmatpush.msra.mxu0 %v2235_v54  ;;  %v5340_v45 = vld [vmem:[%s5700_s7 + $0x280] sm:$0xff] }
 0x214   :  { %5962 = vst [vmem:[#allocation45_spill] sm:$0xff] %v5262_v3  ;;  %v1581_v3 = vadd.f32 %v1580_v27, %v1231_v38  ;;  %v5322_v38 = vld [vmem:[%s5700_s7 + $0x348] sm:$0xff]  ;;  %v2183_v27 = vunpack.c.l.bf16 %v5299_v61  ;;  %2369 = vmatpush.msrb.mxu2 %v2161_v57  ;;  %v5345_v54 = vld [vmem:[%s5700_s7 + $0x340] sm:$0xff]  ;;  %v5352_v57 = vld [vmem:[%s5700_s7 + $0x218] sm:$0xff] }
 0x215   :  { %5963 = vst [vmem:[#allocation46_spill] sm:$0xff] %v5267_v62  ;;  %v2159_v62 = vunpack.c.l.bf16 %v5292_v43  ;;  %2393 = vmatpush.msrb.mxu3 %v2185_v21  ;;  %2405 = vmatpush.msra.mxu0 %v2233_v25  ;;  %v5364_v21 = vld [vmem:[%s5700_s7 + $0x338] sm:$0xff]  ;;  %v5371_v25 = vld [vmem:[%s5700_s7 + $0x210] sm:$0xff] }
 0x216   :  { %5964 = vst [vmem:[#allocation47_spill] sm:$0xff] %v5274_v8  ;;  %v5317_v8 = vld [vmem:[%s5700_s7 + $0x288] sm:$0xff] }
 0x217   :  { %5965 = vst [vmem:[#allocation48_spill] sm:$0xff] %v5281_v41  ;;  %v2181_v41 = vunpack.c.l.bf16 %v5317_v8  ;;  %2370 = vmatpush.msrb.mxu2 %v2159_v62  ;;  %2394 = vmatpush.msrb.mxu3 %v2183_v27  ;;  %v2227_v62 = vunpack.c.l.bf16 %v5345_v54  ;;  %v2082_v27 = vunpack.c.h.bf16 %v4687_v20  ;;  %v5396_v20 = vld [vmem:[%s5700_s7 + $0x3e0] sm:$0xff] }
 0x218   :  { %5966 = vst [vmem:[#allocation49_spill] sm:$0xff] %v5286_v17  ;;  %v1600_v17 = vpop.f32.mrf.mxu3  ;;  %2406 = vmatpush.msra.mxu0 %v2231_v10 }
 0x219   :  { %5967 = vst [vmem:[#allocation50_spill] sm:$0xff] %v5292_v43  ;;  %v2157_v43 = vunpack.c.l.bf16 %v5310_v7  ;;  %2395 = vmatpush.msrb.mxu3 %v2181_v41  ;;  %v5403_v41 = vld [vmem:[%s5700_s7 + $0x328] sm:$0xff] }
 0x21a   :  { %5968 = vst [vmem:[#allocation51_spill] sm:$0xff] %v5299_v61  ;;  %v1601_v61 = vadd.f32 %v1600_v17, %v1581_v3  ;;  %v2271_v3 = vunpack.c.l.bf16 %v5358_v42  ;;  %v2179_v17 = vunpack.c.l.bf16 %v5340_v45 }
 0x21b   :  { %5969 = vst [vmem:[#allocation52_spill] sm:$0xff] %v5304_v40  ;;  %v2273_v40 = vunpack.c.l.bf16 %v5334_v56  ;;  %2371 = vmatpush.msrb.mxu2 %v2157_v43  ;;  %v2225_v43 = vunpack.c.l.bf16 %v5364_v21 }
 0x21c   :  { %5970 = vst [vmem:[#allocation53_spill] sm:$0xff] %v5310_v7  ;;  %v2229_v7 = vunpack.c.l.bf16 %v5322_v38  ;;  %2396 = vmatpush.msrb.mxu3 %v2179_v17  ;;  %v2078_v17 = vunpack.c.h.bf16 %v4706_v14 }
 0x21d   :  { %5971 = vst [vmem:[#allocation54_spill] sm:$0xff] %v5322_v38  ;;  %2421 = vmatpush.msra.mxu1 %v2273_v40  ;;  %v5377_v38 = vld [vmem:[%s5700_s7 + $0x3e8] sm:$0xff]  ;;  %v2153_v40 = vunpack.c.l.bf16 %v5352_v57 }
 0x21e   :  { %5972 = vst [vmem:[#allocation55_spill] sm:$0xff] %v5328_v59  ;;  %v2269_v10 = vunpack.c.l.bf16 %v5377_v38  ;;  %2407 = vmatpush.msra.mxu0 %v2229_v7  ;;  %v5409_v7 = vld [vmem:[%s5700_s7 + $0x200] sm:$0xff]  ;;  %2461 = vmatpush.msra.mxu3 %v2082_v27  ;;  %v2076_v27 = vunpack.c.h.bf16 %v4716_v53  ;;  %v2050_v53 = vunpack.c.h.bf16 %v4723_v23 }
 0x21f   :  { %5973 = vst [vmem:[#allocation56_spill] sm:$0xff] %v5334_v56  ;;  %v2155_v56 = vunpack.c.l.bf16 %v5328_v59  ;;  %v1620_v59 = vpop.f32.mrf.mxu0  ;;  %2422 = vmatpush.msra.mxu1 %v2271_v3  ;;  %v2151_v3 = vunpack.c.l.bf16 %v5371_v25  ;;  %v2147_v14 = vunpack.c.l.bf16 %v5409_v7 }
 0x220   :  { %5974 = vst [vmem:[#allocation57_spill] sm:$0xff] %v5340_v45  ;;  %v5390_v45 = vld [vmem:[%s5700_s7 + $0x208] sm:$0xff]  ;;  %2408 = vmatpush.msra.mxu0 %v2227_v62  ;;  %v1680_v23 = vpop.f32.mrf.mxu3 }
 0x221   :  { %5975 = vst [vmem:[#allocation58_spill] sm:$0xff] %v5345_v54  ;;  %v1621_v54 = vadd.f32 %v1620_v59, %v1601_v61  ;;  %2372 = vmatpush.msrb.mxu2 %v2155_v56  ;;  %2423 = vmatpush.msra.mxu1 %v2269_v10  ;;  %v2267_v61 = vunpack.c.l.bf16 %v5396_v20  ;;  %v1640_v56 = vpop.f32.mrf.mxu1  ;;  %v2149_v10 = vunpack.c.l.bf16 %v5390_v45 }
 0x222   :  { %5976 = vst [vmem:[#allocation59_spill] sm:$0xff] %v5358_v42  ;;  %v5384_v42 = vld [vmem:[%s5700_s7 + $0x330] sm:$0xff]  ;;  %2409 = vmatpush.msra.mxu0 %v2225_v43 }
 0x223   :  { %5977 = vst [vmem:[#allocation60_spill] sm:$0xff] %v5364_v21  ;;  %v2223_v59 = vunpack.c.l.bf16 %v5384_v42  ;;  %2373 = vmatpush.msrb.mxu2 %v2153_v40  ;;  %v1232_v21 = vperm.slane %v4804_v51, 5  ;;  %2424 = vmatpush.msra.mxu1 %v2267_v61  ;;  %v5432_v40 = vld [vmem:[%s5700_s7 + $0x3d0] sm:$0xff] }
 0x224   :  { %5978 = vst [vmem:[#allocation61_spill] sm:$0xff] %v5371_v25  ;;  %v2221_v25 = vunpack.c.l.bf16 %v5403_v41  ;;  %v2263_v43 = vunpack.c.l.bf16 %v5432_v40 }
 0x225   :  { %5979 = vst [vmem:[#allocation62_spill] sm:$0xff] %v5377_v38  ;;  %v2080_v38 = vunpack.c.h.bf16 %v4695_v2  ;;  %v5415_v2 = vld [vmem:[%s5700_s7 + $0x3d8] sm:$0xff]  ;;  %2374 = vmatpush.msrb.mxu2 %v2151_v3  ;;  %2410 = vmatpush.msra.mxu0 %v2223_v59  ;;  %v5446_v3 = vld [vmem:[%s5700_s7 + $0x3c8] sm:$0xff] }
 0x226   :  { %5980 = vst [vmem:[#allocation63_spill] sm:$0xff] %v5384_v42  ;;  %v2265_v62 = vunpack.c.l.bf16 %v5415_v2  ;;  %v5425_v42 = vadd.f32 %v1640_v56, %v1621_v54  ;;  %v5439_v54 = vld [vmem:[%s5700_s7 + $0x318] sm:$0xff]  ;;  %v1660_v56 = vpop.f32.mrf.mxu2 }
 0x227   :  { %5981 = vst [vmem:[#allocation64_spill] sm:$0xff] %v5396_v20  ;;  %v5422_v20 = vld [vmem:[%s5700_s7 + $0x320] sm:$0xff]  ;;  %2462 = vmatpush.msra.mxu3 %v2080_v38  ;;  %2375 = vmatpush.msrb.mxu2 %v2149_v10  ;;  %v2074_v38 = vunpack.c.h.bf16 %v4730_v15  ;;  %v2261_v10 = vunpack.c.l.bf16 %v5446_v3  ;;  %v2048_v15 = vunpack.c.h.bf16 %v4738_v26 }
 0x228   :  { %5982 = vst [vmem:[#allocation65_spill] sm:$0xff] %v5415_v2  ;;  %v2219_v61 = vunpack.c.l.bf16 %v5422_v20  ;;  %2425 = vmatpush.msra.mxu1 %v2265_v62  ;;  %v5820_v59 = vmax.f32 %v5425_v42, 0.0  ;;  %v1661_v62 = vadd.f32 %v1660_v56, %v1232_v21  ;;  %2411 = vmatpush.msra.mxu0 %v2221_v25  ;;  %v2217_v2 = vunpack.c.l.bf16 %v5439_v54  ;;  %v5468_v21 = vld [vmem:[%s5700_s7 + $0x3c0] sm:$0xff] }
 0x229   :  { %5983 = vst [vmem:[#allocation66_spill] sm:$0xff] %v5422_v20  ;;  %2463 = vmatpush.msra.mxu3 %v2078_v17  ;;  %2376 = vmatpush.msrb.mxu2 %v2147_v14  ;;  %v2072_v17 = vunpack.c.h.bf16 %v4755_v30  ;;  %v5463_v20 = vld [vmem:[%s5700_s7 + $0x308] sm:$0xff]  ;;  %v2259_v26 = vunpack.c.l.bf16 %v5468_v21  ;;  %v2046_v30 = vunpack.c.h.bf16 %v4750_v52  ;;  %v5479_v56 = vld [vmem:[%s5700_s7 + $0x300] sm:$0xff] }
 0x22a   :  { %5984 = vst [vmem:[#allocation67_spill] sm:$0xff] %v5432_v40  ;;  %v5453_v40 = vld [vmem:[%s5700_s7 + $0x310] sm:$0xff]  ;;  %2426 = vmatpush.msra.mxu1 %v2263_v43  ;;  %2377 = vmatmul.f32.vlgmr.msrb.gmra.mxu2 %v5820_v59  ;;  %v1681_v25 = vadd.f32 %v1680_v23, %v1661_v62  ;;  %v1700_v43 = vpop.f32.mrf.mxu0  ;;  %v2068_v23 = vunpack.c.h.bf16 %v4792_v9 }
 0x22b   :  { %2464 = vmatpush.msra.mxu3 %v2076_v27  ;;  %5985 = vst [vmem:[#allocation68_spill] sm:$0xff] %v5468_v21  ;;  %2412 = vmatpush.msra.mxu0 %v2219_v61  ;;  %v2215_v14 = vunpack.c.l.bf16 %v5453_v40  ;;  %v2070_v27 = vunpack.c.h.bf16 %v4773_v22  ;;  %v5484_v61 = vld [vmem:[%s5700_s7 + $0x3b8] sm:$0xff]  ;;  %v1720_v22 = vpop.f32.mrf.mxu1  ;;  %v5493_v59 = vld [vmem:[%s5700_s7 + $0x3b0] sm:$0xff] }
 0x22c   :  { %2441 = vmatpush.msra.mxu2 %v2050_v53  ;;  %v1701_v62 = vadd.f32 %v1700_v43, %v1681_v25  ;;  %v2213_v53 = vunpack.c.l.bf16 %v5463_v20  ;;  %2427 = vmatpush.msra.mxu1 %v2261_v10  ;;  %v2257_v52 = vunpack.c.l.bf16 %v5484_v61  ;;  %v2042_v10 = vunpack.c.h.bf16 %v4784_v46 }
 0x22d   :  { %2465 = vmatpush.msra.mxu3 %v2074_v38  ;;  %2413 = vmatpush.msra.mxu0 %v2217_v2  ;;  %v2044_v38 = vunpack.c.h.bf16 %v4768_v28  ;;  %v2211_v2 = vunpack.c.l.bf16 %v5479_v56  ;;  %v5503_v28 = vld [vmem:[%s5700_s7 + $0x3a8] sm:$0xff]  ;;  %v2255_v25 = vunpack.c.l.bf16 %v5493_v59  ;;  %v2064_v46 = vunpack.c.h.bf16 %v4843_v1  ;;  %v5524_v1 = vld [vmem:[%s5700_s7 + $0x398] sm:$0xff] }
 0x22e   :  { %2442 = vmatpush.msra.mxu2 %v2048_v15  ;;  %v5495_v21 = vadd.f32 %v1720_v22, %v1701_v62  ;;  %2428 = vmatpush.msra.mxu1 %v2259_v26  ;;  %v2066_v15 = vunpack.c.h.bf16 %v4820_v49  ;;  %v5513_v49 = vld [vmem:[%s5700_s7 + $0x3a0] sm:$0xff]  ;;  %v2253_v26 = vunpack.c.l.bf16 %v5503_v28  ;;  %v2060_v62 = vunpack.c.h.bf16 %v4894_v31 }
 0x22f   :  { %2466 = vmatpush.msra.mxu3 %v2072_v17  ;;  %2414 = vmatpush.msra.mxu0 %v2215_v14  ;;  %v2114_v17 = vunpack.c.h.bf16 %v4797_v36  ;;  %v2040_v14 = vunpack.c.h.bf16 %v4813_v24  ;;  %v2112_v36 = vunpack.c.h.bf16 %v4825_v12  ;;  %v2062_v24 = vunpack.c.h.bf16 %v4870_v37 }
 0x230   :  { %2443 = vmatpush.msra.mxu2 %v2046_v30  ;;  %v1888_v9 = vmax.f32 %v5495_v21, 0.0  ;;  %2429 = vmatpush.msra.mxu1 %v2257_v52  ;;  %v2038_v30 = vunpack.c.h.bf16 %v4837_v39  ;;  %v2251_v43 = vunpack.c.l.bf16 %v5513_v49  ;;  %v2036_v12 = vunpack.c.h.bf16 %v4862_v32  ;;  %v5533_v39 = vld [vmem:[%s5700_s7 + $0x390] sm:$0xff]  ;;  %v5542_v32 = vld [vmem:[%s5700_s7 + $0x388] sm:$0xff] }
 0x231   :  { %2467 = vmatpush.msra.mxu3 %v2070_v27  ;;  %2415 = vmatpush.msra.mxu0 %v2213_v53  ;;  %v2110_v27 = vunpack.c.h.bf16 %v4848_v0  ;;  %v2108_v37 = vunpack.c.h.bf16 %v4875_v5  ;;  %v2249_v0 = vunpack.c.l.bf16 %v5524_v1  ;;  %v2034_v53 = vunpack.c.h.bf16 %v4887_v50  ;;  %v5551_v50 = vld [vmem:[%s5700_s7 + $0x380] sm:$0xff] }
 0x232   :  { %2444 = vmatpush.msra.mxu2 %v2044_v38  ;;  %2397 = vmatmul.f32.vlgmr.msrb.gmra.mxu3 %v1888_v9  ;;  %v2058_v52 = vunpack.c.h.bf16 %v4919_v29  ;;  %v2106_v31 = vunpack.c.h.bf16 %v4899_v4  ;;  %v2247_v5 = vunpack.c.l.bf16 %v5533_v39  ;;  %v2032_v22 = vunpack.c.h.bf16 %v4912_v47 }
 0x233   :  { %2468 = vmatpush.msra.mxu3 %v2068_v23  ;;  %2416 = vmatpush.msra.mxu0 %v2211_v2  ;;  %v2056_v38 = vunpack.c.h.bf16 %v4946_v63  ;;  %v2104_v29 = vunpack.c.h.bf16 %v4924_v6  ;;  %v2245_v4 = vunpack.c.l.bf16 %v5542_v32  ;;  %v2030_v23 = vunpack.c.h.bf16 %v4938_v34  ;;  %v5989_v34 = vld [vmem:[#allocation11_spill] sm:$0xff] }
 0x234   :  { %2445 = vmatpush.msra.mxu2 %v2042_v10  ;;  %2430 = vmatpush.msra.mxu1 %v2255_v25  ;;  %v2054_v2 = vunpack.c.h.bf16 %v4971_v48  ;;  %v2102_v47 = vunpack.c.h.bf16 %v4951_v11  ;;  %v2243_v63 = vunpack.c.l.bf16 %v5551_v50  ;;  %v5986_v10 = vld [vmem:[#allocation13_spill] sm:$0xff]  ;;  %v2052_v6 = vunpack.c.h.bf16 %v4997_v19 }
 0x235   :  { %2469 = vmatpush.msra.mxu3 %v2066_v15  ;;  %2481 = vmatpush.msrb.mxu0 %v2114_v17  ;;  %v2028_v15 = vunpack.c.h.bf16 %v5986_v10  ;;  %v5987_v17 = vld [vmem:[#allocation5_spill] sm:$0xff]  ;;  %v2026_v48 = vunpack.c.h.bf16 %v5989_v34  ;;  %v2208_v11 = vunpack.c.h.bf16 %v5045_v60  ;;  %v5993_v60 = vmax.f32 %v5012_v55, 0.0  ;;  %v2611_v55 = vld [vmem:[%s5700_s7 + $0x1e8] sm:$0xff] }
 0x236   :  { %2446 = vmatpush.msra.mxu2 %v2040_v14  ;;  %2431 = vmatpush.msra.mxu1 %v2253_v26  ;;  %v2210_v25 = vunpack.c.h.bf16 %v5987_v17  ;;  %v5988_v14 = vld [vmem:[#allocation8_spill] sm:$0xff]  ;;  %v6000_v17 = vld [vmem:[#allocation30_spill] sm:$0xff]  ;;  %v2148_v21 = vunpack.c.h.bf16 %v5409_v7  ;;  %v2218_v7 = vunpack.c.h.bf16 %v5439_v54 }
 0x237   :  { %2470 = vmatpush.msra.mxu3 %v2064_v46  ;;  %2482 = vmatpush.msrb.mxu0 %v2112_v36  ;;  %v2100_v46 = vunpack.c.h.bf16 %v5988_v14  ;;  %v5990_v36 = vld [vmem:[#allocation14_spill] sm:$0xff]  ;;  %v6001_v14 = vld [vmem:[#allocation3_spill] sm:$0xff] }
 0x238   :  { %2447 = vmatpush.msra.mxu2 %v2038_v30  ;;  %2432 = vmatpush.msra.mxu1 %v2251_v43  ;;  %v2098_v26 = vunpack.c.h.bf16 %v5990_v36  ;;  %v5991_v30 = vld [vmem:[#allocation2_spill] sm:$0xff]  ;;  %v2206_v43 = vunpack.c.h.bf16 %v5072_v35  ;;  %v2094_v35 = vunpack.c.h.bf16 %v5058_v13  ;;  %v6003_v36 = vld [vmem:[#allocation27_spill] sm:$0xff] }
 0x239   :  { %2471 = vmatpush.msra.mxu3 %v2062_v24  ;;  %2483 = vmatpush.msrb.mxu0 %v2110_v27  ;;  %v2024_v19 = vunpack.c.h.bf16 %v5991_v30  ;;  %v2609_v24 = vld [vmem:[%s5700_s7 + $0x1f8] sm:$0xff] }
 0x23a   :  { %2448 = vmatpush.msra.mxu2 %v2036_v12  ;;  %2433 = vmatpush.msra.mxu1 %v2249_v0  ;;  %v2146_v27 = vunpack.c.h.bf16 %v2609_v24  ;;  %v5992_v12 = vld [vmem:[#allocation9_spill] sm:$0xff]  ;;  %v6005_v24 = vld [vmem:[#allocation7_spill] sm:$0xff] }
 0x23b   :  { %2472 = vmatpush.msra.mxu3 %v2060_v62  ;;  %2484 = vmatpush.msrb.mxu0 %v2108_v37  ;;  %v2096_v62 = vunpack.c.h.bf16 %v5992_v12  ;;  %v5994_v37 = vld [vmem:[#allocation18_spill] sm:$0xff]  ;;  %v1760_v34 = vpop.f32.mrf.mxu3 }
 0x23c   :  { %2449 = vmatpush.msra.mxu2 %v2034_v53  ;;  %2434 = vmatpush.msra.mxu1 %v2247_v5  ;;  %v2022_v0 = vunpack.c.h.bf16 %v5994_v37  ;;  %v2610_v53 = vld [vmem:[%s5700_s7 + $0x1f0] sm:$0xff] }
 0x23d   :  { %2473 = vmatpush.msra.mxu3 %v2058_v52  ;;  %2485 = vmatpush.msrb.mxu0 %v2106_v31  ;;  %v2144_v52 = vunpack.c.h.bf16 %v2610_v53  ;;  %v2204_v31 = vunpack.c.h.bf16 %v5098_v33  ;;  %v5995_v5 = vld [vmem:[#allocation20_spill] sm:$0xff]  ;;  %v2178_v33 = vunpack.c.h.bf16 %v5108_v44  ;;  %v5998_v44 = vld [vmem:[#allocation23_spill] sm:$0xff] }
 0x23e   :  { %2450 = vmatpush.msra.mxu2 %v2032_v22  ;;  %2435 = vmatpush.msra.mxu1 %v2245_v4  ;;  %v2020_v22 = vunpack.c.h.bf16 %v5995_v5  ;;  %v1233_v4 = vperm.slane %v4804_v51, 6  ;;  %v5997_v51 = vld [vmem:[#allocation24_spill] sm:$0xff] }
 0x23f   :  { %2474 = vmatpush.msra.mxu3 %v2056_v38  ;;  %2486 = vmatpush.msrb.mxu0 %v2104_v29  ;;  %v2142_v38 = vunpack.c.h.bf16 %v2611_v55  ;;  %v2202_v29 = vunpack.c.h.bf16 %v5126_v18  ;;  %v2176_v18 = vunpack.c.h.bf16 %v5132_v16  ;;  %v2088_v16 = vunpack.c.h.bf16 %v6003_v36  ;;  %v6008_v53 = vld [vmem:[#allocation36_spill] sm:$0xff]  ;;  %v1800_v5 = vpop.f32.mrf.mxu1 }
 0x240   :  { %2451 = vmatpush.msra.mxu2 %v2030_v23  ;;  %2436 = vmatpush.msra.mxu1 %v2243_v63  ;;  %v5996_v23 = vld [vmem:[#allocation21_spill] sm:$0xff] }
 0x241   :  { %2475 = vmatpush.msra.mxu3 %v2054_v2  ;;  %2487 = vmatpush.msrb.mxu0 %v2102_v47  ;;  %v2092_v13 = vunpack.c.h.bf16 %v5996_v23  ;;  %v2200_v2 = vunpack.c.h.bf16 %v5146_v58  ;;  %v2612_v47 = vld [vmem:[%s5700_s7 + $0x1e0] sm:$0xff] }
 0x242   :  { %2452 = vmatpush.msra.mxu2 %v2028_v15  ;;  %2501 = vmatpush.msrb.mxu1 %v2146_v27  ;;  %v2140_v63 = vunpack.c.h.bf16 %v2612_v47  ;;  %v1740_v10 = vpop.f32.mrf.mxu2  ;;  %v2090_v15 = vunpack.c.h.bf16 %v5997_v51  ;;  %v2136_v27 = vunpack.c.h.bf16 %v6005_v24  ;;  %v6014_v47 = vld [vmem:[#allocation37_spill] sm:$0xff]  ;;  %v6024_v24 = vld [vmem:[#allocation6_spill] sm:$0xff] }
 0x243   :  { %2476 = vmatpush.msra.mxu3 %v2052_v6  ;;  %2488 = vmatpush.msrb.mxu0 %v2100_v46  ;;  %v5999_v6 = vmax.f32 %v5998_v44, 0.0  ;;  %v1741_v58 = vadd.f32 %v1740_v10, %v1233_v4  ;;  %v2138_v46 = vunpack.c.h.bf16 %v6001_v14  ;;  %v6015_v10 = vld [vmem:[#allocation42_spill] sm:$0xff]  ;;  %v6019_v14 = vld [vmem:[#allocation45_spill] sm:$0xff] }
 0x244   :  { %2453 = vmatpush.msra.mxu2 %v2026_v48  ;;  %2477 = vmatmul.f32.vlgmr.msra.gmra.mxu3 %v5993_v60  ;;  %v6002_v48 = vld [vmem:[#allocation28_spill] sm:$0xff]  ;;  %v6007_v60 = vld [vmem:[#allocation29_spill] sm:$0xff]  ;;  %v2190_v51 = vunpack.c.h.bf16 %v6015_v10 }
 0x245   :  { %2541 = vmatpush.msrb.mxu3 %v2210_v25  ;;  %2489 = vmatpush.msrb.mxu0 %v2098_v26  ;;  %v2198_v25 = vunpack.c.h.bf16 %v6000_v17  ;;  %v6004_v26 = vld [vmem:[#allocation33_spill] sm:$0xff]  ;;  %v2086_v37 = vunpack.c.h.bf16 %v6007_v60  ;;  %v6036_v10 = vld [vmem:[#allocation16_spill] sm:$0xff] }
 0x246   :  { %2454 = vmatpush.msra.mxu2 %v2024_v19  ;;  %2502 = vmatpush.msrb.mxu1 %v2144_v52  ;;  %v2196_v30 = vunpack.c.h.bf16 %v6004_v26  ;;  %v1761_v19 = vadd.f32 %v1760_v34, %v1741_v58  ;;  %v2194_v52 = vunpack.c.h.bf16 %v6008_v53  ;;  %v6020_v34 = vld [vmem:[#allocation10_spill] sm:$0xff] }
 0x247   :  { %2542 = vmatpush.msrb.mxu3 %v2208_v11  ;;  %2490 = vmatpush.msrb.mxu0 %v2096_v62  ;;  %v2174_v11 = vunpack.c.h.bf16 %v6002_v48  ;;  %v1780_v62 = vpop.f32.mrf.mxu0  ;;  %v2130_v48 = vunpack.c.h.bf16 %v6020_v34  ;;  %v6028_v53 = vld [vmem:[#allocation50_spill] sm:$0xff]  ;;  %v6041_v34 = vld [vmem:[#allocation19_spill] sm:$0xff] }
 0x248   :  { %2455 = vmatpush.msra.mxu2 %v2022_v0  ;;  %2503 = vmatpush.msrb.mxu1 %v2142_v38  ;;  %v1781_v0 = vadd.f32 %v1780_v62, %v1761_v19  ;;  %v6011_v38 = vld [vmem:[#allocation32_spill] sm:$0xff]  ;;  %v6026_v62 = vld [vmem:[#allocation46_spill] sm:$0xff] }
 0x249   :  { %2543 = vmatpush.msrb.mxu3 %v2206_v43  ;;  %2491 = vmatpush.msrb.mxu0 %v2094_v35  ;;  %v6006_v43 = vld [vmem:[#allocation31_spill] sm:$0xff]  ;;  %v2236_v60 = vunpack.c.h.bf16 %v6026_v62  ;;  %v2613_v62 = vld [vmem:[%s5701_s6] sm:$0xff] }
 0x24a   :  { %2456 = vmatpush.msra.mxu2 %v2020_v22  ;;  %2504 = vmatpush.msrb.mxu1 %v2140_v63  ;;  %v2172_v12 = vunpack.c.h.bf16 %v6006_v43  ;;  %v6010_v22 = vld [vmem:[#allocation34_spill] sm:$0xff]  ;;  %v5608_v4 = vadd.f32 %v1800_v5, %v1781_v0  ;;  %v2242_v63 = vunpack.c.h.bf16 %v6014_v47  ;;  %v6025_v43 = vld [vmem:[#allocation47_spill] sm:$0xff]  ;;  %v2182_v5 = vunpack.c.h.bf16 %v5317_v8 }
 0x24b   :  { %2544 = vmatpush.msrb.mxu3 %v2204_v31  ;;  %2457 = vmatmul.f32.vlgmr.msra.gmra.mxu2 %v5999_v6  ;;  %v6009_v31 = vld [vmem:[#allocation12_spill] sm:$0xff]  ;;  %v2170_v55 = vunpack.c.h.bf16 %v6010_v22  ;;  %v6017_v6 = vld [vmem:[#allocation41_spill] sm:$0xff]  ;;  %v6030_v22 = vld [vmem:[#allocation15_spill] sm:$0xff] }
 0x24c   :  { %2521 = vmatpush.msrb.mxu2 %v2178_v33  ;;  %2492 = vmatpush.msrb.mxu0 %v2092_v13  ;;  %v2134_v35 = vunpack.c.h.bf16 %v6009_v31  ;;  %v6012_v33 = vld [vmem:[#allocation39_spill] sm:$0xff]  ;;  %v6013_v13 = vld [vmem:[#allocation38_spill] sm:$0xff]  ;;  %v2166_v17 = vunpack.c.h.bf16 %v6017_v6  ;;  %v6029_v31 = vld [vmem:[#allocation49_spill] sm:$0xff] }
 0x24d   :  { %2545 = vmatpush.msrb.mxu3 %v2202_v29  ;;  %2505 = vmatpush.msrb.mxu1 %v2138_v46  ;;  %v2084_v29 = vunpack.c.h.bf16 %v6011_v38  ;;  %v2192_v23 = vunpack.c.h.bf16 %v6012_v33  ;;  %v2188_v46 = vunpack.c.h.bf16 %v6019_v14  ;;  %v6031_v38 = vld [vmem:[#allocation53_spill] sm:$0xff]  ;;  %v6032_v33 = vld [vmem:[#allocation52_spill] sm:$0xff]  ;;  %v6034_v47 = vld [vmem:[#allocation35_spill] sm:$0xff] }
 0x24e   :  { %2522 = vmatpush.msrb.mxu2 %v2176_v18  ;;  %2493 = vmatpush.msrb.mxu0 %v2090_v15  ;;  %v1889_v18 = vmax.f32 %v5608_v4, 0.0  ;;  %v6016_v15 = vld [vmem:[#allocation4_spill] sm:$0xff]  ;;  %v6040_v14 = vld [vmem:[#allocation58_spill] sm:$0xff]  ;;  %v2262_v4 = vunpack.c.h.bf16 %v5446_v3  ;;  %v2248_v3 = vunpack.c.h.bf16 %v5533_v39 }
 0x24f   :  { %2546 = vmatpush.msrb.mxu3 %v2200_v2  ;;  %2506 = vmatpush.msrb.mxu1 %v2136_v27  ;;  %v2168_v2 = vunpack.c.h.bf16 %v6013_v13  ;;  %v2132_v44 = vunpack.c.h.bf16 %v6016_v15  ;;  %v2128_v27 = vunpack.c.h.bf16 %v6024_v24  ;;  %v6033_v13 = vld [vmem:[#allocation57_spill] sm:$0xff]  ;;  %v6037_v15 = vld [vmem:[#allocation55_spill] sm:$0xff] }
 0x250   :  { %2523 = vmatpush.msrb.mxu2 %v2174_v11  ;;  %2494 = vmatpush.msrb.mxu0 %v2088_v16  ;;  %v6021_v11 = vld [vmem:[#allocation44_spill] sm:$0xff]  ;;  %v6022_v16 = vld [vmem:[#allocation43_spill] sm:$0xff]  ;;  %v2156_v8 = vunpack.c.h.bf16 %v6037_v15 }
 0x251   :  { %2547 = vmatpush.msrb.mxu3 %v2198_v25  ;;  %2507 = vmatpush.msrb.mxu1 %v2134_v35  ;;  %v6018_v25 = vld [vmem:[#allocation40_spill] sm:$0xff]  ;;  %v2164_v36 = vunpack.c.h.bf16 %v6021_v11  ;;  %v2238_v26 = vunpack.c.h.bf16 %v6022_v16  ;;  %v2234_v35 = vunpack.c.h.bf16 %v6029_v31  ;;  %v6042_v11 = vld [vmem:[#allocation61_spill] sm:$0xff]  ;;  %v6045_v24 = vld [vmem:[#allocation63_spill] sm:$0xff] }
 0x252   :  { %2524 = vmatpush.msrb.mxu2 %v2172_v12  ;;  %2495 = vmatpush.msrb.mxu0 %v2086_v37  ;;  %v2240_v58 = vunpack.c.h.bf16 %v6018_v25  ;;  %v2162_v12 = vunpack.c.h.bf16 %v6025_v43  ;;  %v6027_v37 = vld [vmem:[#allocation51_spill] sm:$0xff]  ;;  %v6043_v16 = vld [vmem:[#allocation60_spill] sm:$0xff]  ;;  %v6046_v43 = vld [vmem:[#allocation25_spill] sm:$0xff] }
 0x253   :  { %2548 = vmatpush.msrb.mxu3 %v2196_v30  ;;  %2417 = vmatmul.f32.vlgmr.msra.gmra.mxu0 %v1889_v18  ;;  %v6023_v30 = vld [vmem:[#allocation48_spill] sm:$0xff]  ;;  %v2184_v0 = vunpack.c.h.bf16 %v6027_v37 }
 0x254   :  { %2525 = vmatpush.msrb.mxu2 %v2170_v55  ;;  %2496 = vmatpush.msrb.mxu0 %v2084_v29  ;;  %v2186_v19 = vunpack.c.h.bf16 %v6023_v30  ;;  %v2126_v55 = vunpack.c.h.bf16 %v6030_v22  ;;  %v2158_v29 = vunpack.c.h.bf16 %v6031_v38  ;;  %v6044_v30 = vld [vmem:[#allocation22_spill] sm:$0xff]  ;;  %v2212_v38 = vunpack.c.h.bf16 %v5479_v56  ;;  %v6053_v56 = vld [vmem:[#allocation65_spill] sm:$0xff] }
 0x255   :  { %2549 = vmatpush.msrb.mxu3 %v2194_v52  ;;  %2508 = vmatpush.msrb.mxu1 %v2132_v44  ;;  %v2160_v52 = vunpack.c.h.bf16 %v6028_v53  ;;  %v6038_v44 = vld [vmem:[#allocation54_spill] sm:$0xff] }
 0x256   :  { %2526 = vmatpush.msrb.mxu2 %v2168_v2  ;;  %2561 = vmatpush.msra.mxu0 %v2242_v63  ;;  %v2180_v2 = vunpack.c.h.bf16 %v6033_v13  ;;  %v6035_v63 = vmax.f32 %v6034_v47, 0.0  ;;  %v2230_v6 = vunpack.c.h.bf16 %v6038_v44  ;;  %v6052_v47 = vld [vmem:[#allocation64_spill] sm:$0xff] }
 0x257   :  { %2550 = vmatpush.msrb.mxu3 %v2192_v23  ;;  %2509 = vmatpush.msrb.mxu1 %v2130_v48  ;;  %v2232_v23 = vunpack.c.h.bf16 %v6032_v33  ;;  %v2120_v48 = vunpack.c.h.bf16 %v6041_v34  ;;  %v6049_v33 = vld [vmem:[#allocation56_spill] sm:$0xff]  ;;  %v2246_v34 = vunpack.c.h.bf16 %v5542_v32 }
 0x258   :  { %2527 = vmatpush.msrb.mxu2 %v2166_v17  ;;  %2562 = vmatpush.msra.mxu0 %v2240_v58  ;;  %v6039_v17 = vld [vmem:[#allocation17_spill] sm:$0xff]  ;;  %v2154_v58 = vunpack.c.h.bf16 %v5352_v57  ;;  %v2150_v57 = vunpack.c.h.bf16 %v5390_v45  ;;  %v1234_v45 = vperm.slane %v2613_v62, 7  ;;  %v2274_v54 = vunpack.c.h.bf16 %v6049_v33 }
 0x259   :  { %2551 = vmatpush.msrb.mxu3 %v2190_v51  ;;  %2510 = vmatpush.msrb.mxu1 %v2128_v27  ;;  %v2124_v51 = vunpack.c.h.bf16 %v6036_v10  ;;  %v2122_v25 = vunpack.c.h.bf16 %v6039_v17  ;;  %v2224_v27 = vunpack.c.h.bf16 %v6045_v24  ;;  %v2266_v10 = vunpack.c.h.bf16 %v6053_v56 }
 0x25a   :  { %2528 = vmatpush.msrb.mxu2 %v2164_v36  ;;  %2563 = vmatpush.msra.mxu0 %v2238_v26  ;;  %v2152_v36 = vunpack.c.h.bf16 %v6042_v11  ;;  %v2226_v26 = vunpack.c.h.bf16 %v6043_v16  ;;  %v2258_v17 = vunpack.c.h.bf16 %v5484_v61  ;;  %v2244_v61 = vunpack.c.h.bf16 %v5551_v50 }
 0x25b   :  { %2552 = vmatpush.msrb.mxu3 %v2188_v46  ;;  %2497 = vmatmul.f32.vlgmr.msrb.gmra.mxu0 %v6035_v63  ;;  %v2228_v46 = vunpack.c.h.bf16 %v6040_v14  ;;  %v2268_v63 = vunpack.c.h.bf16 %v6052_v47  ;;  %v2252_v14 = vunpack.c.h.bf16 %v5513_v49 }
 0x25c   :  { %2529 = vmatpush.msrb.mxu2 %v2162_v12  ;;  %2564 = vmatpush.msra.mxu0 %v2236_v60  ;;  %v2116_v12 = vunpack.c.h.bf16 %v6046_v43  ;;  %v6047_v60 = vld [vmem:[#allocation66_spill] sm:$0xff] }
 0x25d   :  { %2553 = vmatpush.msrb.mxu3 %v2186_v19  ;;  %2511 = vmatpush.msrb.mxu1 %v2126_v55  ;;  %v2118_v19 = vunpack.c.h.bf16 %v6044_v30  ;;  %v2220_v37 = vunpack.c.h.bf16 %v6047_v60  ;;  %v1840_v31 = vpop.f32.mrf.mxu3 }
 0x25e   :  { %2530 = vmatpush.msrb.mxu2 %v2160_v52  ;;  %2565 = vmatpush.msra.mxu0 %v2234_v35  ;;  %v2216_v52 = vunpack.c.h.bf16 %v5453_v40  ;;  %v6050_v40 = vld [vmem:[#allocation59_spill] sm:$0xff] }
 0x25f   :  { %2554 = vmatpush.msrb.mxu3 %v2184_v0  ;;  %2512 = vmatpush.msrb.mxu1 %v2124_v51  ;;  %v6048_v0 = vmax.f32 %v5425_v42, 0.0  ;;  %v2272_v13 = vunpack.c.h.bf16 %v6050_v40  ;;  %v6054_v51 = vld [vmem:[#allocation67_spill] sm:$0xff] }
 0x260   :  { %2531 = vmatpush.msrb.mxu2 %v2158_v29  ;;  %2566 = vmatpush.msra.mxu0 %v2232_v23  ;;  %v2264_v15 = vunpack.c.h.bf16 %v6054_v51 }
 0x261   :  { %2555 = vmatpush.msrb.mxu3 %v2182_v5  ;;  %2513 = vmatpush.msrb.mxu1 %v2122_v25  ;;  %v2214_v5 = vunpack.c.h.bf16 %v5463_v20  ;;  %v1880_v42 = vpop.f32.mrf.mxu1  ;;  %v6051_v20 = vld [vmem:[#allocation62_spill] sm:$0xff]  ;;  %v2256_v25 = vunpack.c.h.bf16 %v5493_v59 }
 0x262   :  { %2532 = vmatpush.msrb.mxu2 %v2156_v8  ;;  %2567 = vmatpush.msra.mxu0 %v2230_v6  ;;  %v6055_v8 = vld [vmem:[#allocation26_spill] sm:$0xff] }
 0x263   :  { %2556 = vmatpush.msrb.mxu3 %v2180_v2  ;;  %2514 = vmatpush.msrb.mxu1 %v2120_v48  ;;  %v2270_v2 = vunpack.c.h.bf16 %v6051_v20  ;;  %v6056_v44 = vmax.f32 %v6055_v8, 0.0  ;;  %v2275_v59 = vld [vmem:[%s5702_s8] sm:$0x3] }
 0x264   :  { %2557 = vmatmul.f32.vlgmr.msrb.gmra.mxu3 %v1888_v9  ;;  %2533 = vmatpush.msrb.mxu2 %v2154_v58  ;;  %v2222_v9 = vunpack.c.h.bf16 %v5403_v41  ;;  %v1820_v53 = vpop.f32.mrf.mxu2  ;;  %v2254_v58 = vunpack.c.h.bf16 %v5503_v28  ;;  %v2277_v28 = vperm.slane %v2275_v59, 0 }
 0x265   :  { %2568 = vmatpush.msra.mxu0 %v2228_v46  ;;  %2515 = vmatpush.msrb.mxu1 %v2118_v19  ;;  %v1821_v41 = vadd.f32 %v1820_v53, %v1234_v45  ;;  %v2250_v46 = vunpack.c.h.bf16 %v5524_v1 }
 0x266   :  { %2534 = vmatpush.msrb.mxu2 %v2152_v36 }
 0x267   :  { %2569 = vmatpush.msra.mxu0 %v2226_v26  ;;  %2516 = vmatpush.msrb.mxu1 %v2116_v12  ;;  %v1841_v35 = vadd.f32 %v1840_v31, %v1821_v41  ;;  %v1860_v22 = vpop.f32.mrf.mxu0  ;;  %v2278_v12 = vperm.slane %v2275_v59, 1 }
 0x268   :  { %2535 = vmatpush.msrb.mxu2 %v2150_v57 }
 0x269   :  { %2570 = vmatpush.msra.mxu0 %v2224_v27  ;;  %v1861_v55 = vadd.f32 %v1860_v22, %v1841_v35 }
 0x26a   :  { %2536 = vmatpush.msrb.mxu2 %v2148_v21 }
 0x26b   :  { %2537 = vmatmul.f32.vlgmr.msrb.gmra.mxu2 %v6048_v0  ;;  %2571 = vmatpush.msra.mxu0 %v2222_v9  ;;  %v1881_v29 = vadd.f32 %v1880_v42, %v1861_v55 }
 0x26d   :  { %2572 = vmatpush.msra.mxu0 %v2220_v37  ;;  %v1890_v23 = vmax.f32 %v1881_v29, 0.0 }
 0x26f   :  { %2573 = vmatpush.msra.mxu0 %v2218_v7  ;;  %2437 = vmatmul.f32.vlgmr.msra.gmra.mxu1 %v1890_v23 }
 0x270   :  { %2581 = vmatpush.msra.mxu1 %v2274_v54 }
 0x271   :  { %2574 = vmatpush.msra.mxu0 %v2216_v52 }
 0x272   :  { %2582 = vmatpush.msra.mxu1 %v2272_v13 }
 0x273   :  { %2575 = vmatpush.msra.mxu0 %v2214_v5 }
 0x274   :  { %2583 = vmatpush.msra.mxu1 %v2270_v2 }
 0x275   :  { %2576 = vmatpush.msra.mxu0 %v2212_v38 }
 0x276   :  { %2577 = vmatmul.f32.vlgmr.msra.gmra.mxu0 %v1889_v18  ;;  %2584 = vmatpush.msra.mxu1 %v2268_v63  ;;  %v6057_v18 = vld [vmem:[#allocation68_spill] sm:$0xff] }
 0x277   :  { %2517 = vmatmul.f32.vlgmr.msrb.gmra.mxu1 %v6056_v44  ;;  %v2260_v6 = vunpack.c.h.bf16 %v6057_v18 }
 0x278   :  { %2585 = vmatpush.msra.mxu1 %v2266_v10 }
 0x27a   :  { %2586 = vmatpush.msra.mxu1 %v2264_v15 }
 0x27c   :  { %2587 = vmatpush.msra.mxu1 %v2262_v4 }
 0x27e   :  { %2588 = vmatpush.msra.mxu1 %v2260_v6 }
 0x27f   :  { %v2318_v1 = vpop.f32.mrf.mxu3 }
 0x280   :  { %2589 = vmatpush.msra.mxu1 %v2258_v17 }
 0x282   :  { %2590 = vmatpush.msra.mxu1 %v2256_v25 }
 0x283   :  { %v2358_v16 = vpop.f32.mrf.mxu1 }
 0x284   :  { %2591 = vmatpush.msra.mxu1 %v2254_v58 }
 0x286   :  { %2592 = vmatpush.msra.mxu1 %v2252_v14  ;;  %v2298_v49 = vpop.f32.mrf.mxu2 }
 0x287   :  { %v2299_v48 = vadd.f32 %v2298_v49, %v2277_v28 }
 0x288   :  { %2593 = vmatpush.msra.mxu1 %v2250_v46 }
 0x289   :  { %v2319_v11 = vadd.f32 %v2318_v1, %v2299_v48 }
 0x28a   :  { %2594 = vmatpush.msra.mxu1 %v2248_v3 }
 0x28b   :  { %v2338_v36 = vpop.f32.mrf.mxu0 }
 0x28c   :  { %2595 = vmatpush.msra.mxu1 %v2246_v34  ;;  %v2339_v39 = vadd.f32 %v2338_v36, %v2319_v11 }
 0x28e   :  { %2596 = vmatpush.msra.mxu1 %v2244_v61  ;;  %v2359_v32 = vadd.f32 %v2358_v16, %v2339_v39 }
 0x28f   :  { %2597 = vmatmul.f32.vlgmr.msra.gmra.mxu1 %v1890_v23 }
 0x2ad   :  { %v2378_v26 = vpop.f32.mrf.mxu2 }
 0x2ae   :  { %v2379_v19 = vadd.f32 %v2378_v26, %v2359_v32 }
 0x2b5   :  { %v2398_v30 = vpop.f32.mrf.mxu3 }
 0x2b6   :  { %v2399_v57 = vadd.f32 %v2398_v30, %v2379_v19 }
 0x2c7   :  { %v2478_v62 = vpop.f32.mrf.mxu3 }
 0x2ce   :  { %v2458_v21 = vpop.f32.mrf.mxu2 }
 0x2cf   :  { %v2459_v9 = vadd.f32 %v2458_v21, %v2278_v12 }
 0x2d0   :  { %v2418_v50 = vpop.f32.mrf.mxu0 }
 0x2d1   :  { %v2419_v24 = vadd.f32 %v2418_v50, %v2399_v57  ;;  %v2479_v60 = vadd.f32 %v2478_v62, %v2459_v9 }
 0x2d8   :  { %v2498_v45 = vpop.f32.mrf.mxu0 }
 0x2d9   :  { %v2499_v0 = vadd.f32 %v2498_v45, %v2479_v60 }
 0x2e7   :  { %v2558_v52 = vpop.f32.mrf.mxu3 }
 0x2ec   :  { %v2438_v27 = vpop.f32.mrf.mxu1 }
 0x2ed   :  { %v2439_v43 = vadd.f32 %v2438_v27, %v2419_v24 }
 0x2ee   :  { %v2538_v53 = vpop.f32.mrf.mxu2 }
 0x2ef   :  { %2601 = vst [vmem:[%s5703_s9] sm:$0xff] %v2439_v43 }
 0x2f3   :  { %v2578_v35 = vpop.f32.mrf.mxu0 }
 0x2f4   :  { %v2518_v37 = vpop.f32.mrf.mxu1 }
 0x2f5   :  { %v2519_v7 = vadd.f32 %v2518_v37, %v2499_v0 }
 0x2f7   :  { %v2539_v41 = vadd.f32 %v2538_v53, %v2519_v7 }
 0x2f9   :  { %v2559_v31 = vadd.f32 %v2558_v52, %v2539_v41 }
 0x2fb   :  { %v2579_v5 = vadd.f32 %v2578_v35, %v2559_v31 }
 0x30c   :  { %v2598_v22 = vpop.f32.mrf.mxu1 }
 0x30d   :  { %v2599_v55 = vadd.f32 %v2598_v22, %v2579_v5 }
 0x30f   :  { %2602 = vst [vmem:[%s5703_s9 + $0x8] sm:$0xff] %v2599_v55 }

// kernel: mlp_ae_forward.2
= control target key start
LH: loop header
LB: loop body
LE: loop exit
PB: predicated region body
PF: predicated region fallthrough
CT: control target
= control target key end

     0   :  { %14 = vsyncpa [#allocation4], 0  ;;  %s2841_s12 = smov [#allocation3]   ;;  %s2842_s14 = smov 256   ;;  %s4904_s0 = inlined_call_operand.vmem [shape: f32[8,256], index: 0, kind: input, shape index: {}]   ;;  %s4905_s1 = inlined_call_operand.vmem [shape: bf16[256,1024], index: 1, kind: input, shape index: {}]   ;;  %s4906_s2 = inlined_call_operand.vmem [shape: f32[1,1024], index: 2, kind: input, shape index: {}]   ;;  %s4907_s3 = inlined_call_operand.hbm [shape: bf16[1024,512], index: 3, kind: input, shape index: {}]   ;;  %s4908_s4 = inlined_call_operand.vmem [shape: f32[1,512], index: 4, kind: input, shape index: {}]   ;;  %s4909_s5 = inlined_call_operand.vmem [shape: bf16[512,256], index: 5, kind: input, shape index: {}]   ;;  %s4910_s6 = inlined_call_operand.vmem [shape: f32[1,256], index: 6, kind: input, shape index: {}]   ;;  %s4911_s7 = inlined_call_operand.vmem [shape: bf16[256,16], index: 7, kind: input, shape index: {}]   ;;  %s4912_s8 = inlined_call_operand.vmem [shape: f32[1,16], index: 8, kind: input, shape index: {}]   ;;  %s4913_s9 = inlined_call_operand.vmem [shape: f32[8,16], index: 9, kind: output, shape index: {}]  }
   0x1   :  { %s25_s11 = sshll.u32 %s4907_s3, 4  ;;  %s27_s13 = sshll.u32 %s2841_s12, 4  ;;  %s26_s11 = int_to_ptr.hbm [resolvable:$true] %s25_s11  ;;  %s28_s13 = int_to_ptr.vmem [resolvable:$true] %s27_s13 }
   0x2   :  { %s2843_s15 = smov 16  }
   0x3   :  { %33 = dma.hbm_to_vmem [thread:$0]  %s26_s11, 32768, %s28_s13, [#allocation4], %s2842_s14, %s2842_s14, %s2843_s15  }
   0x4   :  { %2839 = dma.done.wait [#allocation4], 32768  }
   0x5   :  { %2840 = vsyncadd [#allocation4], 4294934528  ;;  %v130_v0 = vld [vmem:[%s4905_s1 + $0x1e0] sm:$0xff]  ;;  %vm2725_vm0 = vcmask 130048  }
   0x6   :  { %v194_v1 = vld [vmem:[%s4905_s1 + $0x3e0] sm:$0xff]  ;;  %v318_v3 = vunpack.c.l.bf16 %v130_v0  ;;  %v319_v5 = vunpack.c.h.bf16 %v130_v0 }
   0x7   :  { %v126_v2 = vld [vmem:[%s4905_s1 + $0x1c0] sm:$0xff]  ;;  %v446_v4 = vunpack.c.l.bf16 %v194_v1  ;;  %v447_v6 = vunpack.c.h.bf16 %v194_v1 }
   0x8   :  { %v190_v7 = vld [vmem:[%s4905_s1 + $0x3c0] sm:$0xff]  ;;  %v310_v10 = vunpack.c.l.bf16 %v126_v2  ;;  %v311_v12 = vunpack.c.h.bf16 %v126_v2  ;;  %454 = vmatpush.msra.mxu0 %v318_v3  ;;  %494 = vmatpush.msra.mxu2 %v319_v5 }
   0x9   :  { %v122_v8 = vld [vmem:[%s4905_s1 + $0x1a0] sm:$0xff]  ;;  %v438_v11 = vunpack.c.l.bf16 %v190_v7  ;;  %v439_v13 = vunpack.c.h.bf16 %v190_v7  ;;  %474 = vmatpush.msra.mxu1 %v446_v4  ;;  %514 = vmatpush.msra.mxu3 %v447_v6 }
   0xa   :  { %v186_v9 = vld [vmem:[%s4905_s1 + $0x3a0] sm:$0xff]  ;;  %v302_v16 = vunpack.c.l.bf16 %v122_v8  ;;  %v303_v18 = vunpack.c.h.bf16 %v122_v8  ;;  %455 = vmatpush.msra.mxu0 %v310_v10  ;;  %495 = vmatpush.msra.mxu2 %v311_v12 }
   0xb   :  { %v118_v14 = vld [vmem:[%s4905_s1 + $0x180] sm:$0xff]  ;;  %v430_v17 = vunpack.c.l.bf16 %v186_v9  ;;  %v431_v19 = vunpack.c.h.bf16 %v186_v9  ;;  %475 = vmatpush.msra.mxu1 %v438_v11  ;;  %515 = vmatpush.msra.mxu3 %v439_v13 }
   0xc   :  { %v182_v15 = vld [vmem:[%s4905_s1 + $0x380] sm:$0xff]  ;;  %v294_v22 = vunpack.c.l.bf16 %v118_v14  ;;  %v295_v24 = vunpack.c.h.bf16 %v118_v14  ;;  %456 = vmatpush.msra.mxu0 %v302_v16  ;;  %496 = vmatpush.msra.mxu2 %v303_v18 }
   0xd   :  { %v114_v20 = vld [vmem:[%s4905_s1 + $0x160] sm:$0xff]  ;;  %v422_v23 = vunpack.c.l.bf16 %v182_v15  ;;  %v423_v25 = vunpack.c.h.bf16 %v182_v15  ;;  %476 = vmatpush.msra.mxu1 %v430_v17  ;;  %516 = vmatpush.msra.mxu3 %v431_v19 }
   0xe   :  { %v178_v21 = vld [vmem:[%s4905_s1 + $0x360] sm:$0xff]  ;;  %v286_v28 = vunpack.c.l.bf16 %v114_v20  ;;  %v287_v30 = vunpack.c.h.bf16 %v114_v20  ;;  %457 = vmatpush.msra.mxu0 %v294_v22  ;;  %497 = vmatpush.msra.mxu2 %v295_v24 }
   0xf   :  { %v110_v26 = vld [vmem:[%s4905_s1 + $0x140] sm:$0xff]  ;;  %v414_v29 = vunpack.c.l.bf16 %v178_v21  ;;  %v415_v31 = vunpack.c.h.bf16 %v178_v21  ;;  %477 = vmatpush.msra.mxu1 %v422_v23  ;;  %517 = vmatpush.msra.mxu3 %v423_v25 }
  0x10   :  { %v174_v27 = vld [vmem:[%s4905_s1 + $0x340] sm:$0xff]  ;;  %v278_v34 = vunpack.c.l.bf16 %v110_v26  ;;  %v279_v36 = vunpack.c.h.bf16 %v110_v26  ;;  %458 = vmatpush.msra.mxu0 %v286_v28  ;;  %498 = vmatpush.msra.mxu2 %v287_v30  ;;  %v131_v28 = vld [vmem:[%s4905_s1 + $0x1e8] sm:$0xff] }
  0x11   :  { %v106_v32 = vld [vmem:[%s4905_s1 + $0x120] sm:$0xff]  ;;  %v406_v35 = vunpack.c.l.bf16 %v174_v27  ;;  %v407_v37 = vunpack.c.h.bf16 %v174_v27  ;;  %478 = vmatpush.msra.mxu1 %v414_v29  ;;  %518 = vmatpush.msra.mxu3 %v415_v31  ;;  %v195_v29 = vld [vmem:[%s4905_s1 + $0x3e8] sm:$0xff] }
  0x12   :  { %v170_v33 = vld [vmem:[%s4905_s1 + $0x320] sm:$0xff]  ;;  %v270_v40 = vunpack.c.l.bf16 %v106_v32  ;;  %v271_v42 = vunpack.c.h.bf16 %v106_v32  ;;  %459 = vmatpush.msra.mxu0 %v278_v34  ;;  %499 = vmatpush.msra.mxu2 %v279_v36  ;;  %v127_v34 = vld [vmem:[%s4905_s1 + $0x1c8] sm:$0xff]  ;;  %v320_v36 = vunpack.c.l.bf16 %v131_v28 }
  0x13   :  { %v102_v38 = vld [vmem:[%s4905_s1 + $0x100] sm:$0xff]  ;;  %v398_v41 = vunpack.c.l.bf16 %v170_v33  ;;  %v399_v43 = vunpack.c.h.bf16 %v170_v33  ;;  %479 = vmatpush.msra.mxu1 %v406_v35  ;;  %519 = vmatpush.msra.mxu3 %v407_v37  ;;  %v191_v35 = vld [vmem:[%s4905_s1 + $0x3c8] sm:$0xff]  ;;  %v448_v37 = vunpack.c.l.bf16 %v195_v29 }
  0x14   :  { %v166_v39 = vld [vmem:[%s4905_s1 + $0x300] sm:$0xff]  ;;  %v262_v46 = vunpack.c.l.bf16 %v102_v38  ;;  %v263_v48 = vunpack.c.h.bf16 %v102_v38  ;;  %460 = vmatpush.msra.mxu0 %v270_v40  ;;  %500 = vmatpush.msra.mxu2 %v271_v42  ;;  %v321_v38 = vunpack.c.h.bf16 %v131_v28  ;;  %v123_v40 = vld [vmem:[%s4905_s1 + $0x1a8] sm:$0xff]  ;;  %v312_v42 = vunpack.c.l.bf16 %v127_v34 }
  0x15   :  { %v98_v44 = vld [vmem:[%s4905_s1 + $0xe0] sm:$0xff]  ;;  %v390_v47 = vunpack.c.l.bf16 %v166_v39  ;;  %v391_v49 = vunpack.c.h.bf16 %v166_v39  ;;  %480 = vmatpush.msra.mxu1 %v398_v41  ;;  %520 = vmatpush.msra.mxu3 %v399_v43  ;;  %v449_v39 = vunpack.c.h.bf16 %v195_v29  ;;  %v187_v41 = vld [vmem:[%s4905_s1 + $0x3a8] sm:$0xff]  ;;  %v440_v43 = vunpack.c.l.bf16 %v191_v35 }
  0x16   :  { %v162_v45 = vld [vmem:[%s4905_s1 + $0x2e0] sm:$0xff]  ;;  %v254_v52 = vunpack.c.l.bf16 %v98_v44  ;;  %v255_v54 = vunpack.c.h.bf16 %v98_v44  ;;  %461 = vmatpush.msra.mxu0 %v262_v46  ;;  %501 = vmatpush.msra.mxu2 %v263_v48  ;;  %v313_v44 = vunpack.c.h.bf16 %v127_v34  ;;  %v119_v46 = vld [vmem:[%s4905_s1 + $0x188] sm:$0xff]  ;;  %v304_v48 = vunpack.c.l.bf16 %v123_v40 }
  0x17   :  { %v94_v50 = vld [vmem:[%s4905_s1 + $0xc0] sm:$0xff]  ;;  %v382_v53 = vunpack.c.l.bf16 %v162_v45  ;;  %v383_v55 = vunpack.c.h.bf16 %v162_v45  ;;  %481 = vmatpush.msra.mxu1 %v390_v47  ;;  %521 = vmatpush.msra.mxu3 %v391_v49  ;;  %v441_v45 = vunpack.c.h.bf16 %v191_v35  ;;  %v183_v47 = vld [vmem:[%s4905_s1 + $0x388] sm:$0xff]  ;;  %v432_v49 = vunpack.c.l.bf16 %v187_v41 }
  0x18   :  { %v158_v51 = vld [vmem:[%s4905_s1 + $0x2c0] sm:$0xff]  ;;  %v246_v58 = vunpack.c.l.bf16 %v94_v50  ;;  %v247_v60 = vunpack.c.h.bf16 %v94_v50  ;;  %462 = vmatpush.msra.mxu0 %v254_v52  ;;  %502 = vmatpush.msra.mxu2 %v255_v54  ;;  %v305_v50 = vunpack.c.h.bf16 %v123_v40  ;;  %v115_v52 = vld [vmem:[%s4905_s1 + $0x168] sm:$0xff]  ;;  %v296_v54 = vunpack.c.l.bf16 %v119_v46 }
  0x19   :  { %v90_v56 = vld [vmem:[%s4905_s1 + $0xa0] sm:$0xff]  ;;  %v374_v59 = vunpack.c.l.bf16 %v158_v51  ;;  %v375_v61 = vunpack.c.h.bf16 %v158_v51  ;;  %482 = vmatpush.msra.mxu1 %v382_v53  ;;  %522 = vmatpush.msra.mxu3 %v383_v55  ;;  %v433_v51 = vunpack.c.h.bf16 %v187_v41  ;;  %v179_v53 = vld [vmem:[%s4905_s1 + $0x368] sm:$0xff]  ;;  %v424_v55 = vunpack.c.l.bf16 %v183_v47 }
  0x1a   :  { %v154_v57 = vld [vmem:[%s4905_s1 + $0x2a0] sm:$0xff]  ;;  %v238_v0 = vunpack.c.l.bf16 %v90_v56  ;;  %v239_v2 = vunpack.c.h.bf16 %v90_v56  ;;  %463 = vmatpush.msra.mxu0 %v246_v58  ;;  %503 = vmatpush.msra.mxu2 %v247_v60  ;;  %v297_v56 = vunpack.c.h.bf16 %v119_v46  ;;  %v111_v58 = vld [vmem:[%s4905_s1 + $0x148] sm:$0xff]  ;;  %v288_v60 = vunpack.c.l.bf16 %v115_v52 }
  0x1b   :  { %v86_v62 = vld [vmem:[%s4905_s1 + $0x80] sm:$0xff]  ;;  %v366_v1 = vunpack.c.l.bf16 %v154_v57  ;;  %v367_v3 = vunpack.c.h.bf16 %v154_v57  ;;  %483 = vmatpush.msra.mxu1 %v374_v59  ;;  %523 = vmatpush.msra.mxu3 %v375_v61  ;;  %v425_v57 = vunpack.c.h.bf16 %v183_v47  ;;  %v175_v59 = vld [vmem:[%s4905_s1 + $0x348] sm:$0xff]  ;;  %v416_v61 = vunpack.c.l.bf16 %v179_v53 }
  0x1c   :  { %v150_v63 = vld [vmem:[%s4905_s1 + $0x280] sm:$0xff]  ;;  %v230_v6 = vunpack.c.l.bf16 %v86_v62  ;;  %v231_v8 = vunpack.c.h.bf16 %v86_v62  ;;  %464 = vmatpush.msra.mxu0 %v238_v0  ;;  %504 = vmatpush.msra.mxu2 %v239_v2  ;;  %v289_v62 = vunpack.c.h.bf16 %v115_v52  ;;  %v107_v0 = vld [vmem:[%s4905_s1 + $0x128] sm:$0xff]  ;;  %v280_v2 = vunpack.c.l.bf16 %v111_v58 }
  0x1d   :  { %v82_v4 = vld [vmem:[%s4905_s1 + $0x60] sm:$0xff]  ;;  %v358_v7 = vunpack.c.l.bf16 %v150_v63  ;;  %v359_v9 = vunpack.c.h.bf16 %v150_v63  ;;  %484 = vmatpush.msra.mxu1 %v366_v1  ;;  %524 = vmatpush.msra.mxu3 %v367_v3  ;;  %v417_v63 = vunpack.c.h.bf16 %v179_v53  ;;  %v171_v1 = vld [vmem:[%s4905_s1 + $0x328] sm:$0xff]  ;;  %v408_v3 = vunpack.c.l.bf16 %v175_v59 }
  0x1e   :  { %v146_v5 = vld [vmem:[%s4905_s1 + $0x260] sm:$0xff]  ;;  %v222_v12 = vunpack.c.l.bf16 %v82_v4  ;;  %v223_v14 = vunpack.c.h.bf16 %v82_v4  ;;  %465 = vmatpush.msra.mxu0 %v230_v6  ;;  %505 = vmatpush.msra.mxu2 %v231_v8  ;;  %v281_v4 = vunpack.c.h.bf16 %v111_v58  ;;  %v103_v6 = vld [vmem:[%s4905_s1 + $0x108] sm:$0xff]  ;;  %v272_v8 = vunpack.c.l.bf16 %v107_v0 }
  0x1f   :  { %v78_v10 = vld [vmem:[%s4905_s1 + $0x40] sm:$0xff]  ;;  %v350_v13 = vunpack.c.l.bf16 %v146_v5  ;;  %v351_v15 = vunpack.c.h.bf16 %v146_v5  ;;  %485 = vmatpush.msra.mxu1 %v358_v7  ;;  %525 = vmatpush.msra.mxu3 %v359_v9  ;;  %v409_v5 = vunpack.c.h.bf16 %v175_v59  ;;  %v167_v7 = vld [vmem:[%s4905_s1 + $0x308] sm:$0xff]  ;;  %v400_v9 = vunpack.c.l.bf16 %v171_v1 }
  0x20   :  { %v142_v11 = vld [vmem:[%s4905_s1 + $0x240] sm:$0xff]  ;;  %v214_v18 = vunpack.c.l.bf16 %v78_v10  ;;  %v215_v20 = vunpack.c.h.bf16 %v78_v10  ;;  %466 = vmatpush.msra.mxu0 %v222_v12  ;;  %506 = vmatpush.msra.mxu2 %v223_v14  ;;  %v273_v10 = vunpack.c.h.bf16 %v107_v0  ;;  %v99_v12 = vld [vmem:[%s4905_s1 + $0xe8] sm:$0xff]  ;;  %v264_v14 = vunpack.c.l.bf16 %v103_v6  ;;  %v132_v0 = vld [vmem:[%s4905_s1 + $0x1f0] sm:$0xff] }
  0x21   :  { %v74_v16 = vld [vmem:[%s4905_s1 + $0x20] sm:$0xff]  ;;  %v342_v19 = vunpack.c.l.bf16 %v142_v11  ;;  %v343_v21 = vunpack.c.h.bf16 %v142_v11  ;;  %486 = vmatpush.msra.mxu1 %v350_v13  ;;  %526 = vmatpush.msra.mxu3 %v351_v15  ;;  %v401_v11 = vunpack.c.h.bf16 %v171_v1  ;;  %v163_v13 = vld [vmem:[%s4905_s1 + $0x2e8] sm:$0xff]  ;;  %v392_v15 = vunpack.c.l.bf16 %v167_v7  ;;  %v196_v1 = vld [vmem:[%s4905_s1 + $0x3f0] sm:$0xff] }
  0x22   :  { %v138_v17 = vld [vmem:[%s4905_s1 + $0x220] sm:$0xff]  ;;  %v206_v24 = vunpack.c.l.bf16 %v74_v16  ;;  %v207_v26 = vunpack.c.h.bf16 %v74_v16  ;;  %467 = vmatpush.msra.mxu0 %v214_v18  ;;  %507 = vmatpush.msra.mxu2 %v215_v20  ;;  %v265_v16 = vunpack.c.h.bf16 %v103_v6  ;;  %v95_v18 = vld [vmem:[%s4905_s1 + $0xc8] sm:$0xff]  ;;  %v256_v20 = vunpack.c.l.bf16 %v99_v12  ;;  %v128_v6 = vld [vmem:[%s4905_s1 + $0x1d0] sm:$0xff] }
  0x23   :  { %v70_v22 = vld [vmem:[%s4905_s1] sm:$0xff]  ;;  %v334_v25 = vunpack.c.l.bf16 %v138_v17  ;;  %v335_v27 = vunpack.c.h.bf16 %v138_v17  ;;  %487 = vmatpush.msra.mxu1 %v342_v19  ;;  %527 = vmatpush.msra.mxu3 %v343_v21  ;;  %v393_v17 = vunpack.c.h.bf16 %v167_v7  ;;  %v159_v19 = vld [vmem:[%s4905_s1 + $0x2c8] sm:$0xff]  ;;  %v384_v21 = vunpack.c.l.bf16 %v163_v13  ;;  %v192_v7 = vld [vmem:[%s4905_s1 + $0x3d0] sm:$0xff] }
  0x24   :  { %v134_v23 = vld [vmem:[%s4905_s1 + $0x200] sm:$0xff]  ;;  %v198_v30 = vunpack.c.l.bf16 %v70_v22  ;;  %v199_v32 = vunpack.c.h.bf16 %v70_v22  ;;  %468 = vmatpush.msra.mxu0 %v206_v24  ;;  %508 = vmatpush.msra.mxu2 %v207_v26  ;;  %v257_v22 = vunpack.c.h.bf16 %v99_v12  ;;  %v91_v24 = vld [vmem:[%s4905_s1 + $0xa8] sm:$0xff]  ;;  %v248_v26 = vunpack.c.l.bf16 %v95_v18 }
  0x25   :  { %v326_v31 = vunpack.c.l.bf16 %v134_v23  ;;  %v327_v33 = vunpack.c.h.bf16 %v134_v23  ;;  %488 = vmatpush.msra.mxu1 %v334_v25  ;;  %528 = vmatpush.msra.mxu3 %v335_v27  ;;  %v385_v23 = vunpack.c.h.bf16 %v163_v13  ;;  %v155_v25 = vld [vmem:[%s4905_s1 + $0x2a8] sm:$0xff]  ;;  %v376_v27 = vunpack.c.l.bf16 %v159_v19 }
  0x26   :  { %469 = vmatpush.msra.mxu0 %v198_v30  ;;  %509 = vmatpush.msra.mxu2 %v199_v32  ;;  %v249_v28 = vunpack.c.h.bf16 %v95_v18  ;;  %v377_v29 = vunpack.c.h.bf16 %v159_v19  ;;  %v87_v30 = vld [vmem:[%s4905_s1 + $0x88] sm:$0xff]  ;;  %v240_v32 = vunpack.c.l.bf16 %v91_v24  ;;  %v241_v34 = vunpack.c.h.bf16 %v91_v24 }
  0x27   :  { %489 = vmatpush.msra.mxu1 %v326_v31  ;;  %529 = vmatpush.msra.mxu3 %v327_v33  ;;  %v151_v31 = vld [vmem:[%s4905_s1 + $0x288] sm:$0xff]  ;;  %v368_v33 = vunpack.c.l.bf16 %v155_v25  ;;  %v369_v35 = vunpack.c.h.bf16 %v155_v25  ;;  %v233_v40 = vunpack.c.h.bf16 %v87_v30  ;;  %v314_v12 = vunpack.c.l.bf16 %v128_v6 }
  0x28   :  { %534 = vmatpush.msrb.mxu0 %v320_v36  ;;  %574 = vmatpush.msrb.mxu2 %v321_v38  ;;  %v232_v36 = vunpack.c.l.bf16 %v87_v30  ;;  %v83_v38 = vld [vmem:[%s4905_s1 + $0x68] sm:$0xff]  ;;  %v361_v41 = vunpack.c.h.bf16 %v151_v31  ;;  %v442_v13 = vunpack.c.l.bf16 %v192_v7 }
  0x29   :  { %554 = vmatpush.msrb.mxu1 %v448_v37  ;;  %594 = vmatpush.msrb.mxu3 %v449_v39  ;;  %v360_v37 = vunpack.c.l.bf16 %v151_v31  ;;  %v147_v39 = vld [vmem:[%s4905_s1 + $0x268] sm:$0xff] }
  0x2a   :  { %535 = vmatpush.msrb.mxu0 %v312_v42  ;;  %575 = vmatpush.msrb.mxu2 %v313_v44  ;;  %v3074_v42 = vld [vmem:[%s4904_s0] sm:$0xff]  ;;  %v224_v44 = vunpack.c.l.bf16 %v83_v38  ;;  %v79_v46 = vld [vmem:[%s4905_s1 + $0x48] sm:$0xff] }
  0x2b   :  { %555 = vmatpush.msrb.mxu1 %v440_v43  ;;  %595 = vmatpush.msrb.mxu3 %v441_v45  ;;  %v3079_v43 = vld [vmem:[%s4904_s0 + $0x8] sm:$0xff]  ;;  %v352_v45 = vunpack.c.l.bf16 %v147_v39  ;;  %v216_v52 = vunpack.c.l.bf16 %v79_v46 }
  0x2c   :  { %536 = vmatpush.msrb.mxu0 %v304_v48  ;;  %576 = vmatpush.msrb.mxu2 %v305_v50  ;;  %v143_v47 = vld [vmem:[%s4905_s1 + $0x248] sm:$0xff]  ;;  %v225_v48 = vunpack.c.h.bf16 %v83_v38 }
  0x2d   :  { %556 = vmatpush.msrb.mxu1 %v432_v49  ;;  %596 = vmatpush.msrb.mxu3 %v433_v51  ;;  %v353_v49 = vunpack.c.h.bf16 %v147_v39  ;;  %v75_v50 = vld [vmem:[%s4905_s1 + $0x28] sm:$0xff]  ;;  %v344_v53 = vunpack.c.l.bf16 %v143_v47 }
  0x2e   :  { %537 = vmatpush.msrb.mxu0 %v296_v54  ;;  %577 = vmatpush.msrb.mxu2 %v297_v56  ;;  %v139_v51 = vld [vmem:[%s4905_s1 + $0x228] sm:$0xff]  ;;  %v217_v54 = vunpack.c.h.bf16 %v79_v46  ;;  %v208_v58 = vunpack.c.l.bf16 %v75_v50 }
  0x2f   :  { %557 = vmatpush.msrb.mxu1 %v424_v55  ;;  %597 = vmatpush.msrb.mxu3 %v425_v57  ;;  %v345_v55 = vunpack.c.h.bf16 %v143_v47  ;;  %v71_v56 = vld [vmem:[%s4905_s1 + $0x8] sm:$0xff]  ;;  %v336_v59 = vunpack.c.l.bf16 %v139_v51 }
  0x30   :  { %538 = vmatpush.msrb.mxu0 %v288_v60  ;;  %578 = vmatpush.msrb.mxu2 %v289_v62  ;;  %v135_v57 = vld [vmem:[%s4905_s1 + $0x208] sm:$0xff]  ;;  %v209_v60 = vunpack.c.h.bf16 %v75_v50  ;;  %v200_v62 = vunpack.c.l.bf16 %v71_v56 }
  0x31   :  { %558 = vmatpush.msrb.mxu1 %v416_v61  ;;  %598 = vmatpush.msrb.mxu3 %v417_v63  ;;  %v337_v61 = vunpack.c.h.bf16 %v139_v51  ;;  %v328_v63 = vunpack.c.l.bf16 %v135_v57 }
  0x32   :  { %539 = vmatpush.msrb.mxu0 %v280_v2  ;;  %579 = vmatpush.msrb.mxu2 %v281_v4  ;;  %v201_v2 = vunpack.c.h.bf16 %v71_v56  ;;  %v322_v4 = vunpack.c.l.bf16 %v132_v0 }
  0x33   :  { %559 = vmatpush.msrb.mxu1 %v408_v3  ;;  %599 = vmatpush.msrb.mxu3 %v409_v5  ;;  %v329_v3 = vunpack.c.h.bf16 %v135_v57  ;;  %v450_v5 = vunpack.c.l.bf16 %v196_v1 }
  0x34   :  { %540 = vmatpush.msrb.mxu0 %v272_v8  ;;  %580 = vmatpush.msrb.mxu2 %v273_v10  ;;  %v323_v8 = vunpack.c.h.bf16 %v132_v0  ;;  %v124_v10 = vld [vmem:[%s4905_s1 + $0x1b0] sm:$0xff] }
  0x35   :  { %560 = vmatpush.msrb.mxu1 %v400_v9  ;;  %600 = vmatpush.msrb.mxu3 %v401_v11  ;;  %v451_v9 = vunpack.c.h.bf16 %v196_v1  ;;  %v188_v11 = vld [vmem:[%s4905_s1 + $0x3b0] sm:$0xff]  ;;  %v306_v18 = vunpack.c.l.bf16 %v124_v10 }
  0x36   :  { %541 = vmatpush.msrb.mxu0 %v264_v14  ;;  %581 = vmatpush.msrb.mxu2 %v265_v16  ;;  %v315_v14 = vunpack.c.h.bf16 %v128_v6  ;;  %v120_v16 = vld [vmem:[%s4905_s1 + $0x190] sm:$0xff]  ;;  %v434_v19 = vunpack.c.l.bf16 %v188_v11 }
  0x37   :  { %561 = vmatpush.msrb.mxu1 %v392_v15  ;;  %601 = vmatpush.msrb.mxu3 %v393_v17  ;;  %v443_v15 = vunpack.c.h.bf16 %v192_v7  ;;  %v184_v17 = vld [vmem:[%s4905_s1 + $0x390] sm:$0xff]  ;;  %v298_v24 = vunpack.c.l.bf16 %v120_v16 }
  0x38   :  { %542 = vmatpush.msrb.mxu0 %v256_v20  ;;  %582 = vmatpush.msrb.mxu2 %v257_v22  ;;  %v307_v20 = vunpack.c.h.bf16 %v124_v10  ;;  %v116_v22 = vld [vmem:[%s4905_s1 + $0x170] sm:$0xff]  ;;  %v426_v25 = vunpack.c.l.bf16 %v184_v17 }
  0x39   :  { %562 = vmatpush.msrb.mxu1 %v384_v21  ;;  %602 = vmatpush.msrb.mxu3 %v385_v23  ;;  %v435_v21 = vunpack.c.h.bf16 %v188_v11  ;;  %v180_v23 = vld [vmem:[%s4905_s1 + $0x370] sm:$0xff]  ;;  %v290_v30 = vunpack.c.l.bf16 %v116_v22 }
  0x3a   :  { %543 = vmatpush.msrb.mxu0 %v248_v26  ;;  %583 = vmatpush.msrb.mxu2 %v249_v28  ;;  %v299_v26 = vunpack.c.h.bf16 %v120_v16  ;;  %v112_v28 = vld [vmem:[%s4905_s1 + $0x150] sm:$0xff]  ;;  %v418_v31 = vunpack.c.l.bf16 %v180_v23 }
  0x3b   :  { %563 = vmatpush.msrb.mxu1 %v376_v27  ;;  %603 = vmatpush.msrb.mxu3 %v377_v29  ;;  %v427_v27 = vunpack.c.h.bf16 %v184_v17  ;;  %v176_v29 = vld [vmem:[%s4905_s1 + $0x350] sm:$0xff]  ;;  %v283_v38 = vunpack.c.h.bf16 %v112_v28 }
  0x3c   :  { %544 = vmatpush.msrb.mxu0 %v240_v32  ;;  %584 = vmatpush.msrb.mxu2 %v241_v34  ;;  %v291_v32 = vunpack.c.h.bf16 %v116_v22  ;;  %v108_v34 = vld [vmem:[%s4905_s1 + $0x130] sm:$0xff]  ;;  %v411_v39 = vunpack.c.h.bf16 %v176_v29 }
  0x3d   :  { %564 = vmatpush.msrb.mxu1 %v368_v33  ;;  %604 = vmatpush.msrb.mxu3 %v369_v35  ;;  %v419_v33 = vunpack.c.h.bf16 %v180_v23  ;;  %v172_v35 = vld [vmem:[%s4905_s1 + $0x330] sm:$0xff]  ;;  %v275_v46 = vunpack.c.h.bf16 %v108_v34 }
  0x3e   :  { %545 = vmatpush.msrb.mxu0 %v232_v36  ;;  %585 = vmatpush.msrb.mxu2 %v233_v40  ;;  %v282_v36 = vunpack.c.l.bf16 %v112_v28  ;;  %v104_v40 = vld [vmem:[%s4905_s1 + $0x110] sm:$0xff]  ;;  %v403_v47 = vunpack.c.h.bf16 %v172_v35 }
  0x3f   :  { %565 = vmatpush.msrb.mxu1 %v360_v37  ;;  %605 = vmatpush.msrb.mxu3 %v361_v41  ;;  %v410_v37 = vunpack.c.l.bf16 %v176_v29  ;;  %v168_v41 = vld [vmem:[%s4905_s1 + $0x310] sm:$0xff]  ;;  %v266_v50 = vunpack.c.l.bf16 %v104_v40 }
  0x40   :  { %510 = vmatmul.f32.vlgmr.msra.gmra.mxu2 %v3074_v42  ;;  %530 = vmatmul.f32.vlgmr.msra.gmra.mxu3 %v3079_v43  ;;  %v394_v51 = vunpack.c.l.bf16 %v168_v41 }
  0x41   :  { %546 = vmatpush.msrb.mxu0 %v224_v44  ;;  %566 = vmatpush.msrb.mxu1 %v352_v45  ;;  %v274_v44 = vunpack.c.l.bf16 %v108_v34  ;;  %v402_v45 = vunpack.c.l.bf16 %v172_v35 }
  0x42   :  { %586 = vmatpush.msrb.mxu2 %v225_v48  ;;  %606 = vmatpush.msrb.mxu3 %v353_v49  ;;  %v100_v48 = vld [vmem:[%s4905_s1 + $0xf0] sm:$0xff] }
  0x43   :  { %470 = vmatmul.f32.vlgmr.msra.gmra.mxu0 %v3074_v42  ;;  %490 = vmatmul.f32.vlgmr.msra.gmra.mxu1 %v3079_v43  ;;  %v164_v49 = vld [vmem:[%s4905_s1 + $0x2f0] sm:$0xff]  ;;  %v258_v56 = vunpack.c.l.bf16 %v100_v48 }
  0x44   :  { %547 = vmatpush.msrb.mxu0 %v216_v52  ;;  %567 = vmatpush.msrb.mxu1 %v344_v53  ;;  %v267_v52 = vunpack.c.h.bf16 %v104_v40  ;;  %v395_v53 = vunpack.c.h.bf16 %v168_v41  ;;  %v386_v57 = vunpack.c.l.bf16 %v164_v49 }
  0x45   :  { %587 = vmatpush.msrb.mxu2 %v217_v54  ;;  %607 = vmatpush.msrb.mxu3 %v345_v55  ;;  %v96_v54 = vld [vmem:[%s4905_s1 + $0xd0] sm:$0xff] }
  0x46   :  { %548 = vmatpush.msrb.mxu0 %v208_v58  ;;  %568 = vmatpush.msrb.mxu1 %v336_v59  ;;  %v160_v55 = vld [vmem:[%s4905_s1 + $0x2d0] sm:$0xff]  ;;  %v259_v58 = vunpack.c.h.bf16 %v100_v48  ;;  %v387_v59 = vunpack.c.h.bf16 %v164_v49  ;;  %v251_v0 = vunpack.c.h.bf16 %v96_v54 }
  0x47   :  { %588 = vmatpush.msrb.mxu2 %v209_v60  ;;  %608 = vmatpush.msrb.mxu3 %v337_v61  ;;  %v92_v60 = vld [vmem:[%s4905_s1 + $0xb0] sm:$0xff]  ;;  %v379_v1 = vunpack.c.h.bf16 %v160_v55 }
  0x48   :  { %549 = vmatpush.msrb.mxu0 %v200_v62  ;;  %569 = vmatpush.msrb.mxu1 %v328_v63  ;;  %v156_v61 = vld [vmem:[%s4905_s1 + $0x2b0] sm:$0xff]  ;;  %v250_v62 = vunpack.c.l.bf16 %v96_v54  ;;  %v378_v63 = vunpack.c.l.bf16 %v160_v55  ;;  %v243_v6 = vunpack.c.h.bf16 %v92_v60 }
  0x49   :  { %589 = vmatpush.msrb.mxu2 %v201_v2  ;;  %609 = vmatpush.msrb.mxu3 %v329_v3  ;;  %v88_v2 = vld [vmem:[%s4905_s1 + $0x90] sm:$0xff]  ;;  %v371_v7 = vunpack.c.h.bf16 %v156_v61 }
  0x4a   :  { %590 = vmatmul.f32.vlgmr.msrb.gmra.mxu2 %v3074_v42  ;;  %610 = vmatmul.f32.vlgmr.msrb.gmra.mxu3 %v3079_v43  ;;  %v152_v3 = vld [vmem:[%s4905_s1 + $0x290] sm:$0xff]  ;;  %v234_v10 = vunpack.c.l.bf16 %v88_v2 }
  0x4b   :  { %614 = vmatpush.msra.mxu0 %v322_v4  ;;  %634 = vmatpush.msra.mxu1 %v450_v5  ;;  %v242_v4 = vunpack.c.l.bf16 %v92_v60  ;;  %v370_v5 = vunpack.c.l.bf16 %v156_v61  ;;  %v362_v11 = vunpack.c.l.bf16 %v152_v3 }
  0x4c   :  { %654 = vmatpush.msra.mxu2 %v323_v8  ;;  %674 = vmatpush.msra.mxu3 %v451_v9  ;;  %v84_v8 = vld [vmem:[%s4905_s1 + $0x70] sm:$0xff] }
  0x4d   :  { %550 = vmatmul.f32.vlgmr.msrb.gmra.mxu0 %v3074_v42  ;;  %570 = vmatmul.f32.vlgmr.msrb.gmra.mxu1 %v3079_v43  ;;  %v148_v9 = vld [vmem:[%s4905_s1 + $0x270] sm:$0xff]  ;;  %v226_v16 = vunpack.c.l.bf16 %v84_v8 }
  0x4e   :  { %615 = vmatpush.msra.mxu0 %v314_v12  ;;  %635 = vmatpush.msra.mxu1 %v442_v13  ;;  %v235_v12 = vunpack.c.h.bf16 %v88_v2  ;;  %v363_v13 = vunpack.c.h.bf16 %v152_v3  ;;  %v354_v17 = vunpack.c.l.bf16 %v148_v9 }
  0x4f   :  { %655 = vmatpush.msra.mxu2 %v315_v14  ;;  %675 = vmatpush.msra.mxu3 %v443_v15  ;;  %v80_v14 = vld [vmem:[%s4905_s1 + $0x50] sm:$0xff] }
  0x50   :  { %616 = vmatpush.msra.mxu0 %v306_v18  ;;  %636 = vmatpush.msra.mxu1 %v434_v19  ;;  %v144_v15 = vld [vmem:[%s4905_s1 + $0x250] sm:$0xff]  ;;  %v227_v18 = vunpack.c.h.bf16 %v84_v8  ;;  %v355_v19 = vunpack.c.h.bf16 %v148_v9  ;;  %v218_v22 = vunpack.c.l.bf16 %v80_v14 }
  0x51   :  { %656 = vmatpush.msra.mxu2 %v307_v20  ;;  %676 = vmatpush.msra.mxu3 %v435_v21  ;;  %v76_v20 = vld [vmem:[%s4905_s1 + $0x30] sm:$0xff]  ;;  %v346_v23 = vunpack.c.l.bf16 %v144_v15 }
  0x52   :  { %617 = vmatpush.msra.mxu0 %v298_v24  ;;  %637 = vmatpush.msra.mxu1 %v426_v25  ;;  %v140_v21 = vld [vmem:[%s4905_s1 + $0x230] sm:$0xff]  ;;  %v219_v24 = vunpack.c.h.bf16 %v80_v14  ;;  %v347_v25 = vunpack.c.h.bf16 %v144_v15  ;;  %v210_v28 = vunpack.c.l.bf16 %v76_v20 }
  0x53   :  { %657 = vmatpush.msra.mxu2 %v299_v26  ;;  %677 = vmatpush.msra.mxu3 %v427_v27  ;;  %v72_v26 = vld [vmem:[%s4905_s1 + $0x10] sm:$0xff]  ;;  %v338_v29 = vunpack.c.l.bf16 %v140_v21 }
  0x54   :  { %618 = vmatpush.msra.mxu0 %v290_v30  ;;  %638 = vmatpush.msra.mxu1 %v418_v31  ;;  %v136_v27 = vld [vmem:[%s4905_s1 + $0x210] sm:$0xff]  ;;  %v211_v30 = vunpack.c.h.bf16 %v76_v20  ;;  %v339_v31 = vunpack.c.h.bf16 %v140_v21  ;;  %v203_v34 = vunpack.c.h.bf16 %v72_v26 }
  0x55   :  { %658 = vmatpush.msra.mxu2 %v291_v32  ;;  %678 = vmatpush.msra.mxu3 %v419_v33  ;;  %v202_v32 = vunpack.c.l.bf16 %v72_v26  ;;  %v330_v33 = vunpack.c.l.bf16 %v136_v27  ;;  %v331_v35 = vunpack.c.h.bf16 %v136_v27 }
  0x56   :  { %619 = vmatpush.msra.mxu0 %v282_v36  ;;  %639 = vmatpush.msra.mxu1 %v410_v37  ;;  %v133_v36 = vld [vmem:[%s4905_s1 + $0x1f8] sm:$0xff] }
  0x57   :  { %659 = vmatpush.msra.mxu2 %v283_v38  ;;  %679 = vmatpush.msra.mxu3 %v411_v39  ;;  %v197_v37 = vld [vmem:[%s4905_s1 + $0x3f8] sm:$0xff]  ;;  %v324_v40 = vunpack.c.l.bf16 %v133_v36 }
  0x58   :  { %620 = vmatpush.msra.mxu0 %v274_v44  ;;  %640 = vmatpush.msra.mxu1 %v402_v45  ;;  %v129_v38 = vld [vmem:[%s4905_s1 + $0x1d8] sm:$0xff]  ;;  %v452_v41 = vunpack.c.l.bf16 %v197_v37  ;;  %v325_v44 = vunpack.c.h.bf16 %v133_v36  ;;  %v453_v45 = vunpack.c.h.bf16 %v197_v37 }
  0x59   :  { %660 = vmatpush.msra.mxu2 %v275_v46  ;;  %680 = vmatpush.msra.mxu3 %v403_v47  ;;  %v193_v39 = vld [vmem:[%s4905_s1 + $0x3d8] sm:$0xff]  ;;  %v316_v48 = vunpack.c.l.bf16 %v129_v38 }
  0x5a   :  { %621 = vmatpush.msra.mxu0 %v266_v50  ;;  %641 = vmatpush.msra.mxu1 %v394_v51  ;;  %v125_v46 = vld [vmem:[%s4905_s1 + $0x1b8] sm:$0xff]  ;;  %v444_v49 = vunpack.c.l.bf16 %v193_v39  ;;  %v317_v50 = vunpack.c.h.bf16 %v129_v38  ;;  %v445_v51 = vunpack.c.h.bf16 %v193_v39 }
  0x5b   :  { %661 = vmatpush.msra.mxu2 %v267_v52  ;;  %681 = vmatpush.msra.mxu3 %v395_v53  ;;  %v189_v47 = vld [vmem:[%s4905_s1 + $0x3b8] sm:$0xff]  ;;  %v308_v54 = vunpack.c.l.bf16 %v125_v46 }
  0x5c   :  { %622 = vmatpush.msra.mxu0 %v258_v56  ;;  %642 = vmatpush.msra.mxu1 %v386_v57  ;;  %v121_v52 = vld [vmem:[%s4905_s1 + $0x198] sm:$0xff]  ;;  %v436_v55 = vunpack.c.l.bf16 %v189_v47  ;;  %v309_v56 = vunpack.c.h.bf16 %v125_v46  ;;  %v437_v57 = vunpack.c.h.bf16 %v189_v47 }
  0x5d   :  { %662 = vmatpush.msra.mxu2 %v259_v58  ;;  %682 = vmatpush.msra.mxu3 %v387_v59  ;;  %v185_v53 = vld [vmem:[%s4905_s1 + $0x398] sm:$0xff]  ;;  %v300_v60 = vunpack.c.l.bf16 %v121_v52 }
  0x5e   :  { %623 = vmatpush.msra.mxu0 %v250_v62  ;;  %643 = vmatpush.msra.mxu1 %v378_v63  ;;  %v117_v58 = vld [vmem:[%s4905_s1 + $0x178] sm:$0xff]  ;;  %v428_v61 = vunpack.c.l.bf16 %v185_v53  ;;  %v301_v62 = vunpack.c.h.bf16 %v121_v52  ;;  %v429_v63 = vunpack.c.h.bf16 %v185_v53 }
  0x5f   :  { %663 = vmatpush.msra.mxu2 %v251_v0  ;;  %683 = vmatpush.msra.mxu3 %v379_v1  ;;  %v181_v59 = vld [vmem:[%s4905_s1 + $0x378] sm:$0xff]  ;;  %v292_v2 = vunpack.c.l.bf16 %v117_v58 }
  0x60   :  { %624 = vmatpush.msra.mxu0 %v242_v4  ;;  %644 = vmatpush.msra.mxu1 %v370_v5  ;;  %v113_v0 = vld [vmem:[%s4905_s1 + $0x158] sm:$0xff]  ;;  %v420_v3 = vunpack.c.l.bf16 %v181_v59  ;;  %v293_v4 = vunpack.c.h.bf16 %v117_v58  ;;  %v421_v5 = vunpack.c.h.bf16 %v181_v59 }
  0x61   :  { %664 = vmatpush.msra.mxu2 %v243_v6  ;;  %684 = vmatpush.msra.mxu3 %v371_v7  ;;  %v177_v1 = vld [vmem:[%s4905_s1 + $0x358] sm:$0xff]  ;;  %v284_v8 = vunpack.c.l.bf16 %v113_v0 }
  0x62   :  { %625 = vmatpush.msra.mxu0 %v234_v10  ;;  %645 = vmatpush.msra.mxu1 %v362_v11  ;;  %v109_v6 = vld [vmem:[%s4905_s1 + $0x138] sm:$0xff]  ;;  %v412_v9 = vunpack.c.l.bf16 %v177_v1  ;;  %v285_v10 = vunpack.c.h.bf16 %v113_v0  ;;  %v413_v11 = vunpack.c.h.bf16 %v177_v1 }
  0x63   :  { %665 = vmatpush.msra.mxu2 %v235_v12  ;;  %685 = vmatpush.msra.mxu3 %v363_v13  ;;  %v173_v7 = vld [vmem:[%s4905_s1 + $0x338] sm:$0xff]  ;;  %v276_v14 = vunpack.c.l.bf16 %v109_v6 }
  0x64   :  { %626 = vmatpush.msra.mxu0 %v226_v16  ;;  %646 = vmatpush.msra.mxu1 %v354_v17  ;;  %v105_v12 = vld [vmem:[%s4905_s1 + $0x118] sm:$0xff]  ;;  %v404_v15 = vunpack.c.l.bf16 %v173_v7  ;;  %v277_v16 = vunpack.c.h.bf16 %v109_v6  ;;  %v405_v17 = vunpack.c.h.bf16 %v173_v7 }
  0x65   :  { %666 = vmatpush.msra.mxu2 %v227_v18  ;;  %686 = vmatpush.msra.mxu3 %v355_v19  ;;  %v169_v13 = vld [vmem:[%s4905_s1 + $0x318] sm:$0xff]  ;;  %v268_v20 = vunpack.c.l.bf16 %v105_v12 }
  0x66   :  { %627 = vmatpush.msra.mxu0 %v218_v22  ;;  %647 = vmatpush.msra.mxu1 %v346_v23  ;;  %v101_v18 = vld [vmem:[%s4905_s1 + $0xf8] sm:$0xff]  ;;  %v396_v21 = vunpack.c.l.bf16 %v169_v13  ;;  %v269_v22 = vunpack.c.h.bf16 %v105_v12  ;;  %v397_v23 = vunpack.c.h.bf16 %v169_v13 }
  0x67   :  { %667 = vmatpush.msra.mxu2 %v219_v24  ;;  %687 = vmatpush.msra.mxu3 %v347_v25  ;;  %v165_v19 = vld [vmem:[%s4905_s1 + $0x2f8] sm:$0xff]  ;;  %v260_v26 = vunpack.c.l.bf16 %v101_v18 }
  0x68   :  { %628 = vmatpush.msra.mxu0 %v210_v28  ;;  %648 = vmatpush.msra.mxu1 %v338_v29  ;;  %v97_v24 = vld [vmem:[%s4905_s1 + $0xd8] sm:$0xff]  ;;  %v388_v27 = vunpack.c.l.bf16 %v165_v19  ;;  %v261_v28 = vunpack.c.h.bf16 %v101_v18  ;;  %v389_v29 = vunpack.c.h.bf16 %v165_v19  ;;  %v3321_v18 = vld [vmem:[#allocation3 + $0x2f0] sm:$0xff]  ;;  %v3325_v19 = vld [vmem:[#allocation3 + $0xc0] sm:$0xff] }
  0x69   :  { %668 = vmatpush.msra.mxu2 %v211_v30  ;;  %688 = vmatpush.msra.mxu3 %v339_v31  ;;  %v161_v25 = vld [vmem:[%s4905_s1 + $0x2d8] sm:$0xff] }
  0x6a   :  { %629 = vmatpush.msra.mxu0 %v202_v32  ;;  %649 = vmatpush.msra.mxu1 %v330_v33  ;;  %v93_v30 = vld [vmem:[%s4905_s1 + $0xb8] sm:$0xff]  ;;  %v252_v32 = vunpack.c.l.bf16 %v97_v24  ;;  %v380_v33 = vunpack.c.l.bf16 %v161_v25 }
  0x6b   :  { %669 = vmatpush.msra.mxu2 %v203_v34  ;;  %689 = vmatpush.msra.mxu3 %v331_v35  ;;  %v157_v31 = vld [vmem:[%s4905_s1 + $0x2b8] sm:$0xff]  ;;  %v253_v34 = vunpack.c.h.bf16 %v97_v24  ;;  %v381_v35 = vunpack.c.h.bf16 %v161_v25  ;;  %v244_v38 = vunpack.c.l.bf16 %v93_v30 }
  0x6c   :  { %630 = vmatmul.f32.vlgmr.msra.gmra.mxu0 %v3074_v42  ;;  %650 = vmatmul.f32.vlgmr.msra.gmra.mxu1 %v3079_v43  ;;  %v89_v36 = vld [vmem:[%s4905_s1 + $0x98] sm:$0xff]  ;;  %v372_v39 = vunpack.c.l.bf16 %v157_v31 }
  0x6d   :  { %670 = vmatmul.f32.vlgmr.msra.gmra.mxu2 %v3074_v42  ;;  %690 = vmatmul.f32.vlgmr.msra.gmra.mxu3 %v3079_v43  ;;  %v153_v37 = vld [vmem:[%s4905_s1 + $0x298] sm:$0xff]  ;;  %v236_v46 = vunpack.c.l.bf16 %v89_v36 }
  0x6e   :  { %694 = vmatpush.msrb.mxu0 %v324_v40  ;;  %714 = vmatpush.msrb.mxu1 %v452_v41  ;;  %v245_v40 = vunpack.c.h.bf16 %v93_v30  ;;  %v373_v41 = vunpack.c.h.bf16 %v157_v31  ;;  %v364_v47 = vunpack.c.l.bf16 %v153_v37  ;;  %v3346_v31 = vld [vmem:[#allocation3 + $0x1a0] sm:$0xff] }
  0x6f   :  { %734 = vmatpush.msrb.mxu2 %v325_v44  ;;  %754 = vmatpush.msrb.mxu3 %v453_v45  ;;  %v85_v44 = vld [vmem:[%s4905_s1 + $0x78] sm:$0xff] }
  0x70   :  { %695 = vmatpush.msrb.mxu0 %v316_v48  ;;  %715 = vmatpush.msrb.mxu1 %v444_v49  ;;  %v149_v45 = vld [vmem:[%s4905_s1 + $0x278] sm:$0xff]  ;;  %v237_v48 = vunpack.c.h.bf16 %v89_v36  ;;  %v365_v49 = vunpack.c.h.bf16 %v153_v37  ;;  %v228_v52 = vunpack.c.l.bf16 %v85_v44 }
  0x71   :  { %735 = vmatpush.msrb.mxu2 %v317_v50  ;;  %755 = vmatpush.msrb.mxu3 %v445_v51  ;;  %v81_v50 = vld [vmem:[%s4905_s1 + $0x58] sm:$0xff]  ;;  %v356_v53 = vunpack.c.l.bf16 %v149_v45 }
  0x72   :  { %696 = vmatpush.msrb.mxu0 %v308_v54  ;;  %716 = vmatpush.msrb.mxu1 %v436_v55  ;;  %v145_v51 = vld [vmem:[%s4905_s1 + $0x258] sm:$0xff]  ;;  %v229_v54 = vunpack.c.h.bf16 %v85_v44  ;;  %v357_v55 = vunpack.c.h.bf16 %v149_v45  ;;  %v220_v58 = vunpack.c.l.bf16 %v81_v50  ;;  %v3365_v45 = vld [vmem:[#allocation3 + $0x80] sm:$0xff] }
  0x73   :  { %736 = vmatpush.msrb.mxu2 %v309_v56  ;;  %756 = vmatpush.msrb.mxu3 %v437_v57  ;;  %v77_v56 = vld [vmem:[%s4905_s1 + $0x38] sm:$0xff]  ;;  %v348_v59 = vunpack.c.l.bf16 %v145_v51 }
  0x74   :  { %697 = vmatpush.msrb.mxu0 %v300_v60  ;;  %717 = vmatpush.msrb.mxu1 %v428_v61  ;;  %v141_v57 = vld [vmem:[%s4905_s1 + $0x238] sm:$0xff]  ;;  %v221_v60 = vunpack.c.h.bf16 %v81_v50  ;;  %v349_v61 = vunpack.c.h.bf16 %v145_v51  ;;  %v212_v0 = vunpack.c.l.bf16 %v77_v56  ;;  %v3372_v50 = vld [vmem:[#allocation3 + $0x2a0] sm:$0xff]  ;;  %v3374_v51 = vld [vmem:[#allocation3 + $0x3d0] sm:$0xff] }
  0x75   :  { %737 = vmatpush.msrb.mxu2 %v301_v62  ;;  %757 = vmatpush.msrb.mxu3 %v429_v63  ;;  %v73_v62 = vld [vmem:[%s4905_s1 + $0x18] sm:$0xff]  ;;  %v340_v1 = vunpack.c.l.bf16 %v141_v57 }
  0x76   :  { %698 = vmatpush.msrb.mxu0 %v292_v2  ;;  %718 = vmatpush.msrb.mxu1 %v420_v3  ;;  %v137_v63 = vld [vmem:[%s4905_s1 + $0x218] sm:$0xff]  ;;  %v213_v2 = vunpack.c.h.bf16 %v77_v56  ;;  %v341_v3 = vunpack.c.h.bf16 %v141_v57  ;;  %v205_v6 = vunpack.c.h.bf16 %v73_v62  ;;  %v1335_v56 = vunpack.c.l.bf16 %v3374_v51  ;;  %v3382_v57 = vld [vmem:[#allocation3 + $0x170] sm:$0xff] }
  0x77   :  { %738 = vmatpush.msrb.mxu2 %v293_v4  ;;  %758 = vmatpush.msrb.mxu3 %v421_v5  ;;  %v204_v4 = vunpack.c.l.bf16 %v73_v62  ;;  %v332_v5 = vunpack.c.l.bf16 %v137_v63  ;;  %v333_v7 = vunpack.c.h.bf16 %v137_v63 }
  0x78   :  { %699 = vmatpush.msrb.mxu0 %v284_v8  ;;  %719 = vmatpush.msrb.mxu1 %v412_v9  ;;  %v3303_v8 = vld [vmem:[#allocation3 + $0xf0] sm:$0xff] }
  0x79   :  { %739 = vmatpush.msrb.mxu2 %v285_v10  ;;  %759 = vmatpush.msrb.mxu3 %v413_v11  ;;  %v3305_v9 = vld [vmem:[#allocation3 + $0x1f0] sm:$0xff]  ;;  %v3307_v10 = vld [vmem:[#allocation3 + $0xe0] sm:$0xff]  ;;  %v1151_v12 = vunpack.c.l.bf16 %v3303_v8 }
  0x7a   :  { %700 = vmatpush.msrb.mxu0 %v276_v14  ;;  %720 = vmatpush.msrb.mxu1 %v404_v15  ;;  %v3309_v11 = vld [vmem:[#allocation3 + $0x1e0] sm:$0xff]  ;;  %v1215_v13 = vunpack.c.l.bf16 %v3305_v9  ;;  %v3313_v14 = vld [vmem:[#allocation3 + $0xd0] sm:$0xff] }
  0x7b   :  { %740 = vmatpush.msrb.mxu2 %v277_v16  ;;  %760 = vmatpush.msrb.mxu3 %v405_v17  ;;  %v3315_v15 = vld [vmem:[#allocation3 + $0x1d0] sm:$0xff]  ;;  %v1147_v16 = vunpack.c.l.bf16 %v3307_v10  ;;  %v1211_v17 = vunpack.c.l.bf16 %v3309_v11 }
  0x7c   :  { %701 = vmatpush.msrb.mxu0 %v268_v20  ;;  %721 = vmatpush.msrb.mxu1 %v396_v21  ;;  %v3327_v20 = vld [vmem:[#allocation3 + $0x1c0] sm:$0xff]  ;;  %v1279_v21 = vunpack.c.l.bf16 %v3321_v18  ;;  %v1207_v24 = vunpack.c.l.bf16 %v3315_v15 }
  0x7d   :  { %741 = vmatpush.msrb.mxu2 %v269_v22  ;;  %761 = vmatpush.msrb.mxu3 %v397_v23  ;;  %v3330_v22 = vld [vmem:[#allocation3 + $0x2e0] sm:$0xff]  ;;  %v1143_v23 = vunpack.c.l.bf16 %v3313_v14 }
  0x7e   :  { %702 = vmatpush.msrb.mxu0 %v260_v26  ;;  %722 = vmatpush.msrb.mxu1 %v388_v27  ;;  %v1275_v25 = vunpack.c.l.bf16 %v3330_v22  ;;  %v3335_v26 = vld [vmem:[#allocation3 + $0xb0] sm:$0xff]  ;;  %v1139_v27 = vunpack.c.l.bf16 %v3325_v19 }
  0x7f   :  { %742 = vmatpush.msrb.mxu2 %v261_v28  ;;  %762 = vmatpush.msrb.mxu3 %v389_v29  ;;  %v3342_v28 = vld [vmem:[#allocation3 + $0xa0] sm:$0xff]  ;;  %v1203_v29 = vunpack.c.l.bf16 %v3327_v20 }
  0x80   :  { %703 = vmatpush.msrb.mxu0 %v252_v32  ;;  %723 = vmatpush.msrb.mxu1 %v380_v33  ;;  %v3348_v32 = vld [vmem:[#allocation3 + $0x2c0] sm:$0xff]  ;;  %v3350_v33 = vld [vmem:[#allocation3 + $0x3f0] sm:$0xff]  ;;  %v1131_v44 = vunpack.c.l.bf16 %v3342_v28 }
  0x81   :  { %743 = vmatpush.msrb.mxu2 %v253_v34  ;;  %763 = vmatpush.msrb.mxu3 %v381_v35  ;;  %v1135_v34 = vunpack.c.l.bf16 %v3335_v26  ;;  %v3353_v35 = vld [vmem:[#allocation3 + $0x90] sm:$0xff]  ;;  %v1267_v37 = vunpack.c.l.bf16 %v3348_v32 }
  0x82   :  { %704 = vmatpush.msrb.mxu0 %v244_v38  ;;  %724 = vmatpush.msrb.mxu1 %v372_v39  ;;  %v1343_v38 = vunpack.c.l.bf16 %v3350_v33  ;;  %v3358_v39 = vld [vmem:[#allocation3 + $0x190] sm:$0xff] }
  0x83   :  { %744 = vmatpush.msrb.mxu2 %v245_v40  ;;  %764 = vmatpush.msrb.mxu3 %v373_v41  ;;  %v3360_v40 = vld [vmem:[#allocation3 + $0x2b0] sm:$0xff]  ;;  %v3362_v41 = vld [vmem:[#allocation3 + $0x3e0] sm:$0xff] }
  0x84   :  { %705 = vmatpush.msrb.mxu0 %v236_v46  ;;  %725 = vmatpush.msrb.mxu1 %v364_v47  ;;  %v1195_v46 = vunpack.c.l.bf16 %v3346_v31  ;;  %v1263_v47 = vunpack.c.l.bf16 %v3360_v40 }
  0x85   :  { %745 = vmatpush.msrb.mxu2 %v237_v48  ;;  %765 = vmatpush.msrb.mxu3 %v365_v49  ;;  %v1339_v48 = vunpack.c.l.bf16 %v3362_v41  ;;  %v3370_v49 = vld [vmem:[#allocation3 + $0x180] sm:$0xff] }
  0x86   :  { %706 = vmatpush.msrb.mxu0 %v228_v52  ;;  %726 = vmatpush.msrb.mxu1 %v356_v53  ;;  %v1127_v52 = vunpack.c.l.bf16 %v3353_v35  ;;  %v3377_v53 = vld [vmem:[#allocation3 + $0x70] sm:$0xff]  ;;  %v1187_v62 = vunpack.c.l.bf16 %v3370_v49 }
  0x87   :  { %746 = vmatpush.msrb.mxu2 %v229_v54  ;;  %766 = vmatpush.msrb.mxu3 %v357_v55  ;;  %v1191_v54 = vunpack.c.l.bf16 %v3358_v39  ;;  %v1259_v55 = vunpack.c.l.bf16 %v3372_v50 }
  0x88   :  { %707 = vmatpush.msrb.mxu0 %v220_v58  ;;  %727 = vmatpush.msrb.mxu1 %v348_v59  ;;  %v3384_v58 = vld [vmem:[#allocation3 + $0x290] sm:$0xff]  ;;  %v3386_v59 = vld [vmem:[#allocation3 + $0x3c0] sm:$0xff] }
  0x89   :  { %747 = vmatpush.msrb.mxu2 %v221_v60  ;;  %767 = vmatpush.msrb.mxu3 %v349_v61  ;;  %5048 = vst [vmem:[#allocation6_spill] sm:$0xff] %v3384_v58  ;;  %v1123_v60 = vunpack.c.l.bf16 %v3365_v45  ;;  %v3389_v61 = vld [vmem:[#allocation3 + $0x60] sm:$0xff]  ;;  %v1255_v63 = vunpack.c.l.bf16 %v3384_v58 }
  0x8a   :  { %708 = vmatpush.msrb.mxu0 %v212_v0  ;;  %728 = vmatpush.msrb.mxu1 %v340_v1  ;;  %5049 = vst [vmem:[#allocation7_spill] sm:$0xff] %v3386_v59  ;;  %v1331_v0 = vunpack.c.l.bf16 %v3386_v59  ;;  %v3394_v1 = vld [vmem:[#allocation3 + $0x160] sm:$0xff] }
  0x8b   :  { %748 = vmatpush.msrb.mxu2 %v213_v2  ;;  %768 = vmatpush.msrb.mxu3 %v341_v3  ;;  %v3396_v2 = vld [vmem:[#allocation3 + $0x280] sm:$0xff]  ;;  %v3398_v3 = vld [vmem:[#allocation3 + $0x3b0] sm:$0xff] }
  0x8c   :  { %709 = vmatpush.msrb.mxu0 %v204_v4  ;;  %729 = vmatpush.msrb.mxu1 %v332_v5  ;;  %5050 = vst [vmem:[#allocation8_spill] sm:$0xff] %v3396_v2  ;;  %v1119_v4 = vunpack.c.l.bf16 %v3377_v53  ;;  %v3401_v5 = vld [vmem:[#allocation3 + $0x50] sm:$0xff]  ;;  %v3621_v58 = vld [vmem:[#allocation3 + $0x420] sm:$0xff] }
  0x8d   :  { %749 = vmatpush.msrb.mxu2 %v205_v6  ;;  %769 = vmatpush.msrb.mxu3 %v333_v7  ;;  %5051 = vst [vmem:[#allocation9_spill] sm:$0xff] %v3398_v3  ;;  %v1183_v6 = vunpack.c.l.bf16 %v3382_v57  ;;  %v1251_v7 = vunpack.c.l.bf16 %v3396_v2  ;;  %v3546_v2 = vld [vmem:[#allocation3 + $0x580] sm:$0xff] }
  0x8e   :  { %710 = vmatmul.f32.vlgmr.msrb.gmra.mxu0 %v3074_v42  ;;  %730 = vmatmul.f32.vlgmr.msrb.gmra.mxu1 %v3079_v43  ;;  %5095 = vst [vmem:[#allocation53_spill] sm:$0xff] %v3546_v2 }
  0x8f   :  { %750 = vmatmul.f32.vlgmr.msrb.gmra.mxu2 %v3074_v42  ;;  %770 = vmatmul.f32.vlgmr.msrb.gmra.mxu3 %v3079_v43  ;;  %v3337_v42 = vld [vmem:[#allocation3 + $0x1b0] sm:$0xff] }
  0x90   :  { %1613 = vmatpush.msra.mxu0 %v1151_v12  ;;  %1633 = vmatpush.msra.mxu1 %v1215_v13  ;;  %v3339_v43 = vld [vmem:[#allocation3 + $0x2d0] sm:$0xff]  ;;  %v1199_v36 = vunpack.c.l.bf16 %v3337_v42  ;;  %v1327_v12 = vunpack.c.l.bf16 %v3398_v3  ;;  %v3476_v3 = vld [vmem:[#allocation3 + $0x5e0] sm:$0xff] }
  0x91   :  { %1653 = vmatpush.msra.mxu2 %v1279_v21  ;;  %v1271_v30 = vunpack.c.l.bf16 %v3339_v43  ;;  %1673 = vmatpush.msra.mxu3 %v1343_v38  ;;  %v3406_v13 = vld [vmem:[#allocation3 + $0x150] sm:$0xff]  ;;  %v1115_v21 = vunpack.c.l.bf16 %v3389_v61  ;;  %5071 = vst [vmem:[#allocation29_spill] sm:$0xff] %v3476_v3 }
  0x92   :  { %1614 = vmatpush.msra.mxu0 %v1147_v16  ;;  %1634 = vmatpush.msra.mxu1 %v1211_v17  ;;  %v3408_v16 = vld [vmem:[#allocation3 + $0x270] sm:$0xff]  ;;  %v3410_v17 = vld [vmem:[#allocation3 + $0x3a0] sm:$0xff] }
  0x93   :  { %1654 = vmatpush.msra.mxu2 %v1275_v25  ;;  %1674 = vmatpush.msra.mxu3 %v1339_v48  ;;  %5052 = vst [vmem:[#allocation10_spill] sm:$0xff] %v3408_v16  ;;  %v1323_v25 = vunpack.c.l.bf16 %v3410_v17 }
  0x94   :  { %1615 = vmatpush.msra.mxu0 %v1143_v23  ;;  %1635 = vmatpush.msra.mxu1 %v1207_v24  ;;  %5053 = vst [vmem:[#allocation11_spill] sm:$0xff] %v3410_v17  ;;  %v1179_v23 = vunpack.c.l.bf16 %v3394_v1  ;;  %v1247_v24 = vunpack.c.l.bf16 %v3408_v16  ;;  %v3468_v17 = vld [vmem:[#allocation3 + $0x230] sm:$0xff] }
  0x95   :  { %1655 = vmatpush.msra.mxu2 %v1271_v30  ;;  %1675 = vmatpush.msra.mxu3 %v1335_v56  ;;  %v1111_v30 = vunpack.c.l.bf16 %v3401_v5  ;;  %v3438_v56 = vld [vmem:[#allocation3 + $0x260] sm:$0xff]  ;;  %5068 = vst [vmem:[#allocation26_spill] sm:$0xff] %v3468_v17 }
  0x96   :  { %1616 = vmatpush.msra.mxu0 %v1139_v27  ;;  %1636 = vmatpush.msra.mxu1 %v1203_v29  ;;  %v3416_v27 = vld [vmem:[#allocation3 + $0x40] sm:$0xff]  ;;  %5058 = vst [vmem:[#allocation16_spill] sm:$0xff] %v3438_v56 }
  0x97   :  { %1656 = vmatpush.msra.mxu2 %v1267_v37  ;;  %1676 = vmatpush.msra.mxu3 %v1331_v0  ;;  %v3418_v29 = vld [vmem:[#allocation3 + $0x140] sm:$0xff]  ;;  %v3424_v37 = vld [vmem:[#allocation3 + $0x130] sm:$0xff]  ;;  %v1107_v38 = vunpack.c.l.bf16 %v3416_v27  ;;  %v1243_v0 = vunpack.c.l.bf16 %v3438_v56 }
  0x98   :  { %1617 = vmatpush.msra.mxu0 %v1135_v34  ;;  %1637 = vmatpush.msra.mxu1 %v1199_v36  ;;  %v1175_v34 = vunpack.c.l.bf16 %v3406_v13  ;;  %v3422_v36 = vld [vmem:[#allocation3 + $0x30] sm:$0xff] }
  0x99   :  { %1657 = vmatpush.msra.mxu2 %v1263_v47  ;;  %1677 = vmatpush.msra.mxu3 %v1327_v12  ;;  %v3430_v47 = vld [vmem:[#allocation3 + $0x120] sm:$0xff]  ;;  %v1103_v48 = vunpack.c.l.bf16 %v3422_v36 }
  0x9a   :  { %1618 = vmatpush.msra.mxu0 %v1131_v44  ;;  %1638 = vmatpush.msra.mxu1 %v1195_v46  ;;  %v1171_v44 = vunpack.c.l.bf16 %v3418_v29  ;;  %v3428_v46 = vld [vmem:[#allocation3 + $0x20] sm:$0xff]  ;;  %5055 = vst [vmem:[#allocation13_spill] sm:$0xff] %v3430_v47 }
  0x9b   :  { %1658 = vmatpush.msra.mxu2 %v1259_v55  ;;  %1678 = vmatpush.msra.mxu3 %v1323_v25  ;;  %5054 = vst [vmem:[#allocation12_spill] sm:$0xff] %v3428_v46  ;;  %v3436_v55 = vld [vmem:[#allocation3 + $0x110] sm:$0xff]  ;;  %v3450_v12 = vld [vmem:[#allocation3] sm:$0xff] }
  0x9c   :  { %1619 = vmatpush.msra.mxu0 %v1127_v52  ;;  %1639 = vmatpush.msra.mxu1 %v1191_v54  ;;  %v3433_v52 = vld [vmem:[#allocation3 + $0x10] sm:$0xff]  ;;  %v1167_v54 = vunpack.c.l.bf16 %v3424_v37  ;;  %5057 = vst [vmem:[#allocation15_spill] sm:$0xff] %v3436_v55 }
  0x9d   :  { %1659 = vmatpush.msra.mxu2 %v1255_v63  ;;  %5056 = vst [vmem:[#allocation14_spill] sm:$0xff] %v3433_v52  ;;  %v1163_v63 = vunpack.c.l.bf16 %v3430_v47 }
  0x9e   :  { %1620 = vmatpush.msra.mxu0 %v1123_v60  ;;  %1640 = vmatpush.msra.mxu1 %v1187_v62  ;;  %v3440_v60 = vld [vmem:[#allocation3 + $0x390] sm:$0xff]  ;;  %v1099_v62 = vunpack.c.l.bf16 %v3428_v46  ;;  %5062 = vst [vmem:[#allocation20_spill] sm:$0xff] %v3450_v12  ;;  %v3623_v46 = vld [vmem:[#allocation3 + $0x520] sm:$0xff] }
  0x9f   :  { %1660 = vmatpush.msra.mxu2 %v1251_v7  ;;  %5059 = vst [vmem:[#allocation17_spill] sm:$0xff] %v3440_v60  ;;  %v3448_v7 = vld [vmem:[#allocation3 + $0x380] sm:$0xff] }
  0xa0   :  { %1621 = vmatpush.msra.mxu0 %v1119_v4  ;;  %1641 = vmatpush.msra.mxu1 %v1183_v6  ;;  %v1319_v4 = vunpack.c.l.bf16 %v3440_v60  ;;  %v3446_v6 = vld [vmem:[#allocation3 + $0x250] sm:$0xff]  ;;  %5061 = vst [vmem:[#allocation19_spill] sm:$0xff] %v3448_v7  ;;  %v1315_v25 = vunpack.c.l.bf16 %v3448_v7  ;;  %v3473_v7 = vld [vmem:[#allocation3 + $0x4e0] sm:$0xff] }
  0xa1   :  { %1661 = vmatpush.msra.mxu2 %v1247_v24  ;;  %5060 = vst [vmem:[#allocation18_spill] sm:$0xff] %v3446_v6  ;;  %v1239_v24 = vunpack.c.l.bf16 %v3446_v6  ;;  %v3464_v60 = vld [vmem:[#allocation3 + $0x370] sm:$0xff] }
  0xa2   :  { %1622 = vmatpush.msra.mxu0 %v1115_v21  ;;  %1642 = vmatpush.msra.mxu1 %v1179_v23  ;;  %v3452_v21 = vld [vmem:[#allocation3 + $0x4f0] sm:$0xff]  ;;  %v3454_v23 = vld [vmem:[#allocation3 + $0x100] sm:$0xff]  ;;  %5067 = vst [vmem:[#allocation25_spill] sm:$0xff] %v3464_v60  ;;  %v1311_v6 = vunpack.c.l.bf16 %v3464_v60 }
  0xa3   :  { %5063 = vst [vmem:[#allocation21_spill] sm:$0xff] %v3452_v21  ;;  %1662 = vmatpush.msra.mxu2 %v1243_v0  ;;  %1679 = vmatpush.msra.mxu3 %v1319_v4  ;;  %v1155_v16 = vunpack.c.l.bf16 %v3454_v23  ;;  %v1407_v0 = vunpack.c.l.bf16 %v3452_v21  ;;  %v3480_v60 = vld [vmem:[#allocation3 + $0x4d0] sm:$0xff]  ;;  %v3488_v21 = vld [vmem:[#allocation3 + $0x220] sm:$0xff] }
  0xa4   :  { %1623 = vmatpush.msra.mxu0 %v1111_v30  ;;  %1643 = vmatpush.msra.mxu1 %v1175_v34  ;;  %5064 = vst [vmem:[#allocation22_spill] sm:$0xff] %v3454_v23  ;;  %v1095_v30 = vunpack.c.l.bf16 %v3433_v52  ;;  %v1159_v34 = vunpack.c.l.bf16 %v3436_v55  ;;  %v1403_v23 = vunpack.c.l.bf16 %v3473_v7  ;;  %v3544_v55 = vld [vmem:[#allocation3 + $0x480] sm:$0xff] }
  0xa5   :  { %5070 = vst [vmem:[#allocation28_spill] sm:$0xff] %v3473_v7  ;;  %1663 = vmatpush.msra.mxu2 %v1239_v24  ;;  %1680 = vmatpush.msra.mxu3 %v1315_v25  ;;  %v3490_v24 = vld [vmem:[#allocation3 + $0x350] sm:$0xff]  ;;  %v3492_v25 = vld [vmem:[#allocation3 + $0x4c0] sm:$0xff] }
  0xa6   :  { %1624 = vmatpush.msra.mxu0 %v1107_v38  ;;  %1644 = vmatpush.msra.mxu1 %v1171_v44  ;;  %v3460_v38 = vld [vmem:[#allocation3 + $0x5f0] sm:$0xff]  ;;  %v3462_v44 = vld [vmem:[#allocation3 + $0x240] sm:$0xff]  ;;  %5072 = vst [vmem:[#allocation30_spill] sm:$0xff] %v3480_v60 }
  0xa7   :  { %5065 = vst [vmem:[#allocation23_spill] sm:$0xff] %v3460_v38  ;;  %v1235_v56 = vunpack.c.l.bf16 %v3462_v44  ;;  %v1471_v4 = vunpack.c.l.bf16 %v3460_v38  ;;  %1681 = vmatpush.msra.mxu3 %v1311_v6  ;;  %v1303_v38 = vunpack.c.l.bf16 %v3490_v24  ;;  %v3500_v6 = vld [vmem:[#allocation3 + $0x210] sm:$0xff]  ;;  %v3518_v7 = vld [vmem:[#allocation3 + $0x5a0] sm:$0xff] }
  0xa8   :  { %1625 = vmatpush.msra.mxu0 %v1103_v48  ;;  %1645 = vmatpush.msra.mxu1 %v1167_v54  ;;  %5066 = vst [vmem:[#allocation24_spill] sm:$0xff] %v3462_v44  ;;  %v3470_v48 = vld [vmem:[#allocation3 + $0x360] sm:$0xff]  ;;  %v1091_v54 = vunpack.c.l.bf16 %v3450_v12  ;;  %v1467_v12 = vunpack.c.l.bf16 %v3476_v3 }
  0xa9   :  { %5069 = vst [vmem:[#allocation27_spill] sm:$0xff] %v3470_v48  ;;  %v1307_v44 = vunpack.c.l.bf16 %v3470_v48  ;;  %1664 = vmatpush.msra.mxu2 %v1235_v56  ;;  %v1399_v48 = vunpack.c.l.bf16 %v3480_v60  ;;  %v3502_v3 = vld [vmem:[#allocation3 + $0x340] sm:$0xff] }
  0xaa   :  { %1626 = vmatpush.msra.mxu0 %v1099_v62  ;;  %1646 = vmatpush.msra.mxu1 %v1163_v63  ;;  %v3482_v62 = vld [vmem:[#allocation3 + $0x5d0] sm:$0xff]  ;;  %v1231_v63 = vunpack.c.l.bf16 %v3468_v17  ;;  %5074 = vst [vmem:[#allocation32_spill] sm:$0xff] %v3488_v21  ;;  %v3514_v60 = vld [vmem:[#allocation3 + $0x200] sm:$0xff] }
  0xab   :  { %5073 = vst [vmem:[#allocation31_spill] sm:$0xff] %v3482_v62  ;;  %v1463_v56 = vunpack.c.l.bf16 %v3482_v62  ;;  %1682 = vmatpush.msra.mxu3 %v1307_v44  ;;  %v3516_v17 = vld [vmem:[#allocation3 + $0x330] sm:$0xff]  ;;  %v1219_v44 = vunpack.c.l.bf16 %v3514_v60  ;;  %v3599_v52 = vld [vmem:[#allocation3 + $0x540] sm:$0xff] }
  0xac   :  { %1627 = vmatpush.msra.mxu0 %v1095_v30  ;;  %1647 = vmatpush.msra.mxu1 %v1159_v34  ;;  %5075 = vst [vmem:[#allocation33_spill] sm:$0xff] %v3490_v24  ;;  %v3494_v30 = vld [vmem:[#allocation3 + $0x5c0] sm:$0xff]  ;;  %v1227_v34 = vunpack.c.l.bf16 %v3488_v21  ;;  %v1223_v21 = vunpack.c.l.bf16 %v3500_v6  ;;  %v1299_v24 = vunpack.c.l.bf16 %v3502_v3 }
  0xad   :  { %5076 = vst [vmem:[#allocation34_spill] sm:$0xff] %v3492_v25  ;;  %1665 = vmatpush.msra.mxu2 %v1231_v63  ;;  %v1459_v62 = vunpack.c.l.bf16 %v3494_v30  ;;  %1683 = vmatpush.msra.mxu3 %v1303_v38  ;;  %v1295_v63 = vunpack.c.l.bf16 %v3516_v17  ;;  %v3534_v38 = vld [vmem:[#allocation3 + $0x590] sm:$0xff] }
  0xae   :  { %1628 = vmatpush.msra.mxu0 %v1091_v54  ;;  %1648 = vmatpush.msra.mxu1 %v1155_v16  ;;  %5077 = vst [vmem:[#allocation35_spill] sm:$0xff] %v3494_v30  ;;  %v3504_v54 = vld [vmem:[#allocation3 + $0x4b0] sm:$0xff] }
  0xaf   :  { %5078 = vst [vmem:[#allocation36_spill] sm:$0xff] %v3500_v6  ;;  %v3506_v16 = vld [vmem:[#allocation3 + $0x5b0] sm:$0xff]  ;;  %1666 = vmatpush.msra.mxu2 %v1227_v34  ;;  %v3528_v6 = vld [vmem:[#allocation3 + $0x6e0] sm:$0xff]  ;;  %1684 = vmatpush.msra.mxu3 %v1299_v24 }
  0xb0   :  { %1693 = vmatpush.msrb.mxu0 %v1407_v0  ;;  %1713 = vmatpush.msrb.mxu1 %v1471_v4  ;;  %5079 = vst [vmem:[#allocation37_spill] sm:$0xff] %v3502_v3  ;;  %v1395_v0 = vunpack.c.l.bf16 %v3492_v25  ;;  %v3511_v4 = vld [vmem:[#allocation3 + $0x4a0] sm:$0xff]  ;;  %v1455_v30 = vunpack.c.l.bf16 %v3506_v16  ;;  %v3530_v25 = vld [vmem:[#allocation3 + $0x310] sm:$0xff] }
  0xb1   :  { %5080 = vst [vmem:[#allocation38_spill] sm:$0xff] %v3504_v54  ;;  %v3524_v3 = vld [vmem:[#allocation3 + $0x320] sm:$0xff]  ;;  %v3532_v34 = vld [vmem:[#allocation3 + $0x490] sm:$0xff]  ;;  %1667 = vmatpush.msra.mxu2 %v1223_v21  ;;  %1685 = vmatpush.msra.mxu3 %v1295_v63  ;;  %v1531_v21 = vunpack.c.l.bf16 %v3528_v6  ;;  %v1287_v24 = vunpack.c.l.bf16 %v3530_v25 }
  0xb2   :  { %5081 = vst [vmem:[#allocation39_spill] sm:$0xff] %v3506_v16  ;;  %1694 = vmatpush.msrb.mxu0 %v1403_v23  ;;  %1714 = vmatpush.msrb.mxu1 %v1467_v12  ;;  %v3522_v23 = vld [vmem:[#allocation3 + $0x6f0] sm:$0xff]  ;;  %v1391_v12 = vunpack.c.l.bf16 %v3504_v54  ;;  %v3542_v54 = vld [vmem:[#allocation3 + $0x300] sm:$0xff] }
  0xb3   :  { %5082 = vst [vmem:[#allocation40_spill] sm:$0xff] %v3511_v4  ;;  %v3540_v16 = vld [vmem:[#allocation3 + $0x6d0] sm:$0xff]  ;;  %1668 = vmatpush.msra.mxu2 %v1219_v44  ;;  %v1283_v63 = vunpack.c.l.bf16 %v3542_v54 }
  0xb4   :  { %5083 = vst [vmem:[#allocation41_spill] sm:$0xff] %v3514_v60  ;;  %1695 = vmatpush.msrb.mxu0 %v1399_v48  ;;  %1715 = vmatpush.msrb.mxu1 %v1463_v56  ;;  %v1291_v60 = vunpack.c.l.bf16 %v3524_v3  ;;  %v1387_v48 = vunpack.c.l.bf16 %v3511_v4  ;;  %v1451_v56 = vunpack.c.l.bf16 %v3518_v7  ;;  %v3558_v4 = vld [vmem:[#allocation3 + $0x570] sm:$0xff]  ;;  %v1527_v44 = vunpack.c.l.bf16 %v3540_v16 }
  0xb5   :  { %5084 = vst [vmem:[#allocation42_spill] sm:$0xff] %v3516_v17  ;;  %v1535_v17 = vunpack.c.l.bf16 %v3522_v23 }
  0xb6   :  { %5085 = vst [vmem:[#allocation43_spill] sm:$0xff] %v3518_v7  ;;  %1696 = vmatpush.msrb.mxu0 %v1395_v0  ;;  %1716 = vmatpush.msrb.mxu1 %v1459_v62  ;;  %v1383_v0 = vunpack.c.l.bf16 %v3532_v34  ;;  %v1447_v62 = vunpack.c.l.bf16 %v3534_v38  ;;  %v3554_v7 = vld [vmem:[#allocation3 + $0x7f0] sm:$0xff] }
  0xb7   :  { %5086 = vst [vmem:[#allocation44_spill] sm:$0xff] %v3522_v23  ;;  %v3552_v23 = vld [vmem:[#allocation3 + $0x6c0] sm:$0xff]  ;;  %1733 = vmatpush.msrb.mxu2 %v1535_v17  ;;  %1686 = vmatpush.msra.mxu3 %v1291_v60  ;;  %v1599_v60 = vunpack.c.l.bf16 %v3554_v7 }
  0xb8   :  { %5087 = vst [vmem:[#allocation45_spill] sm:$0xff] %v3524_v3  ;;  %1697 = vmatpush.msrb.mxu0 %v1391_v12  ;;  %1717 = vmatpush.msrb.mxu1 %v1455_v30  ;;  %v3556_v3 = vld [vmem:[#allocation3 + $0x470] sm:$0xff]  ;;  %v1379_v12 = vunpack.c.l.bf16 %v3544_v55  ;;  %v1443_v30 = vunpack.c.l.bf16 %v3546_v2  ;;  %v1523_v17 = vunpack.c.l.bf16 %v3552_v23 }
  0xb9   :  { %5088 = vst [vmem:[#allocation46_spill] sm:$0xff] %v3528_v6  ;;  %v3564_v6 = vld [vmem:[#allocation3 + $0x6b0] sm:$0xff]  ;;  %1734 = vmatpush.msrb.mxu2 %v1531_v21  ;;  %1687 = vmatpush.msra.mxu3 %v1287_v24 }
  0xba   :  { %5089 = vst [vmem:[#allocation47_spill] sm:$0xff] %v3530_v25  ;;  %1698 = vmatpush.msrb.mxu0 %v1387_v48  ;;  %1718 = vmatpush.msrb.mxu1 %v1451_v56  ;;  %v3568_v25 = vld [vmem:[#allocation3 + $0x460] sm:$0xff]  ;;  %v1375_v48 = vunpack.c.l.bf16 %v3556_v3  ;;  %v1439_v56 = vunpack.c.l.bf16 %v3558_v4  ;;  %v3578_v2 = vld [vmem:[#allocation3 + $0x7d0] sm:$0xff] }
  0xbb   :  { %5090 = vst [vmem:[#allocation48_spill] sm:$0xff] %v3532_v34  ;;  %v3570_v34 = vld [vmem:[#allocation3 + $0x560] sm:$0xff]  ;;  %v3585_v21 = vld [vmem:[#allocation3 + $0x450] sm:$0xff]  ;;  %1735 = vmatpush.msrb.mxu2 %v1527_v44  ;;  %1688 = vmatpush.msra.mxu3 %v1283_v63  ;;  %v1591_v63 = vunpack.c.l.bf16 %v3578_v2 }
  0xbc   :  { %5091 = vst [vmem:[#allocation49_spill] sm:$0xff] %v3534_v38  ;;  %v3566_v38 = vld [vmem:[#allocation3 + $0x7e0] sm:$0xff]  ;;  %1699 = vmatpush.msrb.mxu0 %v1383_v0  ;;  %1719 = vmatpush.msrb.mxu1 %v1447_v62  ;;  %v3587_v24 = vld [vmem:[#allocation3 + $0x550] sm:$0xff]  ;;  %v1519_v0 = vunpack.c.l.bf16 %v3564_v6 }
  0xbd   :  { %5092 = vst [vmem:[#allocation50_spill] sm:$0xff] %v3540_v16  ;;  %v3576_v16 = vld [vmem:[#allocation3 + $0x6a0] sm:$0xff]  ;;  %v1595_v62 = vunpack.c.l.bf16 %v3566_v38  ;;  %1736 = vmatpush.msrb.mxu2 %v1523_v17  ;;  %1753 = vmatpush.msrb.mxu3 %v1599_v60  ;;  %v3610_v17 = vld [vmem:[#allocation3 + $0x430] sm:$0xff] }
  0xbe   :  { %5093 = vst [vmem:[#allocation51_spill] sm:$0xff] %v3542_v54  ;;  %v3583_v54 = vld [vmem:[%s4906_s2] sm:$0xff]  ;;  %1700 = vmatpush.msrb.mxu0 %v1379_v12  ;;  %1720 = vmatpush.msrb.mxu1 %v1443_v30  ;;  %v1515_v44 = vunpack.c.l.bf16 %v3576_v16  ;;  %v1367_v30 = vunpack.c.l.bf16 %v3585_v21  ;;  %v3612_v60 = vld [vmem:[#allocation3 + $0x530] sm:$0xff] }
  0xbf   :  { %5094 = vst [vmem:[#allocation52_spill] sm:$0xff] %v3544_v55  ;;  %v3597_v55 = vld [vmem:[#allocation3 + $0x440] sm:$0xff]  ;;  %v803_v12 = vperm.slane %v3583_v54, 0  ;;  %1737 = vmatpush.msrb.mxu2 %v1519_v0  ;;  %1754 = vmatpush.msrb.mxu3 %v1595_v62  ;;  %v804_v47 = vperm.slane %v3583_v54, 1  ;;  %v1359_v62 = vunpack.c.l.bf16 %v3610_v17 }
  0xc0   :  { %5096 = vst [vmem:[#allocation54_spill] sm:$0xff] %v3552_v23  ;;  %v1435_v23 = vunpack.c.l.bf16 %v3570_v34  ;;  %1701 = vmatpush.msrb.mxu0 %v1375_v48  ;;  %1721 = vmatpush.msrb.mxu1 %v1439_v56  ;;  %v491_v59 = vpop.f32.mrf.mxu1  ;;  %v1363_v56 = vunpack.c.l.bf16 %v3597_v55 }
  0xc1   :  { %5097 = vst [vmem:[#allocation55_spill] sm:$0xff] %v3554_v7  ;;  %v1371_v7 = vunpack.c.l.bf16 %v3568_v25  ;;  %1738 = vmatpush.msrb.mxu2 %v1515_v44  ;;  %1755 = vmatpush.msrb.mxu3 %v1591_v63  ;;  %v3633_v44 = vld [vmem:[#allocation3 + $0x510] sm:$0xff] }
  0xc2   :  { %5098 = vst [vmem:[#allocation56_spill] sm:$0xff] %v3556_v3  ;;  %v3595_v3 = vld [vmem:[#allocation3 + $0x7c0] sm:$0xff]  ;;  %1722 = vmatpush.msrb.mxu1 %v1435_v23 }
  0xc3   :  { %5099 = vst [vmem:[#allocation57_spill] sm:$0xff] %v3558_v4  ;;  %v3593_v4 = vld [vmem:[#allocation3 + $0x690] sm:$0xff]  ;;  %1702 = vmatpush.msrb.mxu0 %v1371_v7  ;;  %v531_v23 = vpop.f32.mrf.mxu3 }
  0xc4   :  { %5100 = vst [vmem:[#allocation58_spill] sm:$0xff] %v3564_v6  ;;  %v3606_v6 = vld [vmem:[#allocation3 + $0x680] sm:$0xff]  ;;  %v1511_v48 = vunpack.c.l.bf16 %v3593_v4 }
  0xc5   :  { %5101 = vst [vmem:[#allocation59_spill] sm:$0xff] %v3566_v38  ;;  %v1431_v38 = vunpack.c.l.bf16 %v3587_v24  ;;  %v1507_v0 = vunpack.c.l.bf16 %v3606_v6  ;;  %1703 = vmatpush.msrb.mxu0 %v1367_v30  ;;  %v3640_v30 = vld [vmem:[#allocation3 + $0x660] sm:$0xff] }
  0xc6   :  { %5102 = vst [vmem:[#allocation60_spill] sm:$0xff] %v3568_v25  ;;  %v471_v25 = vpop.f32.mrf.mxu0  ;;  %1739 = vmatpush.msrb.mxu2 %v1511_v48 }
  0xc7   :  { %5103 = vst [vmem:[#allocation61_spill] sm:$0xff] %v3570_v34  ;;  %v3608_v34 = vld [vmem:[#allocation3 + $0x7b0] sm:$0xff]  ;;  %1723 = vmatpush.msrb.mxu1 %v1431_v38  ;;  %1704 = vmatpush.msrb.mxu0 %v1363_v56  ;;  %v1419_v38 = vunpack.c.l.bf16 %v3623_v46 }
  0xc8   :  { %5104 = vst [vmem:[#allocation62_spill] sm:$0xff] %v3576_v16  ;;  %v492_v16 = vadd.f32 %v491_v59, %v471_v25  ;;  %v1583_v59 = vunpack.c.l.bf16 %v3608_v34  ;;  %v511_v25 = vpop.f32.mrf.mxu2  ;;  %1740 = vmatpush.msrb.mxu2 %v1507_v0  ;;  %v3658_v0 = vld [vmem:[#allocation3 + $0x780] sm:$0xff] }
  0xc9   :  { %5105 = vst [vmem:[#allocation63_spill] sm:$0xff] %v3578_v2  ;;  %v1587_v2 = vunpack.c.l.bf16 %v3595_v3  ;;  %1705 = vmatpush.msrb.mxu0 %v1359_v62 }
  0xca   :  { %5106 = vst [vmem:[#allocation64_spill] sm:$0xff] %v3585_v21  ;;  %v3618_v21 = vld [vmem:[#allocation3 + $0x670] sm:$0xff]  ;;  %v819_v7 = vadd.f32 %v803_v12, %v492_v16  ;;  %v1355_v12 = vunpack.c.l.bf16 %v3621_v58 }
  0xcb   :  { %5107 = vst [vmem:[#allocation65_spill] sm:$0xff] %v3587_v24  ;;  %v1427_v24 = vunpack.c.l.bf16 %v3599_v52  ;;  %1756 = vmatpush.msrb.mxu3 %v1587_v2  ;;  %v1503_v63 = vunpack.c.l.bf16 %v3618_v21 }
  0xcc   :  { %5108 = vst [vmem:[#allocation66_spill] sm:$0xff] %v3593_v4  ;;  %v3629_v4 = vld [vmem:[#allocation3 + $0x7a0] sm:$0xff]  ;;  %v3636_v16 = vmax.f32 %v819_v7, 0.0  ;;  %v3656_v7 = vld [vmem:[#allocation3 + $0x650] sm:$0xff]  ;;  %1706 = vmatpush.msrb.mxu0 %v1355_v12 }
  0xcd   :  { %5109 = vst [vmem:[#allocation67_spill] sm:$0xff] %v3595_v3  ;;  %v1423_v3 = vunpack.c.l.bf16 %v3612_v60  ;;  %1724 = vmatpush.msrb.mxu1 %v1427_v24  ;;  %1757 = vmatpush.msrb.mxu3 %v1583_v59  ;;  %v1579_v2 = vunpack.c.l.bf16 %v3629_v4  ;;  %v1415_v24 = vunpack.c.l.bf16 %v3633_v44  ;;  %v805_v59 = vperm.slane %v3583_v54, 2 }
  0xce   :  { %5110 = vst [vmem:[#allocation68_spill] sm:$0xff] %v3597_v55  ;;  %v3631_v55 = vld [vmem:[#allocation3 + $0x410] sm:$0xff]  ;;  %1629 = vmatmul.f32.vlgmr.msra.gmra.mxu0 %v3636_v16  ;;  %1741 = vmatpush.msrb.mxu2 %v1503_v63  ;;  %v1152_v63 = vunpack.c.h.bf16 %v3303_v8  ;;  %v1495_v12 = vunpack.c.l.bf16 %v3656_v7  ;;  %v1212_v8 = vunpack.c.h.bf16 %v3309_v11 }
  0xcf   :  { %5111 = vst [vmem:[#allocation69_spill] sm:$0xff] %v3599_v52  ;;  %v532_v52 = vadd.f32 %v531_v23, %v511_v25  ;;  %v3644_v23 = vld [vmem:[#allocation3 + $0x400] sm:$0xff]  ;;  %v1351_v48 = vunpack.c.l.bf16 %v3631_v55  ;;  %1725 = vmatpush.msrb.mxu1 %v1423_v3  ;;  %1758 = vmatpush.msrb.mxu3 %v1579_v2  ;;  %v3680_v11 = vld [vmem:[#allocation3 + $0x630] sm:$0xff] }
  0xd0   :  { %5112 = vst [vmem:[#allocation70_spill] sm:$0xff] %v3606_v6  ;;  %v3646_v6 = vld [vmem:[#allocation3 + $0x500] sm:$0xff]  ;;  %v1347_v3 = vunpack.c.l.bf16 %v3644_v23 }
  0xd1   :  { %5113 = vst [vmem:[#allocation71_spill] sm:$0xff] %v3608_v34  ;;  %v3642_v34 = vld [vmem:[#allocation3 + $0x790] sm:$0xff]  ;;  %v820_v25 = vadd.f32 %v804_v47, %v532_v52  ;;  %v1499_v47 = vunpack.c.l.bf16 %v3640_v30  ;;  %1726 = vmatpush.msrb.mxu1 %v1419_v38  ;;  %v1411_v62 = vunpack.c.l.bf16 %v3646_v6  ;;  %1707 = vmatpush.msrb.mxu0 %v1351_v48  ;;  %v1571_v38 = vunpack.c.l.bf16 %v3658_v0  ;;  %v611_v48 = vpop.f32.mrf.mxu3 }
  0xd2   :  { %5114 = vst [vmem:[#allocation72_spill] sm:$0xff] %v3618_v21  ;;  %v1575_v52 = vunpack.c.l.bf16 %v3642_v34 }
  0xd3   :  { %5115 = vst [vmem:[#allocation73_spill] sm:$0xff] %v3623_v46  ;;  %v3651_v56 = vmax.f32 %v820_v25, 0.0  ;;  %v551_v25 = vpop.f32.mrf.mxu0  ;;  %1727 = vmatpush.msrb.mxu1 %v1415_v24  ;;  %1742 = vmatpush.msrb.mxu2 %v1499_v47  ;;  %v3673_v46 = vld [vmem:[#allocation3 + $0x640] sm:$0xff] }
  0xd4   :  { %5116 = vst [vmem:[#allocation74_spill] sm:$0xff] %v3629_v4  ;;  %v571_v4 = vpop.f32.mrf.mxu1  ;;  %1759 = vmatpush.msrb.mxu3 %v1575_v52  ;;  %1708 = vmatpush.msrb.mxu0 %v1347_v3 }
  0xd5   :  { %5117 = vst [vmem:[#allocation75_spill] sm:$0xff] %v3633_v44  ;;  %1649 = vmatmul.f32.vlgmr.msra.gmra.mxu1 %v3651_v56  ;;  %v572_v21 = vadd.f32 %v571_v4, %v551_v25  ;;  %v1148_v44 = vunpack.c.h.bf16 %v3307_v10  ;;  %v591_v4 = vpop.f32.mrf.mxu2  ;;  %v1208_v10 = vunpack.c.h.bf16 %v3315_v15  ;;  %1743 = vmatpush.msrb.mxu2 %v1495_v12  ;;  %v1204_v15 = vunpack.c.h.bf16 %v3327_v20 }
  0xd6   :  { %5118 = vst [vmem:[#allocation76_spill] sm:$0xff] %v3640_v30  ;;  %v3666_v30 = vld [vmem:[#allocation3 + $0x770] sm:$0xff]  ;;  %1728 = vmatpush.msrb.mxu1 %v1411_v62  ;;  %v612_v25 = vadd.f32 %v611_v48, %v591_v4  ;;  %1773 = vmatpush.msra.mxu0 %v1152_v63  ;;  %v1140_v62 = vunpack.c.h.bf16 %v3325_v19  ;;  %v3694_v63 = vld [vmem:[#allocation3 + $0x740] sm:$0xff]  ;;  %v1196_v4 = vunpack.c.h.bf16 %v3346_v31  ;;  %v1128_v48 = vunpack.c.h.bf16 %v3353_v35 }
  0xd7   :  { %5119 = vst [vmem:[#allocation77_spill] sm:$0xff] %v3642_v34  ;;  %v1216_v34 = vunpack.c.h.bf16 %v3305_v9  ;;  %v3675_v9 = vld [vmem:[#allocation3 + $0x760] sm:$0xff]  ;;  %v821_v2 = vadd.f32 %v805_v59, %v572_v21  ;;  %v1567_v24 = vunpack.c.l.bf16 %v3666_v30  ;;  %1760 = vmatpush.msrb.mxu3 %v1571_v38  ;;  %v1491_v21 = vunpack.c.l.bf16 %v3673_v46  ;;  %v3686_v59 = vld [vmem:[#allocation3 + $0x750] sm:$0xff] }
  0xd8   :  { %5120 = vst [vmem:[#allocation78_spill] sm:$0xff] %v3646_v6  ;;  %v806_v6 = vperm.slane %v3583_v54, 3  ;;  %v1563_v52 = vunpack.c.l.bf16 %v3675_v9  ;;  %1774 = vmatpush.msra.mxu0 %v1148_v44  ;;  %v1559_v19 = vunpack.c.l.bf16 %v3686_v59  ;;  %v3700_v44 = vld [vmem:[#allocation3 + $0x610] sm:$0xff]  ;;  %v1200_v38 = vunpack.c.h.bf16 %v3337_v42 }
  0xd9   :  { %5121 = vst [vmem:[#allocation79_spill] sm:$0xff] %v3651_v56  ;;  %1793 = vmatpush.msra.mxu1 %v1216_v34  ;;  %v3682_v47 = vmax.f32 %v821_v2, 0.0  ;;  %1761 = vmatpush.msrb.mxu3 %v1567_v24  ;;  %v1487_v34 = vunpack.c.l.bf16 %v3680_v11  ;;  %v3709_v2 = vld [vmem:[#allocation3 + $0x600] sm:$0xff]  ;;  %v1479_v42 = vunpack.c.l.bf16 %v3700_v44  ;;  %v1124_v31 = vunpack.c.h.bf16 %v3365_v45 }
  0xda   :  { %5122 = vst [vmem:[#allocation80_spill] sm:$0xff] %v3658_v0  ;;  %v1144_v0 = vunpack.c.h.bf16 %v3313_v14  ;;  %v822_v3 = vadd.f32 %v806_v6, %v612_v25  ;;  %v3689_v14 = vld [vmem:[#allocation3 + $0x620] sm:$0xff]  ;;  %v1136_v6 = vunpack.c.h.bf16 %v3335_v26  ;;  %1744 = vmatpush.msrb.mxu2 %v1491_v21  ;;  %v1555_v26 = vunpack.c.l.bf16 %v3694_v63 }
  0xdb   :  { %5123 = vst [vmem:[#allocation81_spill] sm:$0xff] %v3682_v47  ;;  %1794 = vmatpush.msra.mxu1 %v1212_v8  ;;  %1669 = vmatmul.f32.vlgmr.msra.gmra.mxu2 %v3682_v47  ;;  %v1483_v20 = vunpack.c.l.bf16 %v3689_v14  ;;  %v3704_v8 = vld [vmem:[#allocation3 + $0x730] sm:$0xff]  ;;  %v3715_v25 = vld [vmem:[#allocation3 + $0x720] sm:$0xff]  ;;  %v1280_v21 = vunpack.c.h.bf16 %v3321_v18  ;;  %v1188_v35 = vunpack.c.h.bf16 %v3370_v49  ;;  %v1184_v45 = vunpack.c.h.bf16 %v3382_v57 }
  0xdc   :  { %v3696_v12 = vmax.f32 %v822_v3, 0.0  ;;  %1775 = vmatpush.msra.mxu0 %v1144_v0  ;;  %1762 = vmatpush.msrb.mxu3 %v1563_v52  ;;  %v1132_v0 = vunpack.c.h.bf16 %v3342_v28  ;;  %v1551_v24 = vunpack.c.l.bf16 %v3704_v8  ;;  %v1192_v28 = vunpack.c.h.bf16 %v3358_v39  ;;  %v3721_v52 = vld [vmem:[#allocation3 + $0x710] sm:$0xff] }
  0xdd   :  { %1795 = vmatpush.msra.mxu1 %v1208_v10  ;;  %1745 = vmatpush.msrb.mxu2 %v1487_v34  ;;  %v1475_v10 = vunpack.c.l.bf16 %v3709_v2  ;;  %v1547_v3 = vunpack.c.l.bf16 %v3715_v25  ;;  %v1120_v39 = vunpack.c.h.bf16 %v3377_v53  ;;  %v1543_v18 = vunpack.c.l.bf16 %v3721_v52 }
  0xde   :  { %1689 = vmatmul.f32.vlgmr.msra.gmra.mxu3 %v3696_v12  ;;  %1776 = vmatpush.msra.mxu0 %v1140_v62  ;;  %v1276_v62 = vunpack.c.h.bf16 %v3330_v22  ;;  %v1116_v49 = vunpack.c.h.bf16 %v3389_v61  ;;  %v1272_v34 = vunpack.c.h.bf16 %v3339_v43  ;;  %v1180_v53 = vunpack.c.h.bf16 %v3394_v1 }
  0xdf   :  { %1796 = vmatpush.msra.mxu1 %v1204_v15  ;;  %1763 = vmatpush.msrb.mxu3 %v1559_v19  ;;  %v3727_v15 = vld [vmem:[#allocation3 + $0x700] sm:$0xff]  ;;  %v1268_v57 = vunpack.c.h.bf16 %v3348_v32  ;;  %v1176_v19 = vunpack.c.h.bf16 %v3406_v13  ;;  %v1344_v61 = vunpack.c.h.bf16 %v3350_v33  ;;  %v1108_v43 = vunpack.c.h.bf16 %v3416_v27 }
  0xe0   :  { %1777 = vmatpush.msra.mxu0 %v1136_v6  ;;  %1746 = vmatpush.msrb.mxu2 %v1483_v20  ;;  %v1539_v22 = vunpack.c.l.bf16 %v3727_v15  ;;  %v1112_v6 = vunpack.c.h.bf16 %v3401_v5  ;;  %v1264_v1 = vunpack.c.h.bf16 %v3360_v40  ;;  %v1340_v5 = vunpack.c.h.bf16 %v3362_v41  ;;  %v5124_v40 = vld [vmem:[#allocation12_spill] sm:$0xff]  ;;  %v5126_v41 = vld [vmem:[#allocation13_spill] sm:$0xff] }
  0xe1   :  { %1797 = vmatpush.msra.mxu1 %v1200_v38  ;;  %1764 = vmatpush.msrb.mxu3 %v1555_v26  ;;  %v1172_v38 = vunpack.c.h.bf16 %v3418_v29  ;;  %v1104_v32 = vunpack.c.h.bf16 %v3422_v36  ;;  %v1260_v13 = vunpack.c.h.bf16 %v3372_v50  ;;  %v1168_v33 = vunpack.c.h.bf16 %v3424_v37  ;;  %v5125_v29 = vld [vmem:[#allocation6_spill] sm:$0xff]  ;;  %v5127_v36 = vld [vmem:[#allocation7_spill] sm:$0xff]  ;;  %v5129_v37 = vld [vmem:[#allocation8_spill] sm:$0xff] }
  0xe2   :  { %1778 = vmatpush.msra.mxu0 %v1132_v0  ;;  %1747 = vmatpush.msrb.mxu2 %v1479_v42  ;;  %v1336_v27 = vunpack.c.h.bf16 %v3374_v51  ;;  %v1100_v20 = vunpack.c.h.bf16 %v5124_v40  ;;  %v1256_v0 = vunpack.c.h.bf16 %v5125_v29  ;;  %v1164_v26 = vunpack.c.h.bf16 %v5126_v41  ;;  %v5128_v50 = vld [vmem:[#allocation14_spill] sm:$0xff]  ;;  %v5130_v51 = vld [vmem:[#allocation15_spill] sm:$0xff]  ;;  %v5142_v40 = vld [vmem:[#allocation24_spill] sm:$0xff] }
  0xe3   :  { %1798 = vmatpush.msra.mxu1 %v1196_v4  ;;  %1765 = vmatpush.msrb.mxu3 %v1551_v24  ;;  %v1332_v4 = vunpack.c.h.bf16 %v5127_v36  ;;  %v1096_v42 = vunpack.c.h.bf16 %v5128_v50  ;;  %v1160_v24 = vunpack.c.h.bf16 %v5130_v51  ;;  %v808_v29 = vperm.slane %v3583_v54, 5  ;;  %v5146_v51 = vld [vmem:[#allocation30_spill] sm:$0xff] }
  0xe4   :  { %1779 = vmatpush.msra.mxu0 %v1128_v48  ;;  %1748 = vmatpush.msrb.mxu2 %v1475_v10  ;;  %v1252_v48 = vunpack.c.h.bf16 %v5129_v37 }
  0xe5   :  { %1799 = vmatpush.msra.mxu1 %v1192_v28  ;;  %1766 = vmatpush.msrb.mxu3 %v1547_v3  ;;  %v5131_v28 = vld [vmem:[#allocation9_spill] sm:$0xff]  ;;  %v5133_v3 = vld [vmem:[#allocation10_spill] sm:$0xff] }
  0xe6   :  { %1780 = vmatpush.msra.mxu0 %v1124_v31  ;;  %1813 = vmatpush.msra.mxu2 %v1280_v21  ;;  %v1328_v10 = vunpack.c.h.bf16 %v5131_v28  ;;  %v807_v31 = vperm.slane %v3583_v54, 4  ;;  %v5132_v21 = vld [vmem:[#allocation20_spill] sm:$0xff]  ;;  %v5147_v28 = vld [vmem:[#allocation27_spill] sm:$0xff] }
  0xe7   :  { %1800 = vmatpush.msra.mxu1 %v1188_v35  ;;  %1767 = vmatpush.msrb.mxu3 %v1543_v18  ;;  %v1092_v35 = vunpack.c.h.bf16 %v5132_v21  ;;  %v5134_v18 = vld [vmem:[#allocation22_spill] sm:$0xff] }
  0xe8   :  { %1781 = vmatpush.msra.mxu0 %v1120_v39  ;;  %1814 = vmatpush.msra.mxu2 %v1276_v62  ;;  %v1248_v39 = vunpack.c.h.bf16 %v5133_v3  ;;  %v5149_v3 = vld [vmem:[#allocation34_spill] sm:$0xff] }
  0xe9   :  { %1801 = vmatpush.msra.mxu1 %v1184_v45  ;;  %1768 = vmatpush.msrb.mxu3 %v1539_v22  ;;  %v631_v62 = vpop.f32.mrf.mxu0  ;;  %v651_v45 = vpop.f32.mrf.mxu1 }
  0xea   :  { %1782 = vmatpush.msra.mxu0 %v1116_v49  ;;  %1815 = vmatpush.msra.mxu2 %v1272_v34  ;;  %v1156_v49 = vunpack.c.h.bf16 %v5134_v18  ;;  %v5135_v34 = vld [vmem:[#allocation11_spill] sm:$0xff]  ;;  %v652_v22 = vadd.f32 %v651_v45, %v631_v62 }
  0xeb   :  { %1802 = vmatpush.msra.mxu1 %v1180_v53  ;;  %1833 = vmatpush.msra.mxu3 %v1344_v61  ;;  %v1324_v53 = vunpack.c.h.bf16 %v5135_v34  ;;  %v5150_v62 = vld [vmem:[#allocation23_spill] sm:$0xff] }
  0xec   :  { %1783 = vmatpush.msra.mxu0 %v1112_v6  ;;  %1816 = vmatpush.msra.mxu2 %v1268_v57  ;;  %v5136_v6 = vld [vmem:[#allocation16_spill] sm:$0xff]  ;;  %v1472_v45 = vunpack.c.h.bf16 %v5150_v62  ;;  %v5170_v62 = vld [vmem:[#allocation49_spill] sm:$0xff] }
  0xed   :  { %1803 = vmatpush.msra.mxu1 %v1176_v19  ;;  %1834 = vmatpush.msra.mxu3 %v1340_v5  ;;  %v1244_v57 = vunpack.c.h.bf16 %v5136_v6  ;;  %v5137_v19 = vld [vmem:[#allocation17_spill] sm:$0xff] }
  0xee   :  { %1784 = vmatpush.msra.mxu0 %v1108_v43  ;;  %1817 = vmatpush.msra.mxu2 %v1264_v1  ;;  %v1320_v61 = vunpack.c.h.bf16 %v5137_v19  ;;  %v823_v43 = vadd.f32 %v807_v31, %v652_v22  ;;  %v5138_v1 = vld [vmem:[#allocation18_spill] sm:$0xff]  ;;  %v5139_v5 = vld [vmem:[#allocation21_spill] sm:$0xff]  ;;  %v5148_v31 = vld [vmem:[#allocation32_spill] sm:$0xff] }
  0xef   :  { %1804 = vmatpush.msra.mxu1 %v1172_v38  ;;  %1835 = vmatpush.msra.mxu3 %v1336_v27  ;;  %v1240_v38 = vunpack.c.h.bf16 %v5138_v1  ;;  %v1228_v21 = vunpack.c.h.bf16 %v5148_v31  ;;  %v5154_v6 = vld [vmem:[#allocation29_spill] sm:$0xff]  ;;  %v5155_v19 = vld [vmem:[#allocation36_spill] sm:$0xff] }
  0xf0   :  { %1785 = vmatpush.msra.mxu0 %v1104_v32  ;;  %1818 = vmatpush.msra.mxu2 %v1260_v13  ;;  %v1408_v32 = vunpack.c.h.bf16 %v5139_v5  ;;  %v5140_v13 = vld [vmem:[#allocation19_spill] sm:$0xff]  ;;  %v3765_v27 = vmax.f32 %v823_v43, 0.0  ;;  %v691_v50 = vpop.f32.mrf.mxu3  ;;  %v5156_v43 = vld [vmem:[#allocation40_spill] sm:$0xff] }
  0xf1   :  { %1805 = vmatpush.msra.mxu1 %v1168_v33  ;;  %1836 = vmatpush.msra.mxu3 %v1332_v4  ;;  %v1316_v33 = vunpack.c.h.bf16 %v5140_v13  ;;  %v671_v4 = vpop.f32.mrf.mxu2  ;;  %v1388_v1 = vunpack.c.h.bf16 %v5156_v43  ;;  %v5175_v43 = vld [vmem:[#allocation57_spill] sm:$0xff] }
  0xf2   :  { %1786 = vmatpush.msra.mxu0 %v1100_v20  ;;  %1819 = vmatpush.msra.mxu2 %v1256_v0  ;;  %5141 = vst [vmem:[#allocation12_spill] sm:$0xff] %v3765_v27  ;;  %v1236_v20 = vunpack.c.h.bf16 %v5142_v40  ;;  %v5143_v0 = vld [vmem:[#allocation28_spill] sm:$0xff] }
  0xf3   :  { %1806 = vmatpush.msra.mxu1 %v1164_v26  ;;  %1837 = vmatpush.msra.mxu3 %v1328_v10  ;;  %v1404_v41 = vunpack.c.h.bf16 %v5143_v0  ;;  %v5144_v26 = vld [vmem:[#allocation25_spill] sm:$0xff]  ;;  %v1308_v10 = vunpack.c.h.bf16 %v5147_v28  ;;  %v5161_v0 = vld [vmem:[#allocation42_spill] sm:$0xff] }
  0xf4   :  { %1787 = vmatpush.msra.mxu0 %v1096_v42  ;;  %1820 = vmatpush.msra.mxu2 %v1252_v48  ;;  %v1312_v36 = vunpack.c.h.bf16 %v5144_v26  ;;  %v5145_v42 = vld [vmem:[#allocation26_spill] sm:$0xff]  ;;  %v692_v48 = vadd.f32 %v691_v50, %v671_v4  ;;  %v5162_v26 = vld [vmem:[#allocation35_spill] sm:$0xff]  ;;  %v5163_v4 = vld [vmem:[#allocation52_spill] sm:$0xff] }
  0xf5   :  { %1807 = vmatpush.msra.mxu1 %v1160_v24  ;;  %1838 = vmatpush.msra.mxu3 %v1324_v53  ;;  %v1232_v37 = vunpack.c.h.bf16 %v5145_v42  ;;  %v1400_v24 = vunpack.c.h.bf16 %v5146_v51  ;;  %v5153_v53 = vld [vmem:[#allocation33_spill] sm:$0xff]  ;;  %v1380_v50 = vunpack.c.h.bf16 %v5163_v4  ;;  %v5164_v42 = vld [vmem:[#allocation39_spill] sm:$0xff]  ;;  %v1348_v4 = vunpack.c.h.bf16 %v3644_v23 }
  0xf6   :  { %1788 = vmatpush.msra.mxu0 %v1092_v35  ;;  %1821 = vmatpush.msra.mxu2 %v1248_v39  ;;  %v824_v35 = vadd.f32 %v808_v29, %v692_v48  ;;  %v1396_v39 = vunpack.c.h.bf16 %v5149_v3  ;;  %v1304_v22 = vunpack.c.h.bf16 %v5153_v53  ;;  %v5165_v48 = vld [vmem:[#allocation45_spill] sm:$0xff]  ;;  %v5169_v3 = vld [vmem:[#allocation60_spill] sm:$0xff] }
  0xf7   :  { %1808 = vmatpush.msra.mxu1 %v1156_v49  ;;  %1839 = vmatpush.msra.mxu3 %v1320_v61  ;;  %v5152_v49 = vld [vmem:[#allocation38_spill] sm:$0xff]  ;;  %v1224_v61 = vunpack.c.h.bf16 %v5155_v19  ;;  %v1292_v51 = vunpack.c.h.bf16 %v5165_v48  ;;  %v5172_v53 = vld [vmem:[#allocation64_spill] sm:$0xff]  ;;  %v5179_v48 = vld [vmem:[#allocation73_spill] sm:$0xff] }
  0xf8   :  { %1822 = vmatpush.msra.mxu2 %v1244_v57  ;;  %1709 = vmatmul.f32.vlgmr.msrb.gmra.mxu0 %v3765_v27  ;;  %v3778_v18 = vmax.f32 %v824_v35, 0.0  ;;  %v1392_v34 = vunpack.c.h.bf16 %v5152_v49  ;;  %v1468_v57 = vunpack.c.h.bf16 %v5154_v6  ;;  %v5171_v49 = vld [vmem:[#allocation51_spill] sm:$0xff]  ;;  %v5173_v6 = vld [vmem:[#allocation53_spill] sm:$0xff]  ;;  %v5174_v19 = vld [vmem:[#allocation68_spill] sm:$0xff] }
  0xf9   :  { %1853 = vmatpush.msrb.mxu0 %v1408_v32  ;;  %1840 = vmatpush.msra.mxu3 %v1316_v33  ;;  %v5158_v32 = vld [vmem:[#allocation31_spill] sm:$0xff]  ;;  %v5159_v33 = vld [vmem:[#allocation41_spill] sm:$0xff] }
  0xfa   :  { %1823 = vmatpush.msra.mxu2 %v1240_v38  ;;  %5151 = vst [vmem:[#allocation6_spill] sm:$0xff] %v3778_v18  ;;  %1729 = vmatmul.f32.vlgmr.msrb.gmra.mxu1 %v3778_v18  ;;  %v5157_v38 = vld [vmem:[#allocation37_spill] sm:$0xff]  ;;  %v1464_v13 = vunpack.c.h.bf16 %v5158_v32  ;;  %v1220_v40 = vunpack.c.h.bf16 %v5159_v33 }
  0xfb   :  { %1854 = vmatpush.msrb.mxu0 %v1404_v41  ;;  %1841 = vmatpush.msra.mxu3 %v1312_v36  ;;  %v1300_v5 = vunpack.c.h.bf16 %v5157_v38  ;;  %v1296_v41 = vunpack.c.h.bf16 %v5161_v0  ;;  %v1460_v36 = vunpack.c.h.bf16 %v5162_v26  ;;  %v1360_v38 = vunpack.c.h.bf16 %v3610_v17  ;;  %v5177_v33 = vld [vmem:[#allocation65_spill] sm:$0xff] }
  0xfc   :  { %1824 = vmatpush.msra.mxu2 %v1236_v20  ;;  %1873 = vmatpush.msrb.mxu1 %v1472_v45  ;;  %v5160_v20 = vld [vmem:[#allocation48_spill] sm:$0xff]  ;;  %v1448_v45 = vunpack.c.h.bf16 %v5170_v62  ;;  %v5178_v0 = vld [vmem:[#allocation69_spill] sm:$0xff] }
  0xfd   :  { %1855 = vmatpush.msrb.mxu0 %v1400_v24  ;;  %1842 = vmatpush.msra.mxu3 %v1308_v10  ;;  %v1384_v29 = vunpack.c.h.bf16 %v5160_v20  ;;  %v5166_v24 = vld [vmem:[#allocation56_spill] sm:$0xff]  ;;  %v5167_v10 = vld [vmem:[#allocation43_spill] sm:$0xff]  ;;  %v1352_v20 = vunpack.c.h.bf16 %v3631_v55  ;;  %v3814_v26 = vld [vmem:[#allocation3 + $0xf8] sm:$0xff] }
  0xfe   :  { %1825 = vmatpush.msra.mxu2 %v1232_v37  ;;  %1874 = vmatpush.msrb.mxu1 %v1468_v57  ;;  %v1456_v37 = vunpack.c.h.bf16 %v5164_v42  ;;  %v1376_v28 = vunpack.c.h.bf16 %v5166_v24  ;;  %v1452_v31 = vunpack.c.h.bf16 %v5167_v10  ;;  %v1444_v57 = vunpack.c.h.bf16 %v5173_v6  ;;  %v3818_v42 = vld [vmem:[#allocation3 + $0xe8] sm:$0xff]  ;;  %v3822_v24 = vld [vmem:[#allocation3 + $0xd8] sm:$0xff] }
  0xff   :  { %1856 = vmatpush.msrb.mxu0 %v1396_v39  ;;  %1843 = vmatpush.msra.mxu3 %v1304_v22  ;;  %v1372_v39 = vunpack.c.h.bf16 %v5169_v3  ;;  %v1368_v22 = vunpack.c.h.bf16 %v5172_v53  ;;  %v1153_v55 = vunpack.c.l.bf16 %v3814_v26  ;;  %v1149_v23 = vunpack.c.l.bf16 %v3818_v42  ;;  %v5182_v3 = vld [vmem:[#allocation46_spill] sm:$0xff] }
 0x100   :  { %1826 = vmatpush.msra.mxu2 %v1228_v21  ;;  %1789 = vmatmul.f32.vlgmr.msra.gmra.mxu0 %v3636_v16  ;;  %v5168_v21 = vld [vmem:[#allocation47_spill] sm:$0xff]  ;;  %v1145_v62 = vunpack.c.l.bf16 %v3822_v24 }
 0x101   :  { %1857 = vmatpush.msrb.mxu0 %v1392_v34  ;;  %1844 = vmatpush.msra.mxu3 %v1300_v5  ;;  %v1288_v35 = vunpack.c.h.bf16 %v5168_v21  ;;  %v1284_v34 = vunpack.c.h.bf16 %v5171_v49  ;;  %v5176_v5 = vld [vmem:[#allocation61_spill] sm:$0xff] }
 0x102   :  { %1827 = vmatpush.msra.mxu2 %v1224_v61  ;;  %1875 = vmatpush.msrb.mxu1 %v1464_v13  ;;  %v1364_v61 = vunpack.c.h.bf16 %v5174_v19  ;;  %v1436_v32 = vunpack.c.h.bf16 %v5176_v5  ;;  %v1356_v13 = vunpack.c.h.bf16 %v3621_v58  ;;  %v1424_v58 = vunpack.c.h.bf16 %v3612_v60  ;;  %v5181_v60 = vld [vmem:[#allocation75_spill] sm:$0xff]  ;;  %v3835_v49 = vld [vmem:[#allocation3 + $0x1f8] sm:$0xff]  ;;  %v5185_v5 = vld [vmem:[#allocation54_spill] sm:$0xff] }
 0x103   :  { %1858 = vmatpush.msrb.mxu0 %v1388_v1  ;;  %1845 = vmatpush.msra.mxu3 %v1296_v41  ;;  %v1440_v1 = vunpack.c.h.bf16 %v5175_v43  ;;  %v1428_v41 = vunpack.c.h.bf16 %v5178_v0  ;;  %v1416_v21 = vunpack.c.h.bf16 %v5181_v60  ;;  %v1217_v43 = vunpack.c.l.bf16 %v3835_v49  ;;  %v5188_v0 = vld [vmem:[#allocation58_spill] sm:$0xff] }
 0x104   :  { %1828 = vmatpush.msra.mxu2 %v1220_v40  ;;  %1876 = vmatpush.msrb.mxu1 %v1460_v36  ;;  %v1432_v40 = vunpack.c.h.bf16 %v5177_v33  ;;  %v5186_v33 = vld [vmem:[#allocation55_spill] sm:$0xff] }
 0x105   :  { %1859 = vmatpush.msrb.mxu0 %v1384_v29  ;;  %1809 = vmatmul.f32.vlgmr.msra.gmra.mxu1 %v3651_v56  ;;  %v809_v29 = vperm.slane %v3583_v54, 6 }
 0x106   :  { %1877 = vmatpush.msrb.mxu1 %v1456_v37  ;;  %1846 = vmatpush.msra.mxu3 %v1292_v51  ;;  %v1420_v51 = vunpack.c.h.bf16 %v5179_v48 }
 0x107   :  { %1860 = vmatpush.msrb.mxu0 %v1380_v50 }
 0x108   :  { %1878 = vmatpush.msrb.mxu1 %v1452_v31  ;;  %1847 = vmatpush.msra.mxu3 %v1288_v35  ;;  %v810_v35 = vperm.slane %v3583_v54, 7  ;;  %v5184_v54 = vld [vmem:[#allocation50_spill] sm:$0xff] }
 0x109   :  { %1861 = vmatpush.msrb.mxu0 %v1376_v28  ;;  %v5180_v28 = vld [vmem:[#allocation44_spill] sm:$0xff]  ;;  %v1528_v19 = vunpack.c.h.bf16 %v5184_v54  ;;  %v3878_v54 = vld [vmem:[#allocation3 + $0x78] sm:$0xff] }
 0x10a   :  { %1879 = vmatpush.msrb.mxu1 %v1448_v45  ;;  %1848 = vmatpush.msra.mxu3 %v1284_v34  ;;  %v1536_v10 = vunpack.c.h.bf16 %v5180_v28  ;;  %v3833_v45 = vld [vmem:[#allocation3 + $0xc8] sm:$0xff] }
 0x10b   :  { %1862 = vmatpush.msrb.mxu0 %v1372_v39  ;;  %v711_v17 = vpop.f32.mrf.mxu0  ;;  %v731_v36 = vpop.f32.mrf.mxu1  ;;  %v1532_v39 = vunpack.c.h.bf16 %v5182_v3  ;;  %v3864_v28 = vld [vmem:[#allocation3 + $0x1c8] sm:$0xff] }
 0x10c   :  { %1880 = vmatpush.msrb.mxu1 %v1444_v57  ;;  %v732_v50 = vadd.f32 %v731_v36, %v711_v17  ;;  %v3855_v36 = vld [vmem:[#allocation3 + $0x1d8] sm:$0xff] }
 0x10d   :  { %1863 = vmatpush.msrb.mxu0 %v1368_v22  ;;  %v5183_v22 = vld [vmem:[#allocation78_spill] sm:$0xff]  ;;  %v1209_v60 = vunpack.c.l.bf16 %v3855_v36 }
 0x10e   :  { %1881 = vmatpush.msrb.mxu1 %v1440_v1  ;;  %v825_v37 = vadd.f32 %v809_v29, %v732_v50  ;;  %v1412_v6 = vunpack.c.h.bf16 %v5183_v22  ;;  %v3842_v1 = vld [vmem:[#allocation3 + $0xb8] sm:$0xff] }
 0x10f   :  { %1864 = vmatpush.msrb.mxu0 %v1364_v61  ;;  %v1141_v61 = vunpack.c.l.bf16 %v3833_v45  ;;  %v1137_v17 = vunpack.c.l.bf16 %v3842_v1  ;;  %v3875_v22 = vld [vmem:[#allocation3 + $0x1b8] sm:$0xff] }
 0x110   :  { %1882 = vmatpush.msrb.mxu1 %v1436_v32  ;;  %v3826_v31 = vmax.f32 %v825_v37, 0.0  ;;  %v1524_v32 = vunpack.c.h.bf16 %v5185_v5  ;;  %v5190_v37 = vld [vmem:[#allocation62_spill] sm:$0xff]  ;;  %v1201_v5 = vunpack.c.l.bf16 %v3875_v22 }
 0x111   :  { %1865 = vmatpush.msrb.mxu0 %v1360_v38  ;;  %v1516_v48 = vunpack.c.h.bf16 %v5190_v37 }
 0x112   :  { %1883 = vmatpush.msrb.mxu1 %v1432_v40  ;;  %v751_v34 = vpop.f32.mrf.mxu2  ;;  %v771_v53 = vpop.f32.mrf.mxu3  ;;  %1749 = vmatmul.f32.vlgmr.msrb.gmra.mxu2 %v3826_v31  ;;  %v1600_v40 = vunpack.c.h.bf16 %v5186_v33 }
 0x113   :  { %1866 = vmatpush.msrb.mxu0 %v1356_v13  ;;  %v772_v57 = vadd.f32 %v771_v53, %v751_v34  ;;  %1893 = vmatpush.msrb.mxu2 %v1536_v10  ;;  %v3845_v13 = vld [vmem:[#allocation3 + $0x1e8] sm:$0xff]  ;;  %v1205_v53 = vunpack.c.l.bf16 %v3864_v28 }
 0x114   :  { %1884 = vmatpush.msrb.mxu1 %v1428_v41  ;;  %v1520_v41 = vunpack.c.h.bf16 %v5188_v0  ;;  %v5191_v10 = vld [vmem:[#allocation63_spill] sm:$0xff]  ;;  %v5197_v0 = vld [vmem:[#allocation74_spill] sm:$0xff] }
 0x115   :  { %1867 = vmatpush.msrb.mxu0 %v1352_v20  ;;  %v826_v38 = vadd.f32 %v810_v35, %v772_v57  ;;  %1894 = vmatpush.msrb.mxu2 %v1532_v39  ;;  %v3848_v20 = vld [vmem:[#allocation3 + $0xa8] sm:$0xff] }
 0x116   :  { %1885 = vmatpush.msrb.mxu1 %v1424_v58  ;;  %v1213_v58 = vunpack.c.l.bf16 %v3845_v13  ;;  %v3871_v39 = vld [vmem:[#allocation3 + $0x88] sm:$0xff] }
 0x117   :  { %1868 = vmatpush.msrb.mxu0 %v1348_v4  ;;  %v3850_v29 = vmax.f32 %v826_v38, 0.0  ;;  %1895 = vmatpush.msrb.mxu2 %v1528_v19  ;;  %v5189_v4 = vld [vmem:[#allocation59_spill] sm:$0xff] }
 0x118   :  { %1869 = vmatmul.f32.vlgmr.msrb.gmra.mxu0 %v3765_v27  ;;  %1886 = vmatpush.msrb.mxu1 %v1420_v51  ;;  %v1596_v50 = vunpack.c.h.bf16 %v5189_v4  ;;  %v1133_v51 = vunpack.c.l.bf16 %v3848_v20  ;;  %v5195_v19 = vld [vmem:[#allocation71_spill] sm:$0xff]  ;;  %v3890_v4 = vld [vmem:[#allocation3 + $0x198] sm:$0xff] }
 0x119   :  { %1933 = vmatpush.msra.mxu0 %v1153_v55  ;;  %5187 = vst [vmem:[#allocation13_spill] sm:$0xff] %v3850_v29  ;;  %v3859_v55 = vld [vmem:[#allocation3 + $0x98] sm:$0xff]  ;;  %1769 = vmatmul.f32.vlgmr.msrb.gmra.mxu3 %v3850_v29  ;;  %v3882_v38 = vld [vmem:[#allocation3 + $0x1a8] sm:$0xff] }
 0x11a   :  { %1887 = vmatpush.msrb.mxu1 %v1416_v21  ;;  %1896 = vmatpush.msrb.mxu2 %v1524_v32  ;;  %v5192_v21 = vld [vmem:[#allocation66_spill] sm:$0xff]  ;;  %v1129_v3 = vunpack.c.l.bf16 %v3859_v55  ;;  %v5196_v32 = vld [vmem:[#allocation72_spill] sm:$0xff] }
 0x11b   :  { %1934 = vmatpush.msra.mxu0 %v1149_v23  ;;  %1913 = vmatpush.msrb.mxu3 %v1600_v40  ;;  %v1592_v23 = vunpack.c.h.bf16 %v5191_v10  ;;  %v1512_v35 = vunpack.c.h.bf16 %v5192_v21  ;;  %v1504_v33 = vunpack.c.h.bf16 %v5196_v32  ;;  %v3886_v40 = vld [vmem:[#allocation3 + $0x68] sm:$0xff]  ;;  %v1193_v21 = vunpack.c.l.bf16 %v3890_v4 }
 0x11c   :  { %1888 = vmatpush.msrb.mxu1 %v1412_v6  ;;  %1829 = vmatmul.f32.vlgmr.msra.gmra.mxu2 %v3682_v47  ;;  %v5194_v6 = vld [vmem:[#allocation70_spill] sm:$0xff] }
 0x11d   :  { %1935 = vmatpush.msra.mxu0 %v1145_v62  ;;  %1889 = vmatmul.f32.vlgmr.msrb.gmra.mxu1 %v3778_v18  ;;  %v5193_v62 = vld [vmem:[#allocation67_spill] sm:$0xff]  ;;  %v1508_v57 = vunpack.c.h.bf16 %v5194_v6  ;;  %v3907_v6 = vld [vmem:[#allocation3 + $0x178] sm:$0xff] }
 0x11e   :  { %1953 = vmatpush.msra.mxu1 %v1217_v43  ;;  %1897 = vmatpush.msrb.mxu2 %v1520_v41  ;;  %v1588_v34 = vunpack.c.h.bf16 %v5193_v62  ;;  %v1125_v43 = vunpack.c.l.bf16 %v3871_v39  ;;  %v1580_v41 = vunpack.c.h.bf16 %v5197_v0  ;;  %v5200_v62 = vld [vmem:[#allocation80_spill] sm:$0xff]  ;;  %v1185_v32 = vunpack.c.l.bf16 %v3907_v6  ;;  %v3919_v0 = vld [vmem:[#allocation3 + $0x28] sm:$0xff] }
 0x11f   :  { %1936 = vmatpush.msra.mxu0 %v1141_v61  ;;  %1914 = vmatpush.msrb.mxu3 %v1596_v50  ;;  %v1584_v61 = vunpack.c.h.bf16 %v5195_v19  ;;  %v1197_v50 = vunpack.c.l.bf16 %v3882_v38  ;;  %v1492_v19 = vunpack.c.h.bf16 %v3673_v46  ;;  %v1564_v46 = vunpack.c.h.bf16 %v3675_v9 }
 0x120   :  { %1954 = vmatpush.msra.mxu1 %v1213_v58  ;;  %1898 = vmatpush.msrb.mxu2 %v1516_v48  ;;  %v5198_v58 = vld [vmem:[#allocation76_spill] sm:$0xff]  ;;  %v3895_v48 = vld [vmem:[#allocation3 + $0x58] sm:$0xff] }
 0x121   :  { %1937 = vmatpush.msra.mxu0 %v1137_v17  ;;  %1915 = vmatpush.msrb.mxu3 %v1592_v23  ;;  %v1121_v17 = vunpack.c.l.bf16 %v3878_v54  ;;  %v1500_v37 = vunpack.c.h.bf16 %v5198_v58  ;;  %v1117_v23 = vunpack.c.l.bf16 %v3886_v40  ;;  %v3927_v58 = vld [vmem:[#allocation3 + $0x18] sm:$0xff] }
 0x122   :  { %1955 = vmatpush.msra.mxu1 %v1209_v60  ;;  %1899 = vmatpush.msrb.mxu2 %v1512_v35  ;;  %v3899_v60 = vld [vmem:[#allocation3 + $0x188] sm:$0xff]  ;;  %v1496_v35 = vunpack.c.h.bf16 %v3656_v7  ;;  %v1568_v7 = vunpack.c.h.bf16 %v3666_v30 }
 0x123   :  { %1938 = vmatpush.msra.mxu0 %v1133_v51  ;;  %1916 = vmatpush.msrb.mxu3 %v1588_v34  ;;  %v5199_v51 = vld [vmem:[#allocation77_spill] sm:$0xff]  ;;  %v1572_v34 = vunpack.c.h.bf16 %v5200_v62  ;;  %v1476_v62 = vunpack.c.h.bf16 %v3709_v2 }
 0x124   :  { %1956 = vmatpush.msra.mxu1 %v1205_v53  ;;  %1849 = vmatmul.f32.vlgmr.msra.gmra.mxu3 %v3696_v12  ;;  %v1576_v10 = vunpack.c.h.bf16 %v5199_v51  ;;  %v1113_v53 = vunpack.c.l.bf16 %v3895_v48  ;;  %v3931_v51 = vld [vmem:[#allocation3 + $0x148] sm:$0xff] }
 0x125   :  { %1939 = vmatpush.msra.mxu0 %v1129_v3  ;;  %1900 = vmatpush.msrb.mxu2 %v1508_v57  ;;  %v3903_v3 = vld [vmem:[#allocation3 + $0x48] sm:$0xff]  ;;  %v1189_v57 = vunpack.c.l.bf16 %v3899_v60 }
 0x126   :  { %1917 = vmatpush.msrb.mxu3 %v1584_v61  ;;  %1957 = vmatpush.msra.mxu1 %v1201_v5  ;;  %v3911_v61 = vld [vmem:[#allocation3 + $0x38] sm:$0xff]  ;;  %v3915_v5 = vld [vmem:[#allocation3 + $0x168] sm:$0xff] }
 0x127   :  { %1940 = vmatpush.msra.mxu0 %v1125_v43  ;;  %1901 = vmatpush.msrb.mxu2 %v1504_v33  ;;  %v1109_v43 = vunpack.c.l.bf16 %v3903_v3  ;;  %v1488_v33 = vunpack.c.h.bf16 %v3680_v11  ;;  %v1181_v30 = vunpack.c.l.bf16 %v3915_v5  ;;  %v1560_v11 = vunpack.c.h.bf16 %v3686_v59 }
 0x128   :  { %1918 = vmatpush.msrb.mxu3 %v1580_v41  ;;  %1958 = vmatpush.msra.mxu1 %v1197_v50  ;;  %v1105_v41 = vunpack.c.l.bf16 %v3911_v61  ;;  %v1484_v50 = vunpack.c.h.bf16 %v3689_v14  ;;  %v1556_v14 = vunpack.c.h.bf16 %v3694_v63  ;;  %v1173_v59 = vunpack.c.l.bf16 %v3931_v51 }
 0x129   :  { %1941 = vmatpush.msra.mxu0 %v1121_v17  ;;  %1902 = vmatpush.msrb.mxu2 %v1500_v37  ;;  %v3923_v17 = vld [vmem:[#allocation3 + $0x158] sm:$0xff]  ;;  %v1101_v37 = vunpack.c.l.bf16 %v3919_v0 }
 0x12a   :  { %1919 = vmatpush.msrb.mxu3 %v1576_v10  ;;  %1959 = vmatpush.msra.mxu1 %v1193_v21  ;;  %v1177_v9 = vunpack.c.l.bf16 %v3923_v17  ;;  %v1480_v10 = vunpack.c.h.bf16 %v3700_v44  ;;  %v1097_v21 = vunpack.c.l.bf16 %v3927_v58  ;;  %v1552_v44 = vunpack.c.h.bf16 %v3704_v8 }
 0x12b   :  { %1942 = vmatpush.msra.mxu0 %v1117_v23  ;;  %1903 = vmatpush.msrb.mxu2 %v1496_v35  ;;  %v3935_v23 = vld [vmem:[#allocation3 + $0x8] sm:$0xff]  ;;  %v3939_v35 = vld [vmem:[#allocation3 + $0x138] sm:$0xff] }
 0x12c   :  { %1920 = vmatpush.msrb.mxu3 %v1572_v34  ;;  %1960 = vmatpush.msra.mxu1 %v1189_v57  ;;  %v3943_v34 = vld [vmem:[#allocation3 + $0x2f8] sm:$0xff]  ;;  %v1169_v63 = vunpack.c.l.bf16 %v3939_v35 }
 0x12d   :  { %1943 = vmatpush.msra.mxu0 %v1113_v53  ;;  %1904 = vmatpush.msrb.mxu2 %v1492_v19  ;;  %v1093_v53 = vunpack.c.l.bf16 %v3935_v23  ;;  %v3947_v57 = vld [vmem:[#allocation3 + $0x4f8] sm:$0xff]  ;;  %v3950_v19 = vld [vmem:[#allocation3 + $0x128] sm:$0xff]  ;;  %v1281_v2 = vunpack.c.l.bf16 %v3943_v34 }
 0x12e   :  { %1921 = vmatpush.msrb.mxu3 %v1568_v7  ;;  %1961 = vmatpush.msra.mxu1 %v1185_v32  ;;  %v3952_v7 = vld [vmem:[#allocation3 + $0x2e8] sm:$0xff]  ;;  %v1409_v8 = vunpack.c.l.bf16 %v3947_v57  ;;  %v1548_v32 = vunpack.c.h.bf16 %v3715_v25 }
 0x12f   :  { %1944 = vmatpush.msra.mxu0 %v1109_v43  ;;  %1905 = vmatpush.msrb.mxu2 %v1488_v33  ;;  %v3955_v43 = vld [vmem:[#allocation3 + $0x4e8] sm:$0xff]  ;;  %v3959_v33 = vld [vmem:[#allocation3 + $0x118] sm:$0xff] }
 0x130   :  { %1922 = vmatpush.msrb.mxu3 %v1564_v46  ;;  %1962 = vmatpush.msra.mxu1 %v1181_v30  ;;  %v3961_v46 = vld [vmem:[#allocation3 + $0x2d8] sm:$0xff]  ;;  %v1277_v30 = vunpack.c.l.bf16 %v3952_v7  ;;  %v3970_v25 = vld [vmem:[#allocation3 + $0x108] sm:$0xff] }
 0x131   :  { %1945 = vmatpush.msra.mxu0 %v1105_v41  ;;  %1906 = vmatpush.msrb.mxu2 %v1484_v50  ;;  %v1165_v41 = vunpack.c.l.bf16 %v3950_v19  ;;  %v3965_v50 = vld [vmem:[#allocation3 + $0x4d8] sm:$0xff]  ;;  %5202 = vst [vmem:[#allocation14_spill] sm:$0xff] %v3970_v25 }
 0x132   :  { %1923 = vmatpush.msrb.mxu3 %v1560_v11  ;;  %1963 = vmatpush.msra.mxu1 %v1177_v9  ;;  %5201 = vst [vmem:[#allocation7_spill] sm:$0xff] %v3965_v50  ;;  %v1405_v11 = vunpack.c.l.bf16 %v3955_v43  ;;  %v1161_v9 = vunpack.c.l.bf16 %v3959_v33 }
 0x133   :  { %1946 = vmatpush.msra.mxu0 %v1101_v37  ;;  %1907 = vmatpush.msrb.mxu2 %v1480_v10  ;;  %v1544_v37 = vunpack.c.h.bf16 %v3721_v52  ;;  %v1273_v10 = vunpack.c.l.bf16 %v3961_v46  ;;  %v3981_v52 = vld [vmem:[#allocation3 + $0x4c8] sm:$0xff] }
 0x134   :  { %1924 = vmatpush.msrb.mxu3 %v1556_v14  ;;  %1964 = vmatpush.msra.mxu1 %v1173_v59  ;;  %v3975_v14 = vld [vmem:[#allocation3 + $0x2c8] sm:$0xff]  ;;  %v1540_v59 = vunpack.c.h.bf16 %v3727_v15  ;;  %5205 = vst [vmem:[#allocation9_spill] sm:$0xff] %v3981_v52 }
 0x135   :  { %1947 = vmatpush.msra.mxu0 %v1097_v21  ;;  %1908 = vmatpush.msrb.mxu2 %v1476_v62  ;;  %5203 = vst [vmem:[#allocation8_spill] sm:$0xff] %v3975_v14  ;;  %v1401_v21 = vunpack.c.l.bf16 %v3965_v50  ;;  %v3979_v62 = vld [vmem:[#allocation3 + $0x3f8] sm:$0xff]  ;;  %v4003_v50 = vld [vmem:[#allocation3 + $0x4a8] sm:$0xff] }
 0x136   :  { %1925 = vmatpush.msrb.mxu3 %v1552_v44  ;;  %1965 = vmatpush.msra.mxu1 %v1169_v63  ;;  %5204 = vst [vmem:[#allocation15_spill] sm:$0xff] %v3979_v62  ;;  %v1157_v44 = vunpack.c.l.bf16 %v3970_v25  ;;  %v3986_v63 = vld [vmem:[#allocation3 + $0x2b8] sm:$0xff]  ;;  %v1345_v15 = vunpack.c.l.bf16 %v3979_v62  ;;  %v3997_v25 = vld [vmem:[#allocation3 + $0x2a8] sm:$0xff] }
 0x137   :  { %1948 = vmatpush.msra.mxu0 %v1093_v53  ;;  %1909 = vmatmul.f32.vlgmr.msrb.gmra.mxu2 %v3826_v31  ;;  %v3984_v53 = vld [vmem:[#allocation3 + $0x5f8] sm:$0xff]  ;;  %5207 = vst [vmem:[#allocation10_spill] sm:$0xff] %v3986_v63 }
 0x138   :  { %1949 = vmatmul.f32.vlgmr.msra.gmra.mxu0 %v3636_v16  ;;  %1973 = vmatpush.msra.mxu2 %v1281_v2  ;;  %5206 = vst [vmem:[#allocation20_spill] sm:$0xff] %v3984_v53  ;;  %v1269_v2 = vunpack.c.l.bf16 %v3975_v14  ;;  %v4001_v14 = vld [vmem:[#allocation3 + $0x3d8] sm:$0xff] }
 0x139   :  { %2013 = vmatpush.msrb.mxu0 %v1409_v8  ;;  %1926 = vmatpush.msrb.mxu3 %v1548_v32  ;;  %v3989_v8 = vld [vmem:[#allocation3 + $0x3e8] sm:$0xff]  ;;  %v3991_v32 = vld [vmem:[#allocation3 + $0x4b8] sm:$0xff]  ;;  %5211 = vst [vmem:[#allocation17_spill] sm:$0xff] %v3997_v25 }
 0x13a   :  { %1966 = vmatpush.msra.mxu1 %v1165_v41  ;;  %1974 = vmatpush.msra.mxu2 %v1277_v30  ;;  %5208 = vst [vmem:[#allocation22_spill] sm:$0xff] %v3989_v8  ;;  %v1397_v41 = vunpack.c.l.bf16 %v3981_v52  ;;  %v3995_v30 = vld [vmem:[#allocation3 + $0x5e8] sm:$0xff]  ;;  %v4008_v52 = vld [vmem:[#allocation3 + $0x5d8] sm:$0xff] }
 0x13b   :  { %2014 = vmatpush.msrb.mxu0 %v1405_v11  ;;  %1927 = vmatpush.msrb.mxu3 %v1544_v37  ;;  %5209 = vst [vmem:[#allocation11_spill] sm:$0xff] %v3991_v32  ;;  %v1473_v11 = vunpack.c.l.bf16 %v3984_v53  ;;  %v1265_v37 = vunpack.c.l.bf16 %v3986_v63  ;;  %v4010_v62 = vld [vmem:[#allocation3 + $0x298] sm:$0xff]  ;;  %v4015_v63 = vld [vmem:[#allocation3 + $0x3c8] sm:$0xff] }
 0x13c   :  { %1967 = vmatpush.msra.mxu1 %v1161_v9  ;;  %1975 = vmatpush.msra.mxu2 %v1273_v10  ;;  %5210 = vst [vmem:[#allocation16_spill] sm:$0xff] %v3995_v30  ;;  %v1341_v9 = vunpack.c.l.bf16 %v3989_v8  ;;  %v1393_v10 = vunpack.c.l.bf16 %v3991_v32  ;;  %v1337_v8 = vunpack.c.l.bf16 %v4001_v14  ;;  %v1389_v32 = vunpack.c.l.bf16 %v4003_v50  ;;  %v4023_v53 = vld [vmem:[#allocation3 + $0x288] sm:$0xff] }
 0x13d   :  { %2015 = vmatpush.msrb.mxu0 %v1401_v21  ;;  %1928 = vmatpush.msrb.mxu3 %v1540_v59  ;;  %5212 = vst [vmem:[#allocation18_spill] sm:$0xff] %v4001_v14  ;;  %v1469_v21 = vunpack.c.l.bf16 %v3995_v30  ;;  %v1261_v59 = vunpack.c.l.bf16 %v3997_v25  ;;  %v1257_v25 = vunpack.c.l.bf16 %v4010_v62  ;;  %v4027_v30 = vld [vmem:[#allocation3 + $0x3b8] sm:$0xff] }
 0x13e   :  { %5213 = vst [vmem:[#allocation21_spill] sm:$0xff] %v4003_v50  ;;  %1968 = vmatpush.msra.mxu1 %v1157_v44  ;;  %1929 = vmatmul.f32.vlgmr.msrb.gmra.mxu3 %v3850_v29  ;;  %v4017_v44 = vld [vmem:[#allocation3 + $0x498] sm:$0xff]  ;;  %v4021_v29 = vld [vmem:[#allocation3 + $0x5c8] sm:$0xff] }
 0x13f   :  { %5214 = vst [vmem:[#allocation19_spill] sm:$0xff] %v4008_v52  ;;  %1969 = vmatmul.f32.vlgmr.msra.gmra.mxu1 %v3651_v56  ;;  %1976 = vmatpush.msra.mxu2 %v1269_v2  ;;  %v1465_v2 = vunpack.c.l.bf16 %v4008_v52  ;;  %v4029_v56 = vld [vmem:[#allocation3 + $0x488] sm:$0xff]  ;;  %v4033_v50 = vld [vmem:[#allocation3 + $0x5b8] sm:$0xff] }
 0x140   :  { %5215 = vst [vmem:[#allocation24_spill] sm:$0xff] %v4010_v62  ;;  %1993 = vmatpush.msra.mxu3 %v1345_v15  ;;  %2016 = vmatpush.msrb.mxu0 %v1397_v41  ;;  %v1333_v15 = vunpack.c.l.bf16 %v4015_v63  ;;  %v1385_v41 = vunpack.c.l.bf16 %v4017_v44  ;;  %v4035_v14 = vld [vmem:[#allocation3 + $0x278] sm:$0xff]  ;;  %v4039_v62 = vld [vmem:[#allocation3 + $0x3a8] sm:$0xff] }
 0x141   :  { %5216 = vst [vmem:[#allocation28_spill] sm:$0xff] %v4015_v63  ;;  %2033 = vmatpush.msrb.mxu1 %v1473_v11  ;;  %1977 = vmatpush.msra.mxu2 %v1265_v37  ;;  %v1461_v11 = vunpack.c.l.bf16 %v4021_v29  ;;  %v1253_v37 = vunpack.c.l.bf16 %v4023_v53  ;;  %v4041_v52 = vld [vmem:[#allocation3 + $0x478] sm:$0xff]  ;;  %v4047_v63 = vld [vmem:[#allocation3 + $0x268] sm:$0xff] }
 0x142   :  { %5217 = vst [vmem:[#allocation25_spill] sm:$0xff] %v4017_v44  ;;  %1994 = vmatpush.msra.mxu3 %v1341_v9  ;;  %2017 = vmatpush.msrb.mxu0 %v1393_v10  ;;  %v1329_v9 = vunpack.c.l.bf16 %v4027_v30  ;;  %v1381_v10 = vunpack.c.l.bf16 %v4029_v56  ;;  %v4045_v44 = vld [vmem:[#allocation3 + $0x5a8] sm:$0xff] }
 0x143   :  { %5218 = vst [vmem:[#allocation26_spill] sm:$0xff] %v4021_v29  ;;  %2034 = vmatpush.msrb.mxu1 %v1469_v21  ;;  %1978 = vmatpush.msra.mxu2 %v1261_v59  ;;  %v1457_v21 = vunpack.c.l.bf16 %v4033_v50  ;;  %v1249_v59 = vunpack.c.l.bf16 %v4035_v14  ;;  %v4053_v29 = vld [vmem:[#allocation3 + $0x468] sm:$0xff] }
 0x144   :  { %5219 = vst [vmem:[#allocation30_spill] sm:$0xff] %v4023_v53  ;;  %1995 = vmatpush.msra.mxu3 %v1337_v8  ;;  %2018 = vmatpush.msrb.mxu0 %v1389_v32  ;;  %v4051_v53 = vld [vmem:[#allocation3 + $0x398] sm:$0xff]  ;;  %v1325_v8 = vunpack.c.l.bf16 %v4039_v62  ;;  %v1377_v32 = vunpack.c.l.bf16 %v4041_v52 }
 0x145   :  { %5220 = vst [vmem:[#allocation27_spill] sm:$0xff] %v4027_v30  ;;  %2035 = vmatpush.msrb.mxu1 %v1465_v2  ;;  %1979 = vmatpush.msra.mxu2 %v1257_v25  ;;  %v4059_v30 = vld [vmem:[#allocation3 + $0x258] sm:$0xff]  ;;  %v1453_v25 = vunpack.c.l.bf16 %v4045_v44  ;;  %v1245_v2 = vunpack.c.l.bf16 %v4047_v63 }
 0x146   :  { %5221 = vst [vmem:[#allocation32_spill] sm:$0xff] %v4029_v56  ;;  %1996 = vmatpush.msra.mxu3 %v1333_v15  ;;  %2019 = vmatpush.msrb.mxu0 %v1385_v41  ;;  %v4057_v56 = vld [vmem:[#allocation3 + $0x598] sm:$0xff]  ;;  %v1321_v15 = vunpack.c.l.bf16 %v4051_v53  ;;  %v1373_v41 = vunpack.c.l.bf16 %v4053_v29 }
 0x147   :  { %5222 = vst [vmem:[#allocation34_spill] sm:$0xff] %v4033_v50  ;;  %2036 = vmatpush.msrb.mxu1 %v1461_v11  ;;  %1980 = vmatpush.msra.mxu2 %v1253_v37  ;;  %v4065_v50 = vld [vmem:[#allocation3 + $0x458] sm:$0xff]  ;;  %v1449_v11 = vunpack.c.l.bf16 %v4057_v56  ;;  %v1241_v37 = vunpack.c.l.bf16 %v4059_v30 }
 0x148   :  { %5223 = vst [vmem:[#allocation23_spill] sm:$0xff] %v4035_v14  ;;  %v4063_v14 = vld [vmem:[#allocation3 + $0x388] sm:$0xff]  ;;  %1997 = vmatpush.msra.mxu3 %v1329_v9  ;;  %2020 = vmatpush.msrb.mxu0 %v1381_v10  ;;  %v1369_v10 = vunpack.c.l.bf16 %v4065_v50 }
 0x149   :  { %5224 = vst [vmem:[#allocation38_spill] sm:$0xff] %v4039_v62  ;;  %v4071_v62 = vld [vmem:[#allocation3 + $0x248] sm:$0xff]  ;;  %2037 = vmatpush.msrb.mxu1 %v1457_v21  ;;  %1981 = vmatpush.msra.mxu2 %v1249_v59  ;;  %v1317_v9 = vunpack.c.l.bf16 %v4063_v14 }
 0x14a   :  { %5225 = vst [vmem:[#allocation33_spill] sm:$0xff] %v4041_v52  ;;  %v4069_v52 = vld [vmem:[#allocation3 + $0x588] sm:$0xff]  ;;  %1998 = vmatpush.msra.mxu3 %v1325_v8  ;;  %2021 = vmatpush.msrb.mxu0 %v1377_v32  ;;  %v1237_v59 = vunpack.c.l.bf16 %v4071_v62 }
 0x14b   :  { %5226 = vst [vmem:[#allocation29_spill] sm:$0xff] %v4045_v44  ;;  %v4077_v44 = vld [vmem:[#allocation3 + $0x448] sm:$0xff]  ;;  %2038 = vmatpush.msrb.mxu1 %v1453_v25  ;;  %1982 = vmatpush.msra.mxu2 %v1245_v2  ;;  %v1445_v21 = vunpack.c.l.bf16 %v4069_v52 }
 0x14c   :  { %5227 = vst [vmem:[#allocation36_spill] sm:$0xff] %v4047_v63  ;;  %v4075_v63 = vld [vmem:[#allocation3 + $0x378] sm:$0xff]  ;;  %1999 = vmatpush.msra.mxu3 %v1321_v15  ;;  %2022 = vmatpush.msrb.mxu0 %v1373_v41  ;;  %v1365_v32 = vunpack.c.l.bf16 %v4077_v44 }
 0x14d   :  { %5228 = vst [vmem:[#allocation40_spill] sm:$0xff] %v4051_v53  ;;  %v4083_v53 = vld [vmem:[#allocation3 + $0x238] sm:$0xff]  ;;  %v1313_v8 = vunpack.c.l.bf16 %v4075_v63  ;;  %2039 = vmatpush.msrb.mxu1 %v1449_v11  ;;  %1983 = vmatpush.msra.mxu2 %v1241_v37 }
 0x14e   :  { %5229 = vst [vmem:[#allocation37_spill] sm:$0xff] %v4053_v29  ;;  %v4081_v29 = vld [vmem:[#allocation3 + $0x578] sm:$0xff]  ;;  %v1233_v2 = vunpack.c.l.bf16 %v4083_v53  ;;  %2000 = vmatpush.msra.mxu3 %v1317_v9  ;;  %2023 = vmatpush.msrb.mxu0 %v1369_v10 }
 0x14f   :  { %5230 = vst [vmem:[#allocation31_spill] sm:$0xff] %v4057_v56  ;;  %v4089_v56 = vld [vmem:[#allocation3 + $0x438] sm:$0xff]  ;;  %v1441_v25 = vunpack.c.l.bf16 %v4081_v29  ;;  %2040 = vmatpush.msrb.mxu1 %v1445_v21  ;;  %1984 = vmatpush.msra.mxu2 %v1237_v59 }
 0x150   :  { %5231 = vst [vmem:[#allocation41_spill] sm:$0xff] %v4059_v30  ;;  %v4087_v30 = vld [vmem:[#allocation3 + $0x368] sm:$0xff]  ;;  %v1361_v41 = vunpack.c.l.bf16 %v4089_v56  ;;  %2001 = vmatpush.msra.mxu3 %v1313_v8  ;;  %2024 = vmatpush.msrb.mxu0 %v1365_v32 }
 0x151   :  { %5232 = vst [vmem:[#allocation48_spill] sm:$0xff] %v4063_v14  ;;  %v4095_v14 = vld [vmem:[#allocation3 + $0x228] sm:$0xff]  ;;  %v1309_v15 = vunpack.c.l.bf16 %v4087_v30  ;;  %2041 = vmatpush.msrb.mxu1 %v1441_v25  ;;  %1985 = vmatpush.msra.mxu2 %v1233_v2 }
 0x152   :  { %5233 = vst [vmem:[#allocation42_spill] sm:$0xff] %v4065_v50  ;;  %v4093_v50 = vld [vmem:[#allocation3 + $0x568] sm:$0xff]  ;;  %v1229_v37 = vunpack.c.l.bf16 %v4095_v14  ;;  %2025 = vmatpush.msrb.mxu0 %v1361_v41 }
 0x153   :  { %5234 = vst [vmem:[#allocation35_spill] sm:$0xff] %v4069_v52  ;;  %v4101_v52 = vld [vmem:[#allocation3 + $0x428] sm:$0xff]  ;;  %v1437_v11 = vunpack.c.l.bf16 %v4093_v50  ;;  %2002 = vmatpush.msra.mxu3 %v1309_v15 }
 0x154   :  { %5235 = vst [vmem:[#allocation52_spill] sm:$0xff] %v4071_v62  ;;  %v4099_v62 = vld [vmem:[#allocation3 + $0x358] sm:$0xff]  ;;  %v1357_v10 = vunpack.c.l.bf16 %v4101_v52  ;;  %1986 = vmatpush.msra.mxu2 %v1229_v37  ;;  %v4137_v41 = vld [vmem:[#allocation3 + $0x328] sm:$0xff] }
 0x155   :  { %5236 = vst [vmem:[#allocation39_spill] sm:$0xff] %v4075_v63  ;;  %v4107_v63 = vld [vmem:[#allocation3 + $0x218] sm:$0xff]  ;;  %v1305_v9 = vunpack.c.l.bf16 %v4099_v62  ;;  %2042 = vmatpush.msrb.mxu1 %v1437_v11  ;;  %v4140_v11 = vld [vmem:[#allocation3 + $0x528] sm:$0xff] }
 0x156   :  { %5237 = vst [vmem:[#allocation45_spill] sm:$0xff] %v4077_v44  ;;  %v4105_v44 = vld [vmem:[#allocation3 + $0x558] sm:$0xff]  ;;  %v1225_v59 = vunpack.c.l.bf16 %v4107_v63  ;;  %2026 = vmatpush.msrb.mxu0 %v1357_v10  ;;  %v4142_v37 = vld [vmem:[#allocation3 + $0x6e8] sm:$0xff]  ;;  %v1154_v10 = vunpack.c.h.bf16 %v3814_v26 }
 0x157   :  { %5238 = vst [vmem:[#allocation56_spill] sm:$0xff] %v4081_v29  ;;  %v4113_v29 = vld [vmem:[#allocation3 + $0x418] sm:$0xff]  ;;  %v1433_v21 = vunpack.c.l.bf16 %v4105_v44  ;;  %2003 = vmatpush.msra.mxu3 %v1305_v9 }
 0x158   :  { %5239 = vst [vmem:[#allocation43_spill] sm:$0xff] %v4083_v53  ;;  %v4111_v53 = vld [vmem:[#allocation3 + $0x348] sm:$0xff]  ;;  %v1353_v32 = vunpack.c.l.bf16 %v4113_v29  ;;  %1987 = vmatpush.msra.mxu2 %v1225_v59  ;;  %v4145_v9 = vld [vmem:[#allocation3 + $0x318] sm:$0xff] }
 0x159   :  { %5240 = vst [vmem:[#allocation47_spill] sm:$0xff] %v4087_v30  ;;  %v4119_v30 = vld [vmem:[#allocation3 + $0x208] sm:$0xff]  ;;  %v1301_v8 = vunpack.c.l.bf16 %v4111_v53  ;;  %2043 = vmatpush.msrb.mxu1 %v1433_v21  ;;  %v4149_v21 = vld [vmem:[#allocation3 + $0x518] sm:$0xff]  ;;  %v1289_v26 = vunpack.c.l.bf16 %v4145_v9 }
 0x15a   :  { %5241 = vst [vmem:[#allocation60_spill] sm:$0xff] %v4089_v56  ;;  %v4117_v56 = vld [vmem:[#allocation3 + $0x548] sm:$0xff]  ;;  %v1221_v2 = vunpack.c.l.bf16 %v4119_v30  ;;  %2027 = vmatpush.msrb.mxu0 %v1353_v32  ;;  %v4151_v59 = vld [vmem:[#allocation3 + $0x6d8] sm:$0xff] }
 0x15b   :  { %5242 = vst [vmem:[#allocation49_spill] sm:$0xff] %v4093_v50  ;;  %v4125_v50 = vld [vmem:[#allocation3 + $0x408] sm:$0xff]  ;;  %v1429_v25 = vunpack.c.l.bf16 %v4117_v56  ;;  %2004 = vmatpush.msra.mxu3 %v1301_v8  ;;  %v1533_v8 = vunpack.c.l.bf16 %v4142_v37 }
 0x15c   :  { %5243 = vst [vmem:[#allocation51_spill] sm:$0xff] %v4095_v14  ;;  %v4123_v14 = vld [vmem:[#allocation3 + $0x338] sm:$0xff]  ;;  %v1349_v15 = vunpack.c.l.bf16 %v4125_v50  ;;  %1988 = vmatpush.msra.mxu2 %v1221_v2  ;;  %v4155_v32 = vld [vmem:[#allocation3 + $0x308] sm:$0xff] }
 0x15d   :  { %5244 = vst [vmem:[#allocation64_spill] sm:$0xff] %v4101_v52  ;;  %v4129_v52 = vld [vmem:[#allocation3 + $0x538] sm:$0xff]  ;;  %2044 = vmatpush.msrb.mxu1 %v1429_v25  ;;  %1989 = vmatmul.f32.vlgmr.msra.gmra.mxu2 %v3682_v47  ;;  %v1150_v25 = vunpack.c.h.bf16 %v3818_v42  ;;  %v4160_v2 = vld [vmem:[#allocation3 + $0x508] sm:$0xff]  ;;  %v1285_v47 = vunpack.c.l.bf16 %v4155_v32 }
 0x15e   :  { %5245 = vst [vmem:[#allocation53_spill] sm:$0xff] %v4105_v44  ;;  %v4133_v44 = vld [vmem:[#allocation3 + $0x6f8] sm:$0xff]  ;;  %2028 = vmatpush.msrb.mxu0 %v1349_v15  ;;  %v1529_v15 = vunpack.c.l.bf16 %v4151_v59 }
 0x15f   :  { %5246 = vst [vmem:[#allocation68_spill] sm:$0xff] %v4107_v63  ;;  %v1297_v63 = vunpack.c.l.bf16 %v4123_v14  ;;  %2029 = vmatmul.f32.vlgmr.msrb.gmra.mxu0 %v3765_v27  ;;  %v4169_v42 = vld [vmem:[#allocation3 + $0x7f8] sm:$0xff] }
 0x160   :  { %5247 = vst [vmem:[#allocation57_spill] sm:$0xff] %v4113_v29  ;;  %v1425_v29 = vunpack.c.l.bf16 %v4129_v52  ;;  %2093 = vmatpush.msra.mxu0 %v1154_v10  ;;  %v4172_v27 = vld [vmem:[#allocation3 + $0x6b8] sm:$0xff]  ;;  %v4179_v10 = vld [vmem:[#allocation3 + $0x6a8] sm:$0xff] }
 0x161   :  { %5248 = vst [vmem:[#allocation61_spill] sm:$0xff] %v4119_v30  ;;  %v1537_v30 = vunpack.c.l.bf16 %v4133_v44  ;;  %2005 = vmatpush.msra.mxu3 %v1297_v63  ;;  %v1417_v63 = vunpack.c.l.bf16 %v4149_v21 }
 0x162   :  { %5249 = vst [vmem:[#allocation65_spill] sm:$0xff] %v4125_v50  ;;  %v1293_v50 = vunpack.c.l.bf16 %v4137_v41  ;;  %2045 = vmatpush.msrb.mxu1 %v1425_v29  ;;  %v1146_v29 = vunpack.c.h.bf16 %v3822_v24  ;;  %2094 = vmatpush.msra.mxu0 %v1150_v25  ;;  %v1601_v24 = vunpack.c.l.bf16 %v4169_v42  ;;  %v4183_v25 = vld [vmem:[#allocation3 + $0x7d8] sm:$0xff] }
 0x163   :  { %5250 = vst [vmem:[#allocation69_spill] sm:$0xff] %v4129_v52  ;;  %v1421_v52 = vunpack.c.l.bf16 %v4140_v11  ;;  %2053 = vmatpush.msrb.mxu2 %v1537_v30 }
 0x164   :  { %5251 = vst [vmem:[#allocation73_spill] sm:$0xff] %v4140_v11  ;;  %v4165_v11 = vld [vmem:[#allocation3 + $0x6c8] sm:$0xff]  ;;  %2006 = vmatpush.msra.mxu3 %v1293_v50  ;;  %v1142_v50 = vunpack.c.h.bf16 %v3833_v45  ;;  %2095 = vmatpush.msra.mxu0 %v1146_v29  ;;  %v1517_v45 = vunpack.c.l.bf16 %v4179_v10  ;;  %v1134_v29 = vunpack.c.h.bf16 %v3848_v20  ;;  %v1206_v20 = vunpack.c.h.bf16 %v3864_v28 }
 0x165   :  { %5252 = vst [vmem:[#allocation44_spill] sm:$0xff] %v4145_v9  ;;  %2046 = vmatpush.msrb.mxu1 %v1421_v52  ;;  %2054 = vmatpush.msrb.mxu2 %v1533_v8  ;;  %v1413_v9 = vunpack.c.l.bf16 %v4160_v2  ;;  %v1525_v30 = vunpack.c.l.bf16 %v4165_v11  ;;  %v1218_v52 = vunpack.c.h.bf16 %v3835_v49  ;;  %v1521_v8 = vunpack.c.l.bf16 %v4172_v27  ;;  %v4193_v49 = vld [vmem:[#allocation3 + $0x7c8] sm:$0xff] }
 0x166   :  { %5253 = vst [vmem:[#allocation75_spill] sm:$0xff] %v4151_v59  ;;  %2007 = vmatpush.msra.mxu3 %v1289_v26  ;;  %v4175_v59 = vld [vmem:[#allocation3 + $0x7e8] sm:$0xff]  ;;  %2096 = vmatpush.msra.mxu0 %v1142_v50  ;;  %v4205_v50 = vld [vmem:[#allocation3 + $0x678] sm:$0xff] }
 0x167   :  { %5254 = vst [vmem:[#allocation46_spill] sm:$0xff] %v4175_v59  ;;  %2047 = vmatpush.msrb.mxu1 %v1417_v63  ;;  %2055 = vmatpush.msrb.mxu2 %v1529_v15  ;;  %v1597_v26 = vunpack.c.l.bf16 %v4175_v59  ;;  %v1138_v63 = vunpack.c.h.bf16 %v3842_v1  ;;  %v4188_v15 = vld [vmem:[#allocation3 + $0x698] sm:$0xff]  ;;  %v4197_v59 = vld [vmem:[#allocation3 + $0x688] sm:$0xff]  ;;  %v1210_v1 = vunpack.c.h.bf16 %v3855_v36 }
 0x168   :  { %2008 = vmatpush.msra.mxu3 %v1285_v47  ;;  %v1214_v47 = vunpack.c.h.bf16 %v3845_v13  ;;  %v1589_v13 = vunpack.c.l.bf16 %v4193_v49 }
 0x169   :  { %2048 = vmatpush.msrb.mxu1 %v1413_v9  ;;  %2009 = vmatmul.f32.vlgmr.msra.gmra.mxu3 %v3696_v12  ;;  %v1593_v9 = vunpack.c.l.bf16 %v4183_v25 }
 0x16a   :  { %2049 = vmatmul.f32.vlgmr.msrb.gmra.mxu1 %v3778_v18  ;;  %2056 = vmatpush.msrb.mxu2 %v1525_v30  ;;  %v1513_v30 = vunpack.c.l.bf16 %v4188_v15  ;;  %v4201_v18 = vld [vmem:[#allocation3 + $0x7b8] sm:$0xff] }
 0x16b   :  { %2073 = vmatpush.msrb.mxu3 %v1601_v24  ;;  %2113 = vmatpush.msra.mxu1 %v1218_v52  ;;  %v1130_v24 = vunpack.c.h.bf16 %v3859_v55  ;;  %v1509_v52 = vunpack.c.l.bf16 %v4197_v59  ;;  %v1585_v36 = vunpack.c.l.bf16 %v4201_v18  ;;  %v1202_v55 = vunpack.c.h.bf16 %v3875_v22 }
 0x16c   :  { %2057 = vmatpush.msrb.mxu2 %v1521_v8  ;;  %2097 = vmatpush.msra.mxu0 %v1138_v63  ;;  %v4209_v8 = vld [vmem:[#allocation3 + $0x7a8] sm:$0xff] }
 0x16d   :  { %2074 = vmatpush.msrb.mxu3 %v1597_v26  ;;  %2114 = vmatpush.msra.mxu1 %v1214_v47  ;;  %v1126_v26 = vunpack.c.h.bf16 %v3871_v39  ;;  %v4213_v63 = vld [vmem:[#allocation3 + $0x668] sm:$0xff]  ;;  %v1505_v47 = vunpack.c.l.bf16 %v4205_v50  ;;  %v1581_v28 = vunpack.c.l.bf16 %v4209_v8  ;;  %v1198_v39 = vunpack.c.h.bf16 %v3882_v38 }
 0x16e   :  { %2058 = vmatpush.msrb.mxu2 %v1517_v45  ;;  %2098 = vmatpush.msra.mxu0 %v1134_v29  ;;  %v4217_v45 = vld [vmem:[#allocation3 + $0x798] sm:$0xff] }
 0x16f   :  { %2075 = vmatpush.msrb.mxu3 %v1593_v9  ;;  %2115 = vmatpush.msra.mxu1 %v1210_v1  ;;  %v1122_v9 = vunpack.c.h.bf16 %v3878_v54  ;;  %v4221_v29 = vld [vmem:[#allocation3 + $0x658] sm:$0xff]  ;;  %v1501_v1 = vunpack.c.l.bf16 %v4213_v63  ;;  %v1577_v22 = vunpack.c.l.bf16 %v4217_v45  ;;  %v1194_v54 = vunpack.c.h.bf16 %v3890_v4 }
 0x170   :  { %2059 = vmatpush.msrb.mxu2 %v1513_v30  ;;  %2099 = vmatpush.msra.mxu0 %v1130_v24  ;;  %v4225_v30 = vld [vmem:[#allocation3 + $0x788] sm:$0xff] }
 0x171   :  { %2076 = vmatpush.msrb.mxu3 %v1589_v13  ;;  %2116 = vmatpush.msra.mxu1 %v1206_v20  ;;  %v1118_v13 = vunpack.c.h.bf16 %v3886_v40  ;;  %v4229_v24 = vld [vmem:[#allocation3 + $0x648] sm:$0xff]  ;;  %v1497_v20 = vunpack.c.l.bf16 %v4221_v29  ;;  %v1573_v38 = vunpack.c.l.bf16 %v4225_v30  ;;  %v1190_v40 = vunpack.c.h.bf16 %v3899_v60 }
 0x172   :  { %2060 = vmatpush.msrb.mxu2 %v1509_v52  ;;  %2100 = vmatpush.msra.mxu0 %v1126_v26  ;;  %v4233_v52 = vld [vmem:[#allocation3 + $0x778] sm:$0xff] }
 0x173   :  { %2077 = vmatpush.msrb.mxu3 %v1585_v36  ;;  %2117 = vmatpush.msra.mxu1 %v1202_v55  ;;  %v1114_v36 = vunpack.c.h.bf16 %v3895_v48  ;;  %v4237_v26 = vld [vmem:[#allocation3 + $0x638] sm:$0xff]  ;;  %v1493_v55 = vunpack.c.l.bf16 %v4229_v24  ;;  %v1569_v4 = vunpack.c.l.bf16 %v4233_v52  ;;  %v1186_v48 = vunpack.c.h.bf16 %v3907_v6 }
 0x174   :  { %2061 = vmatpush.msrb.mxu2 %v1505_v47  ;;  %2101 = vmatpush.msra.mxu0 %v1122_v9  ;;  %v4241_v47 = vld [vmem:[#allocation3 + $0x768] sm:$0xff] }
 0x175   :  { %2078 = vmatpush.msrb.mxu3 %v1581_v28  ;;  %2118 = vmatpush.msra.mxu1 %v1198_v39  ;;  %v1110_v28 = vunpack.c.h.bf16 %v3903_v3  ;;  %v4245_v9 = vld [vmem:[#allocation3 + $0x628] sm:$0xff]  ;;  %v1489_v39 = vunpack.c.l.bf16 %v4237_v26  ;;  %v1565_v60 = vunpack.c.l.bf16 %v4241_v47  ;;  %v1182_v3 = vunpack.c.h.bf16 %v3915_v5 }
 0x176   :  { %2062 = vmatpush.msrb.mxu2 %v1501_v1  ;;  %2102 = vmatpush.msra.mxu0 %v1118_v13  ;;  %v4249_v1 = vld [vmem:[#allocation3 + $0x758] sm:$0xff] }
 0x177   :  { %2079 = vmatpush.msrb.mxu3 %v1577_v22  ;;  %2119 = vmatpush.msra.mxu1 %v1194_v54  ;;  %v1106_v22 = vunpack.c.h.bf16 %v3911_v61  ;;  %v4253_v13 = vld [vmem:[#allocation3 + $0x618] sm:$0xff]  ;;  %v1485_v54 = vunpack.c.l.bf16 %v4245_v9  ;;  %v1561_v6 = vunpack.c.l.bf16 %v4249_v1  ;;  %v1178_v61 = vunpack.c.h.bf16 %v3923_v17 }
 0x178   :  { %2063 = vmatpush.msrb.mxu2 %v1497_v20  ;;  %2103 = vmatpush.msra.mxu0 %v1114_v36  ;;  %v4257_v20 = vld [vmem:[#allocation3 + $0x748] sm:$0xff] }
 0x179   :  { %2080 = vmatpush.msrb.mxu3 %v1573_v38  ;;  %2120 = vmatpush.msra.mxu1 %v1190_v40  ;;  %v1102_v38 = vunpack.c.h.bf16 %v3919_v0  ;;  %v4261_v36 = vld [vmem:[#allocation3 + $0x608] sm:$0xff]  ;;  %v1481_v40 = vunpack.c.l.bf16 %v4253_v13  ;;  %v1557_v5 = vunpack.c.l.bf16 %v4257_v20  ;;  %v1174_v0 = vunpack.c.h.bf16 %v3931_v51 }
 0x17a   :  { %2064 = vmatpush.msrb.mxu2 %v1493_v55  ;;  %2104 = vmatpush.msra.mxu0 %v1110_v28  ;;  %v4265_v55 = vld [vmem:[#allocation3 + $0x738] sm:$0xff]  ;;  %v1477_v28 = vunpack.c.l.bf16 %v4261_v36  ;;  %v1410_v51 = vunpack.c.h.bf16 %v3947_v57  ;;  %v1162_v57 = vunpack.c.h.bf16 %v3959_v33 }
 0x17b   :  { %2081 = vmatpush.msrb.mxu3 %v1569_v4  ;;  %2121 = vmatpush.msra.mxu1 %v1186_v48  ;;  %v1098_v4 = vunpack.c.h.bf16 %v3927_v58  ;;  %v1553_v17 = vunpack.c.l.bf16 %v4265_v55  ;;  %v1094_v48 = vunpack.c.h.bf16 %v3935_v23  ;;  %v1282_v58 = vunpack.c.h.bf16 %v3943_v34 }
 0x17c   :  { %2065 = vmatpush.msrb.mxu2 %v1489_v39  ;;  %2105 = vmatpush.msra.mxu0 %v1106_v22  ;;  %v4273_v39 = vld [vmem:[#allocation3 + $0x728] sm:$0xff]  ;;  %v4277_v22 = vld [vmem:[#allocation3 + $0x718] sm:$0xff]  ;;  %v1166_v23 = vunpack.c.h.bf16 %v3950_v19 }
 0x17d   :  { %2082 = vmatpush.msrb.mxu3 %v1565_v60  ;;  %2122 = vmatpush.msra.mxu1 %v1182_v3  ;;  %v1170_v60 = vunpack.c.h.bf16 %v3939_v35  ;;  %v1549_v3 = vunpack.c.l.bf16 %v4273_v39  ;;  %v1406_v35 = vunpack.c.h.bf16 %v3955_v43  ;;  %v1545_v34 = vunpack.c.l.bf16 %v4277_v22  ;;  %v5255_v19 = vld [vmem:[#allocation7_spill] sm:$0xff]  ;;  %v5257_v43 = vld [vmem:[#allocation8_spill] sm:$0xff] }
 0x17e   :  { %2066 = vmatpush.msrb.mxu2 %v1485_v54  ;;  %2106 = vmatpush.msra.mxu0 %v1102_v38  ;;  %v1278_v54 = vunpack.c.h.bf16 %v3952_v7  ;;  %v1274_v38 = vunpack.c.h.bf16 %v3961_v46  ;;  %v1402_v7 = vunpack.c.h.bf16 %v5255_v19 }
 0x17f   :  { %2083 = vmatpush.msrb.mxu3 %v1561_v6  ;;  %2123 = vmatpush.msra.mxu1 %v1178_v61  ;;  %v4283_v6 = vld [vmem:[#allocation3 + $0x708] sm:$0xff] }
 0x180   :  { %2067 = vmatpush.msrb.mxu2 %v1481_v40  ;;  %2107 = vmatpush.msra.mxu0 %v1098_v4  ;;  %v1541_v61 = vunpack.c.l.bf16 %v4283_v6  ;;  %v5256_v40 = vld [vmem:[#allocation14_spill] sm:$0xff]  ;;  %v1270_v4 = vunpack.c.h.bf16 %v5257_v43 }
 0x181   :  { %2084 = vmatpush.msrb.mxu3 %v1557_v5  ;;  %2124 = vmatpush.msra.mxu1 %v1174_v0  ;;  %v1158_v5 = vunpack.c.h.bf16 %v5256_v40  ;;  %v5259_v0 = vld [vmem:[#allocation9_spill] sm:$0xff] }
 0x182   :  { %2068 = vmatpush.msrb.mxu2 %v1477_v28  ;;  %2108 = vmatpush.msra.mxu0 %v1094_v48  ;;  %v1398_v46 = vunpack.c.h.bf16 %v5259_v0  ;;  %v5260_v28 = vld [vmem:[#allocation20_spill] sm:$0xff]  ;;  %v5261_v48 = vld [vmem:[#allocation10_spill] sm:$0xff]  ;;  %v5269_v40 = vld [vmem:[#allocation21_spill] sm:$0xff] }
 0x183   :  { %2085 = vmatpush.msrb.mxu3 %v1553_v17  ;;  %2125 = vmatpush.msra.mxu1 %v1170_v60  ;;  %v1474_v17 = vunpack.c.h.bf16 %v5260_v28  ;;  %v1266_v60 = vunpack.c.h.bf16 %v5261_v48  ;;  %v1390_v43 = vunpack.c.h.bf16 %v5269_v40  ;;  %v5271_v0 = vld [vmem:[#allocation24_spill] sm:$0xff]  ;;  %v5279_v40 = vld [vmem:[#allocation23_spill] sm:$0xff] }
 0x184   :  { %2069 = vmatmul.f32.vlgmr.msrb.gmra.mxu2 %v3826_v31  ;;  %2109 = vmatmul.f32.vlgmr.msra.gmra.mxu0 %v3636_v16  ;;  %v5258_v16 = vld [vmem:[#allocation15_spill] sm:$0xff]  ;;  %v1258_v28 = vunpack.c.h.bf16 %v5271_v0  ;;  %v5272_v48 = vld [vmem:[#allocation28_spill] sm:$0xff]  ;;  %v5281_v0 = vld [vmem:[#allocation33_spill] sm:$0xff] }
 0x185   :  { %2133 = vmatpush.msra.mxu2 %v1282_v58  ;;  %2173 = vmatpush.msrb.mxu0 %v1410_v51  ;;  %v1346_v33 = vunpack.c.h.bf16 %v5258_v16  ;;  %v5262_v58 = vld [vmem:[#allocation13_spill] sm:$0xff]  ;;  %v5263_v51 = vld [vmem:[#allocation22_spill] sm:$0xff] }
 0x186   :  { %2086 = vmatpush.msrb.mxu3 %v1549_v3  ;;  %2126 = vmatpush.msra.mxu1 %v1166_v23  ;;  %v1342_v3 = vunpack.c.h.bf16 %v5263_v51  ;;  %v5264_v23 = vld [vmem:[#allocation11_spill] sm:$0xff]  ;;  %v5273_v51 = vld [vmem:[#allocation25_spill] sm:$0xff] }
 0x187   :  { %2134 = vmatpush.msra.mxu2 %v1278_v54  ;;  %2174 = vmatpush.msrb.mxu0 %v1406_v35  ;;  %v1394_v54 = vunpack.c.h.bf16 %v5264_v23  ;;  %v5265_v35 = vld [vmem:[#allocation79_spill] sm:$0xff]  ;;  %v1386_v23 = vunpack.c.h.bf16 %v5273_v51  ;;  %v5283_v51 = vld [vmem:[#allocation36_spill] sm:$0xff] }
 0x188   :  { %2087 = vmatpush.msrb.mxu3 %v1545_v34  ;;  %2127 = vmatpush.msra.mxu1 %v1162_v57  ;;  %v5266_v34 = vld [vmem:[#allocation16_spill] sm:$0xff] }
 0x189   :  { %2135 = vmatpush.msra.mxu2 %v1274_v38  ;;  %2175 = vmatpush.msrb.mxu0 %v1402_v7  ;;  %v1470_v57 = vunpack.c.h.bf16 %v5266_v34  ;;  %v5267_v38 = vld [vmem:[#allocation17_spill] sm:$0xff]  ;;  %v5268_v7 = vld [vmem:[#allocation18_spill] sm:$0xff] }
 0x18a   :  { %2088 = vmatpush.msrb.mxu3 %v1541_v61  ;;  %2128 = vmatpush.msra.mxu1 %v1158_v5  ;;  %v1262_v19 = vunpack.c.h.bf16 %v5267_v38  ;;  %v1338_v61 = vunpack.c.h.bf16 %v5268_v7  ;;  %v5270_v5 = vld [vmem:[#allocation19_spill] sm:$0xff]  ;;  %v5277_v38 = vld [vmem:[#allocation32_spill] sm:$0xff] }
 0x18b   :  { %2089 = vmatmul.f32.vlgmr.msrb.gmra.mxu3 %v5262_v58  ;;  %2129 = vmatmul.f32.vlgmr.msra.gmra.mxu1 %v5265_v35  ;;  %v1466_v16 = vunpack.c.h.bf16 %v5270_v5  ;;  %v5275_v35 = vld [vmem:[#allocation30_spill] sm:$0xff]  ;;  %v1382_v7 = vunpack.c.h.bf16 %v5277_v38  ;;  %v1250_v5 = vunpack.c.h.bf16 %v5279_v40  ;;  %v5287_v38 = vld [vmem:[#allocation41_spill] sm:$0xff] }
 0x18c   :  { %2136 = vmatpush.msra.mxu2 %v1270_v4  ;;  %2153 = vmatpush.msra.mxu3 %v1346_v33  ;;  %v1334_v4 = vunpack.c.h.bf16 %v5272_v48  ;;  %v5274_v33 = vld [vmem:[#allocation26_spill] sm:$0xff]  ;;  %v1254_v34 = vunpack.c.h.bf16 %v5275_v35  ;;  %v1378_v48 = vunpack.c.h.bf16 %v5281_v0  ;;  %v5285_v35 = vld [vmem:[#allocation37_spill] sm:$0xff]  ;;  %v5291_v0 = vld [vmem:[#allocation52_spill] sm:$0xff] }
 0x18d   :  { %2176 = vmatpush.msrb.mxu0 %v1398_v46  ;;  %2193 = vmatpush.msrb.mxu1 %v1474_v17  ;;  %v1462_v46 = vunpack.c.h.bf16 %v5274_v33  ;;  %v5276_v17 = vld [vmem:[#allocation27_spill] sm:$0xff]  ;;  %v1246_v33 = vunpack.c.h.bf16 %v5283_v51  ;;  %v5289_v40 = vld [vmem:[#allocation42_spill] sm:$0xff]  ;;  %v5293_v51 = vld [vmem:[#allocation45_spill] sm:$0xff] }
 0x18e   :  { %2137 = vmatpush.msra.mxu2 %v1266_v60  ;;  %2154 = vmatpush.msra.mxu3 %v1342_v3  ;;  %v1330_v60 = vunpack.c.h.bf16 %v5276_v17  ;;  %v5278_v3 = vld [vmem:[#allocation34_spill] sm:$0xff]  ;;  %v1374_v17 = vunpack.c.h.bf16 %v5285_v35  ;;  %v5295_v35 = vld [vmem:[#allocation43_spill] sm:$0xff] }
 0x18f   :  { %2177 = vmatpush.msrb.mxu0 %v1394_v54  ;;  %2194 = vmatpush.msrb.mxu1 %v1470_v57  ;;  %v1458_v54 = vunpack.c.h.bf16 %v5278_v3  ;;  %v5280_v57 = vld [vmem:[#allocation38_spill] sm:$0xff]  ;;  %v1242_v3 = vunpack.c.h.bf16 %v5287_v38  ;;  %v5297_v38 = vld [vmem:[#allocation60_spill] sm:$0xff] }
 0x190   :  { %2138 = vmatpush.msra.mxu2 %v1262_v19  ;;  %2155 = vmatpush.msra.mxu3 %v1338_v61  ;;  %v1326_v19 = vunpack.c.h.bf16 %v5280_v57  ;;  %v5282_v61 = vld [vmem:[#allocation29_spill] sm:$0xff]  ;;  %v1370_v57 = vunpack.c.h.bf16 %v5289_v40  ;;  %v5299_v40 = vld [vmem:[#allocation51_spill] sm:$0xff] }
 0x191   :  { %2178 = vmatpush.msrb.mxu0 %v1390_v43  ;;  %2195 = vmatpush.msrb.mxu1 %v1466_v16  ;;  %v1454_v43 = vunpack.c.h.bf16 %v5282_v61  ;;  %v5284_v16 = vld [vmem:[#allocation40_spill] sm:$0xff]  ;;  %v1238_v61 = vunpack.c.h.bf16 %v5291_v0 }
 0x192   :  { %2139 = vmatpush.msra.mxu2 %v1258_v28  ;;  %2156 = vmatpush.msra.mxu3 %v1334_v4  ;;  %v1322_v28 = vunpack.c.h.bf16 %v5284_v16  ;;  %v5286_v4 = vld [vmem:[#allocation31_spill] sm:$0xff]  ;;  %v1366_v16 = vunpack.c.h.bf16 %v5293_v51 }
 0x193   :  { %2179 = vmatpush.msrb.mxu0 %v1386_v23  ;;  %2196 = vmatpush.msrb.mxu1 %v1462_v46  ;;  %v1450_v23 = vunpack.c.h.bf16 %v5286_v4  ;;  %v5288_v46 = vld [vmem:[#allocation48_spill] sm:$0xff]  ;;  %v1234_v4 = vunpack.c.h.bf16 %v5295_v35  ;;  %v5305_v35 = vld [vmem:[#allocation65_spill] sm:$0xff] }
 0x194   :  { %2140 = vmatpush.msra.mxu2 %v1254_v34  ;;  %2157 = vmatpush.msra.mxu3 %v1330_v60  ;;  %v1318_v34 = vunpack.c.h.bf16 %v5288_v46  ;;  %v5290_v60 = vld [vmem:[#allocation35_spill] sm:$0xff]  ;;  %v1362_v46 = vunpack.c.h.bf16 %v5297_v38  ;;  %v4357_v38 = vld [vmem:[%s4909_s5 + $0x70] sm:$0xff] }
 0x195   :  { %2180 = vmatpush.msrb.mxu0 %v1382_v7  ;;  %2197 = vmatpush.msrb.mxu1 %v1458_v54  ;;  %v1446_v7 = vunpack.c.h.bf16 %v5290_v60  ;;  %v5292_v54 = vld [vmem:[#allocation39_spill] sm:$0xff]  ;;  %v1230_v60 = vunpack.c.h.bf16 %v5299_v40 }
 0x196   :  { %2141 = vmatpush.msra.mxu2 %v1250_v5  ;;  %2158 = vmatpush.msra.mxu3 %v1326_v19  ;;  %v1314_v5 = vunpack.c.h.bf16 %v5292_v54  ;;  %v5294_v19 = vld [vmem:[#allocation56_spill] sm:$0xff] }
 0x197   :  { %2181 = vmatpush.msrb.mxu0 %v1378_v48  ;;  %2198 = vmatpush.msrb.mxu1 %v1454_v43  ;;  %v1442_v48 = vunpack.c.h.bf16 %v5294_v19  ;;  %v5296_v43 = vld [vmem:[#allocation47_spill] sm:$0xff]  ;;  %v5302_v54 = vld [vmem:[#allocation68_spill] sm:$0xff] }
 0x198   :  { %2142 = vmatpush.msra.mxu2 %v1246_v33  ;;  %2159 = vmatpush.msra.mxu3 %v1322_v28  ;;  %v1310_v33 = vunpack.c.h.bf16 %v5296_v43  ;;  %v5298_v28 = vld [vmem:[#allocation49_spill] sm:$0xff]  ;;  %v1226_v51 = vunpack.c.h.bf16 %v5302_v54  ;;  %v1418_v54 = vunpack.c.h.bf16 %v4149_v21 }
 0x199   :  { %2182 = vmatpush.msrb.mxu0 %v1374_v17  ;;  %2199 = vmatpush.msrb.mxu1 %v1450_v23  ;;  %v1438_v17 = vunpack.c.h.bf16 %v5298_v28  ;;  %v1306_v23 = vunpack.c.h.bf16 %v4099_v62  ;;  %v4350_v43 = vld [vmem:[%s4909_s5 + $0x78] sm:$0xff]  ;;  %v1294_v28 = vunpack.c.h.bf16 %v4137_v41 }
 0x19a   :  { %2143 = vmatpush.msra.mxu2 %v1242_v3  ;;  %2160 = vmatpush.msra.mxu3 %v1318_v34  ;;  %v5300_v3 = vld [vmem:[#allocation64_spill] sm:$0xff]  ;;  %v5301_v34 = vld [vmem:[#allocation53_spill] sm:$0xff] }
 0x19b   :  { %2183 = vmatpush.msrb.mxu0 %v1370_v57  ;;  %2200 = vmatpush.msrb.mxu1 %v1446_v7  ;;  %v1358_v0 = vunpack.c.h.bf16 %v5300_v3  ;;  %v1434_v57 = vunpack.c.h.bf16 %v5301_v34  ;;  %v1302_v7 = vunpack.c.h.bf16 %v4111_v53  ;;  %v5306_v53 = vld [vmem:[#allocation69_spill] sm:$0xff]  ;;  %v5309_v34 = vld [vmem:[#allocation44_spill] sm:$0xff] }
 0x19c   :  { %2144 = vmatpush.msra.mxu2 %v1238_v61  ;;  %2161 = vmatpush.msra.mxu3 %v1314_v5  ;;  %v5303_v61 = vld [vmem:[#allocation57_spill] sm:$0xff]  ;;  %v1430_v5 = vunpack.c.h.bf16 %v4117_v56  ;;  %v1538_v56 = vunpack.c.h.bf16 %v4133_v44  ;;  %v4368_v44 = vld [vmem:[%s4909_s5 + $0x68] sm:$0xff]  ;;  %v1290_v41 = vunpack.c.h.bf16 %v5309_v34  ;;  %v1518_v34 = vunpack.c.h.bf16 %v4179_v10 }
 0x19d   :  { %2184 = vmatpush.msrb.mxu0 %v1366_v16  ;;  %2201 = vmatpush.msrb.mxu1 %v1442_v48  ;;  %v1354_v19 = vunpack.c.h.bf16 %v5303_v61  ;;  %v5304_v16 = vld [vmem:[#allocation61_spill] sm:$0xff]  ;;  %v1298_v48 = vunpack.c.h.bf16 %v4123_v14  ;;  %v4359_v14 = vpop.f32.mrf.mxu0  ;;  %v2347_v61 = vunpack.c.l.bf16 %v4368_v44 }
 0x19e   :  { %2145 = vmatpush.msra.mxu2 %v1234_v4  ;;  %2162 = vmatpush.msra.mxu3 %v1310_v33  ;;  %v1222_v62 = vunpack.c.h.bf16 %v5304_v16  ;;  %v1350_v4 = vunpack.c.h.bf16 %v5305_v35  ;;  %v1426_v33 = vunpack.c.h.bf16 %v5306_v53  ;;  %v5308_v3 = vld [vmem:[#allocation81_spill] sm:$0xff]  ;;  %v1414_v16 = vunpack.c.h.bf16 %v4160_v2  ;;  %v4411_v53 = vld [vmem:[%s4909_s5 + $0xf0] sm:$0xff] }
 0x19f   :  { %2185 = vmatpush.msrb.mxu0 %v1362_v46  ;;  %2202 = vmatpush.msrb.mxu1 %v1438_v17  ;;  %v2351_v46 = vunpack.c.l.bf16 %v4350_v43  ;;  %v5307_v17 = vld [vmem:[#allocation73_spill] sm:$0xff]  ;;  %v1602_v35 = vunpack.c.h.bf16 %v4169_v42 }
 0x1a0   :  { %2146 = vmatpush.msra.mxu2 %v1230_v60  ;;  %2163 = vmatpush.msra.mxu3 %v1306_v23  ;;  %v1422_v40 = vunpack.c.h.bf16 %v5307_v17  ;;  %v1534_v60 = vunpack.c.h.bf16 %v4142_v37  ;;  %v4370_v23 = vpop.f32.mrf.mxu1  ;;  %v5311_v37 = vld [vmem:[#allocation75_spill] sm:$0xff]  ;;  %v4391_v21 = vld [vmem:[%s4909_s5 + $0xf8] sm:$0xff] }
 0x1a1   :  { %2186 = vmatpush.msrb.mxu0 %v1358_v0  ;;  %2203 = vmatpush.msrb.mxu1 %v1434_v57  ;;  %v2349_v0 = vunpack.c.l.bf16 %v4357_v38  ;;  %v5310_v57 = vld [vmem:[#allocation12_spill] sm:$0xff]  ;;  %v4404_v2 = vld [vmem:[%s4909_s5 + $0x58] sm:$0xff] }
 0x1a2   :  { %2147 = vmatpush.msra.mxu2 %v1226_v51  ;;  %2164 = vmatpush.msra.mxu3 %v1302_v7  ;;  %v1530_v51 = vunpack.c.h.bf16 %v5311_v37  ;;  %v4378_v7 = vpop.f32.mrf.mxu2 }
 0x1a3   :  { %2187 = vmatpush.msrb.mxu0 %v1354_v19  ;;  %2204 = vmatpush.msrb.mxu1 %v1430_v5  ;;  %v1286_v19 = vunpack.c.h.bf16 %v4155_v32  ;;  %v4385_v5 = vld [vmem:[%s4909_s5 + $0x60] sm:$0xff]  ;;  %v4398_v32 = vpop.f32.mrf.mxu3 }
 0x1a4   :  { %2148 = vmatpush.msra.mxu2 %v1222_v62  ;;  %2165 = vmatpush.msra.mxu3 %v1298_v48  ;;  %v4396_v62 = vld [vmem:[%s4908_s4] sm:$0xf]  ;;  %v1526_v48 = vunpack.c.h.bf16 %v4165_v11  ;;  %v2383_v11 = vunpack.c.l.bf16 %v4391_v21 }
 0x1a5   :  { %2188 = vmatpush.msrb.mxu0 %v1350_v4  ;;  %2205 = vmatpush.msrb.mxu1 %v1426_v33  ;;  %v2345_v4 = vunpack.c.l.bf16 %v4385_v5  ;;  %v4413_v33 = vpop.f32.mrf.mxu0  ;;  %v1605_v42 = vperm.slane %v4396_v62, 0 }
 0x1a6   :  { %2149 = vmatmul.f32.vlgmr.msra.gmra.mxu2 %v5308_v3  ;;  %2189 = vmatmul.f32.vlgmr.msrb.gmra.mxu0 %v5310_v57  ;;  %v5313_v3 = vld [vmem:[#allocation6_spill] sm:$0xff] }
 0x1a7   :  { %2213 = vmatpush.msrb.mxu2 %v1538_v56  ;;  %2455 = vmatpush.msra.mxu0 %v2351_v46  ;;  %v1522_v56 = vunpack.c.h.bf16 %v4172_v27  ;;  %v4420_v46 = vld [vmem:[%s4909_s5 + $0x50] sm:$0xff] }
 0x1a8   :  { %2166 = vmatpush.msra.mxu3 %v1294_v28  ;;  %2206 = vmatpush.msrb.mxu1 %v1422_v40  ;;  %v5312_v28 = vld [vmem:[#allocation46_spill] sm:$0xff]  ;;  %v2343_v40 = vunpack.c.l.bf16 %v4404_v2  ;;  %v4431_v27 = vpop.f32.mrf.mxu1  ;;  %v2341_v57 = vunpack.c.l.bf16 %v4420_v46 }
 0x1a9   :  { %2214 = vmatpush.msrb.mxu2 %v1534_v60  ;;  %2456 = vmatpush.msra.mxu0 %v2349_v0  ;;  %v1598_v17 = vunpack.c.h.bf16 %v5312_v28  ;;  %v4429_v60 = vld [vmem:[%s4909_s5 + $0xe8] sm:$0xff]  ;;  %v2381_v0 = vunpack.c.l.bf16 %v4411_v53  ;;  %v4486_v28 = vld [vmem:[%s4909_s5 + $0x30] sm:$0xff] }
 0x1aa   :  { %2167 = vmatpush.msra.mxu3 %v1290_v41  ;;  %2207 = vmatpush.msrb.mxu1 %v1418_v54  ;;  %v1594_v41 = vunpack.c.h.bf16 %v4183_v25  ;;  %v4446_v54 = vld [vmem:[%s4909_s5 + $0xe0] sm:$0xff]  ;;  %v4448_v37 = vpop.f32.mrf.mxu2  ;;  %v2379_v10 = vunpack.c.l.bf16 %v4429_v60  ;;  %v1631_v25 = vadd.f32 %v4359_v14, %v1605_v42  ;;  %v4472_v14 = vld [vmem:[%s4909_s5 + $0x38] sm:$0xff]  ;;  %v1506_v42 = vunpack.c.h.bf16 %v4205_v50 }
 0x1ab   :  { %2215 = vmatpush.msrb.mxu2 %v1530_v51  ;;  %2457 = vmatpush.msra.mxu0 %v2347_v61  ;;  %v1514_v51 = vunpack.c.h.bf16 %v4188_v15  ;;  %v4455_v61 = vld [vmem:[%s4909_s5 + $0x40] sm:$0xff]  ;;  %v2377_v15 = vunpack.c.l.bf16 %v4446_v54 }
 0x1ac   :  { %2168 = vmatpush.msra.mxu3 %v1286_v19  ;;  %2208 = vmatpush.msrb.mxu1 %v1414_v16  ;;  %v1590_v19 = vunpack.c.h.bf16 %v4193_v49  ;;  %v1586_v49 = vunpack.c.h.bf16 %v4201_v18  ;;  %v1651_v18 = vadd.f32 %v4370_v23, %v1631_v25  ;;  %v1502_v23 = vunpack.c.h.bf16 %v4213_v63 }
 0x1ad   :  { %2169 = vmatmul.f32.vlgmr.msra.gmra.mxu3 %v3696_v12  ;;  %2209 = vmatmul.f32.vlgmr.msrb.gmra.mxu1 %v5313_v3  ;;  %v4439_v12 = vld [vmem:[%s4909_s5 + $0x48] sm:$0xff]  ;;  %v2335_v3 = vunpack.c.l.bf16 %v4472_v14  ;;  %v1790_v50 = vpop.f32.mrf.mxu0  ;;  %v1498_v25 = vunpack.c.h.bf16 %v4221_v29 }
 0x1ae   :  { %2216 = vmatpush.msrb.mxu2 %v1526_v48  ;;  %2233 = vmatpush.msrb.mxu3 %v1602_v35  ;;  %v2339_v16 = vunpack.c.l.bf16 %v4439_v12  ;;  %v4463_v48 = vld [vmem:[%s4909_s5 + $0xd8] sm:$0xff]  ;;  %v4466_v35 = vpop.f32.mrf.mxu3 }
 0x1af   :  { %2458 = vmatpush.msra.mxu0 %v2345_v4  ;;  %2475 = vmatpush.msra.mxu1 %v2383_v11  ;;  %v1510_v4 = vunpack.c.h.bf16 %v4197_v59  ;;  %v2337_v11 = vunpack.c.l.bf16 %v4455_v61  ;;  %v2375_v59 = vunpack.c.l.bf16 %v4463_v48 }
 0x1b0   :  { %2217 = vmatpush.msrb.mxu2 %v1522_v56  ;;  %2234 = vmatpush.msrb.mxu3 %v1598_v17  ;;  %v4479_v56 = vld [vmem:[%s4909_s5 + $0xd0] sm:$0xff]  ;;  %v1606_v17 = vperm.slane %v4396_v62, 1 }
 0x1b1   :  { %2459 = vmatpush.msra.mxu0 %v2343_v40  ;;  %2476 = vmatpush.msra.mxu1 %v2381_v0  ;;  %v1582_v40 = vunpack.c.h.bf16 %v4209_v8  ;;  %v4495_v0 = vld [vmem:[%s4909_s5 + $0xc8] sm:$0xff]  ;;  %v1578_v8 = vunpack.c.h.bf16 %v4217_v45  ;;  %v1671_v45 = vadd.f32 %v4378_v7, %v1651_v18  ;;  %v4531_v7 = vld [vmem:[%s4909_s5 + $0x18] sm:$0xff]  ;;  %v1570_v18 = vunpack.c.h.bf16 %v4233_v52 }
 0x1b2   :  { %2218 = vmatpush.msrb.mxu2 %v1518_v34  ;;  %2235 = vmatpush.msrb.mxu3 %v1594_v41  ;;  %v2373_v34 = vunpack.c.l.bf16 %v4479_v56  ;;  %v4502_v41 = vld [vmem:[%s4909_s5 + $0x28] sm:$0xff]  ;;  %v2371_v63 = vunpack.c.l.bf16 %v4495_v0  ;;  %v1830_v29 = vpop.f32.mrf.mxu2 }
 0x1b3   :  { %2460 = vmatpush.msra.mxu0 %v2341_v57  ;;  %2477 = vmatpush.msra.mxu1 %v2379_v10  ;;  %v2333_v57 = vunpack.c.l.bf16 %v4486_v28  ;;  %v4509_v10 = vld [vmem:[%s4909_s5 + $0xc0] sm:$0xff] }
 0x1b4   :  { %2219 = vmatpush.msrb.mxu2 %v1514_v51  ;;  %2236 = vmatpush.msrb.mxu3 %v1590_v19  ;;  %v1810_v51 = vpop.f32.mrf.mxu1  ;;  %v4516_v19 = vld [vmem:[%s4909_s5 + $0x20] sm:$0xff] }
 0x1b5   :  { %2461 = vmatpush.msra.mxu0 %v2339_v16  ;;  %2478 = vmatpush.msra.mxu1 %v2377_v15  ;;  %v1791_v16 = vadd.f32 %v1790_v50, %v1606_v17  ;;  %v1574_v15 = vunpack.c.h.bf16 %v4225_v30  ;;  %v1691_v30 = vadd.f32 %v4398_v32, %v1671_v45  ;;  %v2329_v17 = vunpack.c.l.bf16 %v4516_v19  ;;  %v4546_v32 = vld [vmem:[%s4909_s5 + $0x10] sm:$0xff] }
 0x1b6   :  { %2220 = vmatpush.msrb.mxu2 %v1510_v4  ;;  %2237 = vmatpush.msrb.mxu3 %v1586_v49  ;;  %v2331_v4 = vunpack.c.l.bf16 %v4502_v41  ;;  %v4524_v49 = vld [vmem:[%s4909_s5 + $0xb8] sm:$0xff]  ;;  %v1490_v50 = vunpack.c.h.bf16 %v4237_v26  ;;  %v2325_v45 = vunpack.c.l.bf16 %v4546_v32 }
 0x1b7   :  { %2462 = vmatpush.msra.mxu0 %v2337_v11  ;;  %2479 = vmatpush.msra.mxu1 %v2375_v59  ;;  %v2369_v11 = vunpack.c.l.bf16 %v4509_v10  ;;  %v1494_v59 = vunpack.c.h.bf16 %v4229_v24  ;;  %v1850_v24 = vpop.f32.mrf.mxu3  ;;  %v1711_v52 = vadd.f32 %v4413_v33, %v1691_v30  ;;  %v4561_v33 = vld [vmem:[%s4909_s5 + $0x8] sm:$0xff]  ;;  %v1478_v30 = vunpack.c.h.bf16 %v4261_v36  ;;  %v4602_v36 = vld [vmem:[%s4909_s5 + $0x178] sm:$0xff] }
 0x1b8   :  { %2221 = vmatpush.msrb.mxu2 %v1506_v42  ;;  %2238 = vmatpush.msrb.mxu3 %v1582_v40  ;;  %v1811_v42 = vadd.f32 %v1810_v51, %v1791_v16  ;;  %v4539_v40 = vld [vmem:[%s4909_s5 + $0xb0] sm:$0xff]  ;;  %v1486_v51 = vunpack.c.h.bf16 %v4245_v9  ;;  %v4569_v16 = vld [vmem:[%s4909_s5 + $0xa0] sm:$0xff] }
 0x1b9   :  { %2463 = vmatpush.msra.mxu0 %v2335_v3  ;;  %2480 = vmatpush.msra.mxu1 %v2373_v34  ;;  %v2367_v3 = vunpack.c.l.bf16 %v4524_v49  ;;  %v2365_v26 = vunpack.c.l.bf16 %v4539_v40 }
 0x1ba   :  { %2222 = vmatpush.msrb.mxu2 %v1502_v23  ;;  %2239 = vmatpush.msrb.mxu3 %v1578_v8  ;;  %v1831_v34 = vadd.f32 %v1830_v29, %v1811_v42  ;;  %v1566_v23 = vunpack.c.h.bf16 %v4241_v47  ;;  %v2327_v8 = vunpack.c.l.bf16 %v4531_v7  ;;  %v1731_v47 = vadd.f32 %v4431_v27, %v1711_v52  ;;  %v4576_v27 = vld [vmem:[%s4909_s5] sm:$0xff] }
 0x1bb   :  { %2464 = vmatpush.msra.mxu0 %v2333_v57  ;;  %2481 = vmatpush.msra.mxu1 %v2371_v63  ;;  %v4554_v57 = vld [vmem:[%s4909_s5 + $0xa8] sm:$0xff]  ;;  %v2323_v29 = vunpack.c.l.bf16 %v4561_v33 }
 0x1bc   :  { %2223 = vmatpush.msrb.mxu2 %v1498_v25  ;;  %2240 = vmatpush.msrb.mxu3 %v1574_v15  ;;  %v1851_v63 = vadd.f32 %v1850_v24, %v1831_v34  ;;  %v1562_v25 = vunpack.c.h.bf16 %v4249_v1  ;;  %v2363_v9 = vunpack.c.l.bf16 %v4554_v57  ;;  %v1482_v15 = vunpack.c.h.bf16 %v4253_v13  ;;  %v1910_v34 = vpop.f32.mrf.mxu2 }
 0x1bd   :  { %2465 = vmatpush.msra.mxu0 %v2331_v4  ;;  %2482 = vmatpush.msra.mxu1 %v2369_v11  ;;  %v1751_v1 = vadd.f32 %v4448_v37, %v1731_v47  ;;  %v1558_v4 = vunpack.c.h.bf16 %v4257_v20  ;;  %v4584_v11 = vld [vmem:[%s4909_s5 + $0x98] sm:$0xff]  ;;  %v2361_v13 = vunpack.c.l.bf16 %v4569_v16  ;;  %v1554_v20 = vunpack.c.h.bf16 %v4265_v55 }
 0x1be   :  { %2224 = vmatpush.msrb.mxu2 %v1494_v59  ;;  %2241 = vmatpush.msrb.mxu3 %v1570_v18  ;;  %v1870_v59 = vpop.f32.mrf.mxu0  ;;  %v2321_v18 = vunpack.c.l.bf16 %v4576_v27  ;;  %v2359_v24 = vunpack.c.l.bf16 %v4584_v11  ;;  %v1550_v55 = vunpack.c.h.bf16 %v4273_v39  ;;  %v2350_v47 = vunpack.c.h.bf16 %v4357_v38  ;;  %v4637_v38 = vld [vmem:[%s4909_s5 + $0x168] sm:$0xff] }
 0x1bf   :  { %2466 = vmatpush.msra.mxu0 %v2329_v17  ;;  %2483 = vmatpush.msra.mxu1 %v2367_v3  ;;  %v4589_v37 = vadd.f32 %v4466_v35, %v1751_v1  ;;  %v1871_v42 = vadd.f32 %v1870_v59, %v1851_v63  ;;  %v4596_v17 = vld [vmem:[%s4909_s5 + $0x90] sm:$0xff]  ;;  %v4608_v35 = vld [vmem:[%s4909_s5 + $0x88] sm:$0xff]  ;;  %v1890_v3 = vpop.f32.mrf.mxu1  ;;  %v2384_v1 = vunpack.c.h.bf16 %v4391_v21  ;;  %v2411_v21 = vunpack.c.l.bf16 %v4637_v38 }
 0x1c0   :  { %2225 = vmatpush.msrb.mxu2 %v1490_v50  ;;  %2242 = vmatpush.msrb.mxu3 %v1566_v23  ;;  %v2352_v50 = vunpack.c.h.bf16 %v4350_v43  ;;  %v2357_v52 = vunpack.c.l.bf16 %v4596_v17  ;;  %v4615_v23 = vld [vmem:[%s4909_s5 + $0x170] sm:$0xff]  ;;  %v2355_v63 = vunpack.c.l.bf16 %v4608_v35 }
 0x1c1   :  { %2467 = vmatpush.msra.mxu0 %v2327_v8  ;;  %2484 = vmatpush.msra.mxu1 %v2365_v26  ;;  %v2253_v39 = vmax.f32 %v4589_v37, 0.0  ;;  %v1546_v8 = vunpack.c.h.bf16 %v4277_v22  ;;  %v4622_v26 = vld [vmem:[%s4909_s5 + $0x80] sm:$0xff]  ;;  %v1891_v43 = vadd.f32 %v1890_v3, %v1871_v42  ;;  %v1542_v22 = vunpack.c.h.bf16 %v4283_v6 }
 0x1c2   :  { %2226 = vmatpush.msrb.mxu2 %v1486_v51  ;;  %2243 = vmatpush.msrb.mxu3 %v1562_v25  ;;  %v2415_v51 = vunpack.c.l.bf16 %v4602_v36  ;;  %v2346_v6 = vunpack.c.h.bf16 %v4385_v5  ;;  %v4655_v5 = vld [vmem:[%s4909_s5 + $0x158] sm:$0xff]  ;;  %v2342_v42 = vunpack.c.h.bf16 %v4420_v46  ;;  %v4674_v46 = vld [vmem:[%s4909_s5 + $0x148] sm:$0xff] }
 0x1c3   :  { %2468 = vmatpush.msra.mxu0 %v2325_v45  ;;  %2485 = vmatpush.msra.mxu1 %v2363_v9  ;;  %v1911_v25 = vadd.f32 %v1910_v34, %v1891_v43  ;;  %v2413_v45 = vunpack.c.l.bf16 %v4615_v23  ;;  %v2348_v9 = vunpack.c.h.bf16 %v4368_v44  ;;  %v4646_v44 = vld [vmem:[%s4909_s5 + $0x160] sm:$0xff]  ;;  %v2403_v3 = vunpack.c.l.bf16 %v4674_v46  ;;  %v4698_v34 = vld [vmem:[%s4909_s5 + $0x130] sm:$0xff]  ;;  %v4706_v43 = vld [vmem:[%s4909_s5 + $0x128] sm:$0xff] }
 0x1c4   :  { %2227 = vmatpush.msrb.mxu2 %v1482_v15  ;;  %2244 = vmatpush.msrb.mxu3 %v1558_v4  ;;  %v2353_v15 = vunpack.c.l.bf16 %v4622_v26  ;;  %v2410_v37 = vunpack.c.h.bf16 %v4646_v44 }
 0x1c5   :  { %2469 = vmatpush.msra.mxu0 %v2323_v29  ;;  %2486 = vmatpush.msra.mxu1 %v2361_v13  ;;  %v2382_v29 = vunpack.c.h.bf16 %v4411_v53  ;;  %v2344_v13 = vunpack.c.h.bf16 %v4404_v2  ;;  %v2409_v53 = vunpack.c.l.bf16 %v4646_v44  ;;  %v4666_v2 = vld [vmem:[%s4909_s5 + $0x150] sm:$0xff]  ;;  %v1607_v44 = vperm.slane %v4396_v62, 2 }
 0x1c6   :  { %2228 = vmatpush.msrb.mxu2 %v1478_v30  ;;  %2245 = vmatpush.msrb.mxu3 %v1554_v20  ;;  %v2380_v30 = vunpack.c.h.bf16 %v4429_v60  ;;  %v2378_v20 = vunpack.c.h.bf16 %v4446_v54  ;;  %v2340_v60 = vunpack.c.h.bf16 %v4439_v12  ;;  %v2338_v54 = vunpack.c.h.bf16 %v4455_v61 }
 0x1c7   :  { %2470 = vmatpush.msra.mxu0 %v2321_v18  ;;  %2487 = vmatpush.msra.mxu1 %v2359_v24  ;;  %v2376_v18 = vunpack.c.h.bf16 %v4463_v48  ;;  %v2405_v24 = vunpack.c.l.bf16 %v4666_v2  ;;  %v2374_v12 = vunpack.c.h.bf16 %v4479_v56  ;;  %v2336_v48 = vunpack.c.h.bf16 %v4472_v14 }
 0x1c8   :  { %2229 = vmatmul.f32.vlgmr.msrb.gmra.mxu2 %v3826_v31  ;;  %2471 = vmatmul.f32.vlgmr.msra.gmra.mxu0 %v2253_v39  ;;  %v1930_v31 = vpop.f32.mrf.mxu3  ;;  %v2372_v61 = vunpack.c.h.bf16 %v4495_v0  ;;  %v2334_v56 = vunpack.c.h.bf16 %v4486_v28  ;;  %v2370_v14 = vunpack.c.h.bf16 %v4509_v10  ;;  %v2332_v0 = vunpack.c.h.bf16 %v4502_v41 }
 0x1c9   :  { %2246 = vmatpush.msrb.mxu3 %v1550_v55  ;;  %2535 = vmatpush.msrb.mxu0 %v2352_v50  ;;  %v4640_v4 = vadd.f32 %v1930_v31, %v1911_v25  ;;  %v4682_v55 = vld [vmem:[%s4909_s5 + $0x140] sm:$0xff]  ;;  %v4690_v50 = vld [vmem:[%s4909_s5 + $0x138] sm:$0xff]  ;;  %v2368_v28 = vunpack.c.h.bf16 %v4524_v49  ;;  %v2330_v10 = vunpack.c.h.bf16 %v4516_v19  ;;  %v2366_v41 = vunpack.c.h.bf16 %v4539_v40  ;;  %v4740_v31 = vld [vmem:[%s4909_s5 + $0x108] sm:$0xff] }
 0x1ca   :  { %2488 = vmatpush.msra.mxu1 %v2357_v52  ;;  %2495 = vmatpush.msra.mxu2 %v2415_v51  ;;  %v2401_v52 = vunpack.c.l.bf16 %v4682_v55  ;;  %v2397_v51 = vunpack.c.l.bf16 %v4698_v34  ;;  %v2328_v49 = vunpack.c.h.bf16 %v4531_v7  ;;  %v2364_v19 = vunpack.c.h.bf16 %v4554_v57 }
 0x1cb   :  { %2247 = vmatpush.msrb.mxu3 %v1546_v8  ;;  %2536 = vmatpush.msrb.mxu0 %v2350_v47  ;;  %v2254_v59 = vmax.f32 %v4640_v4, 0.0  ;;  %v2399_v8 = vunpack.c.l.bf16 %v4690_v50  ;;  %v4714_v47 = vld [vmem:[%s4909_s5 + $0x120] sm:$0xff]  ;;  %v2326_v40 = vunpack.c.h.bf16 %v4546_v32  ;;  %v2362_v7 = vunpack.c.h.bf16 %v4569_v16 }
 0x1cc   :  { %2489 = vmatpush.msra.mxu1 %v2355_v63  ;;  %2496 = vmatpush.msra.mxu2 %v2413_v45  ;;  %v2395_v63 = vunpack.c.l.bf16 %v4706_v43  ;;  %v2393_v25 = vunpack.c.l.bf16 %v4714_v47  ;;  %v4730_v45 = vld [vmem:[%s4909_s5 + $0x110] sm:$0xff]  ;;  %v2324_v57 = vunpack.c.h.bf16 %v4561_v33  ;;  %v2322_v16 = vunpack.c.h.bf16 %v4576_v27  ;;  %v4747_v33 = vld [vmem:[%s4909_s5 + $0x100] sm:$0xff] }
 0x1cd   :  { %2248 = vmatpush.msrb.mxu3 %v1542_v22  ;;  %2537 = vmatpush.msrb.mxu0 %v2348_v9  ;;  %v4722_v22 = vld [vmem:[%s4909_s5 + $0x118] sm:$0xff]  ;;  %v2389_v32 = vunpack.c.l.bf16 %v4730_v45  ;;  %v2354_v27 = vunpack.c.h.bf16 %v4622_v26  ;;  %v2402_v4 = vunpack.c.h.bf16 %v4682_v55 }
 0x1ce   :  { %2490 = vmatpush.msra.mxu1 %v2353_v15  ;;  %2249 = vmatmul.f32.vlgmr.msrb.gmra.mxu3 %v5262_v58  ;;  %v2407_v58 = vunpack.c.l.bf16 %v4655_v5  ;;  %v2391_v9 = vunpack.c.l.bf16 %v4722_v22  ;;  %v2360_v15 = vunpack.c.h.bf16 %v4584_v11  ;;  %v2387_v11 = vunpack.c.l.bf16 %v4740_v31 }
 0x1cf   :  { %2538 = vmatpush.msrb.mxu0 %v2346_v6  ;;  %2491 = vmatmul.f32.vlgmr.msra.gmra.mxu1 %v2254_v59  ;;  %v2356_v6 = vunpack.c.h.bf16 %v4608_v35  ;;  %v2412_v35 = vunpack.c.h.bf16 %v4637_v38  ;;  %v2404_v38 = vunpack.c.h.bf16 %v4674_v46 }
 0x1d0   :  { %2555 = vmatpush.msrb.mxu1 %v2384_v1  ;;  %2497 = vmatpush.msra.mxu2 %v2411_v21  ;;  %v2358_v1 = vunpack.c.h.bf16 %v4596_v17  ;;  %v2416_v17 = vunpack.c.h.bf16 %v4602_v36  ;;  %v2414_v21 = vunpack.c.h.bf16 %v4615_v23  ;;  %v2406_v36 = vunpack.c.h.bf16 %v4666_v2  ;;  %v4766_v23 = vld [vmem:[%s4909_s5 + $0x1f8] sm:$0xff] }
 0x1d1   :  { %2539 = vmatpush.msrb.mxu0 %v2344_v13  ;;  %v2447_v26 = vunpack.c.l.bf16 %v4766_v23  ;;  %v1950_v13 = vpop.f32.mrf.mxu0 }
 0x1d2   :  { %2556 = vmatpush.msrb.mxu1 %v2382_v29  ;;  %2498 = vmatpush.msra.mxu2 %v2409_v53  ;;  %v2385_v29 = vunpack.c.l.bf16 %v4747_v33  ;;  %v4782_v53 = vld [vmem:[%s4909_s5 + $0x1e8] sm:$0xff] }
 0x1d3   :  { %2540 = vmatpush.msrb.mxu0 %v2342_v42  ;;  %2515 = vmatpush.msra.mxu3 %v2447_v26  ;;  %v1970_v42 = vpop.f32.mrf.mxu1 }
 0x1d4   :  { %2557 = vmatpush.msrb.mxu1 %v2380_v30  ;;  %2499 = vmatpush.msra.mxu2 %v2407_v58  ;;  %v4777_v30 = vld [vmem:[%s4909_s5 + $0x1f0] sm:$0xff]  ;;  %v1951_v58 = vadd.f32 %v1950_v13, %v1607_v44 }
 0x1d5   :  { %2541 = vmatpush.msrb.mxu0 %v2340_v60  ;;  %v2445_v2 = vunpack.c.l.bf16 %v4777_v30  ;;  %v2396_v60 = vunpack.c.h.bf16 %v4706_v43  ;;  %v2386_v43 = vunpack.c.h.bf16 %v4747_v33 }
 0x1d6   :  { %2558 = vmatpush.msrb.mxu1 %v2378_v20  ;;  %2500 = vmatpush.msra.mxu2 %v2405_v24  ;;  %v2443_v20 = vunpack.c.l.bf16 %v4782_v53  ;;  %v2394_v24 = vunpack.c.h.bf16 %v4714_v47 }
 0x1d7   :  { %2542 = vmatpush.msrb.mxu0 %v2338_v54  ;;  %2516 = vmatpush.msra.mxu3 %v2445_v2 }
 0x1d8   :  { %2559 = vmatpush.msrb.mxu1 %v2376_v18  ;;  %2501 = vmatpush.msra.mxu2 %v2403_v3  ;;  %v1971_v18 = vadd.f32 %v1970_v42, %v1951_v58  ;;  %v1608_v58 = vperm.slane %v4396_v62, 3  ;;  %v2802_v62 = vld [vmem:[%s4911_s7 + $0x38] sm:$0xff]  }
 0x1d9   :  { %2543 = vmatpush.msrb.mxu0 %v2336_v48  ;;  %2517 = vmatpush.msra.mxu3 %v2443_v20  ;;  %v2390_v48 = vunpack.c.h.bf16 %v4730_v45 }
 0x1da   :  { %2560 = vmatpush.msrb.mxu1 %v2374_v12  ;;  %2502 = vmatpush.msra.mxu2 %v2401_v52  ;;  %v2392_v12 = vunpack.c.h.bf16 %v4722_v22  ;;  %v4803_v52 = vld [vmem:[%s4909_s5 + $0x1d0] sm:$0xff] }
 0x1db   :  { %2544 = vmatpush.msrb.mxu0 %v2334_v56  ;;  %v2388_v56 = vunpack.c.h.bf16 %v4740_v31  ;;  %v2309_v31 = vld [vmem:[%s4909_s5 + $0x1a0] sm:$0xff] }
 0x1dc   :  { %2561 = vmatpush.msrb.mxu1 %v2372_v61  ;;  %2503 = vmatpush.msra.mxu2 %v2399_v8  ;;  %v4798_v61 = vld [vmem:[%s4909_s5 + $0x1d8] sm:$0xff]  ;;  %v2030_v8 = vpop.f32.mrf.mxu0  ;;  %v2425_v33 = vunpack.c.l.bf16 %v2309_v31 }
 0x1dd   :  { %2545 = vmatpush.msrb.mxu0 %v2332_v0 }
 0x1de   :  { %2562 = vmatpush.msrb.mxu1 %v2370_v14  ;;  %2504 = vmatpush.msra.mxu2 %v2397_v51  ;;  %v2439_v14 = vunpack.c.l.bf16 %v4798_v61 }
 0x1df   :  { %2546 = vmatpush.msrb.mxu0 %v2330_v10 }
 0x1e0   :  { %2563 = vmatpush.msrb.mxu1 %v2368_v28  ;;  %2505 = vmatpush.msra.mxu2 %v2395_v63  ;;  %v1990_v46 = vpop.f32.mrf.mxu2  ;;  %v2437_v28 = vunpack.c.l.bf16 %v4803_v52  ;;  %v2313_v63 = vld [vmem:[%s4909_s5 + $0x1c0] sm:$0xff] }
 0x1e1   :  { %2547 = vmatpush.msrb.mxu0 %v2328_v49  ;;  %v1991_v55 = vadd.f32 %v1990_v46, %v1971_v18  ;;  %v2312_v49 = vld [vmem:[%s4909_s5 + $0x1b8] sm:$0xff] }
 0x1e2   :  { %2564 = vmatpush.msrb.mxu1 %v2366_v41  ;;  %2506 = vmatpush.msra.mxu2 %v2393_v25  ;;  %v2314_v41 = vld [vmem:[%s4909_s5 + $0x1c8] sm:$0xff]  ;;  %v2431_v45 = vunpack.c.l.bf16 %v2312_v49 }
 0x1e3   :  { %2548 = vmatpush.msrb.mxu0 %v2326_v40  ;;  %v2435_v22 = vunpack.c.l.bf16 %v2314_v41  ;;  %v2436_v44 = vunpack.c.h.bf16 %v2314_v41 }
 0x1e4   :  { %2565 = vmatpush.msrb.mxu1 %v2364_v19  ;;  %2507 = vmatpush.msra.mxu2 %v2391_v9  ;;  %v2433_v19 = vunpack.c.l.bf16 %v2313_v63 }
 0x1e5   :  { %2549 = vmatpush.msrb.mxu0 %v2324_v57  ;;  %v2311_v57 = vld [vmem:[%s4909_s5 + $0x1b0] sm:$0xff] }
 0x1e6   :  { %2566 = vmatpush.msrb.mxu1 %v2362_v7  ;;  %2508 = vmatpush.msra.mxu2 %v2389_v32  ;;  %v2310_v32 = vld [vmem:[%s4909_s5 + $0x1a8] sm:$0xff]  ;;  %v2430_v13 = vunpack.c.h.bf16 %v2311_v57 }
 0x1e7   :  { %2550 = vmatpush.msrb.mxu0 %v2322_v16  ;;  %v2050_v51 = vpop.f32.mrf.mxu1  ;;  %v2308_v16 = vld [vmem:[%s4909_s5 + $0x198] sm:$0xff] }
 0x1e8   :  { %2567 = vmatpush.msrb.mxu1 %v2360_v15  ;;  %2551 = vmatmul.f32.vlgmr.msrb.gmra.mxu0 %v2253_v39  ;;  %v2408_v39 = vunpack.c.h.bf16 %v4655_v5  ;;  %v2398_v5 = vunpack.c.h.bf16 %v4698_v34  ;;  %v2429_v15 = vunpack.c.l.bf16 %v2311_v57 }
 0x1e9   :  { %2509 = vmatpush.msra.mxu2 %v2387_v11  ;;  %v2307_v11 = vld [vmem:[%s4909_s5 + $0x190] sm:$0xff] }
 0x1ea   :  { %2568 = vmatpush.msrb.mxu1 %v2358_v1  ;;  %v2427_v1 = vunpack.c.l.bf16 %v2310_v32  ;;  %v2422_v42 = vunpack.c.h.bf16 %v2307_v11 }
 0x1eb   :  { %2510 = vmatpush.msra.mxu2 %v2385_v29  ;;  %v2306_v29 = vld [vmem:[%s4909_s5 + $0x188] sm:$0xff] }
 0x1ec   :  { %2569 = vmatpush.msrb.mxu1 %v2356_v6  ;;  %v2010_v54 = vpop.f32.mrf.mxu3  ;;  %v2423_v6 = vunpack.c.l.bf16 %v2308_v16  ;;  %v2420_v2 = vunpack.c.h.bf16 %v2306_v29 }
 0x1ed   :  { %2575 = vmatpush.msrb.mxu2 %v2416_v17  ;;  %v2011_v3 = vadd.f32 %v2010_v54, %v1991_v55  ;;  %v2305_v17 = vld [vmem:[%s4909_s5 + $0x180] sm:$0xff] }
 0x1ee   :  { %2570 = vmatpush.msrb.mxu1 %v2354_v27  ;;  %v2421_v27 = vunpack.c.l.bf16 %v2307_v11  ;;  %v2418_v20 = vunpack.c.h.bf16 %v2305_v17 }
 0x1ef   :  { %2571 = vmatmul.f32.vlgmr.msrb.gmra.mxu1 %v2254_v59  ;;  %2576 = vmatpush.msrb.mxu2 %v2414_v21  ;;  %v2400_v59 = vunpack.c.h.bf16 %v4690_v50  ;;  %v4793_v50 = vld [vmem:[%s4909_s5 + $0x1e0] sm:$0xff]  ;;  %v2031_v0 = vadd.f32 %v2030_v8, %v2011_v3  ;;  %v2419_v21 = vunpack.c.l.bf16 %v2306_v29 }
 0x1f0   :  { %v2441_v34 = vunpack.c.l.bf16 %v4793_v50  ;;  %v2442_v26 = vunpack.c.h.bf16 %v4793_v50 }
 0x1f1   :  { %2577 = vmatpush.msrb.mxu2 %v2412_v35  ;;  %v2051_v47 = vadd.f32 %v2050_v51, %v2031_v0  ;;  %v2417_v35 = vunpack.c.l.bf16 %v2305_v17  ;;  %v2762_v51 = vunpack.c.l.bf16 %v2802_v62  ;;  %v2797_v17 = vld [vmem:[%s4911_s7 + $0x10] sm:$0xff]  }
 0x1f2   :  { %2518 = vmatpush.msra.mxu3 %v2441_v34 }
 0x1f3   :  { %2578 = vmatpush.msrb.mxu2 %v2410_v37  ;;  %v2448_v37 = vunpack.c.h.bf16 %v4766_v23  ;;  %v2434_v23 = vunpack.c.h.bf16 %v2313_v63 }
 0x1f4   :  { %2519 = vmatpush.msra.mxu3 %v2439_v14 }
 0x1f5   :  { %2579 = vmatpush.msrb.mxu2 %v2408_v39  ;;  %v2446_v39 = vunpack.c.h.bf16 %v4777_v30  ;;  %v2426_v30 = vunpack.c.h.bf16 %v2309_v31 }
 0x1f6   :  { %2520 = vmatpush.msra.mxu3 %v2437_v28  ;;  %v2763_v28 = vunpack.c.h.bf16 %v2802_v62 }
 0x1f7   :  { %2580 = vmatpush.msrb.mxu2 %v2406_v36  ;;  %v2444_v36 = vunpack.c.h.bf16 %v4782_v53  ;;  %v2424_v53 = vunpack.c.h.bf16 %v2308_v16 }
 0x1f8   :  { %2521 = vmatpush.msra.mxu3 %v2435_v22  ;;  %2685 = vmatpush.msra.mxu0 %v2763_v28  ;;  %v2800_v22 = vld [vmem:[%s4911_s7 + $0x28] sm:$0xff]  }
 0x1f9   :  { %2581 = vmatpush.msrb.mxu2 %v2404_v38  ;;  %v2440_v38 = vunpack.c.h.bf16 %v4798_v61 }
 0x1fa   :  { %2522 = vmatpush.msra.mxu3 %v2433_v19  ;;  %2686 = vmatpush.msra.mxu0 %v2762_v51 }
 0x1fb   :  { %2582 = vmatpush.msrb.mxu2 %v2402_v4  ;;  %v2438_v4 = vunpack.c.h.bf16 %v4803_v52 }
 0x1fc   :  { %2523 = vmatpush.msra.mxu3 %v2431_v45 }
 0x1fd   :  { %2583 = vmatpush.msrb.mxu2 %v2400_v59  ;;  %v2432_v59 = vunpack.c.h.bf16 %v2312_v49 }
 0x1fe   :  { %2524 = vmatpush.msra.mxu3 %v2429_v15  ;;  %v2754_v15 = vunpack.c.l.bf16 %v2800_v22 }
 0x1ff   :  { %2584 = vmatpush.msrb.mxu2 %v2398_v5  ;;  %v2428_v5 = vunpack.c.h.bf16 %v2310_v32  ;;  %v2807_v32 = vld [vmem:[%s4911_s7 + $0x60] sm:$0xff]  }
 0x200   :  { %2525 = vmatpush.msra.mxu3 %v2427_v1  ;;  %v2798_v1 = vld [vmem:[%s4911_s7 + $0x18] sm:$0xff]   ;;  %v2782_v29 = vunpack.c.l.bf16 %v2807_v32 }
 0x201   :  { %2585 = vmatpush.msrb.mxu2 %v2396_v60  ;;  %v2110_v60 = vpop.f32.mrf.mxu0 }
 0x202   :  { %2526 = vmatpush.msra.mxu3 %v2425_v33  ;;  %v2111_v18 = vadd.f32 %v2110_v60, %v1608_v58  ;;  %v2783_v33 = vunpack.c.h.bf16 %v2807_v32 }
 0x203   :  { %2586 = vmatpush.msrb.mxu2 %v2394_v24 }
 0x204   :  { %2527 = vmatpush.msra.mxu3 %v2423_v6  ;;  %v2806_v6 = vld [vmem:[%s4911_s7 + $0x58] sm:$0xff]  }
 0x205   :  { %2587 = vmatpush.msrb.mxu2 %v2392_v12 }
 0x206   :  { %2528 = vmatpush.msra.mxu3 %v2421_v27  ;;  %v2747_v27 = vunpack.c.h.bf16 %v2798_v1 }
 0x207   :  { %2588 = vmatpush.msrb.mxu2 %v2390_v48  ;;  %v2070_v10 = vpop.f32.mrf.mxu2 }
 0x208   :  { %v2071_v25 = vadd.f32 %v2070_v10, %v2051_v47  ;;  %2529 = vmatpush.msra.mxu3 %v2419_v21  ;;  %v2130_v46 = vpop.f32.mrf.mxu1  ;;  %v2810_v10 = vld [vmem:[%s4911_s7 + $0x78] sm:$0xff]   ;;  %v2809_v47 = vld [vmem:[%s4911_s7 + $0x70] sm:$0xff]   ;;  %v2779_v21 = vunpack.c.h.bf16 %v2806_v6 }
 0x209   :  { %2589 = vmatpush.msrb.mxu2 %v2388_v56  ;;  %v2131_v54 = vadd.f32 %v2130_v46, %v2111_v18  ;;  %v2795_v41 = vunpack.c.h.bf16 %v2810_v10  ;;  %v2794_v63 = vunpack.c.l.bf16 %v2810_v10  ;;  %v2791_v19 = vunpack.c.h.bf16 %v2809_v47  ;;  %v2449_v46 = vld [vmem:[%s4910_s6] sm:$0x3] }
 0x20a   :  { %2530 = vmatpush.msra.mxu3 %v2417_v35  ;;  %v2790_v45 = vunpack.c.l.bf16 %v2809_v47  ;;  %v2746_v35 = vunpack.c.l.bf16 %v2798_v1  ;;  %v2451_v18 = vperm.slane %v2449_v46, 0  ;;  %v2814_v47 = vld [vmem:[%s4912_s8] ss:$0 sm:$0xff] }
 0x20b   :  { %2590 = vmatpush.msrb.mxu2 %v2386_v43  ;;  %v2801_v43 = vld [vmem:[%s4911_s7 + $0x30] sm:$0xff]   ;;  %2705 = vmatpush.msra.mxu1 %v2795_v41 }
 0x20c   :  { %2595 = vmatpush.msrb.mxu3 %v2448_v37  ;;  %v2759_v49 = vunpack.c.h.bf16 %v2801_v43  ;;  %v2743_v37 = vunpack.c.h.bf16 %v2797_v17 }
 0x20d   :  { %2706 = vmatpush.msra.mxu1 %v2794_v63 }
 0x20e   :  { %v2090_v40 = vpop.f32.mrf.mxu3  ;;  %2596 = vmatpush.msrb.mxu3 %v2446_v39  ;;  %2687 = vmatpush.msra.mxu0 %v2759_v49  ;;  %v2796_v39 = vld [vmem:[%s4911_s7 + $0x8] sm:$0xff]  }
 0x20f   :  { %v2091_v7 = vadd.f32 %v2090_v40, %v2071_v25  ;;  %v2758_v25 = vunpack.c.l.bf16 %v2801_v43  ;;  %v2808_v40 = vld [vmem:[%s4911_s7 + $0x68] sm:$0xff]   ;;  %2707 = vmatpush.msra.mxu1 %v2791_v19 }
 0x210   :  { %2597 = vmatpush.msrb.mxu3 %v2444_v36  ;;  %v2787_v57 = vunpack.c.h.bf16 %v2808_v40  ;;  %v2786_v31 = vunpack.c.l.bf16 %v2808_v40  ;;  %v2742_v36 = vunpack.c.l.bf16 %v2797_v17 }
 0x211   :  { %v2255_v9 = vmax.f32 %v2091_v7, 0.0  ;;  %v2755_v7 = vunpack.c.h.bf16 %v2800_v22  ;;  %2688 = vmatpush.msra.mxu0 %v2758_v25  ;;  %2708 = vmatpush.msra.mxu1 %v2790_v45 }
 0x212   :  { %2598 = vmatpush.msrb.mxu3 %v2442_v26  ;;  %v2739_v26 = vunpack.c.h.bf16 %v2796_v39 }
 0x213   :  { %2511 = vmatmul.f32.vlgmr.msra.gmra.mxu2 %v2255_v9  ;;  %2689 = vmatpush.msra.mxu0 %v2755_v7 }
 0x214   :  { %2599 = vmatpush.msrb.mxu3 %v2440_v38  ;;  %2709 = vmatpush.msra.mxu1 %v2787_v57  ;;  %v2738_v38 = vunpack.c.l.bf16 %v2796_v39 }
 0x215   :  { %2690 = vmatpush.msra.mxu0 %v2754_v15 }
 0x216   :  { %2600 = vmatpush.msrb.mxu3 %v2438_v4  ;;  %2710 = vmatpush.msra.mxu1 %v2786_v31  ;;  %v2778_v4 = vunpack.c.l.bf16 %v2806_v6 }
 0x218   :  { %2601 = vmatpush.msrb.mxu3 %v2436_v44  ;;  %2711 = vmatpush.msra.mxu1 %v2783_v33  ;;  %v2733_v44 = vld [vmem:[%s4911_s7] sm:$0xff]  }
 0x21a   :  { %2602 = vmatpush.msrb.mxu3 %v2434_v23  ;;  %2712 = vmatpush.msra.mxu1 %v2782_v29  ;;  %v2805_v23 = vld [vmem:[%s4911_s7 + $0x50] sm:$0xff]  }
 0x21b   :  { %2591 = vmatmul.f32.vlgmr.msrb.gmra.mxu2 %v2255_v9  ;;  %v2799_v9 = vld [vmem:[%s4911_s7 + $0x20] sm:$0xff]  }
 0x21c   :  { %2603 = vmatpush.msrb.mxu3 %v2432_v59  ;;  %v2751_v16 = vunpack.c.h.bf16 %v2799_v9  ;;  %v2750_v11 = vunpack.c.l.bf16 %v2799_v9  ;;  %2713 = vmatpush.msra.mxu1 %v2779_v21  ;;  %v2735_v59 = vunpack.c.h.bf16 %v2733_v44 }
 0x21e   :  { %2604 = vmatpush.msrb.mxu3 %v2430_v13  ;;  %2691 = vmatpush.msra.mxu0 %v2751_v16  ;;  %v2775_v13 = vunpack.c.h.bf16 %v2805_v23 }
 0x21f   :  { %2714 = vmatpush.msra.mxu1 %v2778_v4 }
 0x220   :  { %2605 = vmatpush.msrb.mxu3 %v2428_v5  ;;  %2692 = vmatpush.msra.mxu0 %v2750_v11  ;;  %v2734_v5 = vunpack.c.l.bf16 %v2733_v44 }
 0x221   :  { %2715 = vmatpush.msra.mxu1 %v2775_v13 }
 0x222   :  { %2606 = vmatpush.msrb.mxu3 %v2426_v30  ;;  %2693 = vmatpush.msra.mxu0 %v2747_v27  ;;  %v2774_v30 = vunpack.c.l.bf16 %v2805_v23 }
 0x223   :  { %v2190_v48 = vpop.f32.mrf.mxu0 }
 0x224   :  { %2607 = vmatpush.msrb.mxu3 %v2424_v53  ;;  %2694 = vmatpush.msra.mxu0 %v2746_v35  ;;  %v2804_v53 = vld [vmem:[%s4911_s7 + $0x48] sm:$0xff]  }
 0x225   :  { %2716 = vmatpush.msra.mxu1 %v2774_v30 }
 0x226   :  { %2608 = vmatpush.msrb.mxu3 %v2422_v42  ;;  %2695 = vmatpush.msra.mxu0 %v2743_v37  ;;  %v2771_v42 = vunpack.c.h.bf16 %v2804_v53 }
 0x228   :  { %2609 = vmatpush.msrb.mxu3 %v2420_v2  ;;  %2696 = vmatpush.msra.mxu0 %v2742_v36  ;;  %v2770_v2 = vunpack.c.l.bf16 %v2804_v53 }
 0x229   :  { %v2150_v24 = vpop.f32.mrf.mxu2  ;;  %2717 = vmatpush.msra.mxu1 %v2771_v42 }
 0x22a   :  { %2610 = vmatpush.msrb.mxu3 %v2418_v20  ;;  %v2151_v12 = vadd.f32 %v2150_v24, %v2131_v54  ;;  %v2210_v61 = vpop.f32.mrf.mxu1  ;;  %2697 = vmatpush.msra.mxu0 %v2739_v26  ;;  %v2803_v20 = vld [vmem:[%s4911_s7 + $0x40] sm:$0xff]  }
 0x22b   :  { %2718 = vmatpush.msra.mxu1 %v2770_v2  ;;  %v2767_v58 = vunpack.c.h.bf16 %v2803_v20  ;;  %v2766_v60 = vunpack.c.l.bf16 %v2803_v20 }
 0x22c   :  { %2698 = vmatpush.msra.mxu0 %v2738_v38 }
 0x22d   :  { %2719 = vmatpush.msra.mxu1 %v2767_v58 }
 0x22e   :  { %2699 = vmatpush.msra.mxu0 %v2735_v59 }
 0x22f   :  { %2720 = vmatpush.msra.mxu1 %v2766_v60 }
 0x230   :  { %v2170_v55 = vpop.f32.mrf.mxu3  ;;  %2700 = vmatpush.msra.mxu0 %v2734_v5 }
 0x231   :  { %v2171_v3 = vadd.f32 %v2170_v55, %v2151_v12 }
 0x233   :  { %v2191_v50 = vadd.f32 %v2190_v48, %v2171_v3  ;;  %v2452_v48 = vperm.slane %v2449_v46, 1 }
 0x235   :  { %v2211_v56 = vadd.f32 %v2210_v61, %v2191_v50 }
 0x245   :  { %v2472_v24 = vpop.f32.mrf.mxu0 }
 0x246   :  { %v2473_v12 = vadd.f32 %v2472_v24, %v2451_v18 }
 0x24b   :  { %v2230_v52 = vpop.f32.mrf.mxu2 }
 0x24c   :  { %v2231_v34 = vadd.f32 %v2230_v52, %v2211_v56  ;;  %v2492_v54 = vpop.f32.mrf.mxu1 }
 0x24d   :  { %v2493_v3 = vadd.f32 %v2492_v54, %v2473_v12 }
 0x251   :  { %v2250_v14 = vpop.f32.mrf.mxu3 }
 0x252   :  { %v2251_v8 = vadd.f32 %v2250_v14, %v2231_v34 }
 0x254   :  { %v2256_v0 = vmax.f32 %v2251_v8, 0.0 }
 0x256   :  { %2531 = vmatmul.f32.vlgmr.msra.gmra.mxu3 %v2256_v0 }
 0x25e   :  { %2611 = vmatmul.f32.vlgmr.msrb.gmra.mxu3 %v2256_v0 }
 0x265   :  { %v2552_v61 = vpop.f32.mrf.mxu0 }
 0x266   :  { %v2553_v14 = vadd.f32 %v2552_v61, %v2452_v48 }
 0x26c   :  { %v2572_v34 = vpop.f32.mrf.mxu1 }
 0x26d   :  { %v2573_v62 = vadd.f32 %v2572_v34, %v2553_v14 }
 0x296   :  { %v2512_v55 = vpop.f32.mrf.mxu2 }
 0x297   :  { %v2513_v50 = vadd.f32 %v2512_v55, %v2493_v3 }
 0x29e   :  { %v2592_v0 = vpop.f32.mrf.mxu2 }
 0x29f   :  { %v2593_v43 = vadd.f32 %v2592_v0, %v2573_v62 }
 0x2d9   :  { %v2532_v52 = vpop.f32.mrf.mxu3 }
 0x2da   :  { %v2533_v56 = vadd.f32 %v2532_v52, %v2513_v50 }
 0x2dc   :  { %v2615_v8 = vmax.f32 %v2533_v56, 0.0 }
 0x2de   :  { %2701 = vmatmul.f32.vlgmr.msra.gmra.mxu0 %v2615_v8 }
 0x2e1   :  { %v2612_v28 = vpop.f32.mrf.mxu3 }
 0x2e2   :  { %v2613_v51 = vadd.f32 %v2612_v28, %v2593_v43 }
 0x2e4   :  { %v2616_v10 = vmax.f32 %v2613_v51, 0.0 }
 0x2e6   :  { %2721 = vmatmul.f32.vlgmr.msra.gmra.mxu1 %v2616_v10 }
 0x35b   :  { %v2702_v41 = vpop.f32.mrf.mxu0 }
 0x35c   :  { %v2703_v63 = vadd.f32 %v2814_v47, %v2702_v41 }
 0x363   :  { %v2722_v49 = vpop.f32.mrf.mxu1 }
 0x364   :  { %v2723_v22 = vadd.f32 %v2722_v49, %v2703_v63 }
 0x366   :  { %2726 = vst.msk [vmem:[%s4913_s9] sm:$0xff] %vm2725_vm0, %v2723_v22 }
 0x367   :  { %2731 = vsyncpa [#allocation4], 1 }

</bundles_post_ra>
